<compile_context>
chip_gen: v7x
topology: tpu7x:2x2x1
jax: 0.10.0
libtpu: 0.0.40
codegen_flags: <defaults>
</compile_context>

<pallas_src>
import jax
import jax.numpy as jnp
import numpy as np
from jax.experimental import pallas as pl
from jax.experimental.pallas import tpu as pltpu  # noqa: F401


# ----------------------------- fused Pallas kernel ---------------------------

def make_fused_kernel(B, dims):
    """dims: tuple of (H_in, P) per conv layer (P = pooled output side)."""
    n_extra = len(dims) - 1
    P1 = dims[0][1] * dims[0][1]

    def kernel(*refs):
        i = 0
        patches1 = refs[i][...]; i += 1          # (B*4*P1, Cin1*9) layer-1 im2col
        w1c = refs[i][...]; i += 1               # (Cin1*9, 10)
        b1c = refs[i][...]; i += 1               # (1, 10)
        extra = []
        for _ in range(n_extra):
            sel_ref = refs[i]; i += 1            # (9*4*Pl, P_{l-1})  0/1 gather matrix
            wt_ref = refs[i]; i += 1             # (9, Cin, 10)       per-tap conv weights
            bl = refs[i][...]; i += 1            # (1, 10)
            extra.append((sel_ref, wt_ref, bl))
        w1rr_ref = refs[i]; i += 1               # (P_last, 10, Hdn)  fc1 weight blocks
        bfc1 = refs[i][...]; i += 1              # (1, Hdn)
        wfc2 = refs[i][...]; i += 1              # (Hdn, 10)
        bfc2 = refs[i][...]; i += 1              # (1, 10)
        o_ref = refs[i]                          # (B, 10)

        # conv layer 1: whole batch + all 4 pool offsets in ONE MXU matmul.
        y1 = jnp.dot(patches1, w1c, preferred_element_type=jnp.float32)  # (B*4*P1, 10)

        for b in range(B):                       # B is tiny -> static unroll, no grid
            base = b * 4 * P1
            a = y1[base:base + P1, :]
            for o in range(1, 4):                # maxpool == max over the 4 conv offsets
                a = jnp.maximum(a, y1[base + o * P1:base + (o + 1) * P1, :])
            a = jnp.maximum(a + b1c, 0.0)        # (P1, 10): pooled + bias + ReLU

            # conv layers 2..L: in-kernel im2col via constant selection matmul.
            for l, (sel_ref, wt_ref, bl) in enumerate(extra, start=1):
                Pl = dims[l][1] * dims[l][1]
                # gather rows: tap*4*Pl + offset*Pl + pooled_pos ; cols: channels
                g = jnp.dot(sel_ref[...], a, preferred_element_type=jnp.float32)  # (36*Pl, Cin)
                z = None
                for t in range(9):               # conv = sum over the 9 taps
                    blk = g[t * 4 * Pl:(t + 1) * 4 * Pl, :]
                    zt = jnp.dot(blk, wt_ref[t], preferred_element_type=jnp.float32)
                    z = zt if z is None else z + zt            # (4*Pl, 10)
                a = z[0:Pl, :]
                for o in range(1, 4):            # maxpool over the 4 offsets
                    a = jnp.maximum(a, z[o * Pl:(o + 1) * Pl, :])
                a = jnp.maximum(a + bl, 0.0)     # (Pl, 10)

            # fc1: NCHW flatten folded into per-position (10, Hdn) weight blocks.
            h = None
            for pq in range(a.shape[0]):
                hp = jnp.dot(a[pq:pq + 1, :], w1rr_ref[pq],
                             preferred_element_type=jnp.float32)          # (1, Hdn)
                h = hp if h is None else h + hp
            h = jnp.maximum(h + bfc1, 0.0)

            # fc2 + numerically-stable log_softmax
            logits = jnp.dot(h, wfc2, preferred_element_type=jnp.float32) + bfc2  # (1, 10)
            m = jnp.max(logits, axis=-1, keepdims=True)
            lse = m + jnp.log(jnp.sum(jnp.exp(logits - m), axis=-1, keepdims=True))
            o_ref[pl.ds(b, 1), :] = logits - lse

    return kernel


# ----------------------------- plan (weight repacking, runs once) ------------

def conv_dims(num_conv_layers, h0=28):
    dims, h = [], h0
    for _ in range(num_conv_layers):
        p = (h - 2) // 2
        dims.append((h, p))
        h = p
    return tuple(dims)


def _pool_conv_selection(h_in, p_out):
    """0/1 matrix implementing the (tap, pool-offset) gather for a 3x3 VALID conv
    followed by a 2x2/2 maxpool on an (h_in, h_in) row-major spatial input."""
    pl_sz = p_out * p_out
    sel = np.zeros((9 * 4 * pl_sz, h_in * h_in), np.float32)
    for kh in range(3):
        for kw in range(3):
            t = kh * 3 + kw
            for dh in range(2):
                for dw in range(2):
                    o = dh * 2 + dw
                    for p in range(p_out):
                        for q in range(p_out):
                            r = t * 4 * pl_sz + o * pl_sz + p * p_out + q
                            s = (2 * p + dh + kh) * h_in + (2 * q + dw + kw)
                            sel[r, s] = 1.0
    return jnp.asarray(sel)


def build_plan(params, num_conv_layers):
    dims = conv_dims(num_conv_layers)
    w0, b0 = params["conv"][0]
    cout = w0.shape[0]                                                   # 10
    arrays = {
        "w1c": jnp.transpose(w0, (1, 2, 3, 0)).reshape(w0.shape[1] * 9, cout),
        "b1c": b0.reshape(1, cout),
        "sel": [], "wtaps": [], "bl": [],
    }
    for l in range(1, num_conv_layers):
        h_in, p_out = dims[l]
        wl, bl = params["conv"][l]
        arrays["sel"].append(_pool_conv_selection(h_in, p_out))
        arrays["wtaps"].append(
            jnp.transpose(wl, (2, 3, 1, 0)).reshape(9, wl.shape[1], wl.shape[0]))
        arrays["bl"].append(bl.reshape(1, -1))
    p_last = dims[-1][1] ** 2
    hdn = params["fc1_w"].shape[1]
    arrays["w1rr"] = jnp.transpose(params["fc1_w"].reshape(cout, p_last, hdn), (1, 0, 2))
    arrays["bfc1"] = params["fc1_b"].reshape(1, -1)
    arrays["wfc2"] = params["fc2_w"]
    arrays["bfc2"] = params["fc2_b"].reshape(1, -1)
    return dims, arrays


# ----------------------------- forward (single fused launch) -----------------

def _extract_patches(x_nhwc, ph, pw):
    """Layer-1 im2col for a 3x3 VALID conv at the four 2x2-pool offsets.
    Returns (B, 4, ph*pw, Cin*9); column order = ci-major, then (kh, kw)."""
    b, _, _, cin = x_nhwc.shape
    offsets = []
    for dh in range(2):
        for dw in range(2):
            taps = []
            for kh in range(3):
                for kw in range(3):
                    r, c = dh + kh, dw + kw
                    taps.append(x_nhwc[:, r:r + 2 * ph:2, c:c + 2 * pw:2, :])
            t = jnp.stack(taps, axis=-1)                  # (B, ph, pw, Cin, 9)
            offsets.append(t.reshape(b, ph * pw, cin * 9))
    return jnp.stack(offsets, axis=1)                     # (B, 4, ph*pw, Cin*9)


def make_forward(dims):
    def forward(arrays, x_nchw):
        b = x_nchw.shape[0]
        x = jnp.transpose(x_nchw, (0, 2, 3, 1))           # NCHW -> NHWC (Cin = 1)
        p1 = dims[0][1]
        patches = _extract_patches(x, p1, p1).reshape(b * 4 * p1 * p1, -1)
        args = [patches, arrays["w1c"], arrays["b1c"]]
        for s, w, bias in zip(arrays["sel"], arrays["wtaps"], arrays["bl"]):
            args.extend([s, w, bias])
        args.extend([arrays["w1rr"], arrays["bfc1"], arrays["wfc2"], arrays["bfc2"]])
        return pl.pallas_call(
            make_fused_kernel(b, dims),
            out_shape=jax.ShapeDtypeStruct((b, 10), jnp.float32),
        )(*args)
    return forward


# ----------------------------- parameters -----------------------------------

def init_params(key, num_conv_layers, num_hidden_nodes):
    params = {"conv": []}
    in_ch, H = 1, 28
    for _ in range(num_conv_layers):
        key, kw, kb = jax.random.split(key, 3)
        bound = (in_ch * 9) ** -0.5
        w = jax.random.uniform(kw, (10, in_ch, 3, 3), jnp.float32, -bound, bound)
        b = jax.random.uniform(kb, (10,), jnp.float32, -bound, bound)
        params["conv"].append((w, b))
        in_ch = 10
        H = (H - 2) // 2
    fc_in = 10 * H * H
    key, k1, k2, k3, k4 = jax.random.split(key, 5)
    b1 = fc_in ** -0.5
    params["fc1_w"] = jax.random.uniform(k1, (fc_in, num_hidden_nodes), jnp.float32, -b1, b1)
    params["fc1_b"] = jax.random.uniform(k2, (num_hidden_nodes,), jnp.float32, -b1, b1)
    b2 = num_hidden_nodes ** -0.5
    params["fc2_w"] = jax.random.uniform(k3, (num_hidden_nodes, 10), jnp.float32, -b2, b2)
    params["fc2_b"] = jax.random.uniform(k4, (10,), jnp.float32, -b2, b2)
    return params


# ----------------------------- pure-JAX reference ----------------------------

def reference_forward(params, x_nchw):
    hi = jax.lax.Precision.HIGHEST
    x = jnp.transpose(x_nchw, (0, 2, 3, 1))
    for (w, b) in params["conv"]:
        w_hwio = jnp.transpose(w, (2, 3, 1, 0))
        y = jax.lax.conv_general_dilated(x, w_hwio, (1, 1), "VALID",
                                         dimension_numbers=("NHWC", "HWIO", "NHWC"),
                                         precision=hi)
        y = y + b.reshape(1, 1, 1, -1)
        y = jax.lax.reduce_window(y, -jnp.inf, jax.lax.max, (1, 2, 2, 1), (1, 2, 2, 1), "VALID")
        x = jnp.maximum(y, 0.0)
    bsz = x.shape[0]
    xf = jnp.transpose(x, (0, 3, 1, 2)).reshape(bsz, -1)
    h = jnp.maximum(jnp.dot(xf, params["fc1_w"], precision=hi) + params["fc1_b"], 0.0)
    logits = jnp.dot(h, params["fc2_w"], precision=hi) + params["fc2_b"]
    return jax.nn.log_softmax(logits, axis=1)


# ----------------------------- main ------------------------------------------

if __name__ == "__main__":
    num_conv_layers, num_hidden_nodes = 2, 32
    key = jax.random.PRNGKey(0)
    key, kx = jax.random.split(key)
    x = jax.random.normal(kx, (2, 1, 28, 28), jnp.float32)   # MNIST-like input implied by module

    params = init_params(key, num_conv_layers, num_hidden_nodes)
    dims, arrays = build_plan(params, num_conv_layers)
    fwd = jax.jit(make_forward(dims))

    out = jax.block_until_ready(fwd(arrays, x))
    ref = jax.block_until_ready(reference_forward(params, x))

    assert out.shape == (2, 10) and out.dtype == jnp.float32
    if not np.allclose(np.asarray(out), np.asarray(ref), atol=5e-4, rtol=5e-4):
        raise RuntimeError("Pallas output does not match JAX reference")
    print("KERNEL_OK")
</pallas_src>

<mosaic_0001>
module attributes {stable_mosaic.version = 11 : i64} {
  func.func @kernel(%arg0: memref<1352x9xf32, #tpu.memory_space<vmem>>, %arg1: memref<9x10xf32, #tpu.memory_space<vmem>>, %arg2: memref<1x10xf32, #tpu.memory_space<vmem>>, %arg3: memref<900x169xf32, #tpu.memory_space<vmem>>, %arg4: memref<9x10x10xf32, #tpu.memory_space<vmem>>, %arg5: memref<1x10xf32, #tpu.memory_space<vmem>>, %arg6: memref<25x10x32xf32, #tpu.memory_space<vmem>>, %arg7: memref<1x32xf32, #tpu.memory_space<vmem>>, %arg8: memref<32x10xf32, #tpu.memory_space<vmem>>, %arg9: memref<1x10xf32, #tpu.memory_space<vmem>>, %arg10: memref<2x10xf32, #tpu.memory_space<vmem>>) attributes {dimension_semantics = [], scalar_prefetch = 0 : i64, scratch_operands = 0 : i64, tpu.core_type = #tpu.core_type<tc>} {
    %c0 = arith.constant 0 : index
    %c0_0 = arith.constant 0 : index
    %0 = vector.load %arg0[%c0, %c0_0] : memref<1352x9xf32, #tpu.memory_space<vmem>>, vector<1352x9xf32>
    %c0_1 = arith.constant 0 : index
    %c0_2 = arith.constant 0 : index
    %1 = vector.load %arg1[%c0_1, %c0_2] : memref<9x10xf32, #tpu.memory_space<vmem>>, vector<9x10xf32>
    %c0_3 = arith.constant 0 : index
    %c0_4 = arith.constant 0 : index
    %2 = vector.load %arg2[%c0_3, %c0_4] : memref<1x10xf32, #tpu.memory_space<vmem>>, vector<1x10xf32>
    %c0_5 = arith.constant 0 : index
    %c0_6 = arith.constant 0 : index
    %3 = vector.load %arg5[%c0_5, %c0_6] : memref<1x10xf32, #tpu.memory_space<vmem>>, vector<1x10xf32>
    %c0_7 = arith.constant 0 : index
    %c0_8 = arith.constant 0 : index
    %4 = vector.load %arg7[%c0_7, %c0_8] : memref<1x32xf32, #tpu.memory_space<vmem>>, vector<1x32xf32>
    %c0_9 = arith.constant 0 : index
    %c0_10 = arith.constant 0 : index
    %5 = vector.load %arg8[%c0_9, %c0_10] : memref<32x10xf32, #tpu.memory_space<vmem>>, vector<32x10xf32>
    %c0_11 = arith.constant 0 : index
    %c0_12 = arith.constant 0 : index
    %6 = vector.load %arg9[%c0_11, %c0_12] : memref<1x10xf32, #tpu.memory_space<vmem>>, vector<1x10xf32>
    %cst = arith.constant dense<0.000000e+00> : vector<1352x10xf32>
    %7 = tpu.matmul %0, %1, %cst {dimension_numbers = #tpu.dot_dimension_numbers<[1], [0], [0], [1], [0, 0, 1, 1], [], []>} : vector<1352x9xf32>, vector<9x10xf32>, vector<1352x10xf32> -> vector<1352x10xf32>
    %8 = vector.extract_strided_slice %7 {offsets = [0, 0], sizes = [169, 10], strides = [1, 1]} : vector<1352x10xf32> to vector<169x10xf32>
    %9 = vector.extract_strided_slice %7 {offsets = [169, 0], sizes = [169, 10], strides = [1, 1]} : vector<1352x10xf32> to vector<169x10xf32>
    %10 = arith.maximumf %8, %9 : vector<169x10xf32>
    %11 = vector.extract_strided_slice %7 {offsets = [338, 0], sizes = [169, 10], strides = [1, 1]} : vector<1352x10xf32> to vector<169x10xf32>
    %12 = arith.maximumf %10, %11 : vector<169x10xf32>
    %13 = vector.extract_strided_slice %7 {offsets = [507, 0], sizes = [169, 10], strides = [1, 1]} : vector<1352x10xf32> to vector<169x10xf32>
    %14 = arith.maximumf %12, %13 : vector<169x10xf32>
    %15 = vector.broadcast %2 : vector<1x10xf32> to vector<169x10xf32>
    %16 = arith.addf %14, %15 : vector<169x10xf32>
    %cst_13 = arith.constant 0.000000e+00 : f32
    %17 = vector.broadcast %cst_13 : f32 to vector<169x10xf32>
    %18 = arith.maximumf %16, %17 : vector<169x10xf32>
    %c0_14 = arith.constant 0 : index
    %c0_15 = arith.constant 0 : index
    %19 = vector.load %arg3[%c0_14, %c0_15] : memref<900x169xf32, #tpu.memory_space<vmem>>, vector<900x169xf32>
    %cst_16 = arith.constant dense<0.000000e+00> : vector<900x10xf32>
    %20 = tpu.matmul %19, %18, %cst_16 {dimension_numbers = #tpu.dot_dimension_numbers<[1], [0], [0], [1], [0, 0, 1, 1], [], []>} : vector<900x169xf32>, vector<169x10xf32>, vector<900x10xf32> -> vector<900x10xf32>
    %21 = vector.extract_strided_slice %20 {offsets = [0, 0], sizes = [100, 10], strides = [1, 1]} : vector<900x10xf32> to vector<100x10xf32>
    %c0_17 = arith.constant 0 : index
    %c0_18 = arith.constant 0 : index
    %c0_19 = arith.constant 0 : index
    %22 = vector.load %arg4[%c0_17, %c0_18, %c0_19] : memref<9x10x10xf32, #tpu.memory_space<vmem>>, vector<1x10x10xf32>
    %23 = vector.shape_cast %22 : vector<1x10x10xf32> to vector<10x10xf32>
    %cst_20 = arith.constant dense<0.000000e+00> : vector<100x10xf32>
    %24 = tpu.matmul %21, %23, %cst_20 {dimension_numbers = #tpu.dot_dimension_numbers<[1], [0], [0], [1], [0, 0, 1, 1], [], []>} : vector<100x10xf32>, vector<10x10xf32>, vector<100x10xf32> -> vector<100x10xf32>
    %25 = vector.extract_strided_slice %20 {offsets = [100, 0], sizes = [100, 10], strides = [1, 1]} : vector<900x10xf32> to vector<100x10xf32>
    %c1 = arith.constant 1 : index
    %c0_21 = arith.constant 0 : index
    %c0_22 = arith.constant 0 : index
    %26 = vector.load %arg4[%c1, %c0_21, %c0_22] : memref<9x10x10xf32, #tpu.memory_space<vmem>>, vector<1x10x10xf32>
    %27 = vector.shape_cast %26 : vector<1x10x10xf32> to vector<10x10xf32>
    %cst_23 = arith.constant dense<0.000000e+00> : vector<100x10xf32>
    %28 = tpu.matmul %25, %27, %cst_23 {dimension_numbers = #tpu.dot_dimension_numbers<[1], [0], [0], [1], [0, 0, 1, 1], [], []>} : vector<100x10xf32>, vector<10x10xf32>, vector<100x10xf32> -> vector<100x10xf32>
    %29 = arith.addf %24, %28 : vector<100x10xf32>
    %30 = vector.extract_strided_slice %20 {offsets = [200, 0], sizes = [100, 10], strides = [1, 1]} : vector<900x10xf32> to vector<100x10xf32>
    %c2 = arith.constant 2 : index
    %c0_24 = arith.constant 0 : index
    %c0_25 = arith.constant 0 : index
    %31 = vector.load %arg4[%c2, %c0_24, %c0_25] : memref<9x10x10xf32, #tpu.memory_space<vmem>>, vector<1x10x10xf32>
    %32 = vector.shape_cast %31 : vector<1x10x10xf32> to vector<10x10xf32>
    %cst_26 = arith.constant dense<0.000000e+00> : vector<100x10xf32>
    %33 = tpu.matmul %30, %32, %cst_26 {dimension_numbers = #tpu.dot_dimension_numbers<[1], [0], [0], [1], [0, 0, 1, 1], [], []>} : vector<100x10xf32>, vector<10x10xf32>, vector<100x10xf32> -> vector<100x10xf32>
    %34 = arith.addf %29, %33 : vector<100x10xf32>
    %35 = vector.extract_strided_slice %20 {offsets = [300, 0], sizes = [100, 10], strides = [1, 1]} : vector<900x10xf32> to vector<100x10xf32>
    %c3 = arith.constant 3 : index
    %c0_27 = arith.constant 0 : index
    %c0_28 = arith.constant 0 : index
    %36 = vector.load %arg4[%c3, %c0_27, %c0_28] : memref<9x10x10xf32, #tpu.memory_space<vmem>>, vector<1x10x10xf32>
    %37 = vector.shape_cast %36 : vector<1x10x10xf32> to vector<10x10xf32>
    %cst_29 = arith.constant dense<0.000000e+00> : vector<100x10xf32>
    %38 = tpu.matmul %35, %37, %cst_29 {dimension_numbers = #tpu.dot_dimension_numbers<[1], [0], [0], [1], [0, 0, 1, 1], [], []>} : vector<100x10xf32>, vector<10x10xf32>, vector<100x10xf32> -> vector<100x10xf32>
    %39 = arith.addf %34, %38 : vector<100x10xf32>
    %40 = vector.extract_strided_slice %20 {offsets = [400, 0], sizes = [100, 10], strides = [1, 1]} : vector<900x10xf32> to vector<100x10xf32>
    %c4 = arith.constant 4 : index
    %c0_30 = arith.constant 0 : index
    %c0_31 = arith.constant 0 : index
    %41 = vector.load %arg4[%c4, %c0_30, %c0_31] : memref<9x10x10xf32, #tpu.memory_space<vmem>>, vector<1x10x10xf32>
    %42 = vector.shape_cast %41 : vector<1x10x10xf32> to vector<10x10xf32>
    %cst_32 = arith.constant dense<0.000000e+00> : vector<100x10xf32>
    %43 = tpu.matmul %40, %42, %cst_32 {dimension_numbers = #tpu.dot_dimension_numbers<[1], [0], [0], [1], [0, 0, 1, 1], [], []>} : vector<100x10xf32>, vector<10x10xf32>, vector<100x10xf32> -> vector<100x10xf32>
    %44 = arith.addf %39, %43 : vector<100x10xf32>
    %45 = vector.extract_strided_slice %20 {offsets = [500, 0], sizes = [100, 10], strides = [1, 1]} : vector<900x10xf32> to vector<100x10xf32>
    %c5 = arith.constant 5 : index
    %c0_33 = arith.constant 0 : index
    %c0_34 = arith.constant 0 : index
    %46 = vector.load %arg4[%c5, %c0_33, %c0_34] : memref<9x10x10xf32, #tpu.memory_space<vmem>>, vector<1x10x10xf32>
    %47 = vector.shape_cast %46 : vector<1x10x10xf32> to vector<10x10xf32>
    %cst_35 = arith.constant dense<0.000000e+00> : vector<100x10xf32>
    %48 = tpu.matmul %45, %47, %cst_35 {dimension_numbers = #tpu.dot_dimension_numbers<[1], [0], [0], [1], [0, 0, 1, 1], [], []>} : vector<100x10xf32>, vector<10x10xf32>, vector<100x10xf32> -> vector<100x10xf32>
    %49 = arith.addf %44, %48 : vector<100x10xf32>
    %50 = vector.extract_strided_slice %20 {offsets = [600, 0], sizes = [100, 10], strides = [1, 1]} : vector<900x10xf32> to vector<100x10xf32>
    %c6 = arith.constant 6 : index
    %c0_36 = arith.constant 0 : index
    %c0_37 = arith.constant 0 : index
    %51 = vector.load %arg4[%c6, %c0_36, %c0_37] : memref<9x10x10xf32, #tpu.memory_space<vmem>>, vector<1x10x10xf32>
    %52 = vector.shape_cast %51 : vector<1x10x10xf32> to vector<10x10xf32>
    %cst_38 = arith.constant dense<0.000000e+00> : vector<100x10xf32>
    %53 = tpu.matmul %50, %52, %cst_38 {dimension_numbers = #tpu.dot_dimension_numbers<[1], [0], [0], [1], [0, 0, 1, 1], [], []>} : vector<100x10xf32>, vector<10x10xf32>, vector<100x10xf32> -> vector<100x10xf32>
    %54 = arith.addf %49, %53 : vector<100x10xf32>
    %55 = vector.extract_strided_slice %20 {offsets = [700, 0], sizes = [100, 10], strides = [1, 1]} : vector<900x10xf32> to vector<100x10xf32>
    %c7 = arith.constant 7 : index
    %c0_39 = arith.constant 0 : index
    %c0_40 = arith.constant 0 : index
    %56 = vector.load %arg4[%c7, %c0_39, %c0_40] : memref<9x10x10xf32, #tpu.memory_space<vmem>>, vector<1x10x10xf32>
    %57 = vector.shape_cast %56 : vector<1x10x10xf32> to vector<10x10xf32>
    %cst_41 = arith.constant dense<0.000000e+00> : vector<100x10xf32>
    %58 = tpu.matmul %55, %57, %cst_41 {dimension_numbers = #tpu.dot_dimension_numbers<[1], [0], [0], [1], [0, 0, 1, 1], [], []>} : vector<100x10xf32>, vector<10x10xf32>, vector<100x10xf32> -> vector<100x10xf32>
    %59 = arith.addf %54, %58 : vector<100x10xf32>
    %60 = vector.extract_strided_slice %20 {offsets = [800, 0], sizes = [100, 10], strides = [1, 1]} : vector<900x10xf32> to vector<100x10xf32>
    %c8 = arith.constant 8 : index
    %c0_42 = arith.constant 0 : index
    %c0_43 = arith.constant 0 : index
    %61 = vector.load %arg4[%c8, %c0_42, %c0_43] : memref<9x10x10xf32, #tpu.memory_space<vmem>>, vector<1x10x10xf32>
    %62 = vector.shape_cast %61 : vector<1x10x10xf32> to vector<10x10xf32>
    %cst_44 = arith.constant dense<0.000000e+00> : vector<100x10xf32>
    %63 = tpu.matmul %60, %62, %cst_44 {dimension_numbers = #tpu.dot_dimension_numbers<[1], [0], [0], [1], [0, 0, 1, 1], [], []>} : vector<100x10xf32>, vector<10x10xf32>, vector<100x10xf32> -> vector<100x10xf32>
    %64 = arith.addf %59, %63 : vector<100x10xf32>
    %65 = vector.extract_strided_slice %64 {offsets = [0, 0], sizes = [25, 10], strides = [1, 1]} : vector<100x10xf32> to vector<25x10xf32>
    %66 = vector.extract_strided_slice %64 {offsets = [25, 0], sizes = [25, 10], strides = [1, 1]} : vector<100x10xf32> to vector<25x10xf32>
    %67 = arith.maximumf %65, %66 : vector<25x10xf32>
    %68 = vector.extract_strided_slice %64 {offsets = [50, 0], sizes = [25, 10], strides = [1, 1]} : vector<100x10xf32> to vector<25x10xf32>
    %69 = arith.maximumf %67, %68 : vector<25x10xf32>
    %70 = vector.extract_strided_slice %64 {offsets = [75, 0], sizes = [25, 10], strides = [1, 1]} : vector<100x10xf32> to vector<25x10xf32>
    %71 = arith.maximumf %69, %70 : vector<25x10xf32>
    %72 = vector.broadcast %3 : vector<1x10xf32> to vector<25x10xf32>
    %73 = arith.addf %71, %72 : vector<25x10xf32>
    %cst_45 = arith.constant 0.000000e+00 : f32
    %74 = vector.broadcast %cst_45 : f32 to vector<25x10xf32>
    %75 = arith.maximumf %73, %74 : vector<25x10xf32>
    %76 = vector.extract_strided_slice %75 {offsets = [0, 0], sizes = [1, 10], strides = [1, 1]} : vector<25x10xf32> to vector<1x10xf32>
    %c0_46 = arith.constant 0 : index
    %c0_47 = arith.constant 0 : index
    %c0_48 = arith.constant 0 : index
    %77 = vector.load %arg6[%c0_46, %c0_47, %c0_48] : memref<25x10x32xf32, #tpu.memory_space<vmem>>, vector<1x10x32xf32>
    %78 = vector.shape_cast %77 : vector<1x10x32xf32> to vector<10x32xf32>
    %cst_49 = arith.constant dense<0.000000e+00> : vector<1x32xf32>
    %79 = tpu.matmul %76, %78, %cst_49 {dimension_numbers = #tpu.dot_dimension_numbers<[1], [0], [0], [1], [0, 0, 1, 1], [], []>} : vector<1x10xf32>, vector<10x32xf32>, vector<1x32xf32> -> vector<1x32xf32>
    %80 = vector.extract_strided_slice %75 {offsets = [1, 0], sizes = [1, 10], strides = [1, 1]} : vector<25x10xf32> to vector<1x10xf32>
    %c1_50 = arith.constant 1 : index
    %c0_51 = arith.constant 0 : index
    %c0_52 = arith.constant 0 : index
    %81 = vector.load %arg6[%c1_50, %c0_51, %c0_52] : memref<25x10x32xf32, #tpu.memory_space<vmem>>, vector<1x10x32xf32>
    %82 = vector.shape_cast %81 : vector<1x10x32xf32> to vector<10x32xf32>
    %cst_53 = arith.constant dense<0.000000e+00> : vector<1x32xf32>
    %83 = tpu.matmul %80, %82, %cst_53 {dimension_numbers = #tpu.dot_dimension_numbers<[1], [0], [0], [1], [0, 0, 1, 1], [], []>} : vector<1x10xf32>, vector<10x32xf32>, vector<1x32xf32> -> vector<1x32xf32>
    %84 = arith.addf %79, %83 : vector<1x32xf32>
    %85 = vector.extract_strided_slice %75 {offsets = [2, 0], sizes = [1, 10], strides = [1, 1]} : vector<25x10xf32> to vector<1x10xf32>
    %c2_54 = arith.constant 2 : index
    %c0_55 = arith.constant 0 : index
    %c0_56 = arith.constant 0 : index
    %86 = vector.load %arg6[%c2_54, %c0_55, %c0_56] : memref<25x10x32xf32, #tpu.memory_space<vmem>>, vector<1x10x32xf32>
    %87 = vector.shape_cast %86 : vector<1x10x32xf32> to vector<10x32xf32>
    %cst_57 = arith.constant dense<0.000000e+00> : vector<1x32xf32>
    %88 = tpu.matmul %85, %87, %cst_57 {dimension_numbers = #tpu.dot_dimension_numbers<[1], [0], [0], [1], [0, 0, 1, 1], [], []>} : vector<1x10xf32>, vector<10x32xf32>, vector<1x32xf32> -> vector<1x32xf32>
    %89 = arith.addf %84, %88 : vector<1x32xf32>
    %90 = vector.extract_strided_slice %75 {offsets = [3, 0], sizes = [1, 10], strides = [1, 1]} : vector<25x10xf32> to vector<1x10xf32>
    %c3_58 = arith.constant 3 : index
    %c0_59 = arith.constant 0 : index
    %c0_60 = arith.constant 0 : index
    %91 = vector.load %arg6[%c3_58, %c0_59, %c0_60] : memref<25x10x32xf32, #tpu.memory_space<vmem>>, vector<1x10x32xf32>
    %92 = vector.shape_cast %91 : vector<1x10x32xf32> to vector<10x32xf32>
    %cst_61 = arith.constant dense<0.000000e+00> : vector<1x32xf32>
    %93 = tpu.matmul %90, %92, %cst_61 {dimension_numbers = #tpu.dot_dimension_numbers<[1], [0], [0], [1], [0, 0, 1, 1], [], []>} : vector<1x10xf32>, vector<10x32xf32>, vector<1x32xf32> -> vector<1x32xf32>
    %94 = arith.addf %89, %93 : vector<1x32xf32>
    %95 = vector.extract_strided_slice %75 {offsets = [4, 0], sizes = [1, 10], strides = [1, 1]} : vector<25x10xf32> to vector<1x10xf32>
    %c4_62 = arith.constant 4 : index
    %c0_63 = arith.constant 0 : index
    %c0_64 = arith.constant 0 : index
    %96 = vector.load %arg6[%c4_62, %c0_63, %c0_64] : memref<25x10x32xf32, #tpu.memory_space<vmem>>, vector<1x10x32xf32>
    %97 = vector.shape_cast %96 : vector<1x10x32xf32> to vector<10x32xf32>
    %cst_65 = arith.constant dense<0.000000e+00> : vector<1x32xf32>
    %98 = tpu.matmul %95, %97, %cst_65 {dimension_numbers = #tpu.dot_dimension_numbers<[1], [0], [0], [1], [0, 0, 1, 1], [], []>} : vector<1x10xf32>, vector<10x32xf32>, vector<1x32xf32> -> vector<1x32xf32>
    %99 = arith.addf %94, %98 : vector<1x32xf32>
    %100 = vector.extract_strided_slice %75 {offsets = [5, 0], sizes = [1, 10], strides = [1, 1]} : vector<25x10xf32> to vector<1x10xf32>
    %c5_66 = arith.constant 5 : index
    %c0_67 = arith.constant 0 : index
    %c0_68 = arith.constant 0 : index
    %101 = vector.load %arg6[%c5_66, %c0_67, %c0_68] : memref<25x10x32xf32, #tpu.memory_space<vmem>>, vector<1x10x32xf32>
    %102 = vector.shape_cast %101 : vector<1x10x32xf32> to vector<10x32xf32>
    %cst_69 = arith.constant dense<0.000000e+00> : vector<1x32xf32>
    %103 = tpu.matmul %100, %102, %cst_69 {dimension_numbers = #tpu.dot_dimension_numbers<[1], [0], [0], [1], [0, 0, 1, 1], [], []>} : vector<1x10xf32>, vector<10x32xf32>, vector<1x32xf32> -> vector<1x32xf32>
    %104 = arith.addf %99, %103 : vector<1x32xf32>
    %105 = vector.extract_strided_slice %75 {offsets = [6, 0], sizes = [1, 10], strides = [1, 1]} : vector<25x10xf32> to vector<1x10xf32>
    %c6_70 = arith.constant 6 : index
    %c0_71 = arith.constant 0 : index
    %c0_72 = arith.constant 0 : index
    %106 = vector.load %arg6[%c6_70, %c0_71, %c0_72] : memref<25x10x32xf32, #tpu.memory_space<vmem>>, vector<1x10x32xf32>
    %107 = vector.shape_cast %106 : vector<1x10x32xf32> to vector<10x32xf32>
    %cst_73 = arith.constant dense<0.000000e+00> : vector<1x32xf32>
    %108 = tpu.matmul %105, %107, %cst_73 {dimension_numbers = #tpu.dot_dimension_numbers<[1], [0], [0], [1], [0, 0, 1, 1], [], []>} : vector<1x10xf32>, vector<10x32xf32>, vector<1x32xf32> -> vector<1x32xf32>
    %109 = arith.addf %104, %108 : vector<1x32xf32>
    %110 = vector.extract_strided_slice %75 {offsets = [7, 0], sizes = [1, 10], strides = [1, 1]} : vector<25x10xf32> to vector<1x10xf32>
    %c7_74 = arith.constant 7 : index
    %c0_75 = arith.constant 0 : index
    %c0_76 = arith.constant 0 : index
    %111 = vector.load %arg6[%c7_74, %c0_75, %c0_76] : memref<25x10x32xf32, #tpu.memory_space<vmem>>, vector<1x10x32xf32>
    %112 = vector.shape_cast %111 : vector<1x10x32xf32> to vector<10x32xf32>
    %cst_77 = arith.constant dense<0.000000e+00> : vector<1x32xf32>
    %113 = tpu.matmul %110, %112, %cst_77 {dimension_numbers = #tpu.dot_dimension_numbers<[1], [0], [0], [1], [0, 0, 1, 1], [], []>} : vector<1x10xf32>, vector<10x32xf32>, vector<1x32xf32> -> vector<1x32xf32>
    %114 = arith.addf %109, %113 : vector<1x32xf32>
    %115 = vector.extract_strided_slice %75 {offsets = [8, 0], sizes = [1, 10], strides = [1, 1]} : vector<25x10xf32> to vector<1x10xf32>
    %c8_78 = arith.constant 8 : index
    %c0_79 = arith.constant 0 : index
    %c0_80 = arith.constant 0 : index
    %116 = vector.load %arg6[%c8_78, %c0_79, %c0_80] : memref<25x10x32xf32, #tpu.memory_space<vmem>>, vector<1x10x32xf32>
    %117 = vector.shape_cast %116 : vector<1x10x32xf32> to vector<10x32xf32>
    %cst_81 = arith.constant dense<0.000000e+00> : vector<1x32xf32>
    %118 = tpu.matmul %115, %117, %cst_81 {dimension_numbers = #tpu.dot_dimension_numbers<[1], [0], [0], [1], [0, 0, 1, 1], [], []>} : vector<1x10xf32>, vector<10x32xf32>, vector<1x32xf32> -> vector<1x32xf32>
    %119 = arith.addf %114, %118 : vector<1x32xf32>
    %120 = vector.extract_strided_slice %75 {offsets = [9, 0], sizes = [1, 10], strides = [1, 1]} : vector<25x10xf32> to vector<1x10xf32>
    %c9 = arith.constant 9 : index
    %c0_82 = arith.constant 0 : index
    %c0_83 = arith.constant 0 : index
    %121 = vector.load %arg6[%c9, %c0_82, %c0_83] : memref<25x10x32xf32, #tpu.memory_space<vmem>>, vector<1x10x32xf32>
    %122 = vector.shape_cast %121 : vector<1x10x32xf32> to vector<10x32xf32>
    %cst_84 = arith.constant dense<0.000000e+00> : vector<1x32xf32>
    %123 = tpu.matmul %120, %122, %cst_84 {dimension_numbers = #tpu.dot_dimension_numbers<[1], [0], [0], [1], [0, 0, 1, 1], [], []>} : vector<1x10xf32>, vector<10x32xf32>, vector<1x32xf32> -> vector<1x32xf32>
    %124 = arith.addf %119, %123 : vector<1x32xf32>
    %125 = vector.extract_strided_slice %75 {offsets = [10, 0], sizes = [1, 10], strides = [1, 1]} : vector<25x10xf32> to vector<1x10xf32>
    %c10 = arith.constant 10 : index
    %c0_85 = arith.constant 0 : index
    %c0_86 = arith.constant 0 : index
    %126 = vector.load %arg6[%c10, %c0_85, %c0_86] : memref<25x10x32xf32, #tpu.memory_space<vmem>>, vector<1x10x32xf32>
    %127 = vector.shape_cast %126 : vector<1x10x32xf32> to vector<10x32xf32>
    %cst_87 = arith.constant dense<0.000000e+00> : vector<1x32xf32>
    %128 = tpu.matmul %125, %127, %cst_87 {dimension_numbers = #tpu.dot_dimension_numbers<[1], [0], [0], [1], [0, 0, 1, 1], [], []>} : vector<1x10xf32>, vector<10x32xf32>, vector<1x32xf32> -> vector<1x32xf32>
    %129 = arith.addf %124, %128 : vector<1x32xf32>
    %130 = vector.extract_strided_slice %75 {offsets = [11, 0], sizes = [1, 10], strides = [1, 1]} : vector<25x10xf32> to vector<1x10xf32>
    %c11 = arith.constant 11 : index
    %c0_88 = arith.constant 0 : index
    %c0_89 = arith.constant 0 : index
    %131 = vector.load %arg6[%c11, %c0_88, %c0_89] : memref<25x10x32xf32, #tpu.memory_space<vmem>>, vector<1x10x32xf32>
    %132 = vector.shape_cast %131 : vector<1x10x32xf32> to vector<10x32xf32>
    %cst_90 = arith.constant dense<0.000000e+00> : vector<1x32xf32>
    %133 = tpu.matmul %130, %132, %cst_90 {dimension_numbers = #tpu.dot_dimension_numbers<[1], [0], [0], [1], [0, 0, 1, 1], [], []>} : vector<1x10xf32>, vector<10x32xf32>, vector<1x32xf32> -> vector<1x32xf32>
    %134 = arith.addf %129, %133 : vector<1x32xf32>
    %135 = vector.extract_strided_slice %75 {offsets = [12, 0], sizes = [1, 10], strides = [1, 1]} : vector<25x10xf32> to vector<1x10xf32>
    %c12 = arith.constant 12 : index
    %c0_91 = arith.constant 0 : index
    %c0_92 = arith.constant 0 : index
    %136 = vector.load %arg6[%c12, %c0_91, %c0_92] : memref<25x10x32xf32, #tpu.memory_space<vmem>>, vector<1x10x32xf32>
    %137 = vector.shape_cast %136 : vector<1x10x32xf32> to vector<10x32xf32>
    %cst_93 = arith.constant dense<0.000000e+00> : vector<1x32xf32>
    %138 = tpu.matmul %135, %137, %cst_93 {dimension_numbers = #tpu.dot_dimension_numbers<[1], [0], [0], [1], [0, 0, 1, 1], [], []>} : vector<1x10xf32>, vector<10x32xf32>, vector<1x32xf32> -> vector<1x32xf32>
    %139 = arith.addf %134, %138 : vector<1x32xf32>
    %140 = vector.extract_strided_slice %75 {offsets = [13, 0], sizes = [1, 10], strides = [1, 1]} : vector<25x10xf32> to vector<1x10xf32>
    %c13 = arith.constant 13 : index
    %c0_94 = arith.constant 0 : index
    %c0_95 = arith.constant 0 : index
    %141 = vector.load %arg6[%c13, %c0_94, %c0_95] : memref<25x10x32xf32, #tpu.memory_space<vmem>>, vector<1x10x32xf32>
    %142 = vector.shape_cast %141 : vector<1x10x32xf32> to vector<10x32xf32>
    %cst_96 = arith.constant dense<0.000000e+00> : vector<1x32xf32>
    %143 = tpu.matmul %140, %142, %cst_96 {dimension_numbers = #tpu.dot_dimension_numbers<[1], [0], [0], [1], [0, 0, 1, 1], [], []>} : vector<1x10xf32>, vector<10x32xf32>, vector<1x32xf32> -> vector<1x32xf32>
    %144 = arith.addf %139, %143 : vector<1x32xf32>
    %145 = vector.extract_strided_slice %75 {offsets = [14, 0], sizes = [1, 10], strides = [1, 1]} : vector<25x10xf32> to vector<1x10xf32>
    %c14 = arith.constant 14 : index
    %c0_97 = arith.constant 0 : index
    %c0_98 = arith.constant 0 : index
    %146 = vector.load %arg6[%c14, %c0_97, %c0_98] : memref<25x10x32xf32, #tpu.memory_space<vmem>>, vector<1x10x32xf32>
    %147 = vector.shape_cast %146 : vector<1x10x32xf32> to vector<10x32xf32>
    %cst_99 = arith.constant dense<0.000000e+00> : vector<1x32xf32>
    %148 = tpu.matmul %145, %147, %cst_99 {dimension_numbers = #tpu.dot_dimension_numbers<[1], [0], [0], [1], [0, 0, 1, 1], [], []>} : vector<1x10xf32>, vector<10x32xf32>, vector<1x32xf32> -> vector<1x32xf32>
    %149 = arith.addf %144, %148 : vector<1x32xf32>
    %150 = vector.extract_strided_slice %75 {offsets = [15, 0], sizes = [1, 10], strides = [1, 1]} : vector<25x10xf32> to vector<1x10xf32>
    %c15 = arith.constant 15 : index
    %c0_100 = arith.constant 0 : index
    %c0_101 = arith.constant 0 : index
    %151 = vector.load %arg6[%c15, %c0_100, %c0_101] : memref<25x10x32xf32, #tpu.memory_space<vmem>>, vector<1x10x32xf32>
    %152 = vector.shape_cast %151 : vector<1x10x32xf32> to vector<10x32xf32>
    %cst_102 = arith.constant dense<0.000000e+00> : vector<1x32xf32>
    %153 = tpu.matmul %150, %152, %cst_102 {dimension_numbers = #tpu.dot_dimension_numbers<[1], [0], [0], [1], [0, 0, 1, 1], [], []>} : vector<1x10xf32>, vector<10x32xf32>, vector<1x32xf32> -> vector<1x32xf32>
    %154 = arith.addf %149, %153 : vector<1x32xf32>
    %155 = vector.extract_strided_slice %75 {offsets = [16, 0], sizes = [1, 10], strides = [1, 1]} : vector<25x10xf32> to vector<1x10xf32>
    %c16 = arith.constant 16 : index
    %c0_103 = arith.constant 0 : index
    %c0_104 = arith.constant 0 : index
    %156 = vector.load %arg6[%c16, %c0_103, %c0_104] : memref<25x10x32xf32, #tpu.memory_space<vmem>>, vector<1x10x32xf32>
    %157 = vector.shape_cast %156 : vector<1x10x32xf32> to vector<10x32xf32>
    %cst_105 = arith.constant dense<0.000000e+00> : vector<1x32xf32>
    %158 = tpu.matmul %155, %157, %cst_105 {dimension_numbers = #tpu.dot_dimension_numbers<[1], [0], [0], [1], [0, 0, 1, 1], [], []>} : vector<1x10xf32>, vector<10x32xf32>, vector<1x32xf32> -> vector<1x32xf32>
    %159 = arith.addf %154, %158 : vector<1x32xf32>
    %160 = vector.extract_strided_slice %75 {offsets = [17, 0], sizes = [1, 10], strides = [1, 1]} : vector<25x10xf32> to vector<1x10xf32>
    %c17 = arith.constant 17 : index
    %c0_106 = arith.constant 0 : index
    %c0_107 = arith.constant 0 : index
    %161 = vector.load %arg6[%c17, %c0_106, %c0_107] : memref<25x10x32xf32, #tpu.memory_space<vmem>>, vector<1x10x32xf32>
    %162 = vector.shape_cast %161 : vector<1x10x32xf32> to vector<10x32xf32>
    %cst_108 = arith.constant dense<0.000000e+00> : vector<1x32xf32>
    %163 = tpu.matmul %160, %162, %cst_108 {dimension_numbers = #tpu.dot_dimension_numbers<[1], [0], [0], [1], [0, 0, 1, 1], [], []>} : vector<1x10xf32>, vector<10x32xf32>, vector<1x32xf32> -> vector<1x32xf32>
    %164 = arith.addf %159, %163 : vector<1x32xf32>
    %165 = vector.extract_strided_slice %75 {offsets = [18, 0], sizes = [1, 10], strides = [1, 1]} : vector<25x10xf32> to vector<1x10xf32>
    %c18 = arith.constant 18 : index
    %c0_109 = arith.constant 0 : index
    %c0_110 = arith.constant 0 : index
    %166 = vector.load %arg6[%c18, %c0_109, %c0_110] : memref<25x10x32xf32, #tpu.memory_space<vmem>>, vector<1x10x32xf32>
    %167 = vector.shape_cast %166 : vector<1x10x32xf32> to vector<10x32xf32>
    %cst_111 = arith.constant dense<0.000000e+00> : vector<1x32xf32>
    %168 = tpu.matmul %165, %167, %cst_111 {dimension_numbers = #tpu.dot_dimension_numbers<[1], [0], [0], [1], [0, 0, 1, 1], [], []>} : vector<1x10xf32>, vector<10x32xf32>, vector<1x32xf32> -> vector<1x32xf32>
    %169 = arith.addf %164, %168 : vector<1x32xf32>
    %170 = vector.extract_strided_slice %75 {offsets = [19, 0], sizes = [1, 10], strides = [1, 1]} : vector<25x10xf32> to vector<1x10xf32>
    %c19 = arith.constant 19 : index
    %c0_112 = arith.constant 0 : index
    %c0_113 = arith.constant 0 : index
    %171 = vector.load %arg6[%c19, %c0_112, %c0_113] : memref<25x10x32xf32, #tpu.memory_space<vmem>>, vector<1x10x32xf32>
    %172 = vector.shape_cast %171 : vector<1x10x32xf32> to vector<10x32xf32>
    %cst_114 = arith.constant dense<0.000000e+00> : vector<1x32xf32>
    %173 = tpu.matmul %170, %172, %cst_114 {dimension_numbers = #tpu.dot_dimension_numbers<[1], [0], [0], [1], [0, 0, 1, 1], [], []>} : vector<1x10xf32>, vector<10x32xf32>, vector<1x32xf32> -> vector<1x32xf32>
    %174 = arith.addf %169, %173 : vector<1x32xf32>
    %175 = vector.extract_strided_slice %75 {offsets = [20, 0], sizes = [1, 10], strides = [1, 1]} : vector<25x10xf32> to vector<1x10xf32>
    %c20 = arith.constant 20 : index
    %c0_115 = arith.constant 0 : index
    %c0_116 = arith.constant 0 : index
    %176 = vector.load %arg6[%c20, %c0_115, %c0_116] : memref<25x10x32xf32, #tpu.memory_space<vmem>>, vector<1x10x32xf32>
    %177 = vector.shape_cast %176 : vector<1x10x32xf32> to vector<10x32xf32>
    %cst_117 = arith.constant dense<0.000000e+00> : vector<1x32xf32>
    %178 = tpu.matmul %175, %177, %cst_117 {dimension_numbers = #tpu.dot_dimension_numbers<[1], [0], [0], [1], [0, 0, 1, 1], [], []>} : vector<1x10xf32>, vector<10x32xf32>, vector<1x32xf32> -> vector<1x32xf32>
    %179 = arith.addf %174, %178 : vector<1x32xf32>
    %180 = vector.extract_strided_slice %75 {offsets = [21, 0], sizes = [1, 10], strides = [1, 1]} : vector<25x10xf32> to vector<1x10xf32>
    %c21 = arith.constant 21 : index
    %c0_118 = arith.constant 0 : index
    %c0_119 = arith.constant 0 : index
    %181 = vector.load %arg6[%c21, %c0_118, %c0_119] : memref<25x10x32xf32, #tpu.memory_space<vmem>>, vector<1x10x32xf32>
    %182 = vector.shape_cast %181 : vector<1x10x32xf32> to vector<10x32xf32>
    %cst_120 = arith.constant dense<0.000000e+00> : vector<1x32xf32>
    %183 = tpu.matmul %180, %182, %cst_120 {dimension_numbers = #tpu.dot_dimension_numbers<[1], [0], [0], [1], [0, 0, 1, 1], [], []>} : vector<1x10xf32>, vector<10x32xf32>, vector<1x32xf32> -> vector<1x32xf32>
    %184 = arith.addf %179, %183 : vector<1x32xf32>
    %185 = vector.extract_strided_slice %75 {offsets = [22, 0], sizes = [1, 10], strides = [1, 1]} : vector<25x10xf32> to vector<1x10xf32>
    %c22 = arith.constant 22 : index
    %c0_121 = arith.constant 0 : index
    %c0_122 = arith.constant 0 : index
    %186 = vector.load %arg6[%c22, %c0_121, %c0_122] : memref<25x10x32xf32, #tpu.memory_space<vmem>>, vector<1x10x32xf32>
    %187 = vector.shape_cast %186 : vector<1x10x32xf32> to vector<10x32xf32>
    %cst_123 = arith.constant dense<0.000000e+00> : vector<1x32xf32>
    %188 = tpu.matmul %185, %187, %cst_123 {dimension_numbers = #tpu.dot_dimension_numbers<[1], [0], [0], [1], [0, 0, 1, 1], [], []>} : vector<1x10xf32>, vector<10x32xf32>, vector<1x32xf32> -> vector<1x32xf32>
    %189 = arith.addf %184, %188 : vector<1x32xf32>
    %190 = vector.extract_strided_slice %75 {offsets = [23, 0], sizes = [1, 10], strides = [1, 1]} : vector<25x10xf32> to vector<1x10xf32>
    %c23 = arith.constant 23 : index
    %c0_124 = arith.constant 0 : index
    %c0_125 = arith.constant 0 : index
    %191 = vector.load %arg6[%c23, %c0_124, %c0_125] : memref<25x10x32xf32, #tpu.memory_space<vmem>>, vector<1x10x32xf32>
    %192 = vector.shape_cast %191 : vector<1x10x32xf32> to vector<10x32xf32>
    %cst_126 = arith.constant dense<0.000000e+00> : vector<1x32xf32>
    %193 = tpu.matmul %190, %192, %cst_126 {dimension_numbers = #tpu.dot_dimension_numbers<[1], [0], [0], [1], [0, 0, 1, 1], [], []>} : vector<1x10xf32>, vector<10x32xf32>, vector<1x32xf32> -> vector<1x32xf32>
    %194 = arith.addf %189, %193 : vector<1x32xf32>
    %195 = vector.extract_strided_slice %75 {offsets = [24, 0], sizes = [1, 10], strides = [1, 1]} : vector<25x10xf32> to vector<1x10xf32>
    %c24 = arith.constant 24 : index
    %c0_127 = arith.constant 0 : index
    %c0_128 = arith.constant 0 : index
    %196 = vector.load %arg6[%c24, %c0_127, %c0_128] : memref<25x10x32xf32, #tpu.memory_space<vmem>>, vector<1x10x32xf32>
    %197 = vector.shape_cast %196 : vector<1x10x32xf32> to vector<10x32xf32>
    %cst_129 = arith.constant dense<0.000000e+00> : vector<1x32xf32>
    %198 = tpu.matmul %195, %197, %cst_129 {dimension_numbers = #tpu.dot_dimension_numbers<[1], [0], [0], [1], [0, 0, 1, 1], [], []>} : vector<1x10xf32>, vector<10x32xf32>, vector<1x32xf32> -> vector<1x32xf32>
    %199 = arith.addf %194, %198 : vector<1x32xf32>
    %200 = arith.addf %199, %4 : vector<1x32xf32>
    %cst_130 = arith.constant 0.000000e+00 : f32
    %201 = vector.broadcast %cst_130 : f32 to vector<1x32xf32>
    %202 = arith.maximumf %200, %201 : vector<1x32xf32>
    %cst_131 = arith.constant dense<0.000000e+00> : vector<1x10xf32>
    %203 = tpu.matmul %202, %5, %cst_131 {dimension_numbers = #tpu.dot_dimension_numbers<[1], [0], [0], [1], [0, 0, 1, 1], [], []>} : vector<1x32xf32>, vector<32x10xf32>, vector<1x10xf32> -> vector<1x10xf32>
    %204 = arith.addf %203, %6 : vector<1x10xf32>
    %cst_132 = arith.constant dense<0xFF800000> : vector<1xf32>
    %205 = vector.multi_reduction <maximumf>, %204, %cst_132 [1] : vector<1x10xf32> to vector<1xf32>
    %206 = vector.shape_cast %205 : vector<1xf32> to vector<1x1xf32>
    %207 = vector.broadcast %206 : vector<1x1xf32> to vector<1x10xf32>
    %208 = arith.subf %204, %207 : vector<1x10xf32>
    %209 = math.exp %208 : vector<1x10xf32>
    %cst_133 = arith.constant dense<0.000000e+00> : vector<1xf32>
    %210 = vector.multi_reduction <add>, %209, %cst_133 [1] : vector<1x10xf32> to vector<1xf32>
    %211 = vector.shape_cast %210 : vector<1xf32> to vector<1x1xf32>
    %212 = math.log %211 : vector<1x1xf32>
    %213 = arith.addf %206, %212 : vector<1x1xf32>
    %214 = vector.broadcast %213 : vector<1x1xf32> to vector<1x10xf32>
    %215 = arith.subf %204, %214 : vector<1x10xf32>
    %c0_134 = arith.constant 0 : index
    %c0_135 = arith.constant 0 : index
    %216 = vector.load %arg10[%c0_134, %c0_135] : memref<2x10xf32, #tpu.memory_space<vmem>>, vector<1x10xf32>
    tpu.vector_store %arg10[%c0_134, %c0_135], %215 {strides = array<i32>} : memref<2x10xf32, #tpu.memory_space<vmem>>, vector<1x10xf32>,
    %217 = vector.extract_strided_slice %7 {offsets = [676, 0], sizes = [169, 10], strides = [1, 1]} : vector<1352x10xf32> to vector<169x10xf32>
    %218 = vector.extract_strided_slice %7 {offsets = [845, 0], sizes = [169, 10], strides = [1, 1]} : vector<1352x10xf32> to vector<169x10xf32>
    %219 = arith.maximumf %217, %218 : vector<169x10xf32>
    %220 = vector.extract_strided_slice %7 {offsets = [1014, 0], sizes = [169, 10], strides = [1, 1]} : vector<1352x10xf32> to vector<169x10xf32>
    %221 = arith.maximumf %219, %220 : vector<169x10xf32>
    %222 = vector.extract_strided_slice %7 {offsets = [1183, 0], sizes = [169, 10], strides = [1, 1]} : vector<1352x10xf32> to vector<169x10xf32>
    %223 = arith.maximumf %221, %222 : vector<169x10xf32>
    %224 = vector.broadcast %2 : vector<1x10xf32> to vector<169x10xf32>
    %225 = arith.addf %223, %224 : vector<169x10xf32>
    %cst_136 = arith.constant 0.000000e+00 : f32
    %226 = vector.broadcast %cst_136 : f32 to vector<169x10xf32>
    %227 = arith.maximumf %225, %226 : vector<169x10xf32>
    %c0_137 = arith.constant 0 : index
    %c0_138 = arith.constant 0 : index
    %228 = vector.load %arg3[%c0_137, %c0_138] : memref<900x169xf32, #tpu.memory_space<vmem>>, vector<900x169xf32>
    %cst_139 = arith.constant dense<0.000000e+00> : vector<900x10xf32>
    %229 = tpu.matmul %228, %227, %cst_139 {dimension_numbers = #tpu.dot_dimension_numbers<[1], [0], [0], [1], [0, 0, 1, 1], [], []>} : vector<900x169xf32>, vector<169x10xf32>, vector<900x10xf32> -> vector<900x10xf32>
    %230 = vector.extract_strided_slice %229 {offsets = [0, 0], sizes = [100, 10], strides = [1, 1]} : vector<900x10xf32> to vector<100x10xf32>
    %c0_140 = arith.constant 0 : index
    %c0_141 = arith.constant 0 : index
    %c0_142 = arith.constant 0 : index
    %231 = vector.load %arg4[%c0_140, %c0_141, %c0_142] : memref<9x10x10xf32, #tpu.memory_space<vmem>>, vector<1x10x10xf32>
    %232 = vector.shape_cast %231 : vector<1x10x10xf32> to vector<10x10xf32>
    %cst_143 = arith.constant dense<0.000000e+00> : vector<100x10xf32>
    %233 = tpu.matmul %230, %232, %cst_143 {dimension_numbers = #tpu.dot_dimension_numbers<[1], [0], [0], [1], [0, 0, 1, 1], [], []>} : vector<100x10xf32>, vector<10x10xf32>, vector<100x10xf32> -> vector<100x10xf32>
    %234 = vector.extract_strided_slice %229 {offsets = [100, 0], sizes = [100, 10], strides = [1, 1]} : vector<900x10xf32> to vector<100x10xf32>
    %c1_144 = arith.constant 1 : index
    %c0_145 = arith.constant 0 : index
    %c0_146 = arith.constant 0 : index
    %235 = vector.load %arg4[%c1_144, %c0_145, %c0_146] : memref<9x10x10xf32, #tpu.memory_space<vmem>>, vector<1x10x10xf32>
    %236 = vector.shape_cast %235 : vector<1x10x10xf32> to vector<10x10xf32>
    %cst_147 = arith.constant dense<0.000000e+00> : vector<100x10xf32>
    %237 = tpu.matmul %234, %236, %cst_147 {dimension_numbers = #tpu.dot_dimension_numbers<[1], [0], [0], [1], [0, 0, 1, 1], [], []>} : vector<100x10xf32>, vector<10x10xf32>, vector<100x10xf32> -> vector<100x10xf32>
    %238 = arith.addf %233, %237 : vector<100x10xf32>
    %239 = vector.extract_strided_slice %229 {offsets = [200, 0], sizes = [100, 10], strides = [1, 1]} : vector<900x10xf32> to vector<100x10xf32>
    %c2_148 = arith.constant 2 : index
    %c0_149 = arith.constant 0 : index
    %c0_150 = arith.constant 0 : index
    %240 = vector.load %arg4[%c2_148, %c0_149, %c0_150] : memref<9x10x10xf32, #tpu.memory_space<vmem>>, vector<1x10x10xf32>
    %241 = vector.shape_cast %240 : vector<1x10x10xf32> to vector<10x10xf32>
    %cst_151 = arith.constant dense<0.000000e+00> : vector<100x10xf32>
    %242 = tpu.matmul %239, %241, %cst_151 {dimension_numbers = #tpu.dot_dimension_numbers<[1], [0], [0], [1], [0, 0, 1, 1], [], []>} : vector<100x10xf32>, vector<10x10xf32>, vector<100x10xf32> -> vector<100x10xf32>
    %243 = arith.addf %238, %242 : vector<100x10xf32>
    %244 = vector.extract_strided_slice %229 {offsets = [300, 0], sizes = [100, 10], strides = [1, 1]} : vector<900x10xf32> to vector<100x10xf32>
    %c3_152 = arith.constant 3 : index
    %c0_153 = arith.constant 0 : index
    %c0_154 = arith.constant 0 : index
    %245 = vector.load %arg4[%c3_152, %c0_153, %c0_154] : memref<9x10x10xf32, #tpu.memory_space<vmem>>, vector<1x10x10xf32>
    %246 = vector.shape_cast %245 : vector<1x10x10xf32> to vector<10x10xf32>
    %cst_155 = arith.constant dense<0.000000e+00> : vector<100x10xf32>
    %247 = tpu.matmul %244, %246, %cst_155 {dimension_numbers = #tpu.dot_dimension_numbers<[1], [0], [0], [1], [0, 0, 1, 1], [], []>} : vector<100x10xf32>, vector<10x10xf32>, vector<100x10xf32> -> vector<100x10xf32>
    %248 = arith.addf %243, %247 : vector<100x10xf32>
    %249 = vector.extract_strided_slice %229 {offsets = [400, 0], sizes = [100, 10], strides = [1, 1]} : vector<900x10xf32> to vector<100x10xf32>
    %c4_156 = arith.constant 4 : index
    %c0_157 = arith.constant 0 : index
    %c0_158 = arith.constant 0 : index
    %250 = vector.load %arg4[%c4_156, %c0_157, %c0_158] : memref<9x10x10xf32, #tpu.memory_space<vmem>>, vector<1x10x10xf32>
    %251 = vector.shape_cast %250 : vector<1x10x10xf32> to vector<10x10xf32>
    %cst_159 = arith.constant dense<0.000000e+00> : vector<100x10xf32>
    %252 = tpu.matmul %249, %251, %cst_159 {dimension_numbers = #tpu.dot_dimension_numbers<[1], [0], [0], [1], [0, 0, 1, 1], [], []>} : vector<100x10xf32>, vector<10x10xf32>, vector<100x10xf32> -> vector<100x10xf32>
    %253 = arith.addf %248, %252 : vector<100x10xf32>
    %254 = vector.extract_strided_slice %229 {offsets = [500, 0], sizes = [100, 10], strides = [1, 1]} : vector<900x10xf32> to vector<100x10xf32>
    %c5_160 = arith.constant 5 : index
    %c0_161 = arith.constant 0 : index
    %c0_162 = arith.constant 0 : index
    %255 = vector.load %arg4[%c5_160, %c0_161, %c0_162] : memref<9x10x10xf32, #tpu.memory_space<vmem>>, vector<1x10x10xf32>
    %256 = vector.shape_cast %255 : vector<1x10x10xf32> to vector<10x10xf32>
    %cst_163 = arith.constant dense<0.000000e+00> : vector<100x10xf32>
    %257 = tpu.matmul %254, %256, %cst_163 {dimension_numbers = #tpu.dot_dimension_numbers<[1], [0], [0], [1], [0, 0, 1, 1], [], []>} : vector<100x10xf32>, vector<10x10xf32>, vector<100x10xf32> -> vector<100x10xf32>
    %258 = arith.addf %253, %257 : vector<100x10xf32>
    %259 = vector.extract_strided_slice %229 {offsets = [600, 0], sizes = [100, 10], strides = [1, 1]} : vector<900x10xf32> to vector<100x10xf32>
    %c6_164 = arith.constant 6 : index
    %c0_165 = arith.constant 0 : index
    %c0_166 = arith.constant 0 : index
    %260 = vector.load %arg4[%c6_164, %c0_165, %c0_166] : memref<9x10x10xf32, #tpu.memory_space<vmem>>, vector<1x10x10xf32>
    %261 = vector.shape_cast %260 : vector<1x10x10xf32> to vector<10x10xf32>
    %cst_167 = arith.constant dense<0.000000e+00> : vector<100x10xf32>
    %262 = tpu.matmul %259, %261, %cst_167 {dimension_numbers = #tpu.dot_dimension_numbers<[1], [0], [0], [1], [0, 0, 1, 1], [], []>} : vector<100x10xf32>, vector<10x10xf32>, vector<100x10xf32> -> vector<100x10xf32>
    %263 = arith.addf %258, %262 : vector<100x10xf32>
    %264 = vector.extract_strided_slice %229 {offsets = [700, 0], sizes = [100, 10], strides = [1, 1]} : vector<900x10xf32> to vector<100x10xf32>
    %c7_168 = arith.constant 7 : index
    %c0_169 = arith.constant 0 : index
    %c0_170 = arith.constant 0 : index
    %265 = vector.load %arg4[%c7_168, %c0_169, %c0_170] : memref<9x10x10xf32, #tpu.memory_space<vmem>>, vector<1x10x10xf32>
    %266 = vector.shape_cast %265 : vector<1x10x10xf32> to vector<10x10xf32>
    %cst_171 = arith.constant dense<0.000000e+00> : vector<100x10xf32>
    %267 = tpu.matmul %264, %266, %cst_171 {dimension_numbers = #tpu.dot_dimension_numbers<[1], [0], [0], [1], [0, 0, 1, 1], [], []>} : vector<100x10xf32>, vector<10x10xf32>, vector<100x10xf32> -> vector<100x10xf32>
    %268 = arith.addf %263, %267 : vector<100x10xf32>
    %269 = vector.extract_strided_slice %229 {offsets = [800, 0], sizes = [100, 10], strides = [1, 1]} : vector<900x10xf32> to vector<100x10xf32>
    %c8_172 = arith.constant 8 : index
    %c0_173 = arith.constant 0 : index
    %c0_174 = arith.constant 0 : index
    %270 = vector.load %arg4[%c8_172, %c0_173, %c0_174] : memref<9x10x10xf32, #tpu.memory_space<vmem>>, vector<1x10x10xf32>
    %271 = vector.shape_cast %270 : vector<1x10x10xf32> to vector<10x10xf32>
    %cst_175 = arith.constant dense<0.000000e+00> : vector<100x10xf32>
    %272 = tpu.matmul %269, %271, %cst_175 {dimension_numbers = #tpu.dot_dimension_numbers<[1], [0], [0], [1], [0, 0, 1, 1], [], []>} : vector<100x10xf32>, vector<10x10xf32>, vector<100x10xf32> -> vector<100x10xf32>
    %273 = arith.addf %268, %272 : vector<100x10xf32>
    %274 = vector.extract_strided_slice %273 {offsets = [0, 0], sizes = [25, 10], strides = [1, 1]} : vector<100x10xf32> to vector<25x10xf32>
    %275 = vector.extract_strided_slice %273 {offsets = [25, 0], sizes = [25, 10], strides = [1, 1]} : vector<100x10xf32> to vector<25x10xf32>
    %276 = arith.maximumf %274, %275 : vector<25x10xf32>
    %277 = vector.extract_strided_slice %273 {offsets = [50, 0], sizes = [25, 10], strides = [1, 1]} : vector<100x10xf32> to vector<25x10xf32>
    %278 = arith.maximumf %276, %277 : vector<25x10xf32>
    %279 = vector.extract_strided_slice %273 {offsets = [75, 0], sizes = [25, 10], strides = [1, 1]} : vector<100x10xf32> to vector<25x10xf32>
    %280 = arith.maximumf %278, %279 : vector<25x10xf32>
    %281 = vector.broadcast %3 : vector<1x10xf32> to vector<25x10xf32>
    %282 = arith.addf %280, %281 : vector<25x10xf32>
    %cst_176 = arith.constant 0.000000e+00 : f32
    %283 = vector.broadcast %cst_176 : f32 to vector<25x10xf32>
    %284 = arith.maximumf %282, %283 : vector<25x10xf32>
    %285 = vector.extract_strided_slice %284 {offsets = [0, 0], sizes = [1, 10], strides = [1, 1]} : vector<25x10xf32> to vector<1x10xf32>
    %c0_177 = arith.constant 0 : index
    %c0_178 = arith.constant 0 : index
    %c0_179 = arith.constant 0 : index
    %286 = vector.load %arg6[%c0_177, %c0_178, %c0_179] : memref<25x10x32xf32, #tpu.memory_space<vmem>>, vector<1x10x32xf32>
    %287 = vector.shape_cast %286 : vector<1x10x32xf32> to vector<10x32xf32>
    %cst_180 = arith.constant dense<0.000000e+00> : vector<1x32xf32>
    %288 = tpu.matmul %285, %287, %cst_180 {dimension_numbers = #tpu.dot_dimension_numbers<[1], [0], [0], [1], [0, 0, 1, 1], [], []>} : vector<1x10xf32>, vector<10x32xf32>, vector<1x32xf32> -> vector<1x32xf32>
    %289 = vector.extract_strided_slice %284 {offsets = [1, 0], sizes = [1, 10], strides = [1, 1]} : vector<25x10xf32> to vector<1x10xf32>
    %c1_181 = arith.constant 1 : index
    %c0_182 = arith.constant 0 : index
    %c0_183 = arith.constant 0 : index
    %290 = vector.load %arg6[%c1_181, %c0_182, %c0_183] : memref<25x10x32xf32, #tpu.memory_space<vmem>>, vector<1x10x32xf32>
    %291 = vector.shape_cast %290 : vector<1x10x32xf32> to vector<10x32xf32>
    %cst_184 = arith.constant dense<0.000000e+00> : vector<1x32xf32>
    %292 = tpu.matmul %289, %291, %cst_184 {dimension_numbers = #tpu.dot_dimension_numbers<[1], [0], [0], [1], [0, 0, 1, 1], [], []>} : vector<1x10xf32>, vector<10x32xf32>, vector<1x32xf32> -> vector<1x32xf32>
    %293 = arith.addf %288, %292 : vector<1x32xf32>
    %294 = vector.extract_strided_slice %284 {offsets = [2, 0], sizes = [1, 10], strides = [1, 1]} : vector<25x10xf32> to vector<1x10xf32>
    %c2_185 = arith.constant 2 : index
    %c0_186 = arith.constant 0 : index
    %c0_187 = arith.constant 0 : index
    %295 = vector.load %arg6[%c2_185, %c0_186, %c0_187] : memref<25x10x32xf32, #tpu.memory_space<vmem>>, vector<1x10x32xf32>
    %296 = vector.shape_cast %295 : vector<1x10x32xf32> to vector<10x32xf32>
    %cst_188 = arith.constant dense<0.000000e+00> : vector<1x32xf32>
    %297 = tpu.matmul %294, %296, %cst_188 {dimension_numbers = #tpu.dot_dimension_numbers<[1], [0], [0], [1], [0, 0, 1, 1], [], []>} : vector<1x10xf32>, vector<10x32xf32>, vector<1x32xf32> -> vector<1x32xf32>
    %298 = arith.addf %293, %297 : vector<1x32xf32>
    %299 = vector.extract_strided_slice %284 {offsets = [3, 0], sizes = [1, 10], strides = [1, 1]} : vector<25x10xf32> to vector<1x10xf32>
    %c3_189 = arith.constant 3 : index
    %c0_190 = arith.constant 0 : index
    %c0_191 = arith.constant 0 : index
    %300 = vector.load %arg6[%c3_189, %c0_190, %c0_191] : memref<25x10x32xf32, #tpu.memory_space<vmem>>, vector<1x10x32xf32>
    %301 = vector.shape_cast %300 : vector<1x10x32xf32> to vector<10x32xf32>
    %cst_192 = arith.constant dense<0.000000e+00> : vector<1x32xf32>
    %302 = tpu.matmul %299, %301, %cst_192 {dimension_numbers = #tpu.dot_dimension_numbers<[1], [0], [0], [1], [0, 0, 1, 1], [], []>} : vector<1x10xf32>, vector<10x32xf32>, vector<1x32xf32> -> vector<1x32xf32>
    %303 = arith.addf %298, %302 : vector<1x32xf32>
    %304 = vector.extract_strided_slice %284 {offsets = [4, 0], sizes = [1, 10], strides = [1, 1]} : vector<25x10xf32> to vector<1x10xf32>
    %c4_193 = arith.constant 4 : index
    %c0_194 = arith.constant 0 : index
    %c0_195 = arith.constant 0 : index
    %305 = vector.load %arg6[%c4_193, %c0_194, %c0_195] : memref<25x10x32xf32, #tpu.memory_space<vmem>>, vector<1x10x32xf32>
    %306 = vector.shape_cast %305 : vector<1x10x32xf32> to vector<10x32xf32>
    %cst_196 = arith.constant dense<0.000000e+00> : vector<1x32xf32>
    %307 = tpu.matmul %304, %306, %cst_196 {dimension_numbers = #tpu.dot_dimension_numbers<[1], [0], [0], [1], [0, 0, 1, 1], [], []>} : vector<1x10xf32>, vector<10x32xf32>, vector<1x32xf32> -> vector<1x32xf32>
    %308 = arith.addf %303, %307 : vector<1x32xf32>
    %309 = vector.extract_strided_slice %284 {offsets = [5, 0], sizes = [1, 10], strides = [1, 1]} : vector<25x10xf32> to vector<1x10xf32>
    %c5_197 = arith.constant 5 : index
    %c0_198 = arith.constant 0 : index
    %c0_199 = arith.constant 0 : index
    %310 = vector.load %arg6[%c5_197, %c0_198, %c0_199] : memref<25x10x32xf32, #tpu.memory_space<vmem>>, vector<1x10x32xf32>
    %311 = vector.shape_cast %310 : vector<1x10x32xf32> to vector<10x32xf32>
    %cst_200 = arith.constant dense<0.000000e+00> : vector<1x32xf32>
    %312 = tpu.matmul %309, %311, %cst_200 {dimension_numbers = #tpu.dot_dimension_numbers<[1], [0], [0], [1], [0, 0, 1, 1], [], []>} : vector<1x10xf32>, vector<10x32xf32>, vector<1x32xf32> -> vector<1x32xf32>
    %313 = arith.addf %308, %312 : vector<1x32xf32>
    %314 = vector.extract_strided_slice %284 {offsets = [6, 0], sizes = [1, 10], strides = [1, 1]} : vector<25x10xf32> to vector<1x10xf32>
    %c6_201 = arith.constant 6 : index
    %c0_202 = arith.constant 0 : index
    %c0_203 = arith.constant 0 : index
    %315 = vector.load %arg6[%c6_201, %c0_202, %c0_203] : memref<25x10x32xf32, #tpu.memory_space<vmem>>, vector<1x10x32xf32>
    %316 = vector.shape_cast %315 : vector<1x10x32xf32> to vector<10x32xf32>
    %cst_204 = arith.constant dense<0.000000e+00> : vector<1x32xf32>
    %317 = tpu.matmul %314, %316, %cst_204 {dimension_numbers = #tpu.dot_dimension_numbers<[1], [0], [0], [1], [0, 0, 1, 1], [], []>} : vector<1x10xf32>, vector<10x32xf32>, vector<1x32xf32> -> vector<1x32xf32>
    %318 = arith.addf %313, %317 : vector<1x32xf32>
    %319 = vector.extract_strided_slice %284 {offsets = [7, 0], sizes = [1, 10], strides = [1, 1]} : vector<25x10xf32> to vector<1x10xf32>
    %c7_205 = arith.constant 7 : index
    %c0_206 = arith.constant 0 : index
    %c0_207 = arith.constant 0 : index
    %320 = vector.load %arg6[%c7_205, %c0_206, %c0_207] : memref<25x10x32xf32, #tpu.memory_space<vmem>>, vector<1x10x32xf32>
    %321 = vector.shape_cast %320 : vector<1x10x32xf32> to vector<10x32xf32>
    %cst_208 = arith.constant dense<0.000000e+00> : vector<1x32xf32>
    %322 = tpu.matmul %319, %321, %cst_208 {dimension_numbers = #tpu.dot_dimension_numbers<[1], [0], [0], [1], [0, 0, 1, 1], [], []>} : vector<1x10xf32>, vector<10x32xf32>, vector<1x32xf32> -> vector<1x32xf32>
    %323 = arith.addf %318, %322 : vector<1x32xf32>
    %324 = vector.extract_strided_slice %284 {offsets = [8, 0], sizes = [1, 10], strides = [1, 1]} : vector<25x10xf32> to vector<1x10xf32>
    %c8_209 = arith.constant 8 : index
    %c0_210 = arith.constant 0 : index
    %c0_211 = arith.constant 0 : index
    %325 = vector.load %arg6[%c8_209, %c0_210, %c0_211] : memref<25x10x32xf32, #tpu.memory_space<vmem>>, vector<1x10x32xf32>
    %326 = vector.shape_cast %325 : vector<1x10x32xf32> to vector<10x32xf32>
    %cst_212 = arith.constant dense<0.000000e+00> : vector<1x32xf32>
    %327 = tpu.matmul %324, %326, %cst_212 {dimension_numbers = #tpu.dot_dimension_numbers<[1], [0], [0], [1], [0, 0, 1, 1], [], []>} : vector<1x10xf32>, vector<10x32xf32>, vector<1x32xf32> -> vector<1x32xf32>
    %328 = arith.addf %323, %327 : vector<1x32xf32>
    %329 = vector.extract_strided_slice %284 {offsets = [9, 0], sizes = [1, 10], strides = [1, 1]} : vector<25x10xf32> to vector<1x10xf32>
    %c9_213 = arith.constant 9 : index
    %c0_214 = arith.constant 0 : index
    %c0_215 = arith.constant 0 : index
    %330 = vector.load %arg6[%c9_213, %c0_214, %c0_215] : memref<25x10x32xf32, #tpu.memory_space<vmem>>, vector<1x10x32xf32>
    %331 = vector.shape_cast %330 : vector<1x10x32xf32> to vector<10x32xf32>
    %cst_216 = arith.constant dense<0.000000e+00> : vector<1x32xf32>
    %332 = tpu.matmul %329, %331, %cst_216 {dimension_numbers = #tpu.dot_dimension_numbers<[1], [0], [0], [1], [0, 0, 1, 1], [], []>} : vector<1x10xf32>, vector<10x32xf32>, vector<1x32xf32> -> vector<1x32xf32>
    %333 = arith.addf %328, %332 : vector<1x32xf32>
    %334 = vector.extract_strided_slice %284 {offsets = [10, 0], sizes = [1, 10], strides = [1, 1]} : vector<25x10xf32> to vector<1x10xf32>
    %c10_217 = arith.constant 10 : index
    %c0_218 = arith.constant 0 : index
    %c0_219 = arith.constant 0 : index
    %335 = vector.load %arg6[%c10_217, %c0_218, %c0_219] : memref<25x10x32xf32, #tpu.memory_space<vmem>>, vector<1x10x32xf32>
    %336 = vector.shape_cast %335 : vector<1x10x32xf32> to vector<10x32xf32>
    %cst_220 = arith.constant dense<0.000000e+00> : vector<1x32xf32>
    %337 = tpu.matmul %334, %336, %cst_220 {dimension_numbers = #tpu.dot_dimension_numbers<[1], [0], [0], [1], [0, 0, 1, 1], [], []>} : vector<1x10xf32>, vector<10x32xf32>, vector<1x32xf32> -> vector<1x32xf32>
    %338 = arith.addf %333, %337 : vector<1x32xf32>
    %339 = vector.extract_strided_slice %284 {offsets = [11, 0], sizes = [1, 10], strides = [1, 1]} : vector<25x10xf32> to vector<1x10xf32>
    %c11_221 = arith.constant 11 : index
    %c0_222 = arith.constant 0 : index
    %c0_223 = arith.constant 0 : index
    %340 = vector.load %arg6[%c11_221, %c0_222, %c0_223] : memref<25x10x32xf32, #tpu.memory_space<vmem>>, vector<1x10x32xf32>
    %341 = vector.shape_cast %340 : vector<1x10x32xf32> to vector<10x32xf32>
    %cst_224 = arith.constant dense<0.000000e+00> : vector<1x32xf32>
    %342 = tpu.matmul %339, %341, %cst_224 {dimension_numbers = #tpu.dot_dimension_numbers<[1], [0], [0], [1], [0, 0, 1, 1], [], []>} : vector<1x10xf32>, vector<10x32xf32>, vector<1x32xf32> -> vector<1x32xf32>
    %343 = arith.addf %338, %342 : vector<1x32xf32>
    %344 = vector.extract_strided_slice %284 {offsets = [12, 0], sizes = [1, 10], strides = [1, 1]} : vector<25x10xf32> to vector<1x10xf32>
    %c12_225 = arith.constant 12 : index
    %c0_226 = arith.constant 0 : index
    %c0_227 = arith.constant 0 : index
    %345 = vector.load %arg6[%c12_225, %c0_226, %c0_227] : memref<25x10x32xf32, #tpu.memory_space<vmem>>, vector<1x10x32xf32>
    %346 = vector.shape_cast %345 : vector<1x10x32xf32> to vector<10x32xf32>
    %cst_228 = arith.constant dense<0.000000e+00> : vector<1x32xf32>
    %347 = tpu.matmul %344, %346, %cst_228 {dimension_numbers = #tpu.dot_dimension_numbers<[1], [0], [0], [1], [0, 0, 1, 1], [], []>} : vector<1x10xf32>, vector<10x32xf32>, vector<1x32xf32> -> vector<1x32xf32>
    %348 = arith.addf %343, %347 : vector<1x32xf32>
    %349 = vector.extract_strided_slice %284 {offsets = [13, 0], sizes = [1, 10], strides = [1, 1]} : vector<25x10xf32> to vector<1x10xf32>
    %c13_229 = arith.constant 13 : index
    %c0_230 = arith.constant 0 : index
    %c0_231 = arith.constant 0 : index
    %350 = vector.load %arg6[%c13_229, %c0_230, %c0_231] : memref<25x10x32xf32, #tpu.memory_space<vmem>>, vector<1x10x32xf32>
    %351 = vector.shape_cast %350 : vector<1x10x32xf32> to vector<10x32xf32>
    %cst_232 = arith.constant dense<0.000000e+00> : vector<1x32xf32>
    %352 = tpu.matmul %349, %351, %cst_232 {dimension_numbers = #tpu.dot_dimension_numbers<[1], [0], [0], [1], [0, 0, 1, 1], [], []>} : vector<1x10xf32>, vector<10x32xf32>, vector<1x32xf32> -> vector<1x32xf32>
    %353 = arith.addf %348, %352 : vector<1x32xf32>
    %354 = vector.extract_strided_slice %284 {offsets = [14, 0], sizes = [1, 10], strides = [1, 1]} : vector<25x10xf32> to vector<1x10xf32>
    %c14_233 = arith.constant 14 : index
    %c0_234 = arith.constant 0 : index
    %c0_235 = arith.constant 0 : index
    %355 = vector.load %arg6[%c14_233, %c0_234, %c0_235] : memref<25x10x32xf32, #tpu.memory_space<vmem>>, vector<1x10x32xf32>
    %356 = vector.shape_cast %355 : vector<1x10x32xf32> to vector<10x32xf32>
    %cst_236 = arith.constant dense<0.000000e+00> : vector<1x32xf32>
    %357 = tpu.matmul %354, %356, %cst_236 {dimension_numbers = #tpu.dot_dimension_numbers<[1], [0], [0], [1], [0, 0, 1, 1], [], []>} : vector<1x10xf32>, vector<10x32xf32>, vector<1x32xf32> -> vector<1x32xf32>
    %358 = arith.addf %353, %357 : vector<1x32xf32>
    %359 = vector.extract_strided_slice %284 {offsets = [15, 0], sizes = [1, 10], strides = [1, 1]} : vector<25x10xf32> to vector<1x10xf32>
    %c15_237 = arith.constant 15 : index
    %c0_238 = arith.constant 0 : index
    %c0_239 = arith.constant 0 : index
    %360 = vector.load %arg6[%c15_237, %c0_238, %c0_239] : memref<25x10x32xf32, #tpu.memory_space<vmem>>, vector<1x10x32xf32>
    %361 = vector.shape_cast %360 : vector<1x10x32xf32> to vector<10x32xf32>
    %cst_240 = arith.constant dense<0.000000e+00> : vector<1x32xf32>
    %362 = tpu.matmul %359, %361, %cst_240 {dimension_numbers = #tpu.dot_dimension_numbers<[1], [0], [0], [1], [0, 0, 1, 1], [], []>} : vector<1x10xf32>, vector<10x32xf32>, vector<1x32xf32> -> vector<1x32xf32>
    %363 = arith.addf %358, %362 : vector<1x32xf32>
    %364 = vector.extract_strided_slice %284 {offsets = [16, 0], sizes = [1, 10], strides = [1, 1]} : vector<25x10xf32> to vector<1x10xf32>
    %c16_241 = arith.constant 16 : index
    %c0_242 = arith.constant 0 : index
    %c0_243 = arith.constant 0 : index
    %365 = vector.load %arg6[%c16_241, %c0_242, %c0_243] : memref<25x10x32xf32, #tpu.memory_space<vmem>>, vector<1x10x32xf32>
    %366 = vector.shape_cast %365 : vector<1x10x32xf32> to vector<10x32xf32>
    %cst_244 = arith.constant dense<0.000000e+00> : vector<1x32xf32>
    %367 = tpu.matmul %364, %366, %cst_244 {dimension_numbers = #tpu.dot_dimension_numbers<[1], [0], [0], [1], [0, 0, 1, 1], [], []>} : vector<1x10xf32>, vector<10x32xf32>, vector<1x32xf32> -> vector<1x32xf32>
    %368 = arith.addf %363, %367 : vector<1x32xf32>
    %369 = vector.extract_strided_slice %284 {offsets = [17, 0], sizes = [1, 10], strides = [1, 1]} : vector<25x10xf32> to vector<1x10xf32>
    %c17_245 = arith.constant 17 : index
    %c0_246 = arith.constant 0 : index
    %c0_247 = arith.constant 0 : index
    %370 = vector.load %arg6[%c17_245, %c0_246, %c0_247] : memref<25x10x32xf32, #tpu.memory_space<vmem>>, vector<1x10x32xf32>
    %371 = vector.shape_cast %370 : vector<1x10x32xf32> to vector<10x32xf32>
    %cst_248 = arith.constant dense<0.000000e+00> : vector<1x32xf32>
    %372 = tpu.matmul %369, %371, %cst_248 {dimension_numbers = #tpu.dot_dimension_numbers<[1], [0], [0], [1], [0, 0, 1, 1], [], []>} : vector<1x10xf32>, vector<10x32xf32>, vector<1x32xf32> -> vector<1x32xf32>
    %373 = arith.addf %368, %372 : vector<1x32xf32>
    %374 = vector.extract_strided_slice %284 {offsets = [18, 0], sizes = [1, 10], strides = [1, 1]} : vector<25x10xf32> to vector<1x10xf32>
    %c18_249 = arith.constant 18 : index
    %c0_250 = arith.constant 0 : index
    %c0_251 = arith.constant 0 : index
    %375 = vector.load %arg6[%c18_249, %c0_250, %c0_251] : memref<25x10x32xf32, #tpu.memory_space<vmem>>, vector<1x10x32xf32>
    %376 = vector.shape_cast %375 : vector<1x10x32xf32> to vector<10x32xf32>
    %cst_252 = arith.constant dense<0.000000e+00> : vector<1x32xf32>
    %377 = tpu.matmul %374, %376, %cst_252 {dimension_numbers = #tpu.dot_dimension_numbers<[1], [0], [0], [1], [0, 0, 1, 1], [], []>} : vector<1x10xf32>, vector<10x32xf32>, vector<1x32xf32> -> vector<1x32xf32>
    %378 = arith.addf %373, %377 : vector<1x32xf32>
    %379 = vector.extract_strided_slice %284 {offsets = [19, 0], sizes = [1, 10], strides = [1, 1]} : vector<25x10xf32> to vector<1x10xf32>
    %c19_253 = arith.constant 19 : index
    %c0_254 = arith.constant 0 : index
    %c0_255 = arith.constant 0 : index
    %380 = vector.load %arg6[%c19_253, %c0_254, %c0_255] : memref<25x10x32xf32, #tpu.memory_space<vmem>>, vector<1x10x32xf32>
    %381 = vector.shape_cast %380 : vector<1x10x32xf32> to vector<10x32xf32>
    %cst_256 = arith.constant dense<0.000000e+00> : vector<1x32xf32>
    %382 = tpu.matmul %379, %381, %cst_256 {dimension_numbers = #tpu.dot_dimension_numbers<[1], [0], [0], [1], [0, 0, 1, 1], [], []>} : vector<1x10xf32>, vector<10x32xf32>, vector<1x32xf32> -> vector<1x32xf32>
    %383 = arith.addf %378, %382 : vector<1x32xf32>
    %384 = vector.extract_strided_slice %284 {offsets = [20, 0], sizes = [1, 10], strides = [1, 1]} : vector<25x10xf32> to vector<1x10xf32>
    %c20_257 = arith.constant 20 : index
    %c0_258 = arith.constant 0 : index
    %c0_259 = arith.constant 0 : index
    %385 = vector.load %arg6[%c20_257, %c0_258, %c0_259] : memref<25x10x32xf32, #tpu.memory_space<vmem>>, vector<1x10x32xf32>
    %386 = vector.shape_cast %385 : vector<1x10x32xf32> to vector<10x32xf32>
    %cst_260 = arith.constant dense<0.000000e+00> : vector<1x32xf32>
    %387 = tpu.matmul %384, %386, %cst_260 {dimension_numbers = #tpu.dot_dimension_numbers<[1], [0], [0], [1], [0, 0, 1, 1], [], []>} : vector<1x10xf32>, vector<10x32xf32>, vector<1x32xf32> -> vector<1x32xf32>
    %388 = arith.addf %383, %387 : vector<1x32xf32>
    %389 = vector.extract_strided_slice %284 {offsets = [21, 0], sizes = [1, 10], strides = [1, 1]} : vector<25x10xf32> to vector<1x10xf32>
    %c21_261 = arith.constant 21 : index
    %c0_262 = arith.constant 0 : index
    %c0_263 = arith.constant 0 : index
    %390 = vector.load %arg6[%c21_261, %c0_262, %c0_263] : memref<25x10x32xf32, #tpu.memory_space<vmem>>, vector<1x10x32xf32>
    %391 = vector.shape_cast %390 : vector<1x10x32xf32> to vector<10x32xf32>
    %cst_264 = arith.constant dense<0.000000e+00> : vector<1x32xf32>
    %392 = tpu.matmul %389, %391, %cst_264 {dimension_numbers = #tpu.dot_dimension_numbers<[1], [0], [0], [1], [0, 0, 1, 1], [], []>} : vector<1x10xf32>, vector<10x32xf32>, vector<1x32xf32> -> vector<1x32xf32>
    %393 = arith.addf %388, %392 : vector<1x32xf32>
    %394 = vector.extract_strided_slice %284 {offsets = [22, 0], sizes = [1, 10], strides = [1, 1]} : vector<25x10xf32> to vector<1x10xf32>
    %c22_265 = arith.constant 22 : index
    %c0_266 = arith.constant 0 : index
    %c0_267 = arith.constant 0 : index
    %395 = vector.load %arg6[%c22_265, %c0_266, %c0_267] : memref<25x10x32xf32, #tpu.memory_space<vmem>>, vector<1x10x32xf32>
    %396 = vector.shape_cast %395 : vector<1x10x32xf32> to vector<10x32xf32>
    %cst_268 = arith.constant dense<0.000000e+00> : vector<1x32xf32>
    %397 = tpu.matmul %394, %396, %cst_268 {dimension_numbers = #tpu.dot_dimension_numbers<[1], [0], [0], [1], [0, 0, 1, 1], [], []>} : vector<1x10xf32>, vector<10x32xf32>, vector<1x32xf32> -> vector<1x32xf32>
    %398 = arith.addf %393, %397 : vector<1x32xf32>
    %399 = vector.extract_strided_slice %284 {offsets = [23, 0], sizes = [1, 10], strides = [1, 1]} : vector<25x10xf32> to vector<1x10xf32>
    %c23_269 = arith.constant 23 : index
    %c0_270 = arith.constant 0 : index
    %c0_271 = arith.constant 0 : index
    %400 = vector.load %arg6[%c23_269, %c0_270, %c0_271] : memref<25x10x32xf32, #tpu.memory_space<vmem>>, vector<1x10x32xf32>
    %401 = vector.shape_cast %400 : vector<1x10x32xf32> to vector<10x32xf32>
    %cst_272 = arith.constant dense<0.000000e+00> : vector<1x32xf32>
    %402 = tpu.matmul %399, %401, %cst_272 {dimension_numbers = #tpu.dot_dimension_numbers<[1], [0], [0], [1], [0, 0, 1, 1], [], []>} : vector<1x10xf32>, vector<10x32xf32>, vector<1x32xf32> -> vector<1x32xf32>
    %403 = arith.addf %398, %402 : vector<1x32xf32>
    %404 = vector.extract_strided_slice %284 {offsets = [24, 0], sizes = [1, 10], strides = [1, 1]} : vector<25x10xf32> to vector<1x10xf32>
    %c24_273 = arith.constant 24 : index
    %c0_274 = arith.constant 0 : index
    %c0_275 = arith.constant 0 : index
    %405 = vector.load %arg6[%c24_273, %c0_274, %c0_275] : memref<25x10x32xf32, #tpu.memory_space<vmem>>, vector<1x10x32xf32>
    %406 = vector.shape_cast %405 : vector<1x10x32xf32> to vector<10x32xf32>
    %cst_276 = arith.constant dense<0.000000e+00> : vector<1x32xf32>
    %407 = tpu.matmul %404, %406, %cst_276 {dimension_numbers = #tpu.dot_dimension_numbers<[1], [0], [0], [1], [0, 0, 1, 1], [], []>} : vector<1x10xf32>, vector<10x32xf32>, vector<1x32xf32> -> vector<1x32xf32>
    %408 = arith.addf %403, %407 : vector<1x32xf32>
    %409 = arith.addf %408, %4 : vector<1x32xf32>
    %cst_277 = arith.constant 0.000000e+00 : f32
    %410 = vector.broadcast %cst_277 : f32 to vector<1x32xf32>
    %411 = arith.maximumf %409, %410 : vector<1x32xf32>
    %cst_278 = arith.constant dense<0.000000e+00> : vector<1x10xf32>
    %412 = tpu.matmul %411, %5, %cst_278 {dimension_numbers = #tpu.dot_dimension_numbers<[1], [0], [0], [1], [0, 0, 1, 1], [], []>} : vector<1x32xf32>, vector<32x10xf32>, vector<1x10xf32> -> vector<1x10xf32>
    %413 = arith.addf %412, %6 : vector<1x10xf32>
    %cst_279 = arith.constant dense<0xFF800000> : vector<1xf32>
    %414 = vector.multi_reduction <maximumf>, %413, %cst_279 [1] : vector<1x10xf32> to vector<1xf32>
    %415 = vector.shape_cast %414 : vector<1xf32> to vector<1x1xf32>
    %416 = vector.broadcast %415 : vector<1x1xf32> to vector<1x10xf32>
    %417 = arith.subf %413, %416 : vector<1x10xf32>
    %418 = math.exp %417 : vector<1x10xf32>
    %cst_280 = arith.constant dense<0.000000e+00> : vector<1xf32>
    %419 = vector.multi_reduction <add>, %418, %cst_280 [1] : vector<1x10xf32> to vector<1xf32>
    %420 = vector.shape_cast %419 : vector<1xf32> to vector<1x1xf32>
    %421 = math.log %420 : vector<1x1xf32>
    %422 = arith.addf %415, %421 : vector<1x1xf32>
    %423 = vector.broadcast %422 : vector<1x1xf32> to vector<1x10xf32>
    %424 = arith.subf %413, %423 : vector<1x10xf32>
    %c1_281 = arith.constant 1 : index
    %c0_282 = arith.constant 0 : index
    %425 = vector.load %arg10[%c1_281, %c0_282] : memref<2x10xf32, #tpu.memory_space<vmem>>, vector<1x10xf32>
    tpu.vector_store %arg10[%c1_281, %c0_282], %424 {strides = array<i32>} : memref<2x10xf32, #tpu.memory_space<vmem>>, vector<1x10xf32>,
    return
  }
}

</mosaic_0001>

<bundles_post_ra>
// kernel: forward.1
= control target key start
LH: loop header
LB: loop body
LE: loop exit
PB: predicated region body
PF: predicated region fallthrough
CT: control target
= control target key end

     0   :  { %vm723_vm0 = vcmask 1040384   ;;  %v22586_v2 = vmov 0.0|0.0   ;;  %vm16655_vm1 = vmmov 1   ;;  %v22617_v4 = vmov 0  ;;  %s22575_s0 = inlined_call_operand.vmem [shape: f32[1352,9], index: 0, kind: input, shape index: {}]   ;;  %s22576_s1 = inlined_call_operand.vmem [shape: f32[9,10], index: 1, kind: input, shape index: {}]   ;;  %s22577_s2 = inlined_call_operand.vmem [shape: f32[1,10], index: 2, kind: input, shape index: {}]   ;;  %s22578_s3 = inlined_call_operand.vmem [shape: f32[900,169], index: 3, kind: input, shape index: {}]   ;;  %s22579_s4 = inlined_call_operand.vmem [shape: f32[9,10,10], index: 4, kind: input, shape index: {}]   ;;  %s22580_s5 = inlined_call_operand.vmem [shape: f32[1,10], index: 5, kind: input, shape index: {}]   ;;  %s22581_s6 = inlined_call_operand.vmem [shape: f32[25,10,32], index: 6, kind: input, shape index: {}]   ;;  %s22582_s7 = inlined_call_operand.vmem [shape: f32[1,32], index: 7, kind: input, shape index: {}]   ;;  %s22583_s8 = inlined_call_operand.vmem [shape: f32[32,10], index: 8, kind: input, shape index: {}]   ;;  %s22584_s9 = inlined_call_operand.vmem [shape: f32[1,10], index: 9, kind: input, shape index: {}]   ;;  %s22585_s10 = inlined_call_operand.hbm [shape: f32[2,10], index: 10, kind: output, shape index: {}]  }
   0x1   :  { %v205_v0 = vld [vmem:[%s22576_s1] sm:$0xff]  ;;  %v206_v1 = vld [vmem:[%s22576_s1 + $0x8] sm:$0x1]  ;;  %15819 = vmatprep.subr.bf16.mxu0 %v22586_v2  ;;  %vm16722_vm2 = vmpackc.low %vm723_vm0, %vm16655_vm1  ;;  %16175 = vmatprep.subr.bf16.mxu1 %v22586_v2  ;;  %vm16656_vm3 = vmmov 0   ;;  %v22589_v5 = vmov 0.0   ;;  %vm215_vm4 = vcmask 72704  }
   0x2   :  { %v15820_v3 = vpack.c.bf16 %v206_v1, %v205_v0  ;;  %v22618_v4 = vsel %vm16722_vm2, 4294967295, %v22617_v4  ;;  %14166 = vmatprep.mubr.msk.f32.mxu0 %vm16656_vm3, %v22589_v5  ;;  %v36_v6 = vld [vmem:[%s22575_s0] sm:$0xff]  ;;  %v37_v7 = vld [vmem:[%s22575_s0 + $0x8] sm:$0xff]  ;;  %v38_v8 = vld [vmem:[%s22575_s0 + $0x10] sm:$0xff] }
   0x3   :  { %22619 = vst [vmem:[#allocation5_spill] sm:$0xff] %v22618_v4 }
   0x4   :  { %15822 = vmatpush3.bf16.msk.msra.mxu0 %vm16722_vm2, %v15820_v3 }
   0x5   :  { %15823 = vmatprep.subr.bf16.mxu0 %v22586_v2 }
   0x7   :  { %14167 = vmatmul.mubr.msk.f32.vlgmr.msra.gmra.mrb[0].mxu0 %vm215_vm4, %v36_v6 }
   0x8   :  { %14169 = vmatprep.mubr.msk.f32.mxu0 %vm16656_vm3, %v22589_v5 }
   0xb   :  { %14170 = vmatmul.mubr.msk.f32.gmra.mrb[2].mxu0 %vm215_vm4, %v37_v7 }
   0xc   :  { %14172 = vmatprep.mubr.msk.f32.mxu0 %vm16656_vm3, %v22589_v5 }
   0xd   :  { %15 = vsyncpa [#allocation3], 0  ;;  %v39_v9 = vld [vmem:[%s22575_s0 + $0x18] sm:$0xff]  ;;  %v40_v10 = vld [vmem:[%s22575_s0 + $0x20] sm:$0xff]  ;;  %vm1659_vm5 = vcmask 1046528   ;;  %vm1768_vm6 = vcmask 1045504  }
   0xe   :  { %v41_v11 = vld [vmem:[%s22575_s0 + $0x28] sm:$0xff]  ;;  %v42_v12 = vld [vmem:[%s22575_s0 + $0x30] sm:$0xff]  ;;  %v43_v13 = vld [vmem:[%s22575_s0 + $0x38] sm:$0xff]  ;;  %vm2241_vm7 = vcmask 334848   ;;  %vm1877_vm8 = vcmask 1044480   ;;  %vm3285_vm9 = vcmask 1041408  }
   0xf   :  { %14173 = vmatmul.mubr.msk.f32.gmra.mrb[4].mxu0 %vm215_vm4, %v38_v8  ;;  %v44_v14 = vld [vmem:[%s22575_s0 + $0x40] sm:$0xff]  ;;  %v45_v15 = vld [vmem:[%s22575_s0 + $0x48] sm:$0xff]  ;;  %v46_v16 = vld [vmem:[%s22575_s0 + $0x50] sm:$0xff]  ;;  %vm3232_vm11 = vcmask 1043456   ;;  %vm3258_vm12 = vcmask 80896   ;;  %vm7046_vm13 = vcmask 261120  }
  0x10   :  { %14175 = vmatprep.mubr.msk.f32.mxu0 %vm16656_vm3, %v22589_v5  ;;  %v47_v17 = vld [vmem:[%s22575_s0 + $0x58] sm:$0xff]  ;;  %v48_v18 = vld [vmem:[%s22575_s0 + $0x60] sm:$0xff]  ;;  %v49_v19 = vld [vmem:[%s22575_s0 + $0x68] sm:$0xff]  ;;  %vm7120_vm14 = vcmask 73728  }
  0x11   :  { %v50_v20 = vld [vmem:[%s22575_s0 + $0x70] sm:$0xff]  ;;  %v51_v21 = vld [vmem:[%s22575_s0 + $0x78] sm:$0xff]  ;;  %v52_v22 = vld [vmem:[%s22575_s0 + $0x80] sm:$0xff] }
  0x12   :  { %v53_v23 = vld [vmem:[%s22575_s0 + $0x88] sm:$0xff]  ;;  %v54_v24 = vld [vmem:[%s22575_s0 + $0x90] sm:$0xff]  ;;  %v55_v25 = vld [vmem:[%s22575_s0 + $0x98] sm:$0xff] }
  0x13   :  { %14176 = vmatmul.mubr.msk.f32.gmra.mrb[6].mxu0 %vm215_vm4, %v39_v9  ;;  %v56_v26 = vld [vmem:[%s22575_s0 + $0xa0] sm:$0xff]  ;;  %v57_v27 = vld [vmem:[%s22575_s0 + $0xa8] sm:$0xff]  ;;  %v58_v28 = vld [vmem:[%s22575_s0 + $0xb0] sm:$0xff] }
  0x14   :  { %14178 = vmatprep.mubr.msk.f32.mxu0 %vm16656_vm3, %v22589_v5  ;;  %v59_v29 = vld [vmem:[%s22575_s0 + $0xb8] sm:$0xff]  ;;  %v60_v30 = vld [vmem:[%s22575_s0 + $0xc0] sm:$0xff]  ;;  %v61_v31 = vld [vmem:[%s22575_s0 + $0xc8] sm:$0xff] }
  0x15   :  { %v62_v32 = vld [vmem:[%s22575_s0 + $0xd0] sm:$0xff]  ;;  %v63_v33 = vld [vmem:[%s22575_s0 + $0xd8] sm:$0xff]  ;;  %v64_v34 = vld [vmem:[%s22575_s0 + $0xe0] sm:$0xff] }
  0x16   :  { %v65_v35 = vld [vmem:[%s22575_s0 + $0xe8] sm:$0xff]  ;;  %v66_v36 = vld [vmem:[%s22575_s0 + $0xf0] sm:$0xff]  ;;  %v67_v37 = vld [vmem:[%s22575_s0 + $0xf8] sm:$0xff] }
  0x17   :  { %14179 = vmatmul.mubr.msk.f32.gmra.mrb[8].mxu0 %vm215_vm4, %v40_v10  ;;  %v68_v38 = vld [vmem:[%s22575_s0 + $0x100] sm:$0xff]  ;;  %v69_v39 = vld [vmem:[%s22575_s0 + $0x108] sm:$0xff]  ;;  %v70_v40 = vld [vmem:[%s22575_s0 + $0x110] sm:$0xff] }
  0x18   :  { %14181 = vmatprep.mubr.msk.f32.mxu0 %vm16656_vm3, %v22589_v5  ;;  %v71_v41 = vld [vmem:[%s22575_s0 + $0x118] sm:$0xff]  ;;  %v72_v42 = vld [vmem:[%s22575_s0 + $0x120] sm:$0xff]  ;;  %v73_v43 = vld [vmem:[%s22575_s0 + $0x128] sm:$0xff] }
  0x19   :  { %v74_v44 = vld [vmem:[%s22575_s0 + $0x130] sm:$0xff]  ;;  %v75_v45 = vld [vmem:[%s22575_s0 + $0x138] sm:$0xff]  ;;  %v76_v46 = vld [vmem:[%s22575_s0 + $0x140] sm:$0xff] }
  0x1a   :  { %v77_v47 = vld [vmem:[%s22575_s0 + $0x148] sm:$0xff]  ;;  %v78_v48 = vld [vmem:[%s22575_s0 + $0x150] sm:$0xff]  ;;  %v79_v49 = vld [vmem:[%s22575_s0 + $0x158] sm:$0xff] }
  0x1b   :  { %14182 = vmatmul.mubr.msk.f32.gmra.mrb[10].mxu0 %vm215_vm4, %v41_v11  ;;  %v80_v50 = vld [vmem:[%s22575_s0 + $0x160] sm:$0xff]  ;;  %v81_v51 = vld [vmem:[%s22575_s0 + $0x168] sm:$0xff]  ;;  %v82_v52 = vld [vmem:[%s22575_s0 + $0x170] sm:$0xff] }
  0x1c   :  { %14184 = vmatprep.mubr.msk.f32.mxu0 %vm16656_vm3, %v22589_v5  ;;  %v83_v53 = vld [vmem:[%s22575_s0 + $0x178] sm:$0xff]  ;;  %v84_v54 = vld [vmem:[%s22575_s0 + $0x180] sm:$0xff]  ;;  %v85_v55 = vld [vmem:[%s22575_s0 + $0x188] sm:$0xff] }
  0x1d   :  { %v86_v56 = vld [vmem:[%s22575_s0 + $0x190] sm:$0xff]  ;;  %v87_v57 = vld [vmem:[%s22575_s0 + $0x198] sm:$0xff]  ;;  %v88_v58 = vld [vmem:[%s22575_s0 + $0x1a0] sm:$0xff] }
  0x1e   :  { %v89_v59 = vld [vmem:[%s22575_s0 + $0x1a8] sm:$0xff]  ;;  %v90_v62 = vld [vmem:[%s22575_s0 + $0x1b0] sm:$0xff]  ;;  %v91_v1 = vld [vmem:[%s22575_s0 + $0x1b8] sm:$0xff] }
  0x1f   :  { %14185 = vmatmul.mubr.msk.f32.gmra.mrb[12].mxu0 %vm215_vm4, %v42_v12  ;;  %v92_v7 = vld [vmem:[%s22575_s0 + $0x1c0] sm:$0xff]  ;;  %v93_v10 = vld [vmem:[%s22575_s0 + $0x1c8] sm:$0xff]  ;;  %vm18721_vm10 = vmpackc.low %vm3285_vm9, %vm16655_vm1 }
  0x20   :  { %14187 = vmatprep.mubr.msk.f32.mxu0 %vm16656_vm3, %v22589_v5 }
  0x23   :  { %14188 = vmatmul.mubr.msk.f32.gmra.mrb[14].mxu0 %vm215_vm4, %v43_v13  ;;  %v94_v13 = vld [vmem:[%s22575_s0 + $0x1d0] sm:$0xff] }
  0x24   :  { %14190 = vmatprep.mubr.msk.f32.mxu0 %vm16656_vm3, %v22589_v5 }
  0x27   :  { %14191 = vmatmul.mubr.msk.f32.gmra.mrb[16].mxu0 %vm215_vm4, %v44_v14 }
  0x28   :  { %14193 = vmatprep.mubr.msk.f32.mxu0 %vm16656_vm3, %v22589_v5 }
  0x2b   :  { %14194 = vmatmul.mubr.msk.f32.gmra.mrb[18].mxu0 %vm215_vm4, %v45_v15 }
  0x2c   :  { %14196 = vmatprep.mubr.msk.f32.mxu0 %vm16656_vm3, %v22589_v5 }
  0x2f   :  { %14197 = vmatmul.mubr.msk.f32.gmra.mrb[20].mxu0 %vm215_vm4, %v46_v16  ;;  %v95_v16 = vld [vmem:[%s22575_s0 + $0x1d8] sm:$0xff] }
  0x30   :  { %14199 = vmatprep.mubr.msk.f32.mxu0 %vm16656_vm3, %v22589_v5 }
  0x33   :  { %14200 = vmatmul.mubr.msk.f32.gmra.mrb[22].mxu0 %vm215_vm4, %v47_v17 }
  0x34   :  { %14202 = vmatprep.mubr.msk.f32.mxu0 %vm16656_vm3, %v22589_v5 }
  0x37   :  { %14203 = vmatmul.mubr.msk.f32.gmra.mrb[24].mxu0 %vm215_vm4, %v48_v18 }
  0x38   :  { %14205 = vmatprep.mubr.msk.f32.mxu0 %vm16656_vm3, %v22589_v5 }
  0x3b   :  { %14206 = vmatmul.mubr.msk.f32.gmra.mrb[26].mxu0 %vm215_vm4, %v49_v19  ;;  %v96_v19 = vld [vmem:[%s22575_s0 + $0x1e0] sm:$0xff] }
  0x3c   :  { %14208 = vmatprep.mubr.msk.f32.mxu0 %vm16656_vm3, %v22589_v5 }
  0x3f   :  { %14209 = vmatmul.mubr.msk.f32.gmra.mrb[28].mxu0 %vm215_vm4, %v50_v20 }
  0x40   :  { %14211 = vmatprep.mubr.msk.f32.mxu0 %vm16656_vm3, %v22589_v5 }
  0x43   :  { %14212 = vmatmul.mubr.msk.f32.gmra.mrb[30].mxu0 %vm215_vm4, %v51_v21 }
  0x44   :  { %14214 = vmatprep.mubr.msk.f32.mxu0 %vm16656_vm3, %v22589_v5 }
  0x47   :  { %14215 = vmatmul.mubr.msk.f32.gmra.mrb[32].mxu0 %vm215_vm4, %v52_v22  ;;  %v97_v22 = vld [vmem:[%s22575_s0 + $0x1e8] sm:$0xff] }
  0x48   :  { %14217 = vmatprep.mubr.msk.f32.mxu0 %vm16656_vm3, %v22589_v5 }
  0x4b   :  { %14218 = vmatmul.mubr.msk.f32.gmra.mrb[34].mxu0 %vm215_vm4, %v53_v23 }
  0x4c   :  { %14220 = vmatprep.mubr.msk.f32.mxu0 %vm16656_vm3, %v22589_v5 }
  0x4f   :  { %14221 = vmatmul.mubr.msk.f32.gmra.mrb[36].mxu0 %vm215_vm4, %v54_v24 }
  0x50   :  { %14223 = vmatprep.mubr.msk.f32.mxu0 %vm16656_vm3, %v22589_v5 }
  0x53   :  { %14224 = vmatmul.mubr.msk.f32.gmra.mrb[38].mxu0 %vm215_vm4, %v55_v25  ;;  %v98_v25 = vld [vmem:[%s22575_s0 + $0x1f0] sm:$0xff] }
  0x54   :  { %14226 = vmatprep.mubr.msk.f32.mxu0 %vm16656_vm3, %v22589_v5 }
  0x57   :  { %14227 = vmatmul.mubr.msk.f32.gmra.mrb[40].mxu0 %vm215_vm4, %v56_v26 }
  0x58   :  { %14229 = vmatprep.mubr.msk.f32.mxu0 %vm16656_vm3, %v22589_v5 }
  0x5b   :  { %14230 = vmatmul.mubr.msk.f32.gmra.mrb[42].mxu0 %vm215_vm4, %v57_v27 }
  0x5c   :  { %14232 = vmatprep.mubr.msk.f32.mxu0 %vm16656_vm3, %v22589_v5 }
  0x5f   :  { %14233 = vmatmul.mubr.msk.f32.gmra.mrb[44].mxu0 %vm215_vm4, %v58_v28  ;;  %v99_v28 = vld [vmem:[%s22575_s0 + $0x1f8] sm:$0xff] }
  0x60   :  { %14235 = vmatprep.mubr.msk.f32.mxu0 %vm16656_vm3, %v22589_v5 }
  0x63   :  { %14236 = vmatmul.mubr.msk.f32.gmra.mrb[46].mxu0 %vm215_vm4, %v59_v29 }
  0x64   :  { %14238 = vmatprep.mubr.msk.f32.mxu0 %vm16656_vm3, %v22589_v5 }
  0x67   :  { %14239 = vmatmul.mubr.msk.f32.gmra.mrb[48].mxu0 %vm215_vm4, %v60_v30 }
  0x68   :  { %14241 = vmatprep.mubr.msk.f32.mxu0 %vm16656_vm3, %v22589_v5 }
  0x6b   :  { %14242 = vmatmul.mubr.msk.f32.gmra.mrb[50].mxu0 %vm215_vm4, %v61_v31  ;;  %v100_v31 = vld [vmem:[%s22575_s0 + $0x200] sm:$0xff] }
  0x6c   :  { %14244 = vmatprep.mubr.msk.f32.mxu0 %vm16656_vm3, %v22589_v5 }
  0x6f   :  { %14245 = vmatmul.mubr.msk.f32.gmra.mrb[52].mxu0 %vm215_vm4, %v62_v32 }
  0x70   :  { %14247 = vmatprep.mubr.msk.f32.mxu0 %vm16656_vm3, %v22589_v5 }
  0x73   :  { %14248 = vmatmul.mubr.msk.f32.gmra.mrb[54].mxu0 %vm215_vm4, %v63_v33 }
  0x74   :  { %14250 = vmatprep.mubr.msk.f32.mxu0 %vm16656_vm3, %v22589_v5 }
  0x77   :  { %14251 = vmatmul.mubr.msk.f32.gmra.mrb[56].mxu0 %vm215_vm4, %v64_v34  ;;  %v101_v34 = vld [vmem:[%s22575_s0 + $0x208] sm:$0xff] }
  0x78   :  { %14253 = vmatprep.mubr.msk.f32.mxu0 %vm16656_vm3, %v22589_v5 }
  0x7b   :  { %14254 = vmatmul.mubr.msk.f32.gmra.mrb[58].mxu0 %vm215_vm4, %v65_v35 }
  0x7c   :  { %14256 = vmatprep.mubr.msk.f32.mxu0 %vm16656_vm3, %v22589_v5 }
  0x7f   :  { %14257 = vmatmul.mubr.msk.f32.gmra.mrb[60].mxu0 %vm215_vm4, %v66_v36 }
  0x80   :  { %14259 = vmatprep.mubr.msk.f32.mxu0 %vm16656_vm3, %v22589_v5 }
  0x83   :  { %14260 = vmatmul.mubr.msk.f32.gmra.mrb[62].mxu0 %vm215_vm4, %v67_v37  ;;  %v102_v37 = vld [vmem:[%s22575_s0 + $0x210] sm:$0xff] }
  0x84   :  { %14262 = vmatprep.mubr.msk.f32.mxu0 %vm16656_vm3, %v22589_v5 }
  0x87   :  { %14263 = vmatmul.mubr.msk.f32.gmra.mrb[64].mxu0 %vm215_vm4, %v68_v38 }
  0x88   :  { %14265 = vmatprep.mubr.msk.f32.mxu0 %vm16656_vm3, %v22589_v5 }
  0x8b   :  { %14266 = vmatmul.mubr.msk.f32.gmra.mrb[66].mxu0 %vm215_vm4, %v69_v39 }
  0x8c   :  { %14268 = vmatprep.mubr.msk.f32.mxu0 %vm16656_vm3, %v22589_v5 }
  0x8f   :  { %14269 = vmatmul.mubr.msk.f32.gmra.mrb[68].mxu0 %vm215_vm4, %v70_v40  ;;  %v103_v40 = vld [vmem:[%s22575_s0 + $0x218] sm:$0xff] }
  0x90   :  { %14271 = vmatprep.mubr.msk.f32.mxu0 %vm16656_vm3, %v22589_v5 }
  0x93   :  { %14272 = vmatmul.mubr.msk.f32.gmra.mrb[70].mxu0 %vm215_vm4, %v71_v41 }
  0x94   :  { %14274 = vmatprep.mubr.msk.f32.mxu0 %vm16656_vm3, %v22589_v5 }
  0x97   :  { %14275 = vmatmul.mubr.msk.f32.gmra.mrb[72].mxu0 %vm215_vm4, %v72_v42 }
  0x98   :  { %14277 = vmatprep.mubr.msk.f32.mxu0 %vm16656_vm3, %v22589_v5 }
  0x9b   :  { %14278 = vmatmul.mubr.msk.f32.gmra.mrb[74].mxu0 %vm215_vm4, %v73_v43  ;;  %v104_v43 = vld [vmem:[%s22575_s0 + $0x220] sm:$0xff] }
  0x9c   :  { %14280 = vmatprep.mubr.msk.f32.mxu0 %vm16656_vm3, %v22589_v5 }
  0x9f   :  { %14281 = vmatmul.mubr.msk.f32.gmra.mrb[76].mxu0 %vm215_vm4, %v74_v44 }
  0xa0   :  { %14283 = vmatprep.mubr.msk.f32.mxu0 %vm16656_vm3, %v22589_v5 }
  0xa3   :  { %14284 = vmatmul.mubr.msk.f32.gmra.mrb[78].mxu0 %vm215_vm4, %v75_v45 }
  0xa4   :  { %14286 = vmatprep.mubr.msk.f32.mxu0 %vm16656_vm3, %v22589_v5 }
  0xa7   :  { %14287 = vmatmul.mubr.msk.f32.gmra.mrb[80].mxu0 %vm215_vm4, %v76_v46  ;;  %v105_v46 = vld [vmem:[%s22575_s0 + $0x228] sm:$0xff] }
  0xa8   :  { %14289 = vmatprep.mubr.msk.f32.mxu0 %vm16656_vm3, %v22589_v5 }
  0xab   :  { %14290 = vmatmul.mubr.msk.f32.gmra.mrb[82].mxu0 %vm215_vm4, %v77_v47 }
  0xac   :  { %14292 = vmatprep.mubr.msk.f32.mxu0 %vm16656_vm3, %v22589_v5 }
  0xaf   :  { %14293 = vmatmul.mubr.msk.f32.gmra.mrb[84].mxu0 %vm215_vm4, %v78_v48 }
  0xb0   :  { %14295 = vmatprep.mubr.msk.f32.mxu0 %vm16656_vm3, %v22589_v5 }
  0xb3   :  { %14296 = vmatmul.mubr.msk.f32.gmra.mrb[86].mxu0 %vm215_vm4, %v79_v49  ;;  %v106_v49 = vld [vmem:[%s22575_s0 + $0x230] sm:$0xff] }
  0xb4   :  { %14298 = vmatprep.mubr.msk.f32.mxu0 %vm16656_vm3, %v22589_v5 }
  0xb7   :  { %14299 = vmatmul.mubr.msk.f32.gmra.mrb[88].mxu0 %vm215_vm4, %v80_v50 }
  0xb8   :  { %14301 = vmatprep.mubr.msk.f32.mxu0 %vm16656_vm3, %v22589_v5 }
  0xbb   :  { %14302 = vmatmul.mubr.msk.f32.gmra.mrb[90].mxu0 %vm215_vm4, %v81_v51 }
  0xbc   :  { %14304 = vmatprep.mubr.msk.f32.mxu0 %vm16656_vm3, %v22589_v5 }
  0xbf   :  { %14305 = vmatmul.mubr.msk.f32.gmra.mrb[92].mxu0 %vm215_vm4, %v82_v52  ;;  %v107_v52 = vld [vmem:[%s22575_s0 + $0x238] sm:$0xff] }
  0xc0   :  { %14307 = vmatprep.mubr.msk.f32.mxu0 %vm16656_vm3, %v22589_v5 }
  0xc3   :  { %14308 = vmatmul.mubr.msk.f32.gmra.mrb[94].mxu0 %vm215_vm4, %v83_v53 }
  0xc4   :  { %14310 = vmatprep.mubr.msk.f32.mxu0 %vm16656_vm3, %v22589_v5 }
  0xc7   :  { %14311 = vmatmul.mubr.msk.f32.gmra.mrb[96].mxu0 %vm215_vm4, %v84_v54 }
  0xc8   :  { %14313 = vmatprep.mubr.msk.f32.mxu0 %vm16656_vm3, %v22589_v5 }
  0xcb   :  { %14314 = vmatmul.mubr.msk.f32.gmra.mrb[98].mxu0 %vm215_vm4, %v85_v55  ;;  %v108_v55 = vld [vmem:[%s22575_s0 + $0x240] sm:$0xff] }
  0xcc   :  { %14316 = vmatprep.mubr.msk.f32.mxu0 %vm16656_vm3, %v22589_v5 }
  0xcf   :  { %14317 = vmatmul.mubr.msk.f32.gmra.mrb[100].mxu0 %vm215_vm4, %v86_v56 }
  0xd0   :  { %14319 = vmatprep.mubr.msk.f32.mxu0 %vm16656_vm3, %v22589_v5 }
  0xd3   :  { %14320 = vmatmul.mubr.msk.f32.gmra.mrb[102].mxu0 %vm215_vm4, %v87_v57 }
  0xd4   :  { %14322 = vmatprep.mubr.msk.f32.mxu0 %vm16656_vm3, %v22589_v5 }
  0xd7   :  { %14323 = vmatmul.mubr.msk.f32.gmra.mrb[104].mxu0 %vm215_vm4, %v88_v58  ;;  %v109_v58 = vld [vmem:[%s22575_s0 + $0x248] sm:$0xff] }
  0xd8   :  { %14325 = vmatprep.mubr.msk.f32.mxu0 %vm16656_vm3, %v22589_v5 }
  0xda   :  { %v17053_v60 = vpop.f32.mrb[0].mxu0 }
  0xdb   :  { %v14168_v61 = vpop.f32.mrb[1].mxu0  ;;  %14326 = vmatmul.mubr.msk.f32.gmra.mrb[106].mxu0 %vm215_vm4, %v89_v59 }
  0xdc   :  { %14328 = vmatprep.mubr.msk.f32.mxu0 %vm16656_vm3, %v22589_v5 }
  0xde   :  { %v17061_v63 = vpop.f32.mrb[2].mxu0 }
  0xdf   :  { %v14171_v0 = vpop.f32.mrb[3].mxu0  ;;  %14329 = vmatmul.mubr.msk.f32.gmra.mrb[108].mxu0 %vm215_vm4, %v90_v62  ;;  %v110_v62 = vld [vmem:[%s22575_s0 + $0x250] sm:$0xff] }
  0xe0   :  { %14331 = vmatprep.mubr.msk.f32.mxu0 %vm16656_vm3, %v22589_v5 }
  0xe2   :  { %v17069_v3 = vpop.f32.mrb[4].mxu0 }
  0xe3   :  { %v14174_v6 = vpop.f32.mrb[5].mxu0  ;;  %14332 = vmatmul.mubr.msk.f32.gmra.mrb[110].mxu0 %vm215_vm4, %v91_v1 }
  0xe4   :  { %14334 = vmatprep.mubr.msk.f32.mxu0 %vm16656_vm3, %v22589_v5  ;;  %v111_v6 = vld [vmem:[%s22575_s0 + $0x258] sm:$0xff] }
  0xe6   :  { %v17077_v8 = vpop.f32.mrb[6].mxu0 }
  0xe7   :  { %v14177_v9 = vpop.f32.mrb[7].mxu0  ;;  %14335 = vmatmul.mubr.msk.f32.gmra.mrb[112].mxu0 %vm215_vm4, %v92_v7 }
  0xe8   :  { %14337 = vmatprep.mubr.msk.f32.mxu0 %vm16656_vm3, %v22589_v5 }
  0xea   :  { %v17085_v11 = vpop.f32.mrb[8].mxu0 }
  0xeb   :  { %v14180_v12 = vpop.f32.mrb[9].mxu0  ;;  %14338 = vmatmul.mubr.msk.f32.gmra.mrb[114].mxu0 %vm215_vm4, %v93_v10 }
  0xec   :  { %14340 = vmatprep.mubr.msk.f32.mxu0 %vm16656_vm3, %v22589_v5 }
  0xee   :  { %v17093_v14 = vpop.f32.mrb[10].mxu0 }
  0xef   :  { %v14183_v15 = vpop.f32.mrb[11].mxu0  ;;  %14341 = vmatmul.mubr.msk.f32.gmra.mrb[116].mxu0 %vm215_vm4, %v94_v13  ;;  %v112_v13 = vld [vmem:[%s22575_s0 + $0x260] sm:$0xff] }
  0xf0   :  { %14343 = vmatprep.mubr.msk.f32.mxu0 %vm16656_vm3, %v22589_v5 }
  0xf2   :  { %v17101_v17 = vpop.f32.mrb[12].mxu0 }
  0xf3   :  { %v14186_v18 = vpop.f32.mrb[13].mxu0  ;;  %14344 = vmatmul.mubr.msk.f32.gmra.mrb[118].mxu0 %vm215_vm4, %v95_v16 }
  0xf4   :  { %14346 = vmatprep.mubr.msk.f32.mxu0 %vm16656_vm3, %v22589_v5 }
  0xf6   :  { %v17109_v20 = vpop.f32.mrb[14].mxu0 }
  0xf7   :  { %v14189_v21 = vpop.f32.mrb[15].mxu0  ;;  %14347 = vmatmul.mubr.msk.f32.gmra.mrb[120].mxu0 %vm215_vm4, %v96_v19 }
  0xf8   :  { %14349 = vmatprep.mubr.msk.f32.mxu0 %vm16656_vm3, %v22589_v5 }
  0xfa   :  { %v17117_v23 = vpop.f32.mrb[16].mxu0 }
  0xfb   :  { %v14192_v24 = vpop.f32.mrb[17].mxu0  ;;  %14350 = vmatmul.mubr.msk.f32.gmra.mrb[122].mxu0 %vm215_vm4, %v97_v22  ;;  %v113_v22 = vld [vmem:[%s22575_s0 + $0x268] sm:$0xff] }
  0xfc   :  { %14352 = vmatprep.mubr.msk.f32.mxu0 %vm16656_vm3, %v22589_v5 }
  0xfe   :  { %v17125_v26 = vpop.f32.mrb[18].mxu0 }
  0xff   :  { %v14195_v27 = vpop.f32.mrb[19].mxu0  ;;  %14353 = vmatmul.mubr.msk.f32.gmra.mrb[124].mxu0 %vm215_vm4, %v98_v25 }
 0x100   :  { %14355 = vmatprep.mubr.msk.f32.mxu0 %vm16656_vm3, %v22589_v5 }
 0x102   :  { %v17133_v29 = vpop.f32.mrb[20].mxu0 }
 0x103   :  { %v14198_v30 = vpop.f32.mrb[21].mxu0  ;;  %14356 = vmatmul.mubr.msk.f32.gmra.mrb[126].mxu0 %vm215_vm4, %v99_v28 }
 0x104   :  { %14358 = vmatprep.mubr.msk.f32.mxu0 %vm16656_vm3, %v22589_v5 }
 0x106   :  { %v17141_v32 = vpop.f32.mrb[22].mxu0 }
 0x107   :  { %v14201_v33 = vpop.f32.mrb[23].mxu0  ;;  %14359 = vmatmul.mubr.msk.f32.gmra.mrb[128].mxu0 %vm215_vm4, %v100_v31  ;;  %v114_v31 = vld [vmem:[%s22575_s0 + $0x270] sm:$0xff] }
 0x108   :  { %14361 = vmatprep.mubr.msk.f32.mxu0 %vm16656_vm3, %v22589_v5 }
 0x10a   :  { %v17149_v35 = vpop.f32.mrb[24].mxu0 }
 0x10b   :  { %v14204_v36 = vpop.f32.mrb[25].mxu0  ;;  %14362 = vmatmul.mubr.msk.f32.gmra.mrb[130].mxu0 %vm215_vm4, %v101_v34 }
 0x10c   :  { %14364 = vmatprep.mubr.msk.f32.mxu0 %vm16656_vm3, %v22589_v5 }
 0x10e   :  { %v17157_v38 = vpop.f32.mrb[26].mxu0 }
 0x10f   :  { %v14207_v39 = vpop.f32.mrb[27].mxu0  ;;  %14365 = vmatmul.mubr.msk.f32.gmra.mrb[132].mxu0 %vm215_vm4, %v102_v37 }
 0x110   :  { %14367 = vmatprep.mubr.msk.f32.mxu0 %vm16656_vm3, %v22589_v5 }
 0x112   :  { %v17165_v41 = vpop.f32.mrb[28].mxu0 }
 0x113   :  { %v14210_v42 = vpop.f32.mrb[29].mxu0  ;;  %14368 = vmatmul.mubr.msk.f32.gmra.mrb[134].mxu0 %vm215_vm4, %v103_v40  ;;  %v115_v40 = vld [vmem:[%s22575_s0 + $0x278] sm:$0xff] }
 0x114   :  { %14370 = vmatprep.mubr.msk.f32.mxu0 %vm16656_vm3, %v22589_v5 }
 0x116   :  { %v17173_v44 = vpop.f32.mrb[30].mxu0 }
 0x117   :  { %v14213_v45 = vpop.f32.mrb[31].mxu0  ;;  %14371 = vmatmul.mubr.msk.f32.gmra.mrb[136].mxu0 %vm215_vm4, %v104_v43 }
 0x118   :  { %14373 = vmatprep.mubr.msk.f32.mxu0 %vm16656_vm3, %v22589_v5 }
 0x11a   :  { %v17181_v47 = vpop.f32.mrb[32].mxu0 }
 0x11b   :  { %v14216_v48 = vpop.f32.mrb[33].mxu0  ;;  %14374 = vmatmul.mubr.msk.f32.gmra.mrb[138].mxu0 %vm215_vm4, %v105_v46 }
 0x11c   :  { %14376 = vmatprep.mubr.msk.f32.mxu0 %vm16656_vm3, %v22589_v5 }
 0x11e   :  { %v17189_v50 = vpop.f32.mrb[34].mxu0 }
 0x11f   :  { %v14219_v51 = vpop.f32.mrb[35].mxu0  ;;  %14377 = vmatmul.mubr.msk.f32.gmra.mrb[140].mxu0 %vm215_vm4, %v106_v49  ;;  %v116_v49 = vld [vmem:[%s22575_s0 + $0x280] sm:$0xff] }
 0x120   :  { %14379 = vmatprep.mubr.msk.f32.mxu0 %vm16656_vm3, %v22589_v5 }
 0x122   :  { %v17197_v53 = vpop.f32.mrb[36].mxu0 }
 0x123   :  { %v14222_v54 = vpop.f32.mrb[37].mxu0  ;;  %14380 = vmatmul.mubr.msk.f32.gmra.mrb[142].mxu0 %vm215_vm4, %v107_v52 }
 0x124   :  { %14382 = vmatprep.mubr.msk.f32.mxu0 %vm16656_vm3, %v22589_v5 }
 0x126   :  { %v17205_v56 = vpop.f32.mrb[38].mxu0 }
 0x127   :  { %v14225_v57 = vpop.f32.mrb[39].mxu0  ;;  %14383 = vmatmul.mubr.msk.f32.gmra.mrb[144].mxu0 %vm215_vm4, %v108_v55 }
 0x128   :  { %14385 = vmatprep.mubr.msk.f32.mxu0 %vm16656_vm3, %v22589_v5 }
 0x12a   :  { %v17213_v59 = vpop.f32.mrb[40].mxu0 }
 0x12b   :  { %v14228_v61 = vpop.f32.mrb[41].mxu0  ;;  %14386 = vmatmul.mubr.msk.f32.gmra.mrb[146].mxu0 %vm215_vm4, %v109_v58  ;;  %v117_v58 = vld [vmem:[%s22575_s0 + $0x288] sm:$0xff] }
 0x12c   :  { %14388 = vmatprep.mubr.msk.f32.mxu0 %vm16656_vm3, %v22589_v5 }
 0x12e   :  { %v17221_v0 = vpop.f32.mrb[42].mxu0 }
 0x12f   :  { %v14231_v1 = vpop.f32.mrb[43].mxu0  ;;  %14389 = vmatmul.mubr.msk.f32.gmra.mrb[148].mxu0 %vm215_vm4, %v110_v62  ;;  %v1660_v9 = vrot.slane %v17221_v0, 1 }
 0x130   :  { %14391 = vmatprep.mubr.msk.f32.mxu0 %vm16656_vm3, %v22589_v5 }
 0x132   :  { %v903_v7 = vpop.f32.mrb[44].mxu0 }
 0x133   :  { %v1661_v10 = vrot.slane %v903_v7, 1  ;;  %v14234_v12 = vpop.f32.mrb[45].mxu0  ;;  %14392 = vmatmul.mubr.msk.f32.gmra.mrb[150].mxu0 %vm215_vm4, %v111_v6 }
 0x134   :  { %14394 = vmatprep.mubr.msk.f32.mxu0 %vm16656_vm3, %v22589_v5 }
 0x135   :  { %v17237_v15 = vsel %vm1659_vm5, %v1660_v9, %v1661_v10  ;;  %v118_v9 = vld [vmem:[%s22575_s0 + $0x290] sm:$0xff] }
 0x136   :  { %v1725_v16 = vmax.f32 %v17053_v60, %v17237_v15  ;;  %v908_v18 = vpop.f32.mrb[46].mxu0 }
 0x137   :  { %v1663_v19 = vrot.slane %v908_v18, 1  ;;  %v14237_v21 = vpop.f32.mrb[47].mxu0  ;;  %14395 = vmatmul.mubr.msk.f32.gmra.mrb[152].mxu0 %vm215_vm4, %v112_v13 }
 0x138   :  { %14397 = vmatprep.mubr.msk.f32.mxu0 %vm16656_vm3, %v22589_v5  ;;  %v119_v21 = vld [vmem:[%s22575_s0 + $0x298] sm:$0xff] }
 0x139   :  { %v17248_v24 = vsel %vm1659_vm5, %v1661_v10, %v1663_v19 }
 0x13a   :  { %v1726_v25 = vmax.f32 %v17061_v63, %v17248_v24  ;;  %v913_v27 = vpop.f32.mrb[48].mxu0 }
 0x13b   :  { %v1665_v28 = vrot.slane %v913_v27, 1  ;;  %v14240_v30 = vpop.f32.mrb[49].mxu0  ;;  %14398 = vmatmul.mubr.msk.f32.gmra.mrb[154].mxu0 %vm215_vm4, %v113_v22 }
 0x13c   :  { %14400 = vmatprep.mubr.msk.f32.mxu0 %vm16656_vm3, %v22589_v5 }
 0x13d   :  { %v17259_v33 = vsel %vm1659_vm5, %v1663_v19, %v1665_v28 }
 0x13e   :  { %v1727_v34 = vmax.f32 %v17069_v3, %v17259_v33  ;;  %v918_v36 = vpop.f32.mrb[50].mxu0 }
 0x13f   :  { %v1667_v37 = vrot.slane %v918_v36, 1  ;;  %v14243_v39 = vpop.f32.mrb[51].mxu0  ;;  %14401 = vmatmul.mubr.msk.f32.gmra.mrb[156].mxu0 %vm215_vm4, %v114_v31  ;;  %v120_v36 = vld [vmem:[%s22575_s0 + $0x2a0] sm:$0xff] }
 0x140   :  { %14403 = vmatprep.mubr.msk.f32.mxu0 %vm16656_vm3, %v22589_v5 }
 0x141   :  { %v17270_v42 = vsel %vm1659_vm5, %v1665_v28, %v1667_v37 }
 0x142   :  { %v1728_v43 = vmax.f32 %v17077_v8, %v17270_v42  ;;  %v923_v45 = vpop.f32.mrb[52].mxu0 }
 0x143   :  { %v1669_v46 = vrot.slane %v923_v45, 1  ;;  %v14246_v48 = vpop.f32.mrb[53].mxu0  ;;  %14404 = vmatmul.mubr.msk.f32.gmra.mrb[158].mxu0 %vm215_vm4, %v115_v40 }
 0x144   :  { %14406 = vmatprep.mubr.msk.f32.mxu0 %vm16656_vm3, %v22589_v5  ;;  %v121_v48 = vld [vmem:[%s22575_s0 + $0x2a8] sm:$0xff] }
 0x145   :  { %v17281_v51 = vsel %vm1659_vm5, %v1667_v37, %v1669_v46 }
 0x146   :  { %v1729_v52 = vmax.f32 %v17085_v11, %v17281_v51  ;;  %v928_v54 = vpop.f32.mrb[54].mxu0 }
 0x147   :  { %v1671_v55 = vrot.slane %v928_v54, 1  ;;  %v14249_v57 = vpop.f32.mrb[55].mxu0  ;;  %14407 = vmatmul.mubr.msk.f32.gmra.mrb[160].mxu0 %vm215_vm4, %v116_v49 }
 0x148   :  { %14409 = vmatprep.mubr.msk.f32.mxu0 %vm16656_vm3, %v22589_v5 }
 0x149   :  { %v17292_v61 = vsel %vm1659_vm5, %v1669_v46, %v1671_v55 }
 0x14a   :  { %v1730_v62 = vmax.f32 %v17093_v14, %v17292_v61  ;;  %v933_v1 = vpop.f32.mrb[56].mxu0 }
 0x14b   :  { %v1673_v6 = vrot.slane %v933_v1, 1  ;;  %v14252_v7 = vpop.f32.mrb[57].mxu0  ;;  %14410 = vmatmul.mubr.msk.f32.gmra.mrb[162].mxu0 %vm215_vm4, %v117_v58  ;;  %v122_v1 = vld [vmem:[%s22575_s0 + $0x2b0] sm:$0xff] }
 0x14c   :  { %14412 = vmatprep.mubr.msk.f32.mxu0 %vm16656_vm3, %v22589_v5 }
 0x14d   :  { %v17303_v10 = vsel %vm1659_vm5, %v1671_v55, %v1673_v6 }
 0x14e   :  { %v1731_v12 = vmax.f32 %v17101_v17, %v17303_v10  ;;  %v938_v13 = vpop.f32.mrb[58].mxu0 }
 0x14f   :  { %v1675_v18 = vrot.slane %v938_v13, 1  ;;  %v14255_v19 = vpop.f32.mrb[59].mxu0  ;;  %14413 = vmatmul.mubr.msk.f32.gmra.mrb[164].mxu0 %vm215_vm4, %v118_v9 }
 0x150   :  { %14415 = vmatprep.mubr.msk.f32.mxu0 %vm16656_vm3, %v22589_v5  ;;  %v123_v19 = vld [vmem:[%s22575_s0 + $0x2b8] sm:$0xff] }
 0x151   :  { %v17314_v22 = vsel %vm1659_vm5, %v1673_v6, %v1675_v18 }
 0x152   :  { %v1732_v27 = vmax.f32 %v17109_v20, %v17314_v22  ;;  %v943_v28 = vpop.f32.mrb[60].mxu0 }
 0x153   :  { %v1677_v30 = vrot.slane %v943_v28, 1  ;;  %v14258_v31 = vpop.f32.mrb[61].mxu0  ;;  %14416 = vmatmul.mubr.msk.f32.gmra.mrb[166].mxu0 %vm215_vm4, %v119_v21 }
 0x154   :  { %14418 = vmatprep.mubr.msk.f32.mxu0 %vm16656_vm3, %v22589_v5 }
 0x155   :  { %v17325_v37 = vsel %vm1659_vm5, %v1675_v18, %v1677_v30 }
 0x156   :  { %v1733_v39 = vmax.f32 %v17117_v23, %v17325_v37  ;;  %v948_v40 = vpop.f32.mrb[62].mxu0 }
 0x157   :  { %v1679_v45 = vrot.slane %v948_v40, 1  ;;  %v14261_v46 = vpop.f32.mrb[63].mxu0  ;;  %14419 = vmatmul.mubr.msk.f32.gmra.mrb[168].mxu0 %vm215_vm4, %v120_v36  ;;  %v124_v40 = vld [vmem:[%s22575_s0 + $0x2c0] sm:$0xff] }
 0x158   :  { %14421 = vmatprep.mubr.msk.f32.mxu0 %vm16656_vm3, %v22589_v5 }
 0x159   :  { %v17336_v49 = vsel %vm1659_vm5, %v1677_v30, %v1679_v45 }
 0x15a   :  { %v953_v55 = vpop.f32.mrb[64].mxu0 }
 0x15b   :  { %v1681_v57 = vrot.slane %v953_v55, 1  ;;  %v14264_v58 = vpop.f32.mrb[65].mxu0  ;;  %14422 = vmatmul.mubr.msk.f32.gmra.mrb[170].mxu0 %vm215_vm4, %v121_v48 }
 0x15c   :  { %14424 = vmatprep.mubr.msk.f32.mxu0 %vm16656_vm3, %v22589_v5  ;;  %v125_v58 = vld [vmem:[%s22575_s0 + $0x2c8] sm:$0xff] }
 0x15d   :  { %v17347_v6 = vsel %vm1659_vm5, %v1679_v45, %v1681_v57 }
 0x15e   :  { %v958_v9 = vpop.f32.mrb[66].mxu0 }
 0x15f   :  { %v1683_v13 = vrot.slane %v958_v9, 1  ;;  %v14267_v18 = vpop.f32.mrb[67].mxu0  ;;  %14425 = vmatmul.mubr.msk.f32.gmra.mrb[172].mxu0 %vm215_vm4, %v122_v1 }
 0x160   :  { %14427 = vmatprep.mubr.msk.f32.mxu0 %vm16656_vm3, %v22589_v5 }
 0x161   :  { %v17358_v21 = vsel %vm1659_vm5, %v1681_v57, %v1683_v13 }
 0x162   :  { %v963_v30 = vpop.f32.mrb[68].mxu0 }
 0x163   :  { %v1685_v31 = vrot.slane %v963_v30, 1  ;;  %v14270_v36 = vpop.f32.mrb[69].mxu0  ;;  %14428 = vmatmul.mubr.msk.f32.gmra.mrb[174].mxu0 %vm215_vm4, %v123_v19  ;;  %v126_v30 = vld [vmem:[%s22575_s0 + $0x2d0] sm:$0xff] }
 0x164   :  { %14430 = vmatprep.mubr.msk.f32.mxu0 %vm16656_vm3, %v22589_v5 }
 0x165   :  { %v17369_v45 = vsel %vm1659_vm5, %v1683_v13, %v1685_v31 }
 0x166   :  { %v968_v48 = vpop.f32.mrb[70].mxu0 }
 0x167   :  { %v1687_v55 = vrot.slane %v968_v48, 1  ;;  %v14273_v57 = vpop.f32.mrb[71].mxu0  ;;  %14431 = vmatmul.mubr.msk.f32.gmra.mrb[176].mxu0 %vm215_vm4, %v124_v40 }
 0x168   :  { %14433 = vmatprep.mubr.msk.f32.mxu0 %vm16656_vm3, %v22589_v5 }
 0x169   :  { %v17380_v1 = vsel %vm1659_vm5, %v1685_v31, %v1687_v55 }
 0x16a   :  { %v973_v13 = vpop.f32.mrb[72].mxu0 }
 0x16b   :  { %v1689_v18 = vrot.slane %v973_v13, 1  ;;  %v14276_v19 = vpop.f32.mrb[73].mxu0  ;;  %14434 = vmatmul.mubr.msk.f32.gmra.mrb[178].mxu0 %vm215_vm4, %v125_v58  ;;  %v127_v58 = vld [vmem:[%s22575_s0 + $0x2d8] sm:$0xff] }
 0x16c   :  { %14436 = vmatprep.mubr.msk.f32.mxu0 %vm16656_vm3, %v22589_v5 }
 0x16d   :  { %v17391_v36 = vsel %vm1659_vm5, %v1687_v55, %v1689_v18 }
 0x16e   :  { %v978_v40 = vpop.f32.mrb[74].mxu0 }
 0x16f   :  { %v1691_v48 = vrot.slane %v978_v40, 1  ;;  %v14279_v57 = vpop.f32.mrb[75].mxu0  ;;  %14437 = vmatmul.mubr.msk.f32.gmra.mrb[180].mxu0 %vm215_vm4, %v126_v30  ;;  %v128_v30 = vld [vmem:[%s22575_s0 + $0x2e0] sm:$0xff] }
 0x170   :  { %14439 = vmatprep.mubr.msk.f32.mxu0 %vm16656_vm3, %v22589_v5 }
 0x171   :  { %v17402_v13 = vsel %vm1659_vm5, %v1689_v18, %v1691_v48 }
 0x172   :  { %v983_v19 = vpop.f32.mrb[76].mxu0 }
 0x173   :  { %v1693_v2 = vrot.slane %v983_v19, 1  ;;  %v14282_v31 = vpop.f32.mrb[77].mxu0  ;;  %14440 = vmatmul.mubr.msk.f32.gmra.mrb[182].mxu0 %vm215_vm4, %v127_v58 }
 0x174   :  { %14442 = vmatprep.mubr.msk.f32.mxu0 %vm16656_vm3, %v22589_v5  ;;  %v129_v31 = vld [vmem:[%s22575_s0 + $0x2e8] sm:$0xff] }
 0x175   :  { %v17413_v40 = vsel %vm1659_vm5, %v1691_v48, %v1693_v2 }
 0x176   :  { %v988_v57 = vpop.f32.mrb[78].mxu0 }
 0x177   :  { %v1695_v55 = vrot.slane %v988_v57, 1  ;;  %v14285_v9 = vpop.f32.mrb[79].mxu0  ;;  %14443 = vmatmul.mubr.msk.f32.gmra.mrb[184].mxu0 %vm215_vm4, %v128_v30 }
 0x178   :  { %14445 = vmatprep.mubr.msk.f32.mxu0 %vm16656_vm3, %v22589_v5  ;;  %v130_v9 = vld [vmem:[%s22575_s0 + $0x2f0] sm:$0xff] }
 0x179   :  { %v17424_v58 = vsel %vm1659_vm5, %v1693_v2, %v1695_v55 }
 0x17a   :  { %v993_v19 = vpop.f32.mrb[80].mxu0 }
 0x17b   :  { %v1697_v18 = vrot.slane %v993_v19, 1  ;;  %v14288_v46 = vpop.f32.mrb[81].mxu0  ;;  %14446 = vmatmul.mubr.msk.f32.gmra.mrb[186].mxu0 %vm215_vm4, %v129_v31 }
 0x17c   :  { %14448 = vmatprep.mubr.msk.f32.mxu0 %vm16656_vm3, %v22589_v5  ;;  %v131_v46 = vld [vmem:[%s22575_s0 + $0x2f8] sm:$0xff] }
 0x17d   :  { %v17435_v30 = vsel %vm1659_vm5, %v1695_v55, %v1697_v18 }
 0x17e   :  { %v998_v57 = vpop.f32.mrb[82].mxu0 }
 0x17f   :  { %v1699_v48 = vrot.slane %v998_v57, 1  ;;  %v14291_v28 = vpop.f32.mrb[83].mxu0  ;;  %14449 = vmatmul.mubr.msk.f32.gmra.mrb[188].mxu0 %vm215_vm4, %v130_v9 }
 0x180   :  { %14451 = vmatprep.mubr.msk.f32.mxu0 %vm16656_vm3, %v22589_v5  ;;  %v132_v28 = vld [vmem:[%s22575_s0 + $0x300] sm:$0xff] }
 0x181   :  { %v17446_v31 = vsel %vm1659_vm5, %v1697_v18, %v1699_v48 }
 0x182   :  { %v1003_v19 = vpop.f32.mrb[84].mxu0 }
 0x183   :  { %v1701_v2 = vrot.slane %v1003_v19, 1  ;;  %v14294_v7 = vpop.f32.mrb[85].mxu0  ;;  %14452 = vmatmul.mubr.msk.f32.gmra.mrb[190].mxu0 %vm215_vm4, %v131_v46 }
 0x184   :  { %14454 = vmatprep.mubr.msk.f32.mxu0 %vm16656_vm3, %v22589_v5  ;;  %v1769_v7 = vrot.slane %v1003_v19, 2 }
 0x185   :  { %v17457_v9 = vsel %vm1659_vm5, %v1699_v48, %v1701_v2  ;;  %v17460_v18 = vmax.f32 %v17221_v0, %v1701_v2  ;;  %v133_v48 = vld [vmem:[%s22575_s0 + $0x308] sm:$0xff] }
 0x186   :  { %v1008_v55 = vpop.f32.mrb[86].mxu0 }
 0x187   :  { %v1770_v46 = vrot.slane %v1008_v55, 2  ;;  %v14297_v54 = vpop.f32.mrb[87].mxu0  ;;  %14455 = vmatmul.mubr.msk.f32.gmra.mrb[192].mxu0 %vm215_vm4, %v132_v28 }
 0x188   :  { %14457 = vmatprep.mubr.msk.f32.mxu0 %vm16656_vm3, %v22589_v5  ;;  %v134_v54 = vld [vmem:[%s22575_s0 + $0x310] sm:$0xff] }
 0x189   :  { %v1771_v0 = vsel %vm1768_vm6, %v1769_v7, %v1770_v46  ;;  %v135_v7 = vld [vmem:[%s22575_s0 + $0x318] sm:$0xff] }
 0x18a   :  { %v17474_v2 = vmax.f32 %v1725_v16, %v1771_v0  ;;  %v1013_v57 = vpop.f32.mrb[88].mxu0  ;;  %v136_v0 = vld [vmem:[%s22575_s0 + $0x320] sm:$0xff] }
 0x18b   :  { %v1772_v19 = vrot.slane %v1013_v57, 2  ;;  %v14300_v55 = vpop.f32.mrb[89].mxu0  ;;  %14458 = vmatmul.mubr.msk.f32.gmra.mrb[194].mxu0 %vm215_vm4, %v133_v48 }
 0x18c   :  { %14460 = vmatprep.mubr.msk.f32.mxu0 %vm16656_vm3, %v22589_v5 }
 0x18d   :  { %v1773_v28 = vsel %vm1768_vm6, %v1770_v46, %v1772_v19 }
 0x18e   :  { %v17486_v60 = vmax.f32 %v1726_v25, %v1773_v28  ;;  %v1018_v15 = vpop.f32.mrb[90].mxu0 }
 0x18f   :  { %v1774_v16 = vrot.slane %v1018_v15, 2  ;;  %v14303_v57 = vpop.f32.mrb[91].mxu0  ;;  %14461 = vmatmul.mubr.msk.f32.gmra.mrb[196].mxu0 %vm215_vm4, %v134_v54  ;;  %v137_v54 = vld [vmem:[%s22575_s0 + $0x328] sm:$0xff] }
 0x190   :  { %14463 = vmatprep.mubr.msk.f32.mxu0 %vm16656_vm3, %v22589_v5 }
 0x191   :  { %v1775_v48 = vsel %vm1768_vm6, %v1772_v19, %v1774_v16 }
 0x192   :  { %v17498_v63 = vmax.f32 %v1727_v34, %v1775_v48  ;;  %v1023_v24 = vpop.f32.mrb[92].mxu0  ;;  %v139_v48 = vld [vmem:[%s22575_s0 + $0x338] sm:$0xff] }
 0x193   :  { %v1776_v25 = vrot.slane %v1023_v24, 2  ;;  %v14306_v46 = vpop.f32.mrb[93].mxu0  ;;  %14464 = vmatmul.mubr.msk.f32.gmra.mrb[198].mxu0 %vm215_vm4, %v135_v7 }
 0x194   :  { %14466 = vmatprep.mubr.msk.f32.mxu0 %vm16656_vm3, %v22589_v5  ;;  %v140_v46 = vld [vmem:[%s22575_s0 + $0x340] sm:$0xff] }
 0x195   :  { %v1777_v55 = vsel %vm1768_vm6, %v1774_v16, %v1776_v25  ;;  %v138_v16 = vld [vmem:[%s22575_s0 + $0x330] sm:$0xff] }
 0x196   :  { %v17510_v3 = vmax.f32 %v1728_v43, %v1777_v55  ;;  %v1028_v33 = vpop.f32.mrb[94].mxu0 }
 0x197   :  { %v1778_v34 = vrot.slane %v1028_v33, 2  ;;  %v14309_v19 = vpop.f32.mrb[95].mxu0  ;;  %14467 = vmatmul.mubr.msk.f32.gmra.mrb[200].mxu0 %vm215_vm4, %v136_v0  ;;  %v141_v33 = vld [vmem:[%s22575_s0 + $0x348] sm:$0xff] }
 0x198   :  { %14469 = vmatprep.mubr.msk.f32.mxu0 %vm16656_vm3, %v22589_v5 }
 0x199   :  { %v1779_v28 = vsel %vm1768_vm6, %v1776_v25, %v1778_v34 }
 0x19a   :  { %v17522_v8 = vmax.f32 %v1729_v52, %v1779_v28  ;;  %v1033_v42 = vpop.f32.mrb[96].mxu0 }
 0x19b   :  { %v1780_v43 = vrot.slane %v1033_v42, 2  ;;  %v14312_v15 = vpop.f32.mrb[97].mxu0  ;;  %14470 = vmatmul.mubr.msk.f32.gmra.mrb[202].mxu0 %vm215_vm4, %v137_v54  ;;  %v142_v54 = vld [vmem:[%s22575_s0 + $0x350] sm:$0xff]  ;;  %v22620_v42 = vmax.f32 %v17125_v26, %v17336_v49 }
 0x19c   :  { %14472 = vmatprep.mubr.msk.f32.mxu0 %vm16656_vm3, %v22589_v5  ;;  %v143_v15 = vld [vmem:[%s22575_s0 + $0x358] sm:$0xff] }
 0x19d   :  { %v1781_v57 = vsel %vm1768_vm6, %v1778_v34, %v1780_v43 }
 0x19e   :  { %v17534_v11 = vmax.f32 %v1730_v62, %v1781_v57  ;;  %v1038_v51 = vpop.f32.mrb[98].mxu0  ;;  %v22621_v57 = vmax.f32 %v17133_v29, %v17347_v6 }
 0x19f   :  { %v1782_v52 = vrot.slane %v1038_v51, 2  ;;  %v14315_v7 = vpop.f32.mrb[99].mxu0  ;;  %14473 = vmatmul.mubr.msk.f32.gmra.mrb[204].mxu0 %vm215_vm4, %v138_v16 }
 0x1a0   :  { %14475 = vmatprep.mubr.msk.f32.mxu0 %vm16656_vm3, %v22589_v5  ;;  %v144_v7 = vld [vmem:[%s22575_s0 + $0x360] sm:$0xff] }
 0x1a1   :  { %v1783_v24 = vsel %vm1768_vm6, %v1780_v43, %v1782_v52 }
 0x1a2   :  { %v17546_v14 = vmax.f32 %v1731_v12, %v1783_v24  ;;  %v1043_v61 = vpop.f32.mrb[100].mxu0  ;;  %v22622_v24 = vmax.f32 %v17141_v32, %v17358_v21  ;;  %v145_v32 = vld [vmem:[%s22575_s0 + $0x368] sm:$0xff] }
 0x1a3   :  { %v1784_v62 = vrot.slane %v1043_v61, 2  ;;  %v14318_v25 = vpop.f32.mrb[101].mxu0  ;;  %14476 = vmatmul.mubr.msk.f32.gmra.mrb[206].mxu0 %vm215_vm4, %v139_v48  ;;  %v2026_v61 = vld [vmem:[%s22578_s3 + $0x58] sm:$0xff] }
 0x1a4   :  { %14478 = vmatprep.mubr.msk.f32.mxu0 %vm16656_vm3, %v22589_v5  ;;  %12856 = vmatprep.mubr.msk.f32.mxu1 %vm2241_vm7, %v2026_v61 }
 0x1a5   :  { %v1785_v0 = vsel %vm1768_vm6, %v1782_v52, %v1784_v62 }
 0x1a6   :  { %v17558_v17 = vmax.f32 %v1732_v27, %v1785_v0  ;;  %v1048_v10 = vpop.f32.mrb[102].mxu0 }
 0x1a7   :  { %v1786_v12 = vrot.slane %v1048_v10, 2  ;;  %v14321_v55 = vpop.f32.mrb[103].mxu0  ;;  %14479 = vmatmul.mubr.msk.f32.gmra.mrb[208].mxu0 %vm215_vm4, %v140_v46  ;;  %v22623_v46 = vmax.f32 %v17149_v35, %v17369_v45 }
 0x1a8   :  { %14481 = vmatprep.mubr.msk.f32.mxu0 %vm16656_vm3, %v22589_v5 }
 0x1a9   :  { %v1787_v34 = vsel %vm1768_vm6, %v1784_v62, %v1786_v12 }
 0x1aa   :  { %v17570_v20 = vmax.f32 %v1733_v39, %v1787_v34  ;;  %v1053_v22 = vpop.f32.mrb[104].mxu0 }
 0x1ab   :  { %v1788_v27 = vrot.slane %v1053_v22, 2  ;;  %v14324_v19 = vpop.f32.mrb[105].mxu0  ;;  %14482 = vmatmul.mubr.msk.f32.gmra.mrb[210].mxu0 %vm215_vm4, %v141_v33  ;;  %v146_v33 = vld [vmem:[%s22575_s0 + $0x370] sm:$0xff]  ;;  %v22624_v22 = vmax.f32 %v17157_v38, %v17380_v1 }
 0x1ac   :  { %14484 = vmatprep.mubr.msk.f32.mxu0 %vm16656_vm3, %v22589_v5 }
 0x1ad   :  { %v1789_v28 = vsel %vm1768_vm6, %v1786_v12, %v1788_v27 }
 0x1ae   :  { %v17582_v23 = vmax.f32 %v22620_v42, %v1789_v28  ;;  %v1058_v37 = vpop.f32.mrb[106].mxu0  ;;  %v22625_v42 = vmax.f32 %v17165_v41, %v17391_v36 }
 0x1af   :  { %v1790_v39 = vrot.slane %v1058_v37, 2  ;;  %v14327_v43 = vpop.f32.mrb[107].mxu0  ;;  %14485 = vmatmul.mubr.msk.f32.gmra.mrb[212].mxu0 %vm215_vm4, %v142_v54  ;;  %v147_v54 = vld [vmem:[%s22575_s0 + $0x378] sm:$0xff] }
 0x1b0   :  { %14487 = vmatprep.mubr.msk.f32.mxu0 %vm16656_vm3, %v22589_v5  ;;  %v148_v43 = vld [vmem:[%s22575_s0 + $0x380] sm:$0xff] }
 0x1b1   :  { %v1791_v16 = vsel %vm1768_vm6, %v1788_v27, %v1790_v39 }
 0x1b2   :  { %v17594_v26 = vmax.f32 %v22621_v57, %v1791_v16  ;;  %v1063_v49 = vpop.f32.mrb[108].mxu0  ;;  %v22626_v16 = vmax.f32 %v17173_v44, %v17402_v13 }
 0x1b3   :  { %v1792_v51 = vrot.slane %v1063_v49, 2  ;;  %v14330_v52 = vpop.f32.mrb[109].mxu0  ;;  %14488 = vmatmul.mubr.msk.f32.gmra.mrb[214].mxu0 %vm215_vm4, %v143_v15 }
 0x1b4   :  { %14490 = vmatprep.mubr.msk.f32.mxu0 %vm16656_vm3, %v22589_v5 }
 0x1b5   :  { %v1793_v48 = vsel %vm1768_vm6, %v1790_v39, %v1792_v51 }
 0x1b6   :  { %v17606_v29 = vmax.f32 %v22622_v24, %v1793_v48  ;;  %v1068_v6 = vpop.f32.mrb[110].mxu0 }
 0x1b7   :  { %v1794_v62 = vrot.slane %v1068_v6, 2  ;;  %v14333_v25 = vpop.f32.mrb[111].mxu0  ;;  %14491 = vmatmul.mubr.msk.f32.gmra.mrb[216].mxu0 %vm215_vm4, %v144_v7  ;;  %v22627_v7 = vmax.f32 %v17181_v47, %v17413_v40  ;;  %v150_v6 = vld [vmem:[%s22575_s0 + $0x390] sm:$0xff] }
 0x1b8   :  { %14493 = vmatprep.mubr.msk.f32.mxu0 %vm16656_vm3, %v22589_v5 }
 0x1b9   :  { %v1795_v21 = vsel %vm1768_vm6, %v1792_v51, %v1794_v62  ;;  %v149_v51 = vld [vmem:[%s22575_s0 + $0x388] sm:$0xff] }
 0x1ba   :  { %v17622_v0 = vmax.f32 %v22623_v46, %v1795_v21  ;;  %v1073_v10 = vpop.f32.mrb[112].mxu0  ;;  %v151_v21 = vld [vmem:[%s22575_s0 + $0x398] sm:$0xff] }
 0x1bb   :  { %v1796_v12 = vrot.slane %v1073_v10, 2  ;;  %v14336_v55 = vpop.f32.mrb[113].mxu0  ;;  %14494 = vmatmul.mubr.msk.f32.gmra.mrb[218].mxu0 %vm215_vm4, %v145_v32  ;;  %v22629_v10 = vmax.f32 %v17197_v53, %v17435_v30 }
 0x1bc   :  { %14496 = vmatprep.mubr.msk.f32.mxu0 %vm16656_vm3, %v22589_v5 }
 0x1bd   :  { %v1797_v34 = vsel %vm1768_vm6, %v1794_v62, %v1796_v12  ;;  %v22628_v62 = vmax.f32 %v17189_v50, %v17424_v58 }
 0x1be   :  { %v17634_v35 = vmax.f32 %v22624_v22, %v1797_v34  ;;  %v1078_v45 = vpop.f32.mrb[114].mxu0  ;;  %v22630_v22 = vmax.f32 %v17205_v56, %v17446_v31  ;;  %v22631_v56 = vmax.f32 %v17213_v59, %v17457_v9 }
 0x1bf   :  { %v1798_v27 = vrot.slane %v1078_v45, 2  ;;  %v14339_v19 = vpop.f32.mrb[115].mxu0  ;;  %14497 = vmatmul.mubr.msk.f32.gmra.mrb[220].mxu0 %vm215_vm4, %v146_v33  ;;  %v152_v33 = vld [vmem:[%s22575_s0 + $0x3a0] sm:$0xff] }
 0x1c0   :  { %14499 = vmatprep.mubr.msk.f32.mxu0 %vm16656_vm3, %v22589_v5  ;;  %v153_v19 = vld [vmem:[%s22575_s0 + $0x3a8] sm:$0xff] }
 0x1c1   :  { %v1799_v28 = vsel %vm1768_vm6, %v1796_v12, %v1798_v27 }
 0x1c2   :  { %v17646_v38 = vmax.f32 %v22625_v42, %v1799_v28  ;;  %v1083_v1 = vpop.f32.mrb[116].mxu0 }
 0x1c3   :  { %v1800_v37 = vrot.slane %v1083_v1, 2  ;;  %v14342_v39 = vpop.f32.mrb[117].mxu0  ;;  %14500 = vmatmul.mubr.msk.f32.gmra.mrb[222].mxu0 %vm215_vm4, %v147_v54 }
 0x1c4   :  { %14502 = vmatprep.mubr.msk.f32.mxu0 %vm16656_vm3, %v22589_v5 }
 0x1c5   :  { %v1801_v15 = vsel %vm1768_vm6, %v1798_v27, %v1800_v37 }
 0x1c6   :  { %v17658_v41 = vmax.f32 %v22626_v16, %v1801_v15  ;;  %v1088_v36 = vpop.f32.mrb[118].mxu0 }
 0x1c7   :  { %v1802_v57 = vrot.slane %v1088_v36, 2  ;;  %v14345_v49 = vpop.f32.mrb[119].mxu0  ;;  %14503 = vmatmul.mubr.msk.f32.gmra.mrb[224].mxu0 %vm215_vm4, %v148_v43  ;;  %v17734_v36 = vld [vmem:[%s22577_s2] ss:$0 sm:$0xff] }
 0x1c8   :  { %14505 = vmatprep.mubr.msk.f32.mxu0 %vm16656_vm3, %v22589_v5 }
 0x1c9   :  { %v1803_v52 = vsel %vm1768_vm6, %v1800_v37, %v1802_v57 }
 0x1ca   :  { %v17670_v44 = vmax.f32 %v22627_v7, %v1803_v52  ;;  %v1093_v13 = vpop.f32.mrb[120].mxu0 }
 0x1cb   :  { %v1804_v48 = vrot.slane %v1093_v13, 2  ;;  %v14348_v24 = vpop.f32.mrb[121].mxu0  ;;  %14506 = vmatmul.mubr.msk.f32.gmra.mrb[226].mxu0 %vm215_vm4, %v149_v51 }
 0x1cc   :  { %14508 = vmatprep.mubr.msk.f32.mxu0 %vm16656_vm3, %v22589_v5  ;;  %v156_v24 = vld [vmem:[%s22575_s0 + $0x3c0] sm:$0xff] }
 0x1cd   :  { %v1805_v61 = vsel %vm1768_vm6, %v1802_v57, %v1804_v48  ;;  %v155_v57 = vld [vmem:[%s22575_s0 + $0x3b8] sm:$0xff] }
 0x1ce   :  { %v17682_v47 = vmax.f32 %v22628_v62, %v1805_v61  ;;  %v1098_v40 = vpop.f32.mrb[122].mxu0 }
 0x1cf   :  { %v1806_v25 = vrot.slane %v1098_v40, 2  ;;  %v14351_v32 = vpop.f32.mrb[123].mxu0  ;;  %14509 = vmatmul.mubr.msk.f32.gmra.mrb[228].mxu0 %vm215_vm4, %v150_v6 }
 0x1d0   :  { %14511 = vmatprep.mubr.msk.f32.mxu0 %vm16656_vm3, %v22589_v5 }
 0x1d1   :  { %v1807_v46 = vsel %vm1768_vm6, %v1804_v48, %v1806_v25 }
 0x1d2   :  { %v17694_v50 = vmax.f32 %v22629_v10, %v1807_v46  ;;  %v1103_v58 = vpop.f32.mrb[124].mxu0  ;;  %v157_v10 = vld [vmem:[%s22575_s0 + $0x3c8] sm:$0xff] }
 0x1d3   :  { %v1808_v12 = vrot.slane %v1103_v58, 2  ;;  %v14354_v55 = vpop.f32.mrb[125].mxu0  ;;  %14512 = vmatmul.mubr.msk.f32.gmra.mrb[230].mxu0 %vm215_vm4, %v151_v21 }
 0x1d4   :  { %14514 = vmatprep.mubr.msk.f32.mxu0 %vm16656_vm3, %v22589_v5 }
 0x1d5   :  { %v1809_v34 = vsel %vm1768_vm6, %v1806_v25, %v1808_v12 }
 0x1d6   :  { %v17706_v53 = vmax.f32 %v22630_v22, %v1809_v34  ;;  %v1108_v30 = vpop.f32.mrb[126].mxu0  ;;  %v22632_v34 = vmov 0.0|0.0  }
 0x1d7   :  { %v1810_v45 = vrot.slane %v1108_v30, 2  ;;  %v14357_v27 = vpop.f32.mrb[127].mxu0  ;;  %14515 = vmatmul.mubr.msk.f32.gmra.mrb[232].mxu0 %vm215_vm4, %v152_v33  ;;  %v1878_v1 = vrot.slane %v1108_v30, 3 }
 0x1d8   :  { %14517 = vmatprep.mubr.msk.f32.mxu0 %vm16656_vm3, %v22589_v5 }
 0x1d9   :  { %v1811_v54 = vsel %vm1768_vm6, %v1808_v12, %v1810_v45  ;;  %v17716_v28 = vmax.f32 %v17460_v18, %v1810_v45  ;;  %v154_v18 = vld [vmem:[%s22575_s0 + $0x3b0] sm:$0xff] }
 0x1da   :  { %v17721_v31 = vmax.f32 %v22631_v56, %v1811_v54  ;;  %v1113_v42 = vpop.f32.mrb[128].mxu0 }
 0x1db   :  { %v1879_v37 = vrot.slane %v1113_v42, 3  ;;  %v14360_v39 = vpop.f32.mrb[129].mxu0  ;;  %14518 = vmatmul.mubr.msk.f32.gmra.mrb[234].mxu0 %vm215_vm4, %v153_v19 }
 0x1dc   :  { %14520 = vmatprep.mubr.msk.f32.mxu0 %vm16656_vm3, %v22589_v5  ;;  %v159_v39 = vld [vmem:[%s22575_s0 + $0x3d8] sm:$0xff] }
 0x1dd   :  { %v1880_v43 = vsel %vm1877_vm8, %v1878_v1, %v1879_v37 }
 0x1de   :  { %v1943_v59 = vmax.f32 %v17474_v2, %v1880_v43  ;;  %v1118_v9 = vpop.f32.mrb[130].mxu0 }
 0x1df   :  { %v1881_v15 = vrot.slane %v1118_v9, 3  ;;  %v14363_v16 = vpop.f32.mrb[131].mxu0  ;;  %14521 = vmatmul.mubr.msk.f32.gmra.mrb[236].mxu0 %vm215_vm4, %v154_v18 }
 0x1e0   :  { %14523 = vmatprep.mubr.msk.f32.mxu0 %vm16656_vm3, %v22589_v5  ;;  %v1971_v52 = vadd.f32 %v17734_v36, %v1943_v59 }
 0x1e1   :  { %v1882_v49 = vsel %vm1877_vm8, %v1879_v37, %v1881_v15 }
 0x1e2   :  { %v1944_v2 = vmax.f32 %v17486_v60, %v1882_v49  ;;  %v1123_v51 = vpop.f32.mrb[132].mxu0  ;;  %v1993_v62 = vmax.f32 %v1971_v52, 0.0 }
 0x1e3   :  { %v1883_v7 = vrot.slane %v1123_v51, 3  ;;  %v14366_v13 = vpop.f32.mrb[133].mxu0  ;;  %14524 = vmatmul.mubr.msk.f32.gmra.mrb[238].mxu0 %vm215_vm4, %v155_v57 }
 0x1e4   :  { %v1972_v48 = vadd.f32 %v17734_v36, %v1944_v2  ;;  %14526 = vmatprep.mubr.msk.f32.mxu0 %vm16656_vm3, %v22589_v5 }
 0x1e5   :  { %v1884_v6 = vsel %vm1877_vm8, %v1881_v15, %v1883_v7 }
 0x1e6   :  { %v1945_v60 = vmax.f32 %v17498_v63, %v1884_v6  ;;  %v1128_v61 = vpop.f32.mrb[134].mxu0  ;;  %v1994_v40 = vmax.f32 %v1972_v48, 0.0 }
 0x1e7   :  { %v1885_v25 = vrot.slane %v1128_v61, 3  ;;  %v14369_v32 = vpop.f32.mrb[135].mxu0  ;;  %14527 = vmatmul.mubr.msk.f32.gmra.mrb[240].mxu0 %vm215_vm4, %v156_v24  ;;  %v161_v24 = vld [vmem:[%s22575_s0 + $0x3e8] sm:$0xff] }
 0x1e8   :  { %v15824_v21 = vpack.c.bf16 %v1994_v40, %v1993_v62  ;;  %14529 = vmatprep.mubr.msk.f32.mxu0 %vm16656_vm3, %v22589_v5  ;;  %v1973_v12 = vadd.f32 %v17734_v36, %v1945_v60 }
 0x1e9   :  { %v1886_v46 = vsel %vm1877_vm8, %v1883_v7, %v1885_v25 }
 0x1ea   :  { %v1946_v58 = vmax.f32 %v17510_v3, %v1886_v46  ;;  %v1133_v63 = vpop.f32.mrb[136].mxu0  ;;  %15825 = vmatpush1.bf16.msra.mxu0 %v15824_v21  ;;  %16186 = vmatpush1.bf16.msra.mxu1 %v15824_v21  ;;  %v158_v3 = vld [vmem:[%s22575_s0 + $0x3d0] sm:$0xff]  ;;  %v1995_v19 = vmax.f32 %v1973_v12, 0.0 }
 0x1eb   :  { %v1887_v55 = vrot.slane %v1133_v63, 3  ;;  %v14372_v33 = vpop.f32.mrb[137].mxu0  ;;  %15826 = vmatprep.subr.bf16.mxu0 %v22632_v34  ;;  %16176 = vmatprep.subr.bf16.mxu1 %v22632_v34 }
 0x1ec   :  { %v1974_v22 = vadd.f32 %v17734_v36, %v1946_v58  ;;  %14530 = vmatmul.mubr.msk.f32.gmra.mrb[242].mxu0 %vm215_vm4, %v157_v10  ;;  %v163_v33 = vld [vmem:[%s22575_s0 + $0x3f8] sm:$0xff] }
 0x1ed   :  { %v1888_v30 = vsel %vm1877_vm8, %v1885_v25, %v1887_v55  ;;  %14532 = vmatprep.mubr.msk.f32.mxu0 %vm16656_vm3, %v22589_v5 }
 0x1ee   :  { %v1947_v45 = vmax.f32 %v17522_v8, %v1888_v30  ;;  %v1138_v27 = vpop.f32.mrb[138].mxu0  ;;  %v1996_v54 = vmax.f32 %v1974_v22, 0.0 }
 0x1ef   :  { %v1889_v56 = vrot.slane %v1138_v27, 3  ;;  %v14375_v42 = vpop.f32.mrb[139].mxu0 }
 0x1f0   :  { %v15827_v1 = vpack.c.bf16 %v1996_v54, %v1995_v19  ;;  %14533 = vmatmul.mubr.msk.f32.gmra.mrb[244].mxu0 %vm215_vm4, %v158_v3  ;;  %v1975_v43 = vadd.f32 %v17734_v36, %v1947_v45 }
 0x1f1   :  { %v1890_v37 = vsel %vm1877_vm8, %v1887_v55, %v1889_v56  ;;  %14535 = vmatprep.mubr.msk.f32.mxu0 %vm16656_vm3, %v22589_v5 }
 0x1f2   :  { %v1948_v18 = vmax.f32 %v17534_v11, %v1890_v37  ;;  %v1143_v8 = vpop.f32.mrb[140].mxu0  ;;  %15828 = vmatpush1.bf16.msra.mxu0 %v15827_v1  ;;  %16187 = vmatpush1.bf16.msra.mxu1 %v15827_v1  ;;  %v160_v11 = vld [vmem:[%s22575_s0 + $0x3e0] sm:$0xff]  ;;  %v1997_v2 = vmax.f32 %v1975_v43, 0.0  ;;  %v165_v43 = vld [vmem:[%s22575_s0 + $0x408] sm:$0xff] }
 0x1f3   :  { %v1891_v59 = vrot.slane %v1143_v8, 3  ;;  %v14378_v9 = vpop.f32.mrb[141].mxu0  ;;  %15829 = vmatprep.subr.bf16.mxu0 %v22632_v34  ;;  %16177 = vmatprep.subr.bf16.mxu1 %v22632_v34 }
 0x1f4   :  { %v1976_v15 = vadd.f32 %v17734_v36, %v1948_v18  ;;  %14536 = vmatmul.mubr.msk.f32.gmra.mrb[246].mxu0 %vm215_vm4, %v159_v39 }
 0x1f5   :  { %v1892_v16 = vsel %vm1877_vm8, %v1889_v56, %v1891_v59  ;;  %14538 = vmatprep.mubr.msk.f32.mxu0 %vm16656_vm3, %v22589_v5 }
 0x1f6   :  { %v1949_v57 = vmax.f32 %v17546_v14, %v1892_v16  ;;  %v1148_v49 = vpop.f32.mrb[142].mxu0  ;;  %v1998_v51 = vmax.f32 %v1976_v15, 0.0 }
 0x1f7   :  { %v1893_v52 = vrot.slane %v1148_v49, 3  ;;  %v14381_v7 = vpop.f32.mrb[143].mxu0 }
 0x1f8   :  { %v15830_v13 = vpack.c.bf16 %v1998_v51, %v1997_v2  ;;  %14539 = vmatmul.mubr.msk.f32.gmra.mrb[248].mxu0 %vm215_vm4, %v160_v11  ;;  %v1977_v60 = vadd.f32 %v17734_v36, %v1949_v57 }
 0x1f9   :  { %v1894_v48 = vsel %vm1877_vm8, %v1891_v59, %v1893_v52  ;;  %14541 = vmatprep.mubr.msk.f32.mxu0 %vm16656_vm3, %v22589_v5 }
 0x1fa   :  { %v1950_v6 = vmax.f32 %v17558_v17, %v1894_v48  ;;  %v1153_v14 = vpop.f32.mrb[144].mxu0  ;;  %15831 = vmatpush1.bf16.msra.mxu0 %v15830_v13  ;;  %16188 = vmatpush1.bf16.msra.mxu1 %v15830_v13  ;;  %v162_v17 = vld [vmem:[%s22575_s0 + $0x3f0] sm:$0xff]  ;;  %v1999_v46 = vmax.f32 %v1977_v60, 0.0 }
 0x1fb   :  { %v1895_v61 = vrot.slane %v1153_v14, 3  ;;  %v14384_v62 = vpop.f32.mrb[145].mxu0  ;;  %15832 = vmatprep.subr.bf16.mxu0 %v22632_v34  ;;  %16178 = vmatprep.subr.bf16.mxu1 %v22632_v34 }
 0x1fc   :  { %v1978_v40 = vadd.f32 %v17734_v36, %v1950_v6  ;;  %14542 = vmatmul.mubr.msk.f32.gmra.mrb[250].mxu0 %vm215_vm4, %v161_v24  ;;  %v167_v6 = vld [vmem:[%s22575_s0 + $0x418] sm:$0xff] }
 0x1fd   :  { %v1896_v25 = vsel %vm1877_vm8, %v1893_v52, %v1895_v61  ;;  %14544 = vmatprep.mubr.msk.f32.mxu0 %vm16656_vm3, %v22589_v5 }
 0x1fe   :  { %v1951_v32 = vmax.f32 %v17570_v20, %v1896_v25  ;;  %v1158_v21 = vpop.f32.mrb[146].mxu0  ;;  %v2000_v10 = vmax.f32 %v1978_v40, 0.0 }
 0x1ff   :  { %v1897_v58 = vrot.slane %v1158_v21, 3  ;;  %v14387_v63 = vpop.f32.mrb[147].mxu0 }
 0x200   :  { %v15833_v12 = vpack.c.bf16 %v2000_v10, %v1999_v46  ;;  %14545 = vmatmul.mubr.msk.f32.gmra.mrb[252].mxu0 %vm215_vm4, %v162_v17  ;;  %v1979_v30 = vadd.f32 %v17734_v36, %v1951_v32 }
 0x201   :  { %v1898_v55 = vsel %vm1877_vm8, %v1895_v61, %v1897_v58  ;;  %14547 = vmatprep.mubr.msk.f32.mxu0 %vm16656_vm3, %v22589_v5 }
 0x202   :  { %v1952_v22 = vmax.f32 %v17582_v23, %v1898_v55  ;;  %v1163_v20 = vpop.f32.mrb[148].mxu0  ;;  %15834 = vmatpush1.bf16.msra.mxu0 %v15833_v12  ;;  %16189 = vmatpush1.bf16.msra.mxu1 %v15833_v12  ;;  %v164_v23 = vld [vmem:[%s22575_s0 + $0x400] sm:$0xff]  ;;  %v2001_v42 = vmax.f32 %v1979_v30, 0.0  ;;  %v169_v55 = vld [vmem:[%s22575_s0 + $0x428] sm:$0xff] }
 0x203   :  { %v1899_v3 = vrot.slane %v1163_v20, 3  ;;  %v14390_v45 = vpop.f32.mrb[149].mxu0  ;;  %15835 = vmatprep.subr.bf16.mxu0 %v22632_v34  ;;  %16179 = vmatprep.subr.bf16.mxu1 %v22632_v34 }
 0x204   :  { %v1980_v27 = vadd.f32 %v17734_v36, %v1952_v22  ;;  %14548 = vmatmul.mubr.msk.f32.gmra.mrb[254].mxu0 %vm215_vm4, %v163_v33 }
 0x205   :  { %v1900_v19 = vsel %vm1877_vm8, %v1897_v58, %v1899_v3  ;;  %14550 = vmatprep.mubr.msk.f32.mxu0 %vm16656_vm3, %v22589_v5 }
 0x206   :  { %v1953_v54 = vmax.f32 %v17594_v26, %v1900_v19  ;;  %v1168_v56 = vpop.f32.mrb[150].mxu0  ;;  %v2002_v1 = vmax.f32 %v1980_v27, 0.0 }
 0x207   :  { %v1901_v37 = vrot.slane %v1168_v56, 3  ;;  %v14393_v39 = vpop.f32.mrb[151].mxu0 }
 0x208   :  { %v15836_v18 = vpack.c.bf16 %v2002_v1, %v2001_v42  ;;  %14551 = vmatmul.mubr.msk.f32.gmra.mrb[0].mxu0 %vm215_vm4, %v164_v23  ;;  %v1981_v9 = vadd.f32 %v17734_v36, %v1953_v54  ;;  %v171_v39 = vld [vmem:[%s22575_s0 + $0x438] sm:$0xff] }
 0x209   :  { %v1902_v8 = vsel %vm1877_vm8, %v1899_v3, %v1901_v37  ;;  %14553 = vmatprep.mubr.msk.f32.mxu0 %vm16656_vm3, %v22589_v5 }
 0x20a   :  { %v1954_v59 = vmax.f32 %v17606_v29, %v1902_v8  ;;  %v1173_v26 = vpop.f32.mrb[152].mxu0  ;;  %15837 = vmatpush1.bf16.msra.mxu0 %v15836_v18  ;;  %16190 = vmatpush1.bf16.msra.mxu1 %v15836_v18  ;;  %v166_v29 = vld [vmem:[%s22575_s0 + $0x410] sm:$0xff]  ;;  %v2003_v51 = vmax.f32 %v1981_v9, 0.0 }
 0x20b   :  { %v1903_v15 = vrot.slane %v1173_v26, 3  ;;  %v14396_v16 = vpop.f32.mrb[153].mxu0  ;;  %15838 = vmatprep.subr.bf16.mxu0 %v22632_v34  ;;  %16180 = vmatprep.subr.bf16.mxu1 %v22632_v34 }
 0x20c   :  { %v1982_v11 = vadd.f32 %v17734_v36, %v1954_v59  ;;  %14554 = vmatmul.mubr.msk.f32.gmra.mrb[2].mxu0 %vm215_vm4, %v165_v43 }
 0x20d   :  { %v1904_v57 = vsel %vm1877_vm8, %v1901_v37, %v1903_v15  ;;  %14556 = vmatprep.mubr.msk.f32.mxu0 %vm16656_vm3, %v22589_v5 }
 0x20e   :  { %v1955_v49 = vmax.f32 %v17622_v0, %v1904_v57  ;;  %v1178_v2 = vpop.f32.mrb[154].mxu0  ;;  %v2004_v52 = vmax.f32 %v1982_v11, 0.0 }
 0x20f   :  { %v1905_v7 = vrot.slane %v1178_v2, 3  ;;  %v14399_v13 = vpop.f32.mrb[155].mxu0 }
 0x210   :  { %v15839_v48 = vpack.c.bf16 %v2004_v52, %v2003_v51  ;;  %14557 = vmatmul.mubr.msk.f32.gmra.mrb[4].mxu0 %vm215_vm4, %v166_v29  ;;  %v1983_v60 = vadd.f32 %v17734_v36, %v1955_v49  ;;  %v173_v52 = vld [vmem:[%s22575_s0 + $0x448] sm:$0xff] }
 0x211   :  { %v1906_v24 = vsel %vm1877_vm8, %v1903_v15, %v1905_v7  ;;  %14559 = vmatprep.mubr.msk.f32.mxu0 %vm16656_vm3, %v22589_v5 }
 0x212   :  { %v1956_v14 = vmax.f32 %v17634_v35, %v1906_v24  ;;  %v1183_v0 = vpop.f32.mrb[156].mxu0  ;;  %15840 = vmatpush1.bf16.msra.mxu0 %v15839_v48  ;;  %16191 = vmatpush1.bf16.msra.mxu1 %v15839_v48  ;;  %v168_v35 = vld [vmem:[%s22575_s0 + $0x420] sm:$0xff]  ;;  %v2005_v21 = vmax.f32 %v1983_v60, 0.0 }
 0x213   :  { %v1907_v61 = vrot.slane %v1183_v0, 3  ;;  %v14402_v62 = vpop.f32.mrb[157].mxu0  ;;  %15841 = vmatprep.subr.bf16.mxu0 %v22632_v34  ;;  %16181 = vmatprep.subr.bf16.mxu1 %v22632_v34  ;;  %v174_v0 = vld [vmem:[%s22575_s0 + $0x450] sm:$0xff] }
 0x214   :  { %v1984_v40 = vadd.f32 %v17734_v36, %v1956_v14  ;;  %14560 = vmatmul.mubr.msk.f32.gmra.mrb[6].mxu0 %vm215_vm4, %v167_v6 }
 0x215   :  { %v1908_v25 = vsel %vm1877_vm8, %v1905_v7, %v1907_v61  ;;  %14562 = vmatprep.mubr.msk.f32.mxu0 %vm16656_vm3, %v22589_v5 }
 0x216   :  { %v1957_v17 = vmax.f32 %v17646_v38, %v1908_v25  ;;  %v1188_v32 = vpop.f32.mrb[158].mxu0  ;;  %v2006_v46 = vmax.f32 %v1984_v40, 0.0 }
 0x217   :  { %v1909_v10 = vrot.slane %v1188_v32, 3  ;;  %v14405_v58 = vpop.f32.mrb[159].mxu0 }
 0x218   :  { %v15842_v63 = vpack.c.bf16 %v2006_v46, %v2005_v21  ;;  %14563 = vmatmul.mubr.msk.f32.gmra.mrb[8].mxu0 %vm215_vm4, %v168_v35  ;;  %v1985_v22 = vadd.f32 %v17734_v36, %v1957_v17  ;;  %v176_v58 = vld [vmem:[%s22575_s0 + $0x460] sm:$0xff] }
 0x219   :  { %v1910_v12 = vsel %vm1877_vm8, %v1907_v61, %v1909_v10  ;;  %14565 = vmatprep.mubr.msk.f32.mxu0 %vm16656_vm3, %v22589_v5 }
 0x21a   :  { %v1958_v33 = vmax.f32 %v17658_v41, %v1910_v12  ;;  %v1193_v38 = vpop.f32.mrb[160].mxu0  ;;  %15843 = vmatpush1.bf16.msra.mxu0 %v15842_v63  ;;  %16192 = vmatpush1.bf16.msra.mxu1 %v15842_v63  ;;  %v170_v41 = vld [vmem:[%s22575_s0 + $0x430] sm:$0xff]  ;;  %v2007_v23 = vmax.f32 %v1985_v22, 0.0  ;;  %v2027_v22 = vld [vmem:[%s22578_s3 + $0x60] sm:$0xff] }
 0x21b   :  { %v1911_v20 = vrot.slane %v1193_v38, 3  ;;  %v14408_v30 = vpop.f32.mrb[161].mxu0  ;;  %15844 = vmatprep.subr.bf16.mxu0 %v22632_v34  ;;  %16182 = vmatprep.subr.bf16.mxu1 %v22632_v34  ;;  %v2025_v63 = vld [vmem:[%s22578_s3 + $0x50] sm:$0xff]  ;;  %v177_v38 = vld [vmem:[%s22575_s0 + $0x468] sm:$0xff] }
 0x21c   :  { %v1986_v3 = vadd.f32 %v17734_v36, %v1958_v33  ;;  %14566 = vmatmul.mubr.msk.f32.gmra.mrb[10].mxu0 %vm215_vm4, %v169_v55  ;;  %v2028_v55 = vld [vmem:[%s22578_s3 + $0x68] sm:$0xff]  ;;  %v2030_v30 = vld [vmem:[%s22578_s3 + $0x78] sm:$0xff] }
 0x21d   :  { %v1912_v45 = vsel %vm1877_vm8, %v1909_v10, %v1911_v20  ;;  %14568 = vmatprep.mubr.msk.f32.mxu0 %vm16656_vm3, %v22589_v5 }
 0x21e   :  { %v1959_v27 = vmax.f32 %v17670_v44, %v1912_v45  ;;  %v1198_v19 = vpop.f32.mrb[162].mxu0  ;;  %v2008_v54 = vmax.f32 %v1986_v3, 0.0  ;;  %v178_v45 = vld [vmem:[%s22575_s0 + $0x470] sm:$0xff] }
 0x21f   :  { %v1913_v56 = vrot.slane %v1198_v19, 3  ;;  %v14411_v42 = vpop.f32.mrb[163].mxu0  ;;  %v2032_v19 = vld [vmem:[%s22578_s3 + $0x88] sm:$0xff] }
 0x220   :  { %v15845_v1 = vpack.c.bf16 %v2008_v54, %v2007_v23  ;;  %14569 = vmatmul.mubr.msk.f32.gmra.mrb[12].mxu0 %vm215_vm4, %v170_v41  ;;  %v1987_v8 = vadd.f32 %v17734_v36, %v1959_v27  ;;  %v2029_v41 = vld [vmem:[%s22578_s3 + $0x70] sm:$0xff]  ;;  %v179_v54 = vld [vmem:[%s22575_s0 + $0x478] sm:$0xff] }
 0x221   :  { %v1914_v37 = vsel %vm1877_vm8, %v1911_v20, %v1913_v56  ;;  %14571 = vmatprep.mubr.msk.f32.mxu0 %vm16656_vm3, %v22589_v5 }
 0x222   :  { %v1960_v18 = vmax.f32 %v17682_v47, %v1914_v37  ;;  %v1203_v44 = vpop.f32.mrb[164].mxu0  ;;  %15846 = vmatpush1.bf16.msra.mxu0 %v15845_v1  ;;  %16193 = vmatpush1.bf16.msra.mxu1 %v15845_v1  ;;  %v172_v47 = vld [vmem:[%s22575_s0 + $0x440] sm:$0xff]  ;;  %v2009_v11 = vmax.f32 %v1987_v8, 0.0  ;;  %v2034_v1 = vld [vmem:[%s22578_s3 + $0x98] sm:$0xff]  ;;  %v2036_v8 = vld [vmem:[%s22578_s3 + $0xa8] sm:$0xff] }
 0x223   :  { %v1915_v43 = vrot.slane %v1203_v44, 3  ;;  %v14414_v59 = vpop.f32.mrb[165].mxu0  ;;  %15847 = vmatprep.subr.bf16.mxu0 %v22632_v34  ;;  %16183 = vmatprep.subr.bf16.mxu1 %v22632_v34 }
 0x224   :  { %v1988_v26 = vadd.f32 %v17734_v36, %v1960_v18  ;;  %14572 = vmatmul.mubr.msk.f32.gmra.mrb[14].mxu0 %vm215_vm4, %v171_v39  ;;  %v180_v39 = vld [vmem:[%s22575_s0 + $0x480] sm:$0xff]  ;;  %v2033_v18 = vld [vmem:[%s22578_s3 + $0x90] sm:$0xff]  ;;  %v181_v59 = vld [vmem:[%s22575_s0 + $0x488] sm:$0xff] }
 0x225   :  { %v1916_v9 = vsel %vm1877_vm8, %v1913_v56, %v1915_v43  ;;  %14574 = vmatprep.mubr.msk.f32.mxu0 %vm16656_vm3, %v22589_v5  ;;  %v2031_v56 = vld [vmem:[%s22578_s3 + $0x80] sm:$0xff] }
 0x226   :  { %v1961_v15 = vmax.f32 %v17694_v50, %v1916_v9  ;;  %v1208_v16 = vpop.f32.mrb[166].mxu0  ;;  %v2010_v57 = vmax.f32 %v1988_v26, 0.0  ;;  %v2035_v26 = vld [vmem:[%s22578_s3 + $0xa0] sm:$0xff] }
 0x227   :  { %v1917_v29 = vrot.slane %v1208_v16, 3  ;;  %v14417_v49 = vpop.f32.mrb[167].mxu0  ;;  %v182_v16 = vld [vmem:[%s22575_s0 + $0x490] sm:$0xff] }
 0x228   :  { %v15848_v2 = vpack.c.bf16 %v2010_v57, %v2009_v11  ;;  %14575 = vmatmul.mubr.msk.f32.gmra.mrb[16].mxu0 %vm215_vm4, %v172_v47  ;;  %v1989_v13 = vadd.f32 %v17734_v36, %v1961_v15  ;;  %v2038_v47 = vld [vmem:[%s22578_s3 + $0xb8] sm:$0xff]  ;;  %v2037_v11 = vld [vmem:[%s22578_s3 + $0xb0] sm:$0xff] }
 0x229   :  { %v1918_v51 = vsel %vm1877_vm8, %v1915_v43, %v1917_v29  ;;  %14577 = vmatprep.mubr.msk.f32.mxu0 %vm16656_vm3, %v22589_v5 }
 0x22a   :  { %v1962_v7 = vmax.f32 %v17706_v53, %v1918_v51  ;;  %v17922_v50 = vpop.f32.mrb[168].mxu0  ;;  %15849 = vmatpush1.bf16.msra.mxu0 %v15848_v2  ;;  %16194 = vmatpush1.bf16.msra.mxu1 %v15848_v2  ;;  %v2011_v61 = vmax.f32 %v1989_v13, 0.0  ;;  %v183_v2 = vld [vmem:[%s22575_s0 + $0x498] sm:$0xff]  ;;  %v2039_v51 = vld [vmem:[%s22578_s3 + $0xc0] sm:$0xff] }
 0x22b   :  { %v1919_v48 = vrot.slane %v17922_v50, 3  ;;  %15850 = vmatprep.subr.bf16.mxu0 %v22632_v34  ;;  %16184 = vmatprep.subr.bf16.mxu1 %v22632_v34  ;;  %v14420_v24 = vpop.f32.mrb[169].mxu0 }
 0x22c   :  { %v1990_v6 = vadd.f32 %v17734_v36, %v1962_v7  ;;  %14578 = vmatmul.mubr.msk.f32.gmra.mrb[18].mxu0 %vm215_vm4, %v173_v52  ;;  %v2042_v7 = vld [vmem:[%s22578_s3 + $0xd8] sm:$0xff]  ;;  %v2041_v24 = vld [vmem:[%s22578_s3 + $0xd0] sm:$0xff] }
 0x22d   :  { %v1920_v14 = vsel %vm1877_vm8, %v1917_v29, %v1919_v48  ;;  %v1964_v53 = vmax.f32 %v17716_v28, %v1919_v48  ;;  %14580 = vmatprep.mubr.msk.f32.mxu0 %vm16656_vm3, %v22589_v5  ;;  %v2040_v29 = vld [vmem:[%s22578_s3 + $0xc8] sm:$0xff]  ;;  %v184_v48 = vld [vmem:[%s22575_s0 + $0x4a0] sm:$0xff] }
 0x22e   :  { %v1963_v60 = vmax.f32 %v17721_v31, %v1920_v14  ;;  %v2012_v62 = vmax.f32 %v1990_v6, 0.0  ;;  %v17938_v40 = vpop.f32.mrb[170].mxu0  ;;  %v175_v31 = vld [vmem:[%s22575_s0 + $0x458] sm:$0xff]  ;;  %v2044_v14 = vld [vmem:[%s22578_s3 + $0xe8] sm:$0xff] }
 0x22f   :  { %v1992_v25 = vadd.f32 %v17734_v36, %v1964_v53  ;;  %v14423_v35 = vpop.f32.mrb[171].mxu0 }
 0x230   :  { %v1991_v17 = vadd.f32 %v17734_v36, %v1963_v60  ;;  %v15851_v32 = vpack.c.bf16 %v2012_v62, %v2011_v61  ;;  %14581 = vmatmul.mubr.msk.f32.gmra.mrb[20].mxu0 %vm215_vm4, %v174_v0  ;;  %v185_v0 = vld [vmem:[%s22575_s0 + $0x4a8] sm:$0xff]  ;;  %v2043_v60 = vld [vmem:[%s22578_s3 + $0xe0] sm:$0xff]  ;;  %v2046_v62 = vld [vmem:[%s22578_s3 + $0xf8] sm:$0xff] }
 0x231   :  { %v2014_v28 = vmax.f32 %v1992_v25, 0.0  ;;  %14583 = vmatprep.mubr.msk.f32.mxu0 %vm16656_vm3, %v22589_v5  ;;  %v186_v35 = vld [vmem:[%s22575_s0 + $0x4b0] sm:$0xff] }
 0x232   :  { %v2013_v21 = vmax.f32 %v1991_v17, 0.0  ;;  %15852 = vmatpush1.bf16.msra.mxu0 %v15851_v32  ;;  %16195 = vmatpush1.bf16.msra.mxu1 %v15851_v32  ;;  %v17948_v46 = vpop.f32.mrb[172].mxu0  ;;  %v2045_v17 = vld [vmem:[%s22578_s3 + $0xf0] sm:$0xff] }
 0x233   :  { %15853 = vmatprep.subr.bf16.mxu0 %v22632_v34  ;;  %16185 = vmatprep.subr.bf16.mxu1 %v22632_v34  ;;  %v14426_v36 = vpop.f32.mrb[173].mxu0 }
 0x234   :  { %v15854_v10 = vpack.c.bf16 %v2014_v28, %v2013_v21  ;;  %14584 = vmatmul.mubr.msk.f32.gmra.mrb[22].mxu0 %vm215_vm4, %v175_v31  ;;  %v2048_v28 = vld [vmem:[%s22578_s3 + $0x108] sm:$0xff]  ;;  %v187_v21 = vld [vmem:[%s22575_s0 + $0x4b8] sm:$0xff]  ;;  %v2047_v36 = vld [vmem:[%s22578_s3 + $0x100] sm:$0xff] }
 0x235   :  { %14586 = vmatprep.mubr.msk.f32.mxu0 %vm16656_vm3, %v22589_v5 }
 0x236   :  { %15856 = vmatpush1.bf16.msk.msra.mxu0 %vm16722_vm2, %v15854_v10  ;;  %16196 = vmatpush1.bf16.msk.msra.mxu1 %vm16722_vm2, %v15854_v10  ;;  %v17965_v12 = vpop.f32.mrb[174].mxu0 }
 0x237   :  { %v14429_v33 = vpop.f32.mrb[175].mxu0  ;;  %15857 = vmatprep.subr.bf16.mxu1 %v22632_v34  ;;  %15893 = vmatprep.subr.bf16.mxu0 %v22632_v34 }
 0x238   :  { %14587 = vmatmul.mubr.msk.f32.gmra.mrb[24].mxu0 %vm215_vm4, %v176_v58  ;;  %v2050_v58 = vld [vmem:[%s22578_s3 + $0x118] sm:$0xff]  ;;  %v2049_v33 = vld [vmem:[%s22578_s3 + $0x110] sm:$0xff] }
 0x239   :  { %2674 = vmatmul.mubr.f32.vlgmr.msra.gmra.mrb[0].mxu1 %v2025_v63  ;;  %14589 = vmatprep.mubr.msk.f32.mxu0 %vm16656_vm3, %v22589_v5 }
 0x23a   :  { %12857 = vmatprep.mubr.msk.f32.mxu1 %vm2241_vm7, %v2028_v55  ;;  %v17982_v20 = vpop.f32.mrb[176].mxu0  ;;  %v188_v55 = vld [vmem:[%s22575_s0 + $0x4c0] sm:$0xff] }
 0x23b   :  { %v14432_v3 = vpop.f32.mrb[177].mxu0 }
 0x23c   :  { %14590 = vmatmul.mubr.msk.f32.gmra.mrb[26].mxu0 %vm215_vm4, %v177_v38  ;;  %v189_v3 = vld [vmem:[%s22575_s0 + $0x4c8] sm:$0xff] }
 0x23d   :  { %2679 = vmatmul.mubr.f32.gmra.mrb[2].mxu1 %v2027_v22  ;;  %14592 = vmatprep.mubr.msk.f32.mxu0 %vm16656_vm3, %v22589_v5  ;;  %v2052_v22 = vld [vmem:[%s22578_s3 + $0x128] sm:$0xff] }
 0x23e   :  { %12858 = vmatprep.mubr.msk.f32.mxu1 %vm2241_vm7, %v2030_v30  ;;  %v17997_v27 = vpop.f32.mrb[178].mxu0 }
 0x23f   :  { %v14435_v23 = vpop.f32.mrb[179].mxu0 }
 0x240   :  { %14593 = vmatmul.mubr.msk.f32.gmra.mrb[28].mxu0 %vm215_vm4, %v178_v45  ;;  %v2051_v45 = vld [vmem:[%s22578_s3 + $0x120] sm:$0xff] }
 0x241   :  { %2684 = vmatmul.mubr.f32.gmra.mrb[4].mxu1 %v2029_v41  ;;  %14595 = vmatprep.mubr.msk.f32.mxu0 %vm16656_vm3, %v22589_v5 }
 0x242   :  { %12859 = vmatprep.mubr.msk.f32.mxu1 %vm2241_vm7, %v2032_v19  ;;  %v18012_v42 = vpop.f32.mrb[180].mxu0  ;;  %v2054_v19 = vld [vmem:[%s22578_s3 + $0x138] sm:$0xff] }
 0x243   :  { %v14438_v37 = vpop.f32.mrb[181].mxu0 }
 0x244   :  { %14596 = vmatmul.mubr.msk.f32.gmra.mrb[30].mxu0 %vm215_vm4, %v179_v54  ;;  %v190_v54 = vld [vmem:[%s22575_s0 + $0x4d0] sm:$0xff]  ;;  %v2056_v37 = vld [vmem:[%s22578_s3 + $0x148] sm:$0xff] }
 0x245   :  { %2689 = vmatmul.mubr.f32.gmra.mrb[6].mxu1 %v2031_v56  ;;  %14598 = vmatprep.mubr.msk.f32.mxu0 %vm16656_vm3, %v22589_v5  ;;  %v2053_v56 = vld [vmem:[%s22578_s3 + $0x130] sm:$0xff] }
 0x246   :  { %12860 = vmatprep.mubr.msk.f32.mxu1 %vm2241_vm7, %v2034_v1  ;;  %v18027_v44 = vpop.f32.mrb[182].mxu0 }
 0x247   :  { %v14441_v43 = vpop.f32.mrb[183].mxu0 }
 0x248   :  { %14599 = vmatmul.mubr.msk.f32.gmra.mrb[32].mxu0 %vm215_vm4, %v180_v39 }
 0x249   :  { %2694 = vmatmul.mubr.f32.gmra.mrb[8].mxu1 %v2033_v18  ;;  %14601 = vmatprep.mubr.msk.f32.mxu0 %vm16656_vm3, %v22589_v5  ;;  %v191_v18 = vld [vmem:[%s22575_s0 + $0x4d8] sm:$0xff] }
 0x24a   :  { %12861 = vmatprep.mubr.msk.f32.mxu1 %vm2241_vm7, %v2036_v8  ;;  %v18042_v9 = vpop.f32.mrb[184].mxu0  ;;  %v2055_v8 = vld [vmem:[%s22578_s3 + $0x140] sm:$0xff] }
 0x24b   :  { %v14444_v15 = vpop.f32.mrb[185].mxu0 }
 0x24c   :  { %14602 = vmatmul.mubr.msk.f32.gmra.mrb[34].mxu0 %vm215_vm4, %v181_v59  ;;  %v2058_v59 = vld [vmem:[%s22578_s3 + $0x158] sm:$0xff]  ;;  %v2057_v15 = vld [vmem:[%s22578_s3 + $0x150] sm:$0xff] }
 0x24d   :  { %2699 = vmatmul.mubr.f32.gmra.mrb[10].mxu1 %v2035_v26  ;;  %14604 = vmatprep.mubr.msk.f32.mxu0 %vm16656_vm3, %v22589_v5 }
 0x24e   :  { %12862 = vmatprep.mubr.msk.f32.mxu1 %vm2241_vm7, %v2038_v47  ;;  %v18057_v57 = vpop.f32.mrb[186].mxu0  ;;  %v192_v47 = vld [vmem:[%s22575_s0 + $0x4e0] sm:$0xff] }
 0x24f   :  { %v14447_v49 = vpop.f32.mrb[187].mxu0 }
 0x250   :  { %14605 = vmatmul.mubr.msk.f32.gmra.mrb[36].mxu0 %vm215_vm4, %v182_v16  ;;  %v193_v49 = vld [vmem:[%s22575_s0 + $0x4e8] sm:$0xff] }
 0x251   :  { %2704 = vmatmul.mubr.f32.gmra.mrb[12].mxu1 %v2037_v11  ;;  %14607 = vmatprep.mubr.msk.f32.mxu0 %vm16656_vm3, %v22589_v5  ;;  %v2060_v11 = vld [vmem:[%s22578_s3 + $0x168] sm:$0xff] }
 0x252   :  { %12863 = vmatprep.mubr.msk.f32.mxu1 %vm2241_vm7, %v2040_v29  ;;  %v18072_v52 = vpop.f32.mrb[188].mxu0 }
 0x253   :  { %v14450_v13 = vpop.f32.mrb[189].mxu0 }
 0x254   :  { %14608 = vmatmul.mubr.msk.f32.gmra.mrb[38].mxu0 %vm215_vm4, %v183_v2  ;;  %v2059_v2 = vld [vmem:[%s22578_s3 + $0x160] sm:$0xff] }
 0x255   :  { %2709 = vmatmul.mubr.f32.gmra.mrb[14].mxu1 %v2039_v51  ;;  %14610 = vmatprep.mubr.msk.f32.mxu0 %vm16656_vm3, %v22589_v5 }
 0x256   :  { %12864 = vmatprep.mubr.msk.f32.mxu1 %vm2241_vm7, %v2042_v7  ;;  %v18087_v6 = vpop.f32.mrb[190].mxu0  ;;  %v2062_v7 = vld [vmem:[%s22578_s3 + $0x178] sm:$0xff] }
 0x257   :  { %v14453_v53 = vpop.f32.mrb[191].mxu0 }
 0x258   :  { %14611 = vmatmul.mubr.msk.f32.gmra.mrb[40].mxu0 %vm215_vm4, %v184_v48  ;;  %v194_v48 = vld [vmem:[%s22575_s0 + $0x4f0] sm:$0xff]  ;;  %v2064_v53 = vld [vmem:[%s22578_s3 + $0x188] sm:$0xff] }
 0x259   :  { %2714 = vmatmul.mubr.f32.gmra.mrb[16].mxu1 %v2041_v24  ;;  %14613 = vmatprep.mubr.msk.f32.mxu0 %vm16656_vm3, %v22589_v5  ;;  %v2061_v24 = vld [vmem:[%s22578_s3 + $0x170] sm:$0xff] }
 0x25a   :  { %12865 = vmatprep.mubr.msk.f32.mxu1 %vm2241_vm7, %v2044_v14  ;;  %v18102_v61 = vpop.f32.mrb[192].mxu0 }
 0x25b   :  { %v14456_v25 = vpop.f32.mrb[193].mxu0 }
 0x25c   :  { %14614 = vmatmul.mubr.msk.f32.gmra.mrb[42].mxu0 %vm215_vm4, %v185_v0  ;;  %v2063_v25 = vld [vmem:[%s22578_s3 + $0x180] sm:$0xff] }
 0x25d   :  { %2719 = vmatmul.mubr.f32.gmra.mrb[18].mxu1 %v2043_v60  ;;  %14616 = vmatprep.mubr.msk.f32.mxu0 %vm16656_vm3, %v22589_v5 }
 0x25e   :  { %12866 = vmatprep.mubr.msk.f32.mxu1 %vm2241_vm7, %v2046_v62  ;;  %v18117_v32 = vpop.f32.mrb[194].mxu0  ;;  %v195_v62 = vld [vmem:[%s22575_s0 + $0x4f8] sm:$0xff] }
 0x25f   :  { %v14459_v31 = vpop.f32.mrb[195].mxu0 }
 0x260   :  { %14617 = vmatmul.mubr.msk.f32.gmra.mrb[44].mxu0 %vm215_vm4, %v186_v35 }
 0x261   :  { %2724 = vmatmul.mubr.f32.gmra.mrb[20].mxu1 %v2045_v17  ;;  %14619 = vmatprep.mubr.msk.f32.mxu0 %vm16656_vm3, %v22589_v5  ;;  %v2066_v17 = vld [vmem:[%s22578_s3 + $0x198] sm:$0xff] }
 0x262   :  { %12867 = vmatprep.mubr.msk.f32.mxu1 %vm2241_vm7, %v2048_v28  ;;  %v18132_v10 = vpop.f32.mrb[196].mxu0 }
 0x263   :  { %v14462_v63 = vpop.f32.mrb[197].mxu0 }
 0x264   :  { %14620 = vmatmul.mubr.msk.f32.gmra.mrb[46].mxu0 %vm215_vm4, %v187_v21 }
 0x265   :  { %2729 = vmatmul.mubr.f32.gmra.mrb[22].mxu1 %v2047_v36  ;;  %14622 = vmatprep.mubr.msk.f32.mxu0 %vm16656_vm3, %v22589_v5  ;;  %v196_v36 = vld [vmem:[%s22575_s0 + $0x500] sm:$0xff] }
 0x266   :  { %12868 = vmatprep.mubr.msk.f32.mxu1 %vm2241_vm7, %v2050_v58  ;;  %v18147_v38 = vpop.f32.mrb[198].mxu0  ;;  %v2065_v58 = vld [vmem:[%s22578_s3 + $0x190] sm:$0xff] }
 0x267   :  { %v14465_v30 = vpop.f32.mrb[199].mxu0 }
 0x268   :  { %14623 = vmatmul.mubr.msk.f32.gmra.mrb[48].mxu0 %vm215_vm4, %v188_v55 }
 0x269   :  { %2734 = vmatmul.mubr.f32.gmra.mrb[24].mxu1 %v2049_v33  ;;  %14625 = vmatprep.mubr.msk.f32.mxu0 %vm16656_vm3, %v22589_v5  ;;  %v2068_v33 = vld [vmem:[%s22578_s3 + $0x1a8] sm:$0xff] }
 0x26a   :  { %12869 = vmatprep.mubr.msk.f32.mxu1 %vm2241_vm7, %v2052_v22  ;;  %v18162_v41 = vpop.f32.mrb[200].mxu0 }
 0x26b   :  { %v14468_v23 = vpop.f32.mrb[201].mxu0 }
 0x26c   :  { %14626 = vmatmul.mubr.msk.f32.gmra.mrb[50].mxu0 %vm215_vm4, %v189_v3 }
 0x26d   :  { %2739 = vmatmul.mubr.f32.gmra.mrb[26].mxu1 %v2051_v45  ;;  %14628 = vmatprep.mubr.msk.f32.mxu0 %vm16656_vm3, %v22589_v5  ;;  %v197_v45 = vld [vmem:[%s22575_s0 + $0x508] sm:$0xff] }
 0x26e   :  { %12870 = vmatprep.mubr.msk.f32.mxu1 %vm2241_vm7, %v2054_v19  ;;  %v18177_v1 = vpop.f32.mrb[202].mxu0  ;;  %v2067_v19 = vld [vmem:[%s22578_s3 + $0x1a0] sm:$0xff] }
 0x26f   :  { %v14471_v39 = vpop.f32.mrb[203].mxu0 }
 0x270   :  { %14629 = vmatmul.mubr.msk.f32.gmra.mrb[52].mxu0 %vm215_vm4, %v190_v54 }
 0x271   :  { %2744 = vmatmul.mubr.f32.gmra.mrb[28].mxu1 %v2053_v56  ;;  %14631 = vmatprep.mubr.msk.f32.mxu0 %vm16656_vm3, %v22589_v5  ;;  %v2070_v56 = vld [vmem:[%s22578_s3 + $0x1b8] sm:$0xff] }
 0x272   :  { %12871 = vmatprep.mubr.msk.f32.mxu1 %vm2241_vm7, %v2056_v37  ;;  %v18192_v43 = vpop.f32.mrb[204].mxu0 }
 0x273   :  { %v14474_v26 = vpop.f32.mrb[205].mxu0 }
 0x274   :  { %14632 = vmatmul.mubr.msk.f32.gmra.mrb[54].mxu0 %vm215_vm4, %v191_v18 }
 0x275   :  { %2749 = vmatmul.mubr.f32.gmra.mrb[30].mxu1 %v2055_v8  ;;  %14634 = vmatprep.mubr.msk.f32.mxu0 %vm16656_vm3, %v22589_v5  ;;  %v198_v8 = vld [vmem:[%s22575_s0 + $0x510] sm:$0xff] }
 0x276   :  { %12872 = vmatprep.mubr.msk.f32.mxu1 %vm2241_vm7, %v2058_v59  ;;  %v18207_v16 = vpop.f32.mrb[206].mxu0  ;;  %v2069_v59 = vld [vmem:[%s22578_s3 + $0x1b0] sm:$0xff] }
 0x277   :  { %v14477_v29 = vpop.f32.mrb[207].mxu0 }
 0x278   :  { %14635 = vmatmul.mubr.msk.f32.gmra.mrb[56].mxu0 %vm215_vm4, %v192_v47 }
 0x279   :  { %2754 = vmatmul.mubr.f32.gmra.mrb[32].mxu1 %v2057_v15  ;;  %14637 = vmatprep.mubr.msk.f32.mxu0 %vm16656_vm3, %v22589_v5  ;;  %v2072_v15 = vld [vmem:[%s22578_s3 + $0x1c8] sm:$0xff] }
 0x27a   :  { %12873 = vmatprep.mubr.msk.f32.mxu1 %vm2241_vm7, %v2060_v11  ;;  %v18222_v51 = vpop.f32.mrb[208].mxu0 }
 0x27b   :  { %v14480_v13 = vpop.f32.mrb[209].mxu0 }
 0x27c   :  { %14638 = vmatmul.mubr.msk.f32.gmra.mrb[58].mxu0 %vm215_vm4, %v193_v49 }
 0x27d   :  { %2759 = vmatmul.mubr.f32.gmra.mrb[34].mxu1 %v2059_v2  ;;  %14640 = vmatprep.mubr.msk.f32.mxu0 %vm16656_vm3, %v22589_v5  ;;  %v199_v2 = vld [vmem:[%s22575_s0 + $0x518] sm:$0xff] }
 0x27e   :  { %12874 = vmatprep.mubr.msk.f32.mxu1 %vm2241_vm7, %v2062_v7  ;;  %v18237_v14 = vpop.f32.mrb[210].mxu0  ;;  %v2071_v7 = vld [vmem:[%s22578_s3 + $0x1c0] sm:$0xff] }
 0x27f   :  { %v14483_v0 = vpop.f32.mrb[211].mxu0  ;;  %v7157_v60 = vrot.slane %v18237_v14, 1 }
 0x280   :  { %14641 = vmatmul.mubr.msk.f32.gmra.mrb[60].mxu0 %vm215_vm4, %v194_v48 }
 0x281   :  { %2764 = vmatmul.mubr.f32.gmra.mrb[36].mxu1 %v2061_v24  ;;  %14643 = vmatprep.mubr.msk.f32.mxu0 %vm16656_vm3, %v22589_v5  ;;  %v2074_v24 = vld [vmem:[%s22578_s3 + $0x1d8] sm:$0xff] }
 0x282   :  { %12875 = vmatprep.mubr.msk.f32.mxu1 %vm2241_vm7, %v2064_v53  ;;  %v1323_v35 = vpop.f32.mrb[212].mxu0 }
 0x283   :  { %v7158_v28 = vrot.slane %v1323_v35, 1  ;;  %v14486_v31 = vpop.f32.mrb[213].mxu0 }
 0x284   :  { %14644 = vmatmul.mubr.msk.f32.gmra.mrb[62].mxu0 %vm215_vm4, %v195_v62  ;;  %v200_v62 = vld [vmem:[%s22575_s0 + $0x520] sm:$0xff] }
 0x285   :  { %2769 = vmatmul.mubr.f32.gmra.mrb[38].mxu1 %v2063_v25  ;;  %v18258_v21 = vsel %vm1659_vm5, %v7157_v60, %v7158_v28  ;;  %14646 = vmatprep.mubr.msk.f32.mxu0 %vm16656_vm3, %v22589_v5  ;;  %v2073_v25 = vld [vmem:[%s22578_s3 + $0x1d0] sm:$0xff] }
 0x286   :  { %12876 = vmatprep.mubr.msk.f32.mxu1 %vm2241_vm7, %v2066_v17  ;;  %v7222_v63 = vmax.f32 %v17922_v50, %v18258_v21  ;;  %v1328_v55 = vpop.f32.mrb[214].mxu0 }
 0x287   :  { %v7160_v22 = vrot.slane %v1328_v55, 1  ;;  %v14489_v30 = vpop.f32.mrb[215].mxu0  ;;  %v201_v55 = vld [vmem:[%s22575_s0 + $0x528] sm:$0xff] }
 0x288   :  { %14647 = vmatmul.mubr.msk.f32.gmra.mrb[64].mxu0 %vm215_vm4, %v196_v36 }
 0x289   :  { %2774 = vmatmul.mubr.f32.gmra.mrb[40].mxu1 %v2065_v58  ;;  %v18276_v3 = vsel %vm1659_vm5, %v7158_v28, %v7160_v22  ;;  %14649 = vmatprep.mubr.msk.f32.mxu0 %vm16656_vm3, %v22589_v5  ;;  %v2076_v28 = vld [vmem:[%s22578_s3 + $0x1e8] sm:$0xff] }
 0x28a   :  { %12877 = vmatprep.mubr.msk.f32.mxu1 %vm2241_vm7, %v2068_v33  ;;  %v7223_v23 = vmax.f32 %v17938_v40, %v18276_v3  ;;  %v1333_v54 = vpop.f32.mrb[216].mxu0  ;;  %v2075_v33 = vld [vmem:[%s22578_s3 + $0x1e0] sm:$0xff] }
 0x28b   :  { %v7162_v37 = vrot.slane %v1333_v54, 1  ;;  %v14492_v39 = vpop.f32.mrb[217].mxu0 }
 0x28c   :  { %14650 = vmatmul.mubr.msk.f32.gmra.mrb[66].mxu0 %vm215_vm4, %v197_v45  ;;  %v2078_v45 = vld [vmem:[%s22578_s3 + $0x1f8] sm:$0xff]  ;;  %v2077_v39 = vld [vmem:[%s22578_s3 + $0x1f0] sm:$0xff] }
 0x28d   :  { %2779 = vmatmul.mubr.f32.gmra.mrb[42].mxu1 %v2067_v19  ;;  %v18294_v18 = vsel %vm1659_vm5, %v7160_v22, %v7162_v37  ;;  %14652 = vmatprep.mubr.msk.f32.mxu0 %vm16656_vm3, %v22589_v5 }
 0x28e   :  { %12878 = vmatprep.mubr.msk.f32.mxu1 %vm2241_vm7, %v2070_v56  ;;  %v7224_v26 = vmax.f32 %v17948_v46, %v18294_v18  ;;  %v1338_v47 = vpop.f32.mrb[218].mxu0 }
 0x28f   :  { %v7164_v11 = vrot.slane %v1338_v47, 1  ;;  %v14495_v29 = vpop.f32.mrb[219].mxu0  ;;  %v2080_v47 = vld [vmem:[%s22578_s3 + $0x208] sm:$0xff] }
 0x290   :  { %14653 = vmatmul.mubr.msk.f32.gmra.mrb[68].mxu0 %vm215_vm4, %v198_v8 }
 0x291   :  { %2784 = vmatmul.mubr.f32.gmra.mrb[44].mxu1 %v2069_v59  ;;  %v18312_v49 = vsel %vm1659_vm5, %v7162_v37, %v7164_v11  ;;  %14655 = vmatprep.mubr.msk.f32.mxu0 %vm16656_vm3, %v22589_v5  ;;  %v202_v37 = vld [vmem:[%s22575_s0 + $0x530] sm:$0xff] }
 0x292   :  { %12879 = vmatprep.mubr.msk.f32.mxu1 %vm2241_vm7, %v2072_v15  ;;  %v7225_v13 = vmax.f32 %v17965_v12, %v18312_v49  ;;  %v1343_v48 = vpop.f32.mrb[220].mxu0 }
 0x293   :  { %v7166_v53 = vrot.slane %v1343_v48, 1  ;;  %v14498_v0 = vpop.f32.mrb[221].mxu0 }
 0x294   :  { %14656 = vmatmul.mubr.msk.f32.gmra.mrb[70].mxu0 %vm215_vm4, %v199_v2  ;;  %v203_v2 = vld [vmem:[%s22575_s0 + $0x538] sm:$0xff] }
 0x295   :  { %2789 = vmatmul.mubr.f32.gmra.mrb[46].mxu1 %v2071_v7  ;;  %v18330_v60 = vsel %vm1659_vm5, %v7164_v11, %v7166_v53  ;;  %14658 = vmatprep.mubr.msk.f32.mxu0 %vm16656_vm3, %v22589_v5  ;;  %v2079_v7 = vld [vmem:[%s22578_s3 + $0x200] sm:$0xff] }
 0x296   :  { %12880 = vmatprep.mubr.msk.f32.mxu1 %vm2241_vm7, %v2074_v24  ;;  %v7226_v35 = vmax.f32 %v17982_v20, %v18330_v60  ;;  %v1348_v17 = vpop.f32.mrb[222].mxu0 }
 0x297   :  { %v7168_v31 = vrot.slane %v1348_v17, 1  ;;  %v14501_v36 = vpop.f32.mrb[223].mxu0  ;;  %v204_v17 = vld [vmem:[%s22575_s0 + $0x540] sm:$0xff] }
 0x298   :  { %14659 = vmatmul.mubr.msk.f32.gmra.mrb[72].mxu0 %vm215_vm4, %v200_v62 }
 0x299   :  { %2794 = vmatmul.mubr.f32.gmra.mrb[48].mxu1 %v2073_v25  ;;  %v18348_v58 = vsel %vm1659_vm5, %v7166_v53, %v7168_v31  ;;  %14661 = vmatprep.mubr.msk.f32.mxu0 %vm16656_vm3, %v22589_v5  ;;  %v2082_v53 = vld [vmem:[%s22578_s3 + $0x218] sm:$0xff] }
 0x29a   :  { %12881 = vmatprep.mubr.msk.f32.mxu1 %vm2241_vm7, %v2076_v28  ;;  %v7227_v22 = vmax.f32 %v17997_v27, %v18348_v58  ;;  %v1353_v30 = vpop.f32.mrb[224].mxu0  ;;  %v2081_v28 = vld [vmem:[%s22578_s3 + $0x210] sm:$0xff] }
 0x29b   :  { %v7170_v19 = vrot.slane %v1353_v30, 1  ;;  %v14504_v54 = vpop.f32.mrb[225].mxu0 }
 0x29c   :  { %14662 = vmatmul.mubr.msk.f32.gmra.mrb[74].mxu0 %vm215_vm4, %v201_v55  ;;  %v2084_v55 = vld [vmem:[%s22578_s3 + $0x228] sm:$0xff] }
 0x29d   :  { %2799 = vmatmul.mubr.f32.gmra.mrb[50].mxu1 %v2075_v33  ;;  %v18366_v56 = vsel %vm1659_vm5, %v7168_v31, %v7170_v19  ;;  %14664 = vmatprep.mubr.msk.f32.mxu0 %vm16656_vm3, %v22589_v5 }
 0x29e   :  { %12882 = vmatprep.mubr.msk.f32.mxu1 %vm2241_vm7, %v2078_v45  ;;  %v1358_v59 = vpop.f32.mrb[226].mxu0  ;;  %v22633_v27 = vmax.f32 %v18012_v42, %v18366_v56 }
 0x29f   :  { %v7172_v15 = vrot.slane %v1358_v59, 1  ;;  %v14507_v11 = vpop.f32.mrb[227].mxu0 }
 0x2a0   :  { %14665 = vmatmul.mubr.msk.f32.gmra.mrb[76].mxu0 %vm215_vm4, %v202_v37  ;;  %v2085_v11 = vld [vmem:[%s22578_s3 + $0x230] sm:$0xff] }
 0x2a1   :  { %2804 = vmatmul.mubr.f32.gmra.mrb[52].mxu1 %v2077_v39  ;;  %v18384_v29 = vsel %vm1659_vm5, %v7170_v19, %v7172_v15  ;;  %14667 = vmatprep.mubr.msk.f32.mxu0 %vm16656_vm3, %v22589_v5  ;;  %v2083_v19 = vld [vmem:[%s22578_s3 + $0x220] sm:$0xff]  ;;  %v2086_v39 = vld [vmem:[%s22578_s3 + $0x238] sm:$0xff] }
 0x2a2   :  { %12883 = vmatprep.mubr.msk.f32.mxu1 %vm2241_vm7, %v2080_v47  ;;  %v1363_v24 = vpop.f32.mrb[228].mxu0  ;;  %v22634_v42 = vmax.f32 %v18027_v44, %v18384_v29 }
 0x2a3   :  { %v7174_v0 = vrot.slane %v1363_v24, 1  ;;  %v14510_v62 = vpop.f32.mrb[229].mxu0  ;;  %v2088_v24 = vld [vmem:[%s22578_s3 + $0x248] sm:$0xff] }
 0x2a4   :  { %14668 = vmatmul.mubr.msk.f32.gmra.mrb[78].mxu0 %vm215_vm4, %v203_v2 }
 0x2a5   :  { %2809 = vmatmul.mubr.f32.gmra.mrb[54].mxu1 %v2079_v7  ;;  %v18402_v25 = vsel %vm1659_vm5, %v7172_v15, %v7174_v0  ;;  %14670 = vmatprep.mubr.msk.f32.mxu0 %vm16656_vm3, %v22589_v5 }
 0x2a6   :  { %12884 = vmatprep.mubr.msk.f32.mxu1 %vm2241_vm7, %v2082_v53  ;;  %v1368_v36 = vpop.f32.mrb[230].mxu0  ;;  %v22635_v44 = vmax.f32 %v18042_v9, %v18402_v25  ;;  %v2125_v9 = vld [vmem:[%s22578_s3 + $0x370] sm:$0xff] }
 0x2a7   :  { %v7176_v33 = vrot.slane %v1368_v36, 1  ;;  %v14513_v30 = vpop.f32.mrb[231].mxu0 }
 0x2a8   :  { %14671 = vmatmul.mubr.msk.f32.gmra.mrb[80].mxu0 %vm215_vm4, %v204_v17  ;;  %v2087_v17 = vld [vmem:[%s22578_s3 + $0x240] sm:$0xff] }
 0x2a9   :  { %2814 = vmatmul.mubr.f32.gmra.mrb[56].mxu1 %v2081_v28  ;;  %v18420_v45 = vsel %vm1659_vm5, %v7174_v0, %v7176_v33 }
 0x2aa   :  { %12885 = vmatprep.mubr.msk.f32.mxu1 %vm2241_vm7, %v2084_v55  ;;  %v1373_v37 = vpop.f32.mrb[232].mxu0  ;;  %v2090_v55 = vld [vmem:[%s22578_s3 + $0x258] sm:$0xff] }
 0x2ab   :  { %v7178_v59 = vrot.slane %v1373_v37, 1  ;;  %v14516_v47 = vpop.f32.mrb[233].mxu0  ;;  %v2089_v37 = vld [vmem:[%s22578_s3 + $0x250] sm:$0xff] }
 0x2ac   :  { %v2092_v47 = vld [vmem:[%s22578_s3 + $0x268] sm:$0xff] }
 0x2ad   :  { %2819 = vmatmul.mubr.f32.gmra.mrb[58].mxu1 %v2083_v19  ;;  %v18432_v15 = vsel %vm1659_vm5, %v7176_v33, %v7178_v59 }
 0x2ae   :  { %12886 = vmatprep.mubr.msk.f32.mxu1 %vm2241_vm7, %v2086_v39  ;;  %v1378_v7 = vpop.f32.mrb[234].mxu0 }
 0x2af   :  { %v7180_v53 = vrot.slane %v1378_v7, 1  ;;  %v14519_v0 = vpop.f32.mrb[235].mxu0 }
 0x2b1   :  { %2824 = vmatmul.mubr.f32.gmra.mrb[60].mxu1 %v2085_v11  ;;  %v18444_v62 = vsel %vm1659_vm5, %v7178_v59, %v7180_v53 }
 0x2b2   :  { %12887 = vmatprep.mubr.msk.f32.mxu1 %vm2241_vm7, %v2088_v24  ;;  %v1383_v36 = vpop.f32.mrb[236].mxu0 }
 0x2b3   :  { %v7182_v33 = vrot.slane %v1383_v36, 1  ;;  %v14522_v30 = vpop.f32.mrb[237].mxu0  ;;  %v2094_v36 = vld [vmem:[%s22578_s3 + $0x278] sm:$0xff] }
 0x2b5   :  { %2829 = vmatmul.mubr.f32.gmra.mrb[62].mxu1 %v2087_v17  ;;  %v18456_v19 = vsel %vm1659_vm5, %v7180_v53, %v7182_v33  ;;  %v2091_v53 = vld [vmem:[%s22578_s3 + $0x260] sm:$0xff] }
 0x2b6   :  { %12888 = vmatprep.mubr.msk.f32.mxu1 %vm2241_vm7, %v2090_v55  ;;  %v1388_v59 = vpop.f32.mrb[238].mxu0 }
 0x2b7   :  { %v7184_v11 = vrot.slane %v1388_v59, 1  ;;  %v14525_v7 = vpop.f32.mrb[239].mxu0 }
 0x2b9   :  { %2834 = vmatmul.mubr.f32.gmra.mrb[64].mxu1 %v2089_v37  ;;  %v18468_v24 = vsel %vm1659_vm5, %v7182_v33, %v7184_v11  ;;  %v2093_v37 = vld [vmem:[%s22578_s3 + $0x270] sm:$0xff] }
 0x2ba   :  { %12889 = vmatprep.mubr.msk.f32.mxu1 %vm2241_vm7, %v2092_v47  ;;  %v1393_v17 = vpop.f32.mrb[240].mxu0  ;;  %v2096_v47 = vld [vmem:[%s22578_s3 + $0x288] sm:$0xff] }
 0x2bb   :  { %v7186_v55 = vrot.slane %v1393_v17, 1  ;;  %v14528_v30 = vpop.f32.mrb[241].mxu0 }
 0x2bd   :  { %2839 = vmatmul.mubr.f32.gmra.mrb[66].mxu1 %v2091_v53  ;;  %v18480_v33 = vsel %vm1659_vm5, %v7184_v11, %v7186_v55  ;;  %v2095_v11 = vld [vmem:[%s22578_s3 + $0x280] sm:$0xff] }
 0x2be   :  { %12890 = vmatprep.mubr.msk.f32.mxu1 %vm2241_vm7, %v2094_v36  ;;  %v2098_v36 = vld [vmem:[%s22578_s3 + $0x298] sm:$0xff] }
 0x2bf   :  { %v1398_v7 = vpop.f32.mrb[242].mxu0 }
 0x2c0   :  { %v7188_v17 = vrot.slane %v1398_v7, 1  ;;  %v14531_v30 = vpop.f32.mrb[243].mxu0 }
 0x2c1   :  { %2844 = vmatmul.mubr.f32.gmra.mrb[68].mxu1 %v2093_v37  ;;  %v2016_v37 = vld [vmem:[%s22578_s3 + $0x8] sm:$0xff] }
 0x2c2   :  { %12891 = vmatprep.mubr.msk.f32.mxu1 %vm2241_vm7, %v2096_v47  ;;  %v18496_v53 = vsel %vm1659_vm5, %v7186_v55, %v7188_v17  ;;  %v2097_v55 = vld [vmem:[%s22578_s3 + $0x290] sm:$0xff]  ;;  %12851 = vmatprep.mubr.msk.f32.mxu0 %vm2241_vm7, %v2016_v37  ;;  %v2099_v37 = vld [vmem:[%s22578_s3 + $0x2a0] sm:$0xff] }
 0x2c3   :  { %v1403_v0 = vpop.f32.mrb[244].mxu0 }
 0x2c4   :  { %v7190_v7 = vrot.slane %v1403_v0, 1  ;;  %v14534_v30 = vpop.f32.mrb[245].mxu0  ;;  %v2015_v0 = vld [vmem:[%s22578_s3] sm:$0xff] }
 0x2c5   :  { %2849 = vmatmul.mubr.f32.gmra.mrb[70].mxu1 %v2095_v11  ;;  %v2100_v11 = vld [vmem:[%s22578_s3 + $0x2a8] sm:$0xff]  ;;  %2649 = vmatmul.mubr.f32.vlgmr.msra.gmra.mrb[82].mxu0 %v2015_v0 }
 0x2c6   :  { %12892 = vmatprep.mubr.msk.f32.mxu1 %vm2241_vm7, %v2098_v36  ;;  %v18511_v47 = vsel %vm1659_vm5, %v7188_v17, %v7190_v7  ;;  %v2018_v17 = vld [vmem:[%s22578_s3 + $0x18] sm:$0xff] }
 0x2c7   :  { %v1408_v30 = vpop.f32.mrb[246].mxu0  ;;  %12852 = vmatprep.mubr.msk.f32.mxu0 %vm2241_vm7, %v2018_v17  ;;  %v2101_v17 = vld [vmem:[%s22578_s3 + $0x2b0] sm:$0xff] }
 0x2c8   :  { %v7192_v59 = vrot.slane %v1408_v30, 1  ;;  %v14537_v39 = vpop.f32.mrb[247].mxu0 }
 0x2c9   :  { %2854 = vmatmul.mubr.f32.gmra.mrb[72].mxu1 %v2097_v55  ;;  %v2017_v39 = vld [vmem:[%s22578_s3 + $0x10] sm:$0xff]  ;;  %v2102_v55 = vld [vmem:[%s22578_s3 + $0x2b8] sm:$0xff] }
 0x2ca   :  { %12893 = vmatprep.mubr.msk.f32.mxu1 %vm2241_vm7, %v2100_v11  ;;  %v18530_v28 = vsel %vm1659_vm5, %v7190_v7, %v7192_v59  ;;  %2654 = vmatmul.mubr.f32.gmra.mrb[84].mxu0 %v2017_v39  ;;  %v2020_v7 = vld [vmem:[%s22578_s3 + $0x28] sm:$0xff] }
 0x2cb   :  { %v1413_v11 = vpop.f32.mrb[248].mxu0  ;;  %12853 = vmatprep.mubr.msk.f32.mxu0 %vm2241_vm7, %v2020_v7  ;;  %v2103_v7 = vld [vmem:[%s22578_s3 + $0x2c0] sm:$0xff] }
 0x2cc   :  { %v7194_v30 = vrot.slane %v1413_v11, 1  ;;  %v14540_v36 = vpop.f32.mrb[249].mxu0 }
 0x2cd   :  { %2859 = vmatmul.mubr.f32.gmra.mrb[74].mxu1 %v2099_v37  ;;  %v2019_v36 = vld [vmem:[%s22578_s3 + $0x20] sm:$0xff]  ;;  %v2104_v37 = vld [vmem:[%s22578_s3 + $0x2c8] sm:$0xff] }
 0x2ce   :  { %12894 = vmatprep.mubr.msk.f32.mxu1 %vm2241_vm7, %v2102_v55  ;;  %v18549_v2 = vsel %vm1659_vm5, %v7192_v59, %v7194_v30  ;;  %2659 = vmatmul.mubr.f32.gmra.mrb[86].mxu0 %v2019_v36  ;;  %v2022_v59 = vld [vmem:[%s22578_s3 + $0x38] sm:$0xff] }
 0x2cf   :  { %v1418_v55 = vpop.f32.mrb[250].mxu0  ;;  %12854 = vmatprep.mubr.msk.f32.mxu0 %vm2241_vm7, %v2022_v59  ;;  %v2105_v59 = vld [vmem:[%s22578_s3 + $0x2d0] sm:$0xff] }
 0x2d0   :  { %v7196_v11 = vrot.slane %v1418_v55, 1  ;;  %v14543_v0 = vpop.f32.mrb[251].mxu0 }
 0x2d1   :  { %2864 = vmatmul.mubr.f32.gmra.mrb[76].mxu1 %v2101_v17  ;;  %v2021_v0 = vld [vmem:[%s22578_s3 + $0x30] sm:$0xff]  ;;  %v2106_v17 = vld [vmem:[%s22578_s3 + $0x2d8] sm:$0xff] }
 0x2d2   :  { %12895 = vmatprep.mubr.msk.f32.mxu1 %vm2241_vm7, %v2104_v37  ;;  %v18568_v54 = vsel %vm1659_vm5, %v7194_v30, %v7196_v11  ;;  %2664 = vmatmul.mubr.f32.gmra.mrb[88].mxu0 %v2021_v0  ;;  %v2024_v30 = vld [vmem:[%s22578_s3 + $0x48] sm:$0xff] }
 0x2d3   :  { %v1423_v37 = vpop.f32.mrb[252].mxu0  ;;  %12855 = vmatprep.mubr.msk.f32.mxu0 %vm2241_vm7, %v2024_v30 }
 0x2d4   :  { %v7198_v55 = vrot.slane %v1423_v37, 1  ;;  %v14546_v39 = vpop.f32.mrb[253].mxu0  ;;  %v7265_v0 = vrot.slane %v1423_v37, 2 }
 0x2d5   :  { %2869 = vmatmul.mubr.f32.gmra.mrb[78].mxu1 %v2103_v7  ;;  %v2023_v39 = vld [vmem:[%s22578_s3 + $0x40] sm:$0xff]  ;;  %v2108_v7 = vld [vmem:[%s22578_s3 + $0x2e8] sm:$0xff] }
 0x2d6   :  { %12896 = vmatprep.mubr.msk.f32.mxu1 %vm2241_vm7, %v2106_v17  ;;  %v18587_v31 = vsel %vm1659_vm5, %v7196_v11, %v7198_v55  ;;  %v18590_v36 = vmax.f32 %v18237_v14, %v7198_v55  ;;  %2669 = vmatmul.mubr.f32.gmra.mrb[90].mxu0 %v2023_v39  ;;  %v2107_v14 = vld [vmem:[%s22578_s3 + $0x2e0] sm:$0xff]  ;;  %v2110_v55 = vld [vmem:[%s22578_s3 + $0x2f8] sm:$0xff]  ;;  %v2109_v39 = vld [vmem:[%s22578_s3 + $0x2f0] sm:$0xff] }
 0x2d7   :  { %v7242_v17 = vmax.f32 %v18222_v51, %v18587_v31  ;;  %v1428_v48 = vpop.f32.mrb[254].mxu0  ;;  %15064 = vmatprep.mubr.msk.f32.mxu0 %vm16656_vm3, %v22589_v5  ;;  %v2152_v51 = vld [vmem:[%s22578_s3 + $0x448] sm:$0xff] }
 0x2d8   :  { %v7266_v11 = vrot.slane %v1428_v48, 2  ;;  %v14549_v8 = vpop.f32.mrb[255].mxu0 }
 0x2d9   :  { %2874 = vmatmul.mubr.f32.gmra.mrb[80].mxu1 %v2105_v59 }
 0x2da   :  { %12897 = vmatprep.mubr.msk.f32.mxu1 %vm2241_vm7, %v2108_v7  ;;  %v7267_v37 = vsel %vm1768_vm6, %v7265_v0, %v7266_v11  ;;  %v2112_v7 = vld [vmem:[%s22578_s3 + $0x308] sm:$0xff] }
 0x2db   :  { %v18614_v8 = vmax.f32 %v7222_v63, %v7267_v37  ;;  %v1433_v48 = vpop.f32.mrb[0].mxu0  ;;  %v2111_v37 = vld [vmem:[%s22578_s3 + $0x300] sm:$0xff] }
 0x2dc   :  { %v7268_v30 = vrot.slane %v1433_v48, 2  ;;  %v14552_v59 = vpop.f32.mrb[1].mxu0 }
 0x2dd   :  { %2879 = vmatmul.mubr.f32.gmra.mrb[82].mxu1 %v2107_v14  ;;  %v2113_v59 = vld [vmem:[%s22578_s3 + $0x310] sm:$0xff] }
 0x2de   :  { %12898 = vmatprep.mubr.msk.f32.mxu1 %vm2241_vm7, %v2110_v55  ;;  %v7269_v0 = vsel %vm1768_vm6, %v7266_v11, %v7268_v30  ;;  %v2114_v55 = vld [vmem:[%s22578_s3 + $0x318] sm:$0xff] }
 0x2df   :  { %v18627_v50 = vmax.f32 %v7223_v23, %v7269_v0  ;;  %v1438_v21 = vpop.f32.mrb[2].mxu0 }
 0x2e0   :  { %v7270_v63 = vrot.slane %v1438_v21, 2  ;;  %v14555_v14 = vpop.f32.mrb[3].mxu0 }
 0x2e1   :  { %2884 = vmatmul.mubr.f32.gmra.mrb[84].mxu1 %v2109_v39  ;;  %v2116_v39 = vld [vmem:[%s22578_s3 + $0x328] sm:$0xff] }
 0x2e2   :  { %12899 = vmatprep.mubr.msk.f32.mxu1 %vm2241_vm7, %v2112_v7  ;;  %v7271_v11 = vsel %vm1768_vm6, %v7268_v30, %v7270_v63  ;;  %v2115_v7 = vld [vmem:[%s22578_s3 + $0x320] sm:$0xff] }
 0x2e3   :  { %v18640_v40 = vmax.f32 %v7224_v26, %v7271_v11  ;;  %v1443_v3 = vpop.f32.mrb[4].mxu0 }
 0x2e4   :  { %v7272_v23 = vrot.slane %v1443_v3, 2  ;;  %v14558_v48 = vpop.f32.mrb[5].mxu0 }
 0x2e5   :  { %2889 = vmatmul.mubr.f32.gmra.mrb[86].mxu1 %v2111_v37  ;;  %v2117_v37 = vld [vmem:[%s22578_s3 + $0x330] sm:$0xff] }
 0x2e6   :  { %12900 = vmatprep.mubr.msk.f32.mxu1 %vm2241_vm7, %v2114_v55  ;;  %v7273_v30 = vsel %vm1768_vm6, %v7270_v63, %v7272_v23  ;;  %v2118_v63 = vld [vmem:[%s22578_s3 + $0x338] sm:$0xff]  ;;  %v2120_v55 = vld [vmem:[%s22578_s3 + $0x348] sm:$0xff] }
 0x2e7   :  { %v18653_v46 = vmax.f32 %v7225_v13, %v7273_v30  ;;  %v1448_v18 = vpop.f32.mrb[6].mxu0 }
 0x2e8   :  { %v7274_v26 = vrot.slane %v1448_v18, 2  ;;  %v14561_v0 = vpop.f32.mrb[7].mxu0  ;;  %v2121_v18 = vld [vmem:[%s22578_s3 + $0x350] sm:$0xff] }
 0x2e9   :  { %2894 = vmatmul.mubr.f32.gmra.mrb[88].mxu1 %v2113_v59  ;;  %v2122_v59 = vld [vmem:[%s22578_s3 + $0x358] sm:$0xff]  ;;  %v2124_v0 = vld [vmem:[%s22578_s3 + $0x368] sm:$0xff] }
 0x2ea   :  { %12901 = vmatprep.mubr.msk.f32.mxu1 %vm2241_vm7, %v2116_v39  ;;  %v7275_v21 = vsel %vm1768_vm6, %v7272_v23, %v7274_v26  ;;  %v2119_v23 = vld [vmem:[%s22578_s3 + $0x340] sm:$0xff] }
 0x2eb   :  { %v18666_v12 = vmax.f32 %v7226_v35, %v7275_v21  ;;  %v1453_v49 = vpop.f32.mrb[8].mxu0 }
 0x2ec   :  { %v7276_v13 = vrot.slane %v1453_v49, 2  ;;  %v14564_v14 = vpop.f32.mrb[9].mxu0  ;;  %v2123_v49 = vld [vmem:[%s22578_s3 + $0x360] sm:$0xff] }
 0x2ed   :  { %2899 = vmatmul.mubr.f32.gmra.mrb[90].mxu1 %v2115_v7  ;;  %v2126_v14 = vld [vmem:[%s22578_s3 + $0x378] sm:$0xff] }
 0x2ee   :  { %12902 = vmatprep.mubr.msk.f32.mxu1 %vm2241_vm7, %v2118_v63  ;;  %v7277_v11 = vsel %vm1768_vm6, %v7274_v26, %v7276_v13 }
 0x2ef   :  { %v18679_v20 = vmax.f32 %v7227_v22, %v7277_v11  ;;  %v1458_v60 = vpop.f32.mrb[10].mxu0 }
 0x2f0   :  { %v7278_v35 = vrot.slane %v1458_v60, 2  ;;  %v14567_v3 = vpop.f32.mrb[11].mxu0 }
 0x2f1   :  { %2904 = vmatmul.mubr.f32.gmra.mrb[92].mxu1 %v2117_v37  ;;  %v12965_v3 = vld [vmem:[%s22579_s4 + $0x18] sm:$0x3] }
 0x2f2   :  { %12903 = vmatprep.mubr.msk.f32.mxu1 %vm2241_vm7, %v2120_v55  ;;  %v7279_v48 = vsel %vm1768_vm6, %v7276_v13, %v7278_v35 }
 0x2f3   :  { %v18692_v58 = vmax.f32 %v22633_v27, %v7279_v48  ;;  %v1463_v22 = vpop.f32.mrb[12].mxu0  ;;  %v2128_v48 = vld [vmem:[%s22578_s3 + $0x388] sm:$0xff] }
 0x2f4   :  { %v7280_v30 = vrot.slane %v1463_v22, 2  ;;  %v14570_v39 = vpop.f32.mrb[13].mxu0 }
 0x2f5   :  { %2909 = vmatmul.mubr.f32.gmra.mrb[94].mxu1 %v2119_v23 }
 0x2f6   :  { %12904 = vmatprep.mubr.msk.f32.mxu1 %vm2241_vm7, %v2122_v59  ;;  %v7281_v26 = vsel %vm1768_vm6, %v7278_v35, %v7280_v30  ;;  %v12964_v35 = vld [vmem:[%s22579_s4 + $0x10] sm:$0xff]  ;;  %v22638_v59 = vmax.f32 %v18057_v57, %v18420_v45  ;;  %v2130_v57 = vld [vmem:[%s22578_s3 + $0x398] sm:$0xff]  ;;  %v22639_v45 = vmax.f32 %v18072_v52, %v18432_v15  ;;  %v22640_v52 = vmax.f32 %v18087_v6, %v18444_v62 }
 0x2f7   :  { %v18705_v56 = vmax.f32 %v22634_v42, %v7281_v26  ;;  %v1468_v7 = vpop.f32.mrb[14].mxu0  ;;  %v15858_v23 = vpack.c.bf16 %v12965_v3, %v12964_v35  ;;  %v2134_v35 = vld [vmem:[%s22578_s3 + $0x3b8] sm:$0xff]  ;;  %v22641_v6 = vmax.f32 %v18102_v61, %v18456_v19  ;;  %v2136_v61 = vld [vmem:[%s22578_s3 + $0x3c8] sm:$0xff]  ;;  %v22642_v19 = vmax.f32 %v18117_v32, %v18468_v24 }
 0x2f8   :  { %v7282_v21 = vrot.slane %v1468_v7, 2  ;;  %v14573_v63 = vpop.f32.mrb[15].mxu0  ;;  %v2138_v32 = vld [vmem:[%s22578_s3 + $0x3d8] sm:$0xff]  ;;  %v22643_v24 = vmax.f32 %v18132_v10, %v18480_v33  ;;  %v2140_v10 = vld [vmem:[%s22578_s3 + $0x3e8] sm:$0xff]  ;;  %v22644_v33 = vmax.f32 %v18147_v38, %v18496_v53  ;;  %v22645_v53 = vmax.f32 %v18162_v41, %v18511_v47 }
 0x2f9   :  { %2914 = vmatmul.mubr.f32.gmra.mrb[96].mxu1 %v2121_v18  ;;  %v2127_v18 = vld [vmem:[%s22578_s3 + $0x380] sm:$0xff]  ;;  %v2129_v63 = vld [vmem:[%s22578_s3 + $0x390] sm:$0xff]  ;;  %v2142_v38 = vld [vmem:[%s22578_s3 + $0x3f8] sm:$0xff]  ;;  %v22646_v47 = vmax.f32 %v18177_v1, %v18530_v28  ;;  %v22647_v28 = vmax.f32 %v18192_v43, %v18549_v2  ;;  %v22648_v2 = vmax.f32 %v18207_v16, %v18568_v54 }
 0x2fa   :  { %12905 = vmatprep.mubr.msk.f32.mxu1 %vm2241_vm7, %v2124_v0  ;;  %v7283_v13 = vsel %vm1768_vm6, %v7280_v30, %v7282_v21  ;;  %15860 = vmatpush3.bf16.msk.msra.mxu1 %vm18721_vm10, %v15858_v23  ;;  %v2144_v41 = vld [vmem:[%s22578_s3 + $0x408] sm:$0xff]  ;;  %v2146_v1 = vld [vmem:[%s22578_s3 + $0x418] sm:$0xff] }
 0x2fb   :  { %v18718_v29 = vmax.f32 %v22635_v44, %v7283_v13  ;;  %v1473_v37 = vpop.f32.mrb[16].mxu0  ;;  %15861 = vmatprep.subr.bf16.mxu1 %v22632_v34  ;;  %v2132_v13 = vld [vmem:[%s22578_s3 + $0x3a8] sm:$0xff]  ;;  %v2150_v54 = vld [vmem:[%s22578_s3 + $0x438] sm:$0xff] }
 0x2fc   :  { %v7284_v11 = vrot.slane %v1473_v37, 2  ;;  %v14576_v55 = vpop.f32.mrb[17].mxu0  ;;  %v2148_v43 = vld [vmem:[%s22578_s3 + $0x428] sm:$0xff] }
 0x2fd   :  { %2919 = vmatmul.mubr.f32.gmra.mrb[98].mxu1 %v2123_v49 }
 0x2fe   :  { %12906 = vmatprep.mubr.msk.f32.mxu1 %vm2241_vm7, %v2126_v14  ;;  %v7285_v25 = vsel %vm1768_vm6, %v7282_v21, %v7284_v11 }
 0x2ff   :  { %v18742_v27 = vmax.f32 %v22638_v59, %v7285_v25  ;;  %v1478_v22 = vpop.f32.mrb[18].mxu0  ;;  %v2133_v59 = vld [vmem:[%s22578_s3 + $0x3b0] sm:$0xff] }
 0x300   :  { %v7286_v30 = vrot.slane %v1478_v22, 2  ;;  %v14579_v39 = vpop.f32.mrb[19].mxu0 }
 0x301   :  { %2924 = vmatmul.mubr.f32.gmra.mrb[100].mxu1 %v2125_v9 }
 0x302   :  { %12907 = vmatprep.mubr.msk.f32.mxu1 %vm2241_vm7, %v2128_v48  ;;  %v7287_v26 = vsel %vm1768_vm6, %v7284_v11, %v7286_v30  ;;  %v2131_v11 = vld [vmem:[%s22578_s3 + $0x3a0] sm:$0xff] }
 0x303   :  { %v18758_v0 = vmax.f32 %v22639_v45, %v7287_v26  ;;  %v1483_v42 = vpop.f32.mrb[20].mxu0 }
 0x304   :  { %v7288_v7 = vrot.slane %v1483_v42, 2  ;;  %v14582_v21 = vpop.f32.mrb[21].mxu0  ;;  %v2135_v42 = vld [vmem:[%s22578_s3 + $0x3c0] sm:$0xff] }
 0x305   :  { %2929 = vmatmul.mubr.f32.gmra.mrb[102].mxu1 %v2127_v18 }
 0x306   :  { %12908 = vmatprep.mubr.msk.f32.mxu1 %vm2241_vm7, %v2130_v57  ;;  %v7289_v49 = vsel %vm1768_vm6, %v7286_v30, %v7288_v7 }
 0x307   :  { %v18771_v15 = vmax.f32 %v22640_v52, %v7289_v49  ;;  %v1488_v14 = vpop.f32.mrb[22].mxu0 }
 0x308   :  { %v7290_v44 = vrot.slane %v1488_v14, 2  ;;  %v14585_v37 = vpop.f32.mrb[23].mxu0 }
 0x309   :  { %2934 = vmatmul.mubr.f32.gmra.mrb[104].mxu1 %v2129_v63 }
 0x30a   :  { %12909 = vmatprep.mubr.msk.f32.mxu1 %vm2241_vm7, %v2132_v13  ;;  %v7291_v55 = vsel %vm1768_vm6, %v7288_v7, %v7290_v44 }
 0x30b   :  { %v18784_v62 = vmax.f32 %v22641_v6, %v7291_v55  ;;  %v1493_v3 = vpop.f32.mrb[24].mxu0 }
 0x30c   :  { %v7292_v9 = vrot.slane %v1493_v3, 2  ;;  %v14588_v25 = vpop.f32.mrb[25].mxu0  ;;  %v18786_v23 = vpop.f32.mrb[0].mxu1 }
 0x30d   :  { %2939 = vmatmul.mubr.f32.gmra.mrb[106].mxu1 %v2131_v11  ;;  %v2677_v48 = vpop.f32.mrb[1].mxu1  ;;  %v2139_v25 = vld [vmem:[%s22578_s3 + $0x3e0] sm:$0xff] }
 0x30e   :  { %12910 = vmatprep.mubr.msk.f32.mxu1 %vm2241_vm7, %v2134_v35  ;;  %v7293_v22 = vsel %vm1768_vm6, %v7290_v44, %v7292_v9  ;;  %v2137_v44 = vld [vmem:[%s22578_s3 + $0x3d0] sm:$0xff] }
 0x30f   :  { %v18799_v30 = vmax.f32 %v22642_v19, %v7293_v22  ;;  %v1498_v39 = vpop.f32.mrb[26].mxu0 }
 0x310   :  { %v7294_v18 = vrot.slane %v1498_v39, 2  ;;  %v14591_v26 = vpop.f32.mrb[27].mxu0  ;;  %v18801_v57 = vpop.f32.mrb[2].mxu1 }
 0x311   :  { %2944 = vmatmul.mubr.f32.gmra.mrb[108].mxu1 %v2133_v59  ;;  %v2682_v45 = vpop.f32.mrb[3].mxu1  ;;  %v2141_v26 = vld [vmem:[%s22578_s3 + $0x3f0] sm:$0xff] }
 0x312   :  { %12911 = vmatprep.mubr.msk.f32.mxu1 %vm2241_vm7, %v2136_v61  ;;  %v7295_v7 = vsel %vm1768_vm6, %v7292_v9, %v7294_v18 }
 0x313   :  { %v18814_v21 = vmax.f32 %v22643_v24, %v7295_v7  ;;  %v1503_v63 = vpop.f32.mrb[28].mxu0 }
 0x314   :  { %v7296_v49 = vrot.slane %v1503_v63, 2  ;;  %v14594_v13 = vpop.f32.mrb[29].mxu0  ;;  %v18816_v52 = vpop.f32.mrb[4].mxu1 }
 0x315   :  { %2949 = vmatmul.mubr.f32.gmra.mrb[110].mxu1 %v2135_v42  ;;  %v2687_v14 = vpop.f32.mrb[5].mxu1  ;;  %v2143_v13 = vld [vmem:[%s22578_s3 + $0x400] sm:$0xff] }
 0x316   :  { %12912 = vmatprep.mubr.msk.f32.mxu1 %vm2241_vm7, %v2138_v32  ;;  %v7297_v37 = vsel %vm1768_vm6, %v7294_v18, %v7296_v49 }
 0x317   :  { %v18829_v11 = vmax.f32 %v22644_v33, %v7297_v37  ;;  %v1508_v55 = vpop.f32.mrb[30].mxu0 }
 0x318   :  { %v7298_v35 = vrot.slane %v1508_v55, 2  ;;  %v14597_v6 = vpop.f32.mrb[31].mxu0  ;;  %v18831_v3 = vpop.f32.mrb[6].mxu1 }
 0x319   :  { %2954 = vmatmul.mubr.f32.gmra.mrb[112].mxu1 %v2137_v44  ;;  %v2692_v9 = vpop.f32.mrb[7].mxu1  ;;  %v2145_v6 = vld [vmem:[%s22578_s3 + $0x410] sm:$0xff] }
 0x31a   :  { %12913 = vmatprep.mubr.msk.f32.mxu1 %vm2241_vm7, %v2140_v10  ;;  %v7299_v48 = vsel %vm1768_vm6, %v7296_v49, %v7298_v35 }
 0x31b   :  { %v18844_v59 = vmax.f32 %v22645_v53, %v7299_v48  ;;  %v1513_v22 = vpop.f32.mrb[32].mxu0 }
 0x31c   :  { %v7300_v61 = vrot.slane %v1513_v22, 2  ;;  %v14600_v19 = vpop.f32.mrb[33].mxu0  ;;  %v18846_v39 = vpop.f32.mrb[8].mxu1 }
 0x31d   :  { %2959 = vmatmul.mubr.f32.gmra.mrb[114].mxu1 %v2139_v25  ;;  %v2697_v18 = vpop.f32.mrb[9].mxu1  ;;  %v2147_v19 = vld [vmem:[%s22578_s3 + $0x420] sm:$0xff] }
 0x31e   :  { %12914 = vmatprep.mubr.msk.f32.mxu1 %vm2241_vm7, %v2142_v38  ;;  %v7301_v45 = vsel %vm1768_vm6, %v7298_v35, %v7300_v61 }
 0x31f   :  { %v18859_v42 = vmax.f32 %v22646_v47, %v7301_v45  ;;  %v1518_v7 = vpop.f32.mrb[34].mxu0 }
 0x320   :  { %v7302_v32 = vrot.slane %v1518_v7, 2  ;;  %v14603_v24 = vpop.f32.mrb[35].mxu0  ;;  %v18861_v63 = vpop.f32.mrb[10].mxu1 }
 0x321   :  { %2964 = vmatmul.mubr.f32.gmra.mrb[116].mxu1 %v2141_v26  ;;  %v2702_v49 = vpop.f32.mrb[11].mxu1 }
 0x322   :  { %12915 = vmatprep.mubr.msk.f32.mxu1 %vm2241_vm7, %v2144_v41  ;;  %v7303_v14 = vsel %vm1768_vm6, %v7300_v61, %v7302_v32 }
 0x323   :  { %v18874_v44 = vmax.f32 %v22647_v28, %v7303_v14  ;;  %v1523_v37 = vpop.f32.mrb[36].mxu0 }
 0x324   :  { %v7304_v10 = vrot.slane %v1523_v37, 2  ;;  %v14606_v33 = vpop.f32.mrb[37].mxu0  ;;  %v18876_v55 = vpop.f32.mrb[12].mxu1 }
 0x325   :  { %2969 = vmatmul.mubr.f32.gmra.mrb[118].mxu1 %v2143_v13  ;;  %v2707_v35 = vpop.f32.mrb[13].mxu1  ;;  %v2149_v13 = vld [vmem:[%s22578_s3 + $0x430] sm:$0xff]  ;;  %v18925_v33 = vld [vmem:[%s22577_s2] ss:$0 sm:$0xff] }
 0x326   :  { %12916 = vmatprep.mubr.msk.f32.mxu1 %vm2241_vm7, %v2146_v1  ;;  %v7305_v9 = vsel %vm1768_vm6, %v7302_v32, %v7304_v10 }
 0x327   :  { %v18889_v25 = vmax.f32 %v22648_v2, %v7305_v9  ;;  %v1528_v48 = vpop.f32.mrb[38].mxu0  ;;  %v2154_v2 = vld [vmem:[%s22578_s3 + $0x458] sm:$0xff] }
 0x328   :  { %v7306_v38 = vrot.slane %v1528_v48, 2  ;;  %v14609_v53 = vpop.f32.mrb[39].mxu0  ;;  %v18891_v22 = vpop.f32.mrb[14].mxu1  ;;  %v7373_v26 = vrot.slane %v1528_v48, 3 }
 0x329   :  { %2974 = vmatmul.mubr.f32.gmra.mrb[120].mxu1 %v2145_v6  ;;  %v2712_v61 = vpop.f32.mrb[15].mxu1  ;;  %v3233_v24 = vrot.slane %v18891_v22, 4 }
 0x32a   :  { %12917 = vmatprep.mubr.msk.f32.mxu1 %vm2241_vm7, %v2148_v43  ;;  %v7307_v18 = vsel %vm1768_vm6, %v7304_v10, %v7306_v38  ;;  %v18899_v16 = vmax.f32 %v18590_v36, %v7306_v38 }
 0x32b   :  { %v1533_v45 = vpop.f32.mrb[40].mxu0  ;;  %v18907_v41 = vmax.f32 %v7242_v17, %v7307_v18 }
 0x32c   :  { %v7374_v47 = vrot.slane %v1533_v45, 3  ;;  %v14612_v7 = vpop.f32.mrb[41].mxu0  ;;  %v2715_v32 = vpop.f32.mrb[16].mxu1 }
 0x32d   :  { %2979 = vmatmul.mubr.f32.gmra.mrb[122].mxu1 %v2147_v19  ;;  %v3234_v49 = vrot.slane %v2715_v32, 4  ;;  %v2717_v36 = vpop.f32.mrb[17].mxu1  ;;  %v2156_v32 = vld [vmem:[%s22578_s3 + $0x468] sm:$0xff] }
 0x32e   :  { %12918 = vmatprep.mubr.msk.f32.mxu1 %vm2241_vm7, %v2150_v54  ;;  %v7375_v14 = vsel %vm1877_vm8, %v7373_v26, %v7374_v47 }
 0x32f   :  { %v7438_v31 = vmax.f32 %v18614_v8, %v7375_v14  ;;  %v1538_v17 = vpop.f32.mrb[42].mxu0  ;;  %v18920_v1 = vsel %vm3232_vm11, %v3233_v24, %v3234_v49  ;;  %v2151_v8 = vld [vmem:[%s22578_s3 + $0x440] sm:$0xff] }
 0x330   :  { %v7376_v28 = vrot.slane %v1538_v17, 3  ;;  %v14615_v37 = vpop.f32.mrb[43].mxu0  ;;  %v2720_v10 = vpop.f32.mrb[18].mxu1 }
 0x331   :  { %2984 = vmatmul.mubr.f32.gmra.mrb[124].mxu1 %v2149_v13  ;;  %v7460_v35 = vadd.f32 %v18925_v33, %v7438_v31  ;;  %v3236_v6 = vrot.slane %v2720_v10, 4  ;;  %v2722_v9 = vpop.f32.mrb[19].mxu1 }
 0x332   :  { %12919 = vmatprep.mubr.msk.f32.mxu1 %vm2241_vm7, %v2152_v51  ;;  %v7377_v43 = vsel %vm1877_vm8, %v7374_v47, %v7376_v28  ;;  %v2153_v47 = vld [vmem:[%s22578_s3 + $0x450] sm:$0xff]  ;;  %v2158_v9 = vld [vmem:[%s22578_s3 + $0x478] sm:$0xff] }
 0x333   :  { %v7439_v48 = vmax.f32 %v18627_v50, %v7377_v43  ;;  %v1543_v38 = vpop.f32.mrb[44].mxu0  ;;  %v18938_v53 = vsel %vm3232_vm11, %v3234_v49, %v3236_v6  ;;  %v7482_v26 = vmax.f32 %v7460_v35, 0.0 }
 0x334   :  { %v7378_v61 = vrot.slane %v1543_v38, 3  ;;  %v2725_v19 = vpop.f32.mrb[20].mxu1  ;;  %v14618_v18 = vpop.f32.mrb[45].mxu0 }
 0x335   :  { %2989 = vmatmul.mubr.f32.gmra.mrb[126].mxu1 %v2151_v8  ;;  %v7461_v54 = vadd.f32 %v18925_v33, %v7439_v48  ;;  %v3238_v45 = vrot.slane %v2725_v19, 4  ;;  %v2727_v7 = vpop.f32.mrb[21].mxu1  ;;  %v7752_v17 = vrot.slane %v7482_v26, 4 }
 0x336   :  { %12920 = vmatprep.mubr.msk.f32.mxu1 %vm2241_vm7, %v2154_v2  ;;  %v7379_v50 = vsel %vm1877_vm8, %v7376_v28, %v7378_v61 }
 0x337   :  { %v7483_v24 = vmax.f32 %v7461_v54, 0.0  ;;  %v7440_v49 = vmax.f32 %v18640_v40, %v7379_v50  ;;  %v18951_v36 = vsel %vm3232_vm11, %v3236_v6, %v3238_v45  ;;  %v1548_v13 = vpop.f32.mrb[46].mxu0  ;;  %v2155_v40 = vld [vmem:[%s22578_s3 + $0x460] sm:$0xff]  ;;  %v2160_v50 = vld [vmem:[%s22578_s3 + $0x488] sm:$0xff] }
 0x338   :  { %v2730_v14 = vpop.f32.mrb[22].mxu1  ;;  %v7380_v51 = vrot.slane %v1548_v13, 3  ;;  %v14621_v31 = vpop.f32.mrb[47].mxu0 }
 0x339   :  { %2994 = vmatmul.mubr.f32.gmra.mrb[128].mxu1 %v2153_v47  ;;  %v7753_v37 = vrot.slane %v7483_v24, 4  ;;  %v7462_v10 = vadd.f32 %v18925_v33, %v7440_v49  ;;  %v3240_v28 = vrot.slane %v2730_v14, 4  ;;  %v2732_v35 = vpop.f32.mrb[23].mxu1 }
 0x33a   :  { %12921 = vmatprep.mubr.msk.f32.mxu1 %vm2241_vm7, %v2156_v32  ;;  %v7381_v6 = vsel %vm1877_vm8, %v7378_v61, %v7380_v51 }
 0x33b   :  { %v7484_v8 = vmax.f32 %v7462_v10, 0.0  ;;  %v18963_v43 = vsel %vm3232_vm11, %v3238_v45, %v3240_v28  ;;  %v7441_v2 = vmax.f32 %v18653_v46, %v7381_v6  ;;  %v1553_v48 = vpop.f32.mrb[48].mxu0  ;;  %v18967_v38 = vsel %vm3232_vm11, %v7752_v17, %v7753_v37  ;;  %v2157_v45 = vld [vmem:[%s22578_s3 + $0x470] sm:$0xff] }
 0x33c   :  { %22649 = vst [vmem:[#allocation6_spill] sm:$0xff] %v18967_v38  ;;  %v2735_v19 = vpop.f32.mrb[24].mxu1  ;;  %v7382_v18 = vrot.slane %v1553_v48, 3  ;;  %v14624_v26 = vpop.f32.mrb[49].mxu0 }
 0x33d   :  { %2999 = vmatmul.mubr.f32.gmra.mrb[130].mxu1 %v2155_v40  ;;  %v7755_v54 = vrot.slane %v7484_v8, 4  ;;  %v3242_v61 = vrot.slane %v2735_v19, 4  ;;  %v7463_v7 = vadd.f32 %v18925_v33, %v7441_v2  ;;  %v2737_v47 = vpop.f32.mrb[25].mxu1 }
 0x33e   :  { %12922 = vmatprep.mubr.msk.f32.mxu1 %vm2241_vm7, %v2158_v9  ;;  %v7383_v46 = vsel %vm1877_vm8, %v7380_v51, %v7382_v18 }
 0x33f   :  { %v7485_v32 = vmax.f32 %v7463_v7, 0.0  ;;  %v18979_v24 = vsel %vm3232_vm11, %v3240_v28, %v3242_v61  ;;  %v7442_v49 = vmax.f32 %v18666_v12, %v7383_v46  ;;  %v1558_v13 = vpop.f32.mrb[50].mxu0  ;;  %v18983_v14 = vsel %vm3232_vm11, %v7753_v37, %v7755_v54  ;;  %v2159_v12 = vld [vmem:[%s22578_s3 + $0x480] sm:$0xff]  ;;  %v2162_v28 = vld [vmem:[%s22578_s3 + $0x498] sm:$0xff] }
 0x340   :  { %22650 = vst [vmem:[#allocation7_spill] sm:$0xff] %v18983_v14  ;;  %v2740_v31 = vpop.f32.mrb[26].mxu1  ;;  %v7384_v17 = vrot.slane %v1558_v13, 3  ;;  %v14627_v10 = vpop.f32.mrb[51].mxu0 }
 0x341   :  { %3004 = vmatmul.mubr.f32.gmra.mrb[132].mxu1 %v2157_v45  ;;  %v7757_v35 = vrot.slane %v7485_v32, 4  ;;  %v3244_v40 = vrot.slane %v2740_v31, 4  ;;  %v7464_v6 = vadd.f32 %v18925_v33, %v7442_v49  ;;  %v2742_v9 = vpop.f32.mrb[27].mxu1 }
 0x342   :  { %12923 = vmatprep.mubr.msk.f32.mxu1 %vm2241_vm7, %v2160_v50  ;;  %v7385_v37 = vsel %vm1877_vm8, %v7382_v18, %v7384_v17 }
 0x343   :  { %v7486_v8 = vmax.f32 %v7464_v6, 0.0  ;;  %v7443_v2 = vmax.f32 %v18679_v20, %v7385_v37  ;;  %v18998_v48 = vsel %vm3232_vm11, %v3242_v61, %v3244_v40  ;;  %v1563_v19 = vpop.f32.mrb[52].mxu0  ;;  %v19001_v26 = vsel %vm3232_vm11, %v7755_v54, %v7757_v35  ;;  %v2161_v20 = vld [vmem:[%s22578_s3 + $0x490] sm:$0xff]  ;;  %v2164_v54 = vld [vmem:[%s22578_s3 + $0x4a8] sm:$0xff] }
 0x344   :  { %22651 = vst [vmem:[#allocation8_spill] sm:$0xff] %v19001_v26  ;;  %v2745_v7 = vpop.f32.mrb[28].mxu1  ;;  %v7386_v47 = vrot.slane %v1563_v19, 3  ;;  %v14630_v45 = vpop.f32.mrb[53].mxu0 }
 0x345   :  { %3009 = vmatmul.mubr.f32.gmra.mrb[134].mxu1 %v2159_v12  ;;  %v7759_v46 = vrot.slane %v7486_v8, 4  ;;  %v7465_v18 = vadd.f32 %v18925_v33, %v7443_v2  ;;  %v3246_v50 = vrot.slane %v2745_v7, 4  ;;  %v2747_v32 = vpop.f32.mrb[29].mxu1 }
 0x346   :  { %12924 = vmatprep.mubr.msk.f32.mxu1 %vm2241_vm7, %v2162_v28  ;;  %v7387_v61 = vsel %vm1877_vm8, %v7384_v17, %v7386_v47 }
 0x347   :  { %v7487_v49 = vmax.f32 %v7465_v18, 0.0  ;;  %v7444_v13 = vmax.f32 %v18692_v58, %v7387_v61  ;;  %v1568_v31 = vpop.f32.mrb[54].mxu0  ;;  %v19014_v10 = vsel %vm3232_vm11, %v3244_v40, %v3246_v50  ;;  %v19017_v6 = vsel %vm3232_vm11, %v7757_v35, %v7759_v46  ;;  %v2163_v58 = vld [vmem:[%s22578_s3 + $0x4a0] sm:$0xff]  ;;  %v2166_v40 = vld [vmem:[%s22578_s3 + $0x4b8] sm:$0xff] }
 0x348   :  { %22652 = vst [vmem:[#allocation9_spill] sm:$0xff] %v19017_v6  ;;  %v7388_v9 = vrot.slane %v1568_v31, 3  ;;  %v14633_v12 = vpop.f32.mrb[55].mxu0  ;;  %v2750_v37 = vpop.f32.mrb[30].mxu1 }
 0x349   :  { %3014 = vmatmul.mubr.f32.gmra.mrb[136].mxu1 %v2161_v20  ;;  %v7761_v28 = vrot.slane %v7487_v49, 4  ;;  %v7466_v8 = vadd.f32 %v18925_v33, %v7444_v13  ;;  %v3248_v2 = vrot.slane %v2750_v37, 4  ;;  %v2752_v19 = vpop.f32.mrb[31].mxu1 }
 0x34a   :  { %12925 = vmatprep.mubr.msk.f32.mxu1 %vm2241_vm7, %v2164_v54  ;;  %v7389_v35 = vsel %vm1877_vm8, %v7386_v47, %v7388_v9 }
 0x34b   :  { %v7488_v7 = vmax.f32 %v7466_v8, 0.0  ;;  %v7445_v45 = vmax.f32 %v18705_v56, %v7389_v35  ;;  %v1573_v18 = vpop.f32.mrb[56].mxu0  ;;  %v19032_v32 = vsel %vm3232_vm11, %v3246_v50, %v3248_v2  ;;  %v19035_v20 = vsel %vm3232_vm11, %v7759_v46, %v7761_v28  ;;  %v2165_v56 = vld [vmem:[%s22578_s3 + $0x4b0] sm:$0xff]  ;;  %v2168_v46 = vld [vmem:[%s22578_s3 + $0x4c8] sm:$0xff] }
 0x34c   :  { %22653 = vst [vmem:[#allocation10_spill] sm:$0xff] %v19035_v20  ;;  %v7390_v61 = vrot.slane %v1573_v18, 3  ;;  %v14636_v54 = vpop.f32.mrb[57].mxu0  ;;  %v2755_v49 = vpop.f32.mrb[32].mxu1 }
 0x34d   :  { %3019 = vmatmul.mubr.f32.gmra.mrb[138].mxu1 %v2163_v58  ;;  %v7763_v13 = vrot.slane %v7488_v7, 4  ;;  %v7467_v47 = vadd.f32 %v18925_v33, %v7445_v45  ;;  %v3250_v31 = vrot.slane %v2755_v49, 4  ;;  %v2757_v12 = vpop.f32.mrb[33].mxu1 }
 0x34e   :  { %12926 = vmatprep.mubr.msk.f32.mxu1 %vm2241_vm7, %v2166_v40  ;;  %v7391_v50 = vsel %vm1877_vm8, %v7388_v9, %v7390_v61 }
 0x34f   :  { %v7489_v37 = vmax.f32 %v7467_v47, 0.0  ;;  %v7446_v8 = vmax.f32 %v18718_v29, %v7391_v50  ;;  %v1578_v19 = vpop.f32.mrb[58].mxu0  ;;  %v19048_v58 = vsel %vm3232_vm11, %v3248_v2, %v3250_v31  ;;  %v19051_v35 = vsel %vm3232_vm11, %v7761_v28, %v7763_v13  ;;  %v2167_v29 = vld [vmem:[%s22578_s3 + $0x4c0] sm:$0xff]  ;;  %v2170_v2 = vld [vmem:[%s22578_s3 + $0x4d8] sm:$0xff] }
 0x350   :  { %22654 = vst [vmem:[#allocation11_spill] sm:$0xff] %v19051_v35  ;;  %v7392_v40 = vrot.slane %v1578_v19, 3  ;;  %v14639_v7 = vpop.f32.mrb[59].mxu0  ;;  %v2760_v45 = vpop.f32.mrb[34].mxu1 }
 0x351   :  { %3024 = vmatmul.mubr.f32.gmra.mrb[140].mxu1 %v2165_v56  ;;  %v7765_v18 = vrot.slane %v7489_v37, 4  ;;  %v7468_v54 = vadd.f32 %v18925_v33, %v7446_v8  ;;  %v3252_v49 = vrot.slane %v2760_v45, 4  ;;  %v2762_v47 = vpop.f32.mrb[35].mxu1 }
 0x352   :  { %12927 = vmatprep.mubr.msk.f32.mxu1 %vm2241_vm7, %v2168_v46  ;;  %v7393_v28 = vsel %vm1877_vm8, %v7390_v61, %v7392_v40 }
 0x353   :  { %v7490_v12 = vmax.f32 %v7468_v54, 0.0  ;;  %v7447_v56 = vmax.f32 %v18742_v27, %v7393_v28  ;;  %v1583_v50 = vpop.f32.mrb[60].mxu0  ;;  %v19066_v37 = vsel %vm3232_vm11, %v3250_v31, %v3252_v49  ;;  %v19069_v8 = vsel %vm3232_vm11, %v7763_v13, %v7765_v18  ;;  %v2169_v27 = vld [vmem:[%s22578_s3 + $0x4d0] sm:$0xff]  ;;  %v2172_v13 = vld [vmem:[%s22578_s3 + $0x4e8] sm:$0xff] }
 0x354   :  { %22655 = vst [vmem:[#allocation12_spill] sm:$0xff] %v19069_v8  ;;  %v7394_v46 = vrot.slane %v1583_v50, 3  ;;  %v14642_v19 = vpop.f32.mrb[61].mxu0  ;;  %v2765_v7 = vpop.f32.mrb[36].mxu1  ;;  %v2214_v8 = vld [vmem:[%s22578_s3 + $0x638] sm:$0xff] }
 0x355   :  { %3029 = vmatmul.mubr.f32.gmra.mrb[142].mxu1 %v2167_v29  ;;  %v7767_v45 = vrot.slane %v7490_v12, 4  ;;  %v7469_v61 = vadd.f32 %v18925_v33, %v7447_v56  ;;  %v3254_v47 = vrot.slane %v2765_v7, 4  ;;  %v2767_v9 = vpop.f32.mrb[37].mxu1 }
 0x356   :  { %12928 = vmatprep.mubr.msk.f32.mxu1 %vm2241_vm7, %v2170_v2  ;;  %v7395_v31 = vsel %vm1877_vm8, %v7392_v40, %v7394_v46 }
 0x357   :  { %v7491_v54 = vmax.f32 %v7469_v61, 0.0  ;;  %v7448_v29 = vmax.f32 %v18758_v0, %v7395_v31  ;;  %v1588_v28 = vpop.f32.mrb[62].mxu0  ;;  %v19082_v12 = vsel %vm3232_vm11, %v3252_v49, %v3254_v47  ;;  %v19085_v9 = vsel %vm3232_vm11, %v7765_v18, %v7767_v45  ;;  %v2171_v18 = vld [vmem:[%s22578_s3 + $0x4e0] sm:$0xff]  ;;  %v2174_v31 = vld [vmem:[%s22578_s3 + $0x4f8] sm:$0xff] }
 0x358   :  { %22656 = vst [vmem:[#allocation13_spill] sm:$0xff] %v19085_v9  ;;  %v7396_v2 = vrot.slane %v1588_v28, 3  ;;  %v14645_v56 = vpop.f32.mrb[63].mxu0  ;;  %v19087_v50 = vpop.f32.mrb[38].mxu1 }
 0x359   :  { %3034 = vmatmul.mubr.f32.gmra.mrb[144].mxu1 %v2169_v27  ;;  %v7769_v19 = vrot.slane %v7491_v54, 4  ;;  %v7470_v7 = vadd.f32 %v18925_v33, %v7448_v29  ;;  %v22588_v0 = vrot.slane %v19087_v50, 4  ;;  %v2772_v61 = vpop.f32.mrb[39].mxu1 }
 0x35a   :  { %12929 = vmatprep.mubr.msk.f32.mxu1 %vm2241_vm7, %v2172_v13  ;;  %v7397_v49 = vsel %vm1877_vm8, %v7394_v46, %v7396_v2 }
 0x35b   :  { %v7492_v28 = vmax.f32 %v7470_v7, 0.0  ;;  %v7449_v27 = vmax.f32 %v18771_v15, %v7397_v49  ;;  %v1593_v54 = vpop.f32.mrb[64].mxu0  ;;  %v19105_v29 = vsel %vm3232_vm11, %v3254_v47, %v22588_v0  ;;  %v19108_v13 = vsel %vm3232_vm11, %v7767_v45, %v7769_v19  ;;  %v2173_v15 = vld [vmem:[%s22578_s3 + $0x4f0] sm:$0xff]  ;;  %v2176_v45 = vld [vmem:[%s22578_s3 + $0x508] sm:$0xff] }
 0x35c   :  { %22657 = vst [vmem:[#allocation14_spill] sm:$0xff] %v19108_v13  ;;  %v7398_v56 = vrot.slane %v1593_v54, 3  ;;  %v14648_v61 = vpop.f32.mrb[65].mxu0  ;;  %v19110_v40 = vpop.f32.mrb[40].mxu1  ;;  %v2212_v13 = vld [vmem:[%s22578_s3 + $0x628] sm:$0xff] }
 0x35d   :  { %3039 = vmatmul.mubr.f32.gmra.mrb[146].mxu1 %v2171_v18  ;;  %v7771_v46 = vrot.slane %v7492_v28, 4  ;;  %v7471_v17 = vadd.f32 %v18925_v33, %v7449_v27  ;;  %v2777_v7 = vpop.f32.mrb[41].mxu1 }
 0x35e   :  { %12930 = vmatprep.mubr.msk.f32.mxu1 %vm2241_vm7, %v2174_v31  ;;  %v7399_v47 = vsel %vm1877_vm8, %v7396_v2, %v7398_v56 }
 0x35f   :  { %v7493_v49 = vmax.f32 %v7471_v17, 0.0  ;;  %v7450_v54 = vmax.f32 %v18784_v62, %v7399_v47  ;;  %v1598_v18 = vpop.f32.mrb[66].mxu0  ;;  %v19123_v28 = vsel %vm3232_vm11, %v7769_v19, %v7771_v46  ;;  %v2175_v62 = vld [vmem:[%s22578_s3 + $0x500] sm:$0xff]  ;;  %v2178_v19 = vld [vmem:[%s22578_s3 + $0x518] sm:$0xff] }
 0x360   :  { %22658 = vst [vmem:[#allocation15_spill] sm:$0xff] %v19123_v28  ;;  %v7400_v27 = vrot.slane %v1598_v18, 3  ;;  %v14651_v61 = vpop.f32.mrb[67].mxu0  ;;  %v19125_v31 = vpop.f32.mrb[42].mxu1 }
 0x361   :  { %3044 = vmatmul.mubr.f32.gmra.mrb[148].mxu1 %v2173_v15  ;;  %v7773_v2 = vrot.slane %v7493_v49, 4  ;;  %v7472_v51 = vadd.f32 %v18925_v33, %v7450_v54  ;;  %v2782_v0 = vpop.f32.mrb[43].mxu1 }
 0x362   :  { %12931 = vmatprep.mubr.msk.f32.mxu1 %vm2241_vm7, %v2176_v45  ;;  %v7401_v17 = vsel %vm1877_vm8, %v7398_v56, %v7400_v27 }
 0x363   :  { %v7494_v47 = vmax.f32 %v7472_v51, 0.0  ;;  %v7451_v18 = vmax.f32 %v18799_v30, %v7401_v17  ;;  %v1603_v15 = vpop.f32.mrb[68].mxu0  ;;  %v19140_v49 = vsel %vm3232_vm11, %v7771_v46, %v7773_v2  ;;  %v2177_v51 = vld [vmem:[%s22578_s3 + $0x510] sm:$0xff]  ;;  %v2180_v46 = vld [vmem:[%s22578_s3 + $0x528] sm:$0xff] }
 0x364   :  { %22659 = vst [vmem:[#allocation16_spill] sm:$0xff] %v19140_v49  ;;  %v7402_v0 = vrot.slane %v1603_v15, 3  ;;  %v14654_v54 = vpop.f32.mrb[69].mxu0  ;;  %v19142_v45 = vpop.f32.mrb[44].mxu1 }
 0x365   :  { %3049 = vmatmul.mubr.f32.gmra.mrb[150].mxu1 %v2175_v62  ;;  %v7775_v61 = vrot.slane %v7494_v47, 4  ;;  %v7473_v7 = vadd.f32 %v18925_v33, %v7451_v18  ;;  %v2787_v56 = vpop.f32.mrb[45].mxu1 }
 0x366   :  { %12932 = vmatprep.mubr.msk.f32.mxu1 %vm2241_vm7, %v2178_v19  ;;  %v7403_v30 = vsel %vm1877_vm8, %v7400_v27, %v7402_v0 }
 0x367   :  { %v7495_v17 = vmax.f32 %v7473_v7, 0.0  ;;  %v7452_v15 = vmax.f32 %v18814_v21, %v7403_v30  ;;  %v1608_v62 = vpop.f32.mrb[70].mxu0  ;;  %v19155_v47 = vsel %vm3232_vm11, %v7773_v2, %v7775_v61  ;;  %v2179_v21 = vld [vmem:[%s22578_s3 + $0x520] sm:$0xff]  ;;  %v2182_v2 = vld [vmem:[%s22578_s3 + $0x538] sm:$0xff] }
 0x368   :  { %22660 = vst [vmem:[#allocation17_spill] sm:$0xff] %v19155_v47  ;;  %v7404_v18 = vrot.slane %v1608_v62, 3  ;;  %v14657_v54 = vpop.f32.mrb[71].mxu0  ;;  %v19157_v19 = vpop.f32.mrb[46].mxu1 }
 0x369   :  { %3054 = vmatmul.mubr.f32.gmra.mrb[152].mxu1 %v2177_v51  ;;  %v7777_v27 = vrot.slane %v7495_v17, 4  ;;  %v7474_v5 = vadd.f32 %v18925_v33, %v7452_v15  ;;  %v2792_v4 = vpop.f32.mrb[47].mxu1 }
 0x36a   :  { %12933 = vmatprep.mubr.msk.f32.mxu1 %vm2241_vm7, %v2180_v46  ;;  %v7405_v7 = vsel %vm1877_vm8, %v7402_v0, %v7404_v18 }
 0x36b   :  { %v7496_v30 = vmax.f32 %v7474_v5, 0.0  ;;  %v7453_v62 = vmax.f32 %v18829_v11, %v7405_v7  ;;  %v1613_v51 = vpop.f32.mrb[72].mxu0  ;;  %v19172_v17 = vsel %vm3232_vm11, %v7775_v61, %v7777_v27  ;;  %v2181_v5 = vld [vmem:[%s22578_s3 + $0x530] sm:$0xff]  ;;  %v2184_v61 = vld [vmem:[%s22578_s3 + $0x548] sm:$0xff] }
 0x36c   :  { %22661 = vst [vmem:[#allocation18_spill] sm:$0xff] %v19172_v17  ;;  %v7406_v4 = vrot.slane %v1613_v51, 3  ;;  %v14660_v15 = vpop.f32.mrb[73].mxu0  ;;  %v19174_v46 = vpop.f32.mrb[48].mxu1 }
 0x36d   :  { %3059 = vmatmul.mubr.f32.gmra.mrb[154].mxu1 %v2179_v21  ;;  %v7779_v54 = vrot.slane %v7496_v30, 4  ;;  %v7475_v56 = vadd.f32 %v18925_v33, %v7453_v62  ;;  %v2797_v0 = vpop.f32.mrb[49].mxu1 }
 0x36e   :  { %12934 = vmatprep.mubr.msk.f32.mxu1 %vm2241_vm7, %v2182_v2  ;;  %v7407_v11 = vsel %vm1877_vm8, %v7404_v18, %v7406_v4 }
 0x36f   :  { %v7497_v7 = vmax.f32 %v7475_v56, 0.0  ;;  %v7454_v51 = vmax.f32 %v18844_v59, %v7407_v11  ;;  %v1618_v21 = vpop.f32.mrb[74].mxu0  ;;  %v19187_v30 = vsel %vm3232_vm11, %v7777_v27, %v7779_v54  ;;  %v2183_v59 = vld [vmem:[%s22578_s3 + $0x540] sm:$0xff]  ;;  %v2186_v27 = vld [vmem:[%s22578_s3 + $0x558] sm:$0xff] }
 0x370   :  { %22662 = vst [vmem:[#allocation19_spill] sm:$0xff] %v19187_v30  ;;  %v7408_v62 = vrot.slane %v1618_v21, 3  ;;  %v14663_v15 = vpop.f32.mrb[75].mxu0  ;;  %v19189_v2 = vpop.f32.mrb[50].mxu1 }
 0x371   :  { %3064 = vmatmul.mubr.f32.gmra.mrb[156].mxu1 %v2181_v5  ;;  %v7781_v18 = vrot.slane %v7497_v7, 4  ;;  %v7476_v49 = vadd.f32 %v18925_v33, %v7454_v51  ;;  %v2802_v47 = vpop.f32.mrb[51].mxu1 }
 0x372   :  { %12935 = vmatprep.mubr.msk.f32.mxu1 %vm2241_vm7, %v2184_v61  ;;  %v7409_v56 = vsel %vm1877_vm8, %v7406_v4, %v7408_v62 }
 0x373   :  { %v7498_v11 = vmax.f32 %v7476_v49, 0.0  ;;  %v7455_v21 = vmax.f32 %v18859_v42, %v7409_v56  ;;  %v1623_v5 = vpop.f32.mrb[76].mxu0  ;;  %v19204_v7 = vsel %vm3232_vm11, %v7779_v54, %v7781_v18  ;;  %v2185_v49 = vld [vmem:[%s22578_s3 + $0x550] sm:$0xff]  ;;  %v2188_v54 = vld [vmem:[%s22578_s3 + $0x568] sm:$0xff] }
 0x374   :  { %22663 = vst [vmem:[#allocation20_spill] sm:$0xff] %v19204_v7  ;;  %v7410_v47 = vrot.slane %v1623_v5, 3  ;;  %v14666_v51 = vpop.f32.mrb[77].mxu0  ;;  %v19206_v61 = vpop.f32.mrb[52].mxu1  ;;  %v2210_v7 = vld [vmem:[%s22578_s3 + $0x618] sm:$0xff] }
 0x375   :  { %3069 = vmatmul.mubr.f32.gmra.mrb[158].mxu1 %v2183_v59  ;;  %v7783_v15 = vrot.slane %v7498_v11, 4  ;;  %v7477_v0 = vadd.f32 %v18925_v33, %v7455_v21  ;;  %v2807_v4 = vpop.f32.mrb[53].mxu1 }
 0x376   :  { %12936 = vmatprep.mubr.msk.f32.mxu1 %vm2241_vm7, %v2186_v27  ;;  %v7411_v42 = vsel %vm1877_vm8, %v7408_v62, %v7410_v47 }
 0x377   :  { %v7499_v56 = vmax.f32 %v7477_v0, 0.0  ;;  %v7456_v5 = vmax.f32 %v18874_v44, %v7411_v42  ;;  %v1628_v59 = vpop.f32.mrb[78].mxu0  ;;  %v19219_v11 = vsel %vm3232_vm11, %v7781_v18, %v7783_v15  ;;  %v2187_v44 = vld [vmem:[%s22578_s3 + $0x560] sm:$0xff]  ;;  %v2190_v18 = vld [vmem:[%s22578_s3 + $0x578] sm:$0xff] }
 0x378   :  { %22664 = vst [vmem:[#allocation21_spill] sm:$0xff] %v19219_v11  ;;  %v7412_v21 = vrot.slane %v1628_v59, 3  ;;  %v14669_v51 = vpop.f32.mrb[79].mxu0  ;;  %v19221_v27 = vpop.f32.mrb[54].mxu1 }
 0x379   :  { %3074 = vmatmul.mubr.f32.gmra.mrb[160].mxu1 %v2185_v49  ;;  %v7785_v62 = vrot.slane %v7499_v56, 4  ;;  %v7478_v17 = vadd.f32 %v18925_v33, %v7456_v5  ;;  %v2812_v30 = vpop.f32.mrb[55].mxu1 }
 0x37a   :  { %12937 = vmatprep.mubr.msk.f32.mxu1 %vm2241_vm7, %v2188_v54  ;;  %v7413_v0 = vsel %vm1877_vm8, %v7410_v47, %v7412_v21 }
 0x37b   :  { %v7500_v42 = vmax.f32 %v7478_v17, 0.0  ;;  %v7457_v59 = vmax.f32 %v18889_v25, %v7413_v0  ;;  %v1633_v49 = vpop.f32.mrb[80].mxu0  ;;  %v19236_v56 = vsel %vm3232_vm11, %v7783_v15, %v7785_v62  ;;  %v2189_v17 = vld [vmem:[%s22578_s3 + $0x570] sm:$0xff]  ;;  %v2192_v0 = vld [vmem:[%s22578_s3 + $0x588] sm:$0xff] }
 0x37c   :  { %22665 = vst [vmem:[#allocation22_spill] sm:$0xff] %v19236_v56  ;;  %v7414_v30 = vrot.slane %v1633_v49, 3  ;;  %v14672_v5 = vpop.f32.mrb[81].mxu0  ;;  %v19238_v54 = vpop.f32.mrb[56].mxu1  ;;  %v2208_v56 = vld [vmem:[%s22578_s3 + $0x608] sm:$0xff] }
 0x37d   :  { %3079 = vmatmul.mubr.f32.gmra.mrb[162].mxu1 %v2187_v44  ;;  %v7787_v51 = vrot.slane %v7500_v42, 4  ;;  %v7479_v4 = vadd.f32 %v18925_v33, %v7457_v59  ;;  %v2817_v47 = vpop.f32.mrb[57].mxu1 }
 0x37e   :  { %12938 = vmatprep.mubr.msk.f32.mxu1 %vm2241_vm7, %v2190_v18  ;;  %v7415_v25 = vsel %vm1877_vm8, %v7412_v21, %v7414_v30  ;;  %v7459_v15 = vmax.f32 %v18899_v16, %v7414_v30 }
 0x37f   :  { %v7501_v49 = vmax.f32 %v7479_v4, 0.0  ;;  %v7458_v44 = vmax.f32 %v18907_v41, %v7415_v25  ;;  %v19252_v42 = vsel %vm3232_vm11, %v7785_v62, %v7787_v51  ;;  %v2191_v41 = vld [vmem:[%s22578_s3 + $0x580] sm:$0xff]  ;;  %v2194_v62 = vld [vmem:[%s22578_s3 + $0x598] sm:$0xff] }
 0x380   :  { %22666 = vst [vmem:[#allocation23_spill] sm:$0xff] %v19252_v42  ;;  %v7481_v18 = vadd.f32 %v18925_v33, %v7459_v15  ;;  %v19255_v59 = vpop.f32.mrb[58].mxu1 }
 0x381   :  { %3084 = vmatmul.mubr.f32.gmra.mrb[164].mxu1 %v2189_v17  ;;  %v7789_v21 = vrot.slane %v7501_v49, 4  ;;  %v7480_v16 = vadd.f32 %v18925_v33, %v7458_v44  ;;  %v2822_v30 = vpop.f32.mrb[59].mxu1  ;;  %v2193_v49 = vld [vmem:[%s22578_s3 + $0x590] sm:$0xff]  ;;  %v2196_v44 = vld [vmem:[%s22578_s3 + $0x5a8] sm:$0xff] }
 0x382   :  { %12939 = vmatprep.mubr.msk.f32.mxu1 %vm2241_vm7, %v2192_v0  ;;  %v7503_v4 = vmax.f32 %v7481_v18, 0.0 }
 0x383   :  { %v7502_v47 = vmax.f32 %v7480_v16, 0.0  ;;  %v19268_v25 = vsel %vm3232_vm11, %v7787_v51, %v7789_v21 }
 0x384   :  { %22667 = vst [vmem:[#allocation24_spill] sm:$0xff] %v19268_v25  ;;  %v19270_v17 = vrot.slane %v7503_v4, 4  ;;  %v19272_v15 = vpop.f32.mrb[60].mxu1 }
 0x385   :  { %3089 = vmatmul.mubr.f32.gmra.mrb[166].mxu1 %v2191_v41  ;;  %v7791_v33 = vrot.slane %v7502_v47, 4  ;;  %v2827_v0 = vpop.f32.mrb[61].mxu1 }
 0x386   :  { %22668 = vst [vmem:[#allocation25_spill] sm:$0xff] %v19270_v17  ;;  %12940 = vmatprep.mubr.msk.f32.mxu1 %vm2241_vm7, %v2194_v62  ;;  %v2195_v62 = vld [vmem:[%s22578_s3 + $0x5a0] sm:$0xff]  ;;  %v2197_v0 = vld [vmem:[%s22578_s3 + $0x5b0] sm:$0xff] }
 0x387   :  { %v19283_v51 = vsel %vm3232_vm11, %v7791_v33, %v19270_v17  ;;  %v19286_v18 = vsel %vm3232_vm11, %v7789_v21, %v7791_v33  ;;  %v2198_v21 = vld [vmem:[%s22578_s3 + $0x5b8] sm:$0xff] }
 0x388   :  { %22669 = vst [vmem:[#allocation26_spill] sm:$0xff] %v19283_v51  ;;  %22670 = vst [vmem:[#allocation27_spill] sm:$0xff] %v19286_v18  ;;  %v19290_v30 = vpop.f32.mrb[62].mxu1 }
 0x389   :  { %3094 = vmatmul.mubr.f32.gmra.mrb[168].mxu1 %v2193_v49  ;;  %v2832_v4 = vpop.f32.mrb[63].mxu1  ;;  %v2200_v49 = vld [vmem:[%s22578_s3 + $0x5c8] sm:$0xff] }
 0x38a   :  { %12941 = vmatprep.mubr.msk.f32.mxu1 %vm2241_vm7, %v2196_v44 }
 0x38c   :  { %v19301_v47 = vpop.f32.mrb[64].mxu1 }
 0x38d   :  { %3099 = vmatmul.mubr.f32.gmra.mrb[170].mxu1 %v2195_v62  ;;  %v2837_v33 = vpop.f32.mrb[65].mxu1  ;;  %v3793_v4 = vrot.slane %v19301_v47, 4  ;;  %v2199_v62 = vld [vmem:[%s22578_s3 + $0x5c0] sm:$0xff] }
 0x38e   :  { %12942 = vmatprep.mubr.msk.f32.mxu1 %vm2241_vm7, %v2198_v21  ;;  %v2202_v21 = vld [vmem:[%s22578_s3 + $0x5d8] sm:$0xff] }
 0x390   :  { %v2840_v44 = vpop.f32.mrb[66].mxu1 }
 0x391   :  { %3104 = vmatmul.mubr.f32.gmra.mrb[172].mxu1 %v2197_v0  ;;  %v3794_v16 = vrot.slane %v2840_v44, 4  ;;  %v2842_v41 = vpop.f32.mrb[67].mxu1 }
 0x392   :  { %12943 = vmatprep.mubr.msk.f32.mxu1 %vm2241_vm7, %v2200_v49  ;;  %v2201_v41 = vld [vmem:[%s22578_s3 + $0x5d0] sm:$0xff]  ;;  %v2204_v49 = vld [vmem:[%s22578_s3 + $0x5e8] sm:$0xff] }
 0x393   :  { %v19319_v33 = vsel %vm3232_vm11, %v3793_v4, %v3794_v16 }
 0x394   :  { %v2845_v5 = vpop.f32.mrb[68].mxu1 }
 0x395   :  { %3109 = vmatmul.mubr.f32.gmra.mrb[174].mxu1 %v2199_v62  ;;  %v3796_v0 = vrot.slane %v2845_v5, 4  ;;  %v2847_v51 = vpop.f32.mrb[69].mxu1  ;;  %v2203_v5 = vld [vmem:[%s22578_s3 + $0x5e0] sm:$0xff]  ;;  %v2206_v62 = vld [vmem:[%s22578_s3 + $0x5f8] sm:$0xff] }
 0x396   :  { %12944 = vmatprep.mubr.msk.f32.mxu1 %vm2241_vm7, %v2202_v21 }
 0x397   :  { %v19329_v44 = vsel %vm3232_vm11, %v3794_v16, %v3796_v0 }
 0x398   :  { %v2850_v17 = vpop.f32.mrb[70].mxu1  ;;  %v19335_v51 = vpop.f32.mrb[82].mxu0 }
 0x399   :  { %3114 = vmatmul.mubr.f32.gmra.mrb[176].mxu1 %v2201_v41  ;;  %v3798_v4 = vrot.slane %v2850_v17, 4  ;;  %v2852_v25 = vpop.f32.mrb[71].mxu1  ;;  %v2652_v21 = vpop.f32.mrb[83].mxu0  ;;  %v2205_v41 = vld [vmem:[%s22578_s3 + $0x5f0] sm:$0xff] }
 0x39a   :  { %12945 = vmatprep.mubr.msk.f32.mxu1 %vm2241_vm7, %v2204_v49 }
 0x39b   :  { %v19341_v16 = vsel %vm3232_vm11, %v3796_v0, %v3798_v4 }
 0x39c   :  { %v2855_v18 = vpop.f32.mrb[72].mxu1 }
 0x39d   :  { %3119 = vmatmul.mubr.f32.gmra.mrb[178].mxu1 %v2203_v5  ;;  %v3800_v17 = vrot.slane %v2855_v18, 4  ;;  %v2857_v25 = vpop.f32.mrb[73].mxu1  ;;  %v19347_v49 = vpop.f32.mrb[84].mxu0 }
 0x39e   :  { %12946 = vmatprep.mubr.msk.f32.mxu1 %vm2241_vm7, %v2206_v62  ;;  %v2657_v21 = vpop.f32.mrb[85].mxu0  ;;  %v2207_v62 = vld [vmem:[%s22578_s3 + $0x600] sm:$0xff] }
 0x39f   :  { %v19353_v0 = vsel %vm3232_vm11, %v3798_v4, %v3800_v17 }
 0x3a0   :  { %v2860_v42 = vpop.f32.mrb[74].mxu1 }
 0x3a1   :  { %3124 = vmatmul.mubr.f32.gmra.mrb[180].mxu1 %v2205_v41  ;;  %v3802_v18 = vrot.slane %v2860_v42, 4  ;;  %v2862_v5 = vpop.f32.mrb[75].mxu1  ;;  %v19359_v25 = vpop.f32.mrb[86].mxu0 }
 0x3a2   :  { %12947 = vmatprep.mubr.msk.f32.mxu1 %vm2241_vm7, %v2208_v56  ;;  %v2662_v21 = vpop.f32.mrb[87].mxu0  ;;  %v2209_v56 = vld [vmem:[%s22578_s3 + $0x610] sm:$0xff] }
 0x3a3   :  { %v19365_v4 = vsel %vm3232_vm11, %v3800_v17, %v3802_v18 }
 0x3a4   :  { %v2865_v11 = vpop.f32.mrb[76].mxu1 }
 0x3a5   :  { %3129 = vmatmul.mubr.f32.gmra.mrb[182].mxu1 %v2207_v62  ;;  %v3804_v42 = vrot.slane %v2865_v11, 4  ;;  %v2867_v41 = vpop.f32.mrb[77].mxu1  ;;  %v19371_v5 = vpop.f32.mrb[88].mxu0 }
 0x3a6   :  { %12948 = vmatprep.mubr.msk.f32.mxu1 %vm2241_vm7, %v2210_v7  ;;  %v2667_v21 = vpop.f32.mrb[89].mxu0  ;;  %v2211_v7 = vld [vmem:[%s22578_s3 + $0x620] sm:$0xff] }
 0x3a7   :  { %v19377_v17 = vsel %vm3232_vm11, %v3802_v18, %v3804_v42 }
 0x3a8   :  { %v2870_v28 = vpop.f32.mrb[78].mxu1 }
 0x3a9   :  { %3134 = vmatmul.mubr.f32.gmra.mrb[184].mxu1 %v2209_v56  ;;  %v3806_v11 = vrot.slane %v2870_v28, 4  ;;  %v2872_v62 = vpop.f32.mrb[79].mxu1  ;;  %v19383_v41 = vpop.f32.mrb[90].mxu0 }
 0x3aa   :  { %12949 = vmatprep.mubr.msk.f32.mxu1 %vm2241_vm7, %v2212_v13  ;;  %v2672_v18 = vpop.f32.mrb[91].mxu0  ;;  %v2213_v13 = vld [vmem:[%s22578_s3 + $0x630] sm:$0xff]  ;;  %v2216_v62 = vld [vmem:[%s22578_s3 + $0x648] sm:$0xff] }
 0x3ab   :  { %v19389_v21 = vsel %vm3232_vm11, %v3804_v42, %v3806_v11 }
 0x3ac   :  { %v2875_v9 = vpop.f32.mrb[80].mxu1 }
 0x3ad   :  { %3139 = vmatmul.mubr.f32.gmra.mrb[186].mxu1 %v2211_v7  ;;  %v3808_v28 = vrot.slane %v2875_v9, 4  ;;  %v2877_v56 = vpop.f32.mrb[81].mxu1  ;;  %v2218_v9 = vld [vmem:[%s22578_s3 + $0x658] sm:$0xff] }
 0x3ae   :  { %12950 = vmatprep.mubr.msk.f32.mxu1 %vm2241_vm7, %v2214_v8  ;;  %v2215_v8 = vld [vmem:[%s22578_s3 + $0x640] sm:$0xff] }
 0x3af   :  { %v19399_v20 = vsel %vm3232_vm11, %v3806_v11, %v3808_v28 }
 0x3b0   :  { %v2880_v42 = vpop.f32.mrb[82].mxu1 }
 0x3b1   :  { %3144 = vmatmul.mubr.f32.gmra.mrb[188].mxu1 %v2213_v13  ;;  %v3810_v18 = vrot.slane %v2880_v42, 4  ;;  %v2882_v35 = vpop.f32.mrb[83].mxu1  ;;  %v2220_v13 = vld [vmem:[%s22578_s3 + $0x668] sm:$0xff] }
 0x3b2   :  { %12951 = vmatprep.mubr.msk.f32.mxu1 %vm2241_vm7, %v2216_v62  ;;  %v2217_v35 = vld [vmem:[%s22578_s3 + $0x650] sm:$0xff] }
 0x3b3   :  { %v19409_v7 = vsel %vm3232_vm11, %v3808_v28, %v3810_v18 }
 0x3b4   :  { %v2885_v56 = vpop.f32.mrb[84].mxu1 }
 0x3b5   :  { %3149 = vmatmul.mubr.f32.gmra.mrb[190].mxu1 %v2215_v8  ;;  %v3812_v11 = vrot.slane %v2885_v56, 4  ;;  %v2887_v26 = vpop.f32.mrb[85].mxu1  ;;  %v2222_v8 = vld [vmem:[%s22578_s3 + $0x678] sm:$0xff] }
 0x3b6   :  { %12952 = vmatprep.mubr.msk.f32.mxu1 %vm2241_vm7, %v2218_v9  ;;  %v2219_v26 = vld [vmem:[%s22578_s3 + $0x660] sm:$0xff] }
 0x3b7   :  { %v19419_v62 = vsel %vm3232_vm11, %v3810_v18, %v3812_v11 }
 0x3b8   :  { %v2890_v42 = vpop.f32.mrb[86].mxu1 }
 0x3b9   :  { %3154 = vmatmul.mubr.f32.gmra.mrb[192].mxu1 %v2217_v35  ;;  %v3814_v28 = vrot.slane %v2890_v42, 4  ;;  %v2892_v6 = vpop.f32.mrb[87].mxu1 }
 0x3ba   :  { %12953 = vmatprep.mubr.msk.f32.mxu1 %vm2241_vm7, %v2220_v13  ;;  %v2221_v6 = vld [vmem:[%s22578_s3 + $0x670] sm:$0xff]  ;;  %v2224_v13 = vld [vmem:[%s22578_s3 + $0x688] sm:$0xff] }
 0x3bb   :  { %v19429_v9 = vsel %vm3232_vm11, %v3812_v11, %v3814_v28 }
 0x3bc   :  { %v19431_v56 = vpop.f32.mrb[88].mxu1 }
 0x3bd   :  { %3159 = vmatmul.mubr.f32.gmra.mrb[194].mxu1 %v2219_v26  ;;  %v22614_v18 = vrot.slane %v19431_v56, 4  ;;  %v2897_v35 = vpop.f32.mrb[89].mxu1 }
 0x3be   :  { %12954 = vmatprep.mubr.msk.f32.mxu1 %vm2241_vm7, %v2222_v8  ;;  %v2223_v8 = vld [vmem:[%s22578_s3 + $0x680] sm:$0xff]  ;;  %v2226_v35 = vld [vmem:[%s22578_s3 + $0x698] sm:$0xff] }
 0x3bf   :  { %v19444_v11 = vsel %vm3232_vm11, %v3814_v28, %v22614_v18  ;;  %v2225_v28 = vld [vmem:[%s22578_s3 + $0x690] sm:$0xff] }
 0x3c0   :  { %v19446_v42 = vpop.f32.mrb[90].mxu1 }
 0x3c1   :  { %3164 = vmatmul.mubr.f32.gmra.mrb[196].mxu1 %v2221_v6  ;;  %v2902_v26 = vpop.f32.mrb[91].mxu1  ;;  %v2228_v6 = vld [vmem:[%s22578_s3 + $0x6a8] sm:$0xff] }
 0x3c2   :  { %12955 = vmatprep.mubr.msk.f32.mxu1 %vm2241_vm7, %v2224_v13 }
 0x3c4   :  { %v19455_v38 = vpop.f32.mrb[92].mxu1 }
 0x3c5   :  { %22671 = vst [vmem:[#allocation28_spill] sm:$0xff] %v19455_v38  ;;  %3169 = vmatmul.mubr.f32.gmra.mrb[198].mxu1 %v2223_v8  ;;  %v2907_v14 = vpop.f32.mrb[93].mxu1  ;;  %v2230_v8 = vld [vmem:[%s22578_s3 + $0x6b8] sm:$0xff] }
 0x3c6   :  { %12956 = vmatprep.mubr.msk.f32.mxu1 %vm2241_vm7, %v2226_v35  ;;  %v2227_v14 = vld [vmem:[%s22578_s3 + $0x6a0] sm:$0xff] }
 0x3c8   :  { %v19464_v13 = vpop.f32.mrb[94].mxu1 }
 0x3c9   :  { %22672 = vst [vmem:[#allocation29_spill] sm:$0xff] %v19464_v13  ;;  %3174 = vmatmul.mubr.f32.gmra.mrb[200].mxu1 %v2225_v28  ;;  %v2912_v26 = vpop.f32.mrb[95].mxu1  ;;  %v2229_v28 = vld [vmem:[%s22578_s3 + $0x6b0] sm:$0xff] }
 0x3ca   :  { %12957 = vmatprep.mubr.msk.f32.mxu1 %vm2241_vm7, %v2228_v6  ;;  %v2232_v6 = vld [vmem:[%s22578_s3 + $0x6c8] sm:$0xff] }
 0x3cc   :  { %v19473_v35 = vpop.f32.mrb[96].mxu1 }
 0x3cd   :  { %22673 = vst [vmem:[#allocation30_spill] sm:$0xff] %v19473_v35  ;;  %3179 = vmatmul.mubr.f32.gmra.mrb[202].mxu1 %v2227_v14  ;;  %v2917_v18 = vpop.f32.mrb[97].mxu1  ;;  %v2234_v14 = vld [vmem:[%s22578_s3 + $0x6d8] sm:$0xff] }
 0x3ce   :  { %12958 = vmatprep.mubr.msk.f32.mxu1 %vm2241_vm7, %v2230_v8  ;;  %v2231_v18 = vld [vmem:[%s22578_s3 + $0x6c0] sm:$0xff] }
 0x3d0   :  { %v19482_v26 = vpop.f32.mrb[98].mxu1 }
 0x3d1   :  { %22674 = vst [vmem:[#allocation31_spill] sm:$0xff] %v19482_v26  ;;  %3184 = vmatmul.mubr.f32.gmra.mrb[204].mxu1 %v2229_v28  ;;  %v2922_v13 = vpop.f32.mrb[99].mxu1  ;;  %v2236_v28 = vld [vmem:[%s22578_s3 + $0x6e8] sm:$0xff] }
 0x3d2   :  { %12959 = vmatprep.mubr.msk.f32.mxu1 %vm2241_vm7, %v2232_v6  ;;  %v2233_v13 = vld [vmem:[%s22578_s3 + $0x6d0] sm:$0xff] }
 0x3d4   :  { %v19491_v8 = vpop.f32.mrb[100].mxu1 }
 0x3d5   :  { %22675 = vst [vmem:[#allocation32_spill] sm:$0xff] %v19491_v8  ;;  %3189 = vmatmul.mubr.f32.gmra.mrb[206].mxu1 %v2231_v18  ;;  %v2927_v35 = vpop.f32.mrb[101].mxu1  ;;  %v2238_v18 = vld [vmem:[%s22578_s3 + $0x6f8] sm:$0xff] }
 0x3d6   :  { %12960 = vmatprep.mubr.msk.f32.mxu1 %vm2241_vm7, %v2234_v14  ;;  %v2235_v35 = vld [vmem:[%s22578_s3 + $0x6e0] sm:$0xff] }
 0x3d8   :  { %v19500_v6 = vpop.f32.mrb[102].mxu1 }
 0x3d9   :  { %22676 = vst [vmem:[#allocation33_spill] sm:$0xff] %v19500_v6  ;;  %3194 = vmatmul.mubr.f32.gmra.mrb[208].mxu1 %v2233_v13  ;;  %v2932_v26 = vpop.f32.mrb[103].mxu1  ;;  %v2240_v13 = vld [vmem:[%s22578_s3 + $0x708] sm:$0xf] }
 0x3da   :  { %12961 = vmatprep.mubr.msk.f32.mxu1 %vm2241_vm7, %v2236_v28  ;;  %v2237_v26 = vld [vmem:[%s22578_s3 + $0x6f0] sm:$0xff] }
 0x3dc   :  { %v19509_v14 = vpop.f32.mrb[104].mxu1 }
 0x3dd   :  { %22677 = vst [vmem:[#allocation34_spill] sm:$0xff] %v19509_v14  ;;  %3199 = vmatmul.mubr.f32.gmra.mrb[210].mxu1 %v2235_v35  ;;  %v2937_v8 = vpop.f32.mrb[105].mxu1  ;;  %v3214_v35 = vld [vmem:[%s22579_s4] sm:$0xff] }
 0x3de   :  { %12962 = vmatprep.mubr.msk.f32.mxu1 %vm2241_vm7, %v2238_v18  ;;  %v2239_v8 = vld [vmem:[%s22578_s3 + $0x700] sm:$0xf]  ;;  %v3215_v18 = vld [vmem:[%s22579_s4 + $0x8] sm:$0x3] }
 0x3e0   :  { %v19518_v28 = vpop.f32.mrb[106].mxu1 }
 0x3e1   :  { %22678 = vst [vmem:[#allocation35_spill] sm:$0xff] %v19518_v28  ;;  %3204 = vmatmul.mubr.f32.gmra.mrb[212].mxu1 %v2237_v26  ;;  %v2942_v6 = vpop.f32.mrb[107].mxu1  ;;  %v22679_v26 = vmov 0.0  }
 0x3e2   :  { %12963 = vmatprep.mubr.msk.f32.mxu1 %vm2241_vm7, %v2240_v13  ;;  %v15862_v6 = vpack.c.bf16 %v3215_v18, %v3214_v35 }
 0x3e4   :  { %v19530_v14 = vpop.f32.mrb[108].mxu1 }
 0x3e5   :  { %3209 = vmatmul.mubr.f32.gmra.mrb[214].mxu1 %v2239_v8  ;;  %v2947_v28 = vpop.f32.mrb[109].mxu1 }
 0x3e6   :  { %14677 = vmatprep.mubr.msk.f32.mxu1 %vm16656_vm3, %v22679_v26 }
 0x3e8   :  { %v19534_v13 = vpop.f32.mrb[110].mxu1 }
 0x3e9   :  { %14678 = vmatmul.mubr.msk.f32.vlgmr.msra.gmra.mrb[216].mxu1 %vm3258_vm12, %v18920_v1  ;;  %v2952_v38 = vpop.f32.mrb[111].mxu1 }
 0x3ea   :  { %14680 = vmatprep.mubr.msk.f32.mxu1 %vm16656_vm3, %v22679_v26  ;;  %15864 = vmatpush3.bf16.msk.msra.mxu1 %vm18721_vm10, %v15862_v6 }
 0x3eb   :  { %15865 = vmatprep.subr.bf16.mxu1 %v22632_v34 }
 0x3ec   :  { %v19543_v28 = vpop.f32.mrb[112].mxu1 }
 0x3ed   :  { %22680 = vst [vmem:[#allocation36_spill] sm:$0xff] %v19543_v28  ;;  %14681 = vmatmul.mubr.msk.f32.gmra.mrb[218].mxu1 %vm3258_vm12, %v18938_v53  ;;  %v2957_v8 = vpop.f32.mrb[113].mxu1 }
 0x3ee   :  { %14683 = vmatprep.mubr.msk.f32.mxu1 %vm16656_vm3, %v22679_v26 }
 0x3f0   :  { %v19549_v35 = vpop.f32.mrb[114].mxu1 }
 0x3f1   :  { %22681 = vst [vmem:[#allocation37_spill] sm:$0xff] %v19549_v35  ;;  %14684 = vmatmul.mubr.msk.f32.gmra.mrb[220].mxu1 %vm3258_vm12, %v18951_v36  ;;  %v2962_v1 = vpop.f32.mrb[115].mxu1  ;;  %v4193_v18 = vrot.slane %v19549_v35, 4 }
 0x3f2   :  { %14686 = vmatprep.mubr.msk.f32.mxu1 %vm16656_vm3, %v22679_v26 }
 0x3f4   :  { %v2965_v38 = vpop.f32.mrb[116].mxu1 }
 0x3f5   :  { %14687 = vmatmul.mubr.msk.f32.gmra.mrb[222].mxu1 %vm3258_vm12, %v18963_v43  ;;  %v4194_v53 = vrot.slane %v2965_v38, 4  ;;  %v2967_v6 = vpop.f32.mrb[117].mxu1 }
 0x3f6   :  { %14689 = vmatprep.mubr.msk.f32.mxu1 %vm16656_vm3, %v22679_v26 }
 0x3f7   :  { %v19561_v8 = vsel %vm3232_vm11, %v4193_v18, %v4194_v53 }
 0x3f8   :  { %v2970_v28 = vpop.f32.mrb[118].mxu1 }
 0x3f9   :  { %14690 = vmatmul.mubr.msk.f32.gmra.mrb[224].mxu1 %vm3258_vm12, %v18979_v24  ;;  %v4196_v36 = vrot.slane %v2970_v28, 4  ;;  %v2972_v1 = vpop.f32.mrb[119].mxu1 }
 0x3fa   :  { %14692 = vmatprep.mubr.msk.f32.mxu1 %vm16656_vm3, %v22679_v26 }
 0x3fb   :  { %v19568_v43 = vsel %vm3232_vm11, %v4194_v53, %v4196_v36 }
 0x3fc   :  { %v2975_v38 = vpop.f32.mrb[120].mxu1 }
 0x3fd   :  { %14693 = vmatmul.mubr.msk.f32.gmra.mrb[226].mxu1 %vm3258_vm12, %v18998_v48  ;;  %v4198_v6 = vrot.slane %v2975_v38, 4  ;;  %v2977_v35 = vpop.f32.mrb[121].mxu1 }
 0x3fe   :  { %14695 = vmatprep.mubr.msk.f32.mxu1 %vm16656_vm3, %v22679_v26 }
 0x3ff   :  { %v19575_v18 = vsel %vm3232_vm11, %v4196_v36, %v4198_v6 }
 0x400   :  { %v2980_v24 = vpop.f32.mrb[122].mxu1 }
 0x401   :  { %14696 = vmatmul.mubr.msk.f32.gmra.mrb[228].mxu1 %vm3258_vm12, %v19014_v10  ;;  %v4200_v28 = vrot.slane %v2980_v24, 4  ;;  %v2982_v1 = vpop.f32.mrb[123].mxu1 }
 0x402   :  { %14698 = vmatprep.mubr.msk.f32.mxu1 %vm16656_vm3, %v22679_v26 }
 0x403   :  { %v19582_v53 = vsel %vm3232_vm11, %v4198_v6, %v4200_v28 }
 0x404   :  { %v2985_v48 = vpop.f32.mrb[124].mxu1 }
 0x405   :  { %14699 = vmatmul.mubr.msk.f32.gmra.mrb[230].mxu1 %vm3258_vm12, %v19032_v32  ;;  %v4202_v35 = vrot.slane %v2985_v48, 4  ;;  %v2987_v38 = vpop.f32.mrb[125].mxu1 }
 0x406   :  { %14701 = vmatprep.mubr.msk.f32.mxu1 %vm16656_vm3, %v22679_v26 }
 0x407   :  { %v19589_v36 = vsel %vm3232_vm11, %v4200_v28, %v4202_v35 }
 0x408   :  { %v2990_v10 = vpop.f32.mrb[126].mxu1 }
 0x409   :  { %14702 = vmatmul.mubr.msk.f32.gmra.mrb[232].mxu1 %vm3258_vm12, %v19048_v58  ;;  %v4204_v24 = vrot.slane %v2990_v10, 4  ;;  %v2992_v1 = vpop.f32.mrb[127].mxu1 }
 0x40a   :  { %14704 = vmatprep.mubr.msk.f32.mxu1 %vm16656_vm3, %v22679_v26 }
 0x40b   :  { %v19596_v6 = vsel %vm3232_vm11, %v4202_v35, %v4204_v24 }
 0x40c   :  { %v2995_v32 = vpop.f32.mrb[128].mxu1 }
 0x40d   :  { %14705 = vmatmul.mubr.msk.f32.gmra.mrb[234].mxu1 %vm3258_vm12, %v19066_v37  ;;  %v4206_v48 = vrot.slane %v2995_v32, 4  ;;  %v2997_v38 = vpop.f32.mrb[129].mxu1 }
 0x40e   :  { %14707 = vmatprep.mubr.msk.f32.mxu1 %vm16656_vm3, %v22679_v26 }
 0x40f   :  { %v19603_v28 = vsel %vm3232_vm11, %v4204_v24, %v4206_v48  ;;  %v12995_v24 = vld [vmem:[%s22579_s4 + $0x28] sm:$0x3] }
 0x410   :  { %22682 = vst [vmem:[#allocation38_spill] sm:$0xff] %v19603_v28  ;;  %v3000_v58 = vpop.f32.mrb[130].mxu1 }
 0x411   :  { %14708 = vmatmul.mubr.msk.f32.gmra.mrb[236].mxu1 %vm3258_vm12, %v19082_v12  ;;  %v4208_v10 = vrot.slane %v3000_v58, 4  ;;  %v3002_v1 = vpop.f32.mrb[131].mxu1  ;;  %v12994_v12 = vld [vmem:[%s22579_s4 + $0x20] sm:$0xff] }
 0x412   :  { %14710 = vmatprep.mubr.msk.f32.mxu1 %vm16656_vm3, %v22679_v26  ;;  %v22685_v1 = vrot.slane %v19087_v50, 4 }
 0x413   :  { %v19610_v35 = vsel %vm3232_vm11, %v4206_v48, %v4208_v10 }
 0x414   :  { %22683 = vst [vmem:[#allocation39_spill] sm:$0xff] %v19610_v35  ;;  %v3005_v37 = vpop.f32.mrb[132].mxu1 }
 0x415   :  { %14711 = vmatmul.mubr.msk.f32.gmra.mrb[238].mxu1 %vm3258_vm12, %v19105_v29  ;;  %v4210_v32 = vrot.slane %v3005_v37, 4  ;;  %v3007_v38 = vpop.f32.mrb[133].mxu1 }
 0x416   :  { %14713 = vmatprep.mubr.msk.f32.mxu1 %vm16656_vm3, %v22679_v26  ;;  %v15866_v38 = vpack.c.bf16 %v12995_v24, %v12994_v12 }
 0x417   :  { %v19623_v48 = vsel %vm3232_vm11, %v4208_v10, %v4210_v32 }
 0x418   :  { %22684 = vst [vmem:[#allocation40_spill] sm:$0xff] %v19623_v48  ;;  %v3010_v58 = vpop.f32.mrb[134].mxu1 }
 0x419   :  { %14714 = vmatmul.mubr.msk.f32.gmra.mrb[240].mxu1 %vm3258_vm12, %v22685_v1  ;;  %v4212_v29 = vrot.slane %v3010_v58, 4  ;;  %v3012_v37 = vpop.f32.mrb[135].mxu1 }
 0x41a   :  { %14720 = vmatprep.mubr.msk.f32.mxu1 %vm16656_vm3, %v22679_v26 }
 0x41b   :  { %v19631_v35 = vsel %vm3232_vm11, %v4210_v32, %v4212_v29 }
 0x41c   :  { %v3015_v28 = vpop.f32.mrb[136].mxu1 }
 0x41d   :  { %14721 = vmatmul.mubr.msk.f32.vlgmr.msra.gmra.mrb[216].mxu1 %vm3258_vm12, %v19335_v51  ;;  %v4214_v10 = vrot.slane %v3015_v28, 4  ;;  %v3017_v48 = vpop.f32.mrb[137].mxu1 }
 0x41e   :  { %14723 = vmatprep.mubr.msk.f32.mxu1 %vm16656_vm3, %v22679_v26  ;;  %15868 = vmatpush3.bf16.msk.msra.mxu1 %vm18721_vm10, %v15866_v38 }
 0x41f   :  { %15869 = vmatprep.subr.bf16.mxu1 %v22632_v34  ;;  %v19641_v50 = vsel %vm3232_vm11, %v4212_v29, %v4214_v10 }
 0x420   :  { %v19643_v12 = vpop.f32.mrb[138].mxu1 }
 0x421   :  { %14724 = vmatmul.mubr.msk.f32.gmra.mrb[218].mxu1 %vm3258_vm12, %v19347_v49  ;;  %v22616_v51 = vrot.slane %v19643_v12, 4  ;;  %v3022_v28 = vpop.f32.mrb[139].mxu1 }
 0x422   :  { %14726 = vmatprep.mubr.msk.f32.mxu1 %vm16656_vm3, %v22679_v26 }
 0x423   :  { %v19653_v32 = vsel %vm3232_vm11, %v4214_v10, %v22616_v51 }
 0x424   :  { %v19655_v24 = vpop.f32.mrb[140].mxu1 }
 0x425   :  { %14727 = vmatmul.mubr.msk.f32.gmra.mrb[220].mxu1 %vm3258_vm12, %v19359_v25  ;;  %v3027_v48 = vpop.f32.mrb[141].mxu1 }
 0x426   :  { %14729 = vmatprep.mubr.msk.f32.mxu1 %vm16656_vm3, %v22679_v26 }
 0x428   :  { %v19661_v49 = vpop.f32.mrb[142].mxu1 }
 0x429   :  { %14730 = vmatmul.mubr.msk.f32.gmra.mrb[222].mxu1 %vm3258_vm12, %v19371_v5  ;;  %v3032_v58 = vpop.f32.mrb[143].mxu1 }
 0x42a   :  { %14732 = vmatprep.mubr.msk.f32.mxu1 %vm16656_vm3, %v22679_v26 }
 0x42c   :  { %v19667_v1 = vpop.f32.mrb[144].mxu1 }
 0x42d   :  { %14733 = vmatmul.mubr.msk.f32.gmra.mrb[224].mxu1 %vm3258_vm12, %v19383_v41  ;;  %v3037_v29 = vpop.f32.mrb[145].mxu1 }
 0x42e   :  { %14735 = vmatprep.mubr.msk.f32.mxu1 %vm16656_vm3, %v22679_v26 }
 0x430   :  { %v19673_v25 = vpop.f32.mrb[146].mxu1 }
 0x431   :  { %14736 = vmatmul.mubr.msk.f32.gmra.mrb[226].mxu1 %vm3258_vm12, %v18786_v23  ;;  %v3042_v37 = vpop.f32.mrb[147].mxu1 }
 0x432   :  { %14738 = vmatprep.mubr.msk.f32.mxu1 %vm16656_vm3, %v22679_v26 }
 0x434   :  { %v19679_v5 = vpop.f32.mrb[148].mxu1 }
 0x435   :  { %14739 = vmatmul.mubr.msk.f32.gmra.mrb[228].mxu1 %vm3258_vm12, %v18801_v57  ;;  %v3047_v38 = vpop.f32.mrb[149].mxu1 }
 0x436   :  { %14741 = vmatprep.mubr.msk.f32.mxu1 %vm16656_vm3, %v22679_v26 }
 0x438   :  { %v19685_v41 = vpop.f32.mrb[150].mxu1 }
 0x439   :  { %14742 = vmatmul.mubr.msk.f32.gmra.mrb[230].mxu1 %vm3258_vm12, %v18816_v52  ;;  %v3052_v10 = vpop.f32.mrb[151].mxu1 }
 0x43a   :  { %14744 = vmatprep.mubr.msk.f32.mxu1 %vm16656_vm3, %v22679_v26 }
 0x43c   :  { %v19691_v23 = vpop.f32.mrb[152].mxu1 }
 0x43d   :  { %14745 = vmatmul.mubr.msk.f32.gmra.mrb[232].mxu1 %vm3258_vm12, %v18831_v3  ;;  %v3057_v28 = vpop.f32.mrb[153].mxu1 }
 0x43e   :  { %14747 = vmatprep.mubr.msk.f32.mxu1 %vm16656_vm3, %v22679_v26 }
 0x440   :  { %v19697_v57 = vpop.f32.mrb[154].mxu1 }
 0x441   :  { %14748 = vmatmul.mubr.msk.f32.gmra.mrb[234].mxu1 %vm3258_vm12, %v18846_v39  ;;  %v3062_v48 = vpop.f32.mrb[155].mxu1  ;;  %v13010_v39 = vld [vmem:[%s22579_s4 + $0x30] sm:$0xff] }
 0x442   :  { %14750 = vmatprep.mubr.msk.f32.mxu1 %vm16656_vm3, %v22679_v26 }
 0x444   :  { %v19703_v52 = vpop.f32.mrb[156].mxu1 }
 0x445   :  { %14751 = vmatmul.mubr.msk.f32.gmra.mrb[236].mxu1 %vm3258_vm12, %v18861_v63  ;;  %v3067_v58 = vpop.f32.mrb[157].mxu1  ;;  %v13011_v63 = vld [vmem:[%s22579_s4 + $0x38] sm:$0x3] }
 0x446   :  { %14753 = vmatprep.mubr.msk.f32.mxu1 %vm16656_vm3, %v22679_v26 }
 0x448   :  { %v19709_v3 = vpop.f32.mrb[158].mxu1 }
 0x449   :  { %14754 = vmatmul.mubr.msk.f32.gmra.mrb[238].mxu1 %vm3258_vm12, %v18876_v55  ;;  %v3072_v29 = vpop.f32.mrb[159].mxu1  ;;  %v15870_v55 = vpack.c.bf16 %v13011_v63, %v13010_v39 }
 0x44a   :  { %14756 = vmatprep.mubr.msk.f32.mxu1 %vm16656_vm3, %v22679_v26 }
 0x44c   :  { %v19721_v37 = vpop.f32.mrb[160].mxu1 }
 0x44d   :  { %14757 = vmatmul.mubr.msk.f32.gmra.mrb[240].mxu1 %vm3258_vm12, %v18891_v22  ;;  %v3077_v38 = vpop.f32.mrb[161].mxu1 }
 0x44e   :  { %14763 = vmatprep.mubr.msk.f32.mxu1 %vm16656_vm3, %v22679_v26 }
 0x450   :  { %v19727_v10 = vpop.f32.mrb[162].mxu1 }
 0x451   :  { %14764 = vmatmul.mubr.msk.f32.vlgmr.msra.gmra.mrb[216].mxu1 %vm3258_vm12, %v19110_v40  ;;  %v3082_v28 = vpop.f32.mrb[163].mxu1 }
 0x452   :  { %14766 = vmatprep.mubr.msk.f32.mxu1 %vm16656_vm3, %v22679_v26  ;;  %15872 = vmatpush3.bf16.msk.msra.mxu1 %vm18721_vm10, %v15870_v55 }
 0x453   :  { %15873 = vmatprep.subr.bf16.mxu1 %v22632_v34 }
 0x454   :  { %v19736_v22 = vpop.f32.mrb[164].mxu1 }
 0x455   :  { %14767 = vmatmul.mubr.msk.f32.gmra.mrb[218].mxu1 %vm3258_vm12, %v19125_v31  ;;  %v3087_v48 = vpop.f32.mrb[165].mxu1  ;;  %v4593_v40 = vrot.slane %v19736_v22, 4 }
 0x456   :  { %14769 = vmatprep.mubr.msk.f32.mxu1 %vm16656_vm3, %v22679_v26 }
 0x458   :  { %v3090_v58 = vpop.f32.mrb[166].mxu1 }
 0x459   :  { %14770 = vmatmul.mubr.msk.f32.gmra.mrb[220].mxu1 %vm3258_vm12, %v19142_v45  ;;  %v4594_v29 = vrot.slane %v3090_v58, 4  ;;  %v3092_v39 = vpop.f32.mrb[167].mxu1 }
 0x45a   :  { %14772 = vmatprep.mubr.msk.f32.mxu1 %vm16656_vm3, %v22679_v26 }
 0x45b   :  { %v19748_v63 = vsel %vm3232_vm11, %v4593_v40, %v4594_v29 }
 0x45c   :  { %v3095_v38 = vpop.f32.mrb[168].mxu1 }
 0x45d   :  { %14773 = vmatmul.mubr.msk.f32.gmra.mrb[222].mxu1 %vm3258_vm12, %v19157_v19  ;;  %v4596_v31 = vrot.slane %v3095_v38, 4  ;;  %v3097_v55 = vpop.f32.mrb[169].mxu1 }
 0x45e   :  { %14775 = vmatprep.mubr.msk.f32.mxu1 %vm16656_vm3, %v22679_v26 }
 0x45f   :  { %v19755_v45 = vsel %vm3232_vm11, %v4594_v29, %v4596_v31 }
 0x460   :  { %v3100_v28 = vpop.f32.mrb[170].mxu1 }
 0x461   :  { %14776 = vmatmul.mubr.msk.f32.gmra.mrb[224].mxu1 %vm3258_vm12, %v19174_v46  ;;  %v4598_v48 = vrot.slane %v3100_v28, 4  ;;  %v3102_v58 = vpop.f32.mrb[171].mxu1 }
 0x462   :  { %14778 = vmatprep.mubr.msk.f32.mxu1 %vm16656_vm3, %v22679_v26 }
 0x463   :  { %v19762_v40 = vsel %vm3232_vm11, %v4596_v31, %v4598_v48 }
 0x464   :  { %v3105_v19 = vpop.f32.mrb[172].mxu1 }
 0x465   :  { %14779 = vmatmul.mubr.msk.f32.gmra.mrb[226].mxu1 %vm3258_vm12, %v19189_v2  ;;  %v4600_v39 = vrot.slane %v3105_v19, 4  ;;  %v3107_v38 = vpop.f32.mrb[173].mxu1 }
 0x466   :  { %14781 = vmatprep.mubr.msk.f32.mxu1 %vm16656_vm3, %v22679_v26 }
 0x467   :  { %v19769_v29 = vsel %vm3232_vm11, %v4598_v48, %v4600_v39 }
 0x468   :  { %v3110_v46 = vpop.f32.mrb[174].mxu1 }
 0x469   :  { %14782 = vmatmul.mubr.msk.f32.gmra.mrb[228].mxu1 %vm3258_vm12, %v19206_v61  ;;  %v4602_v55 = vrot.slane %v3110_v46, 4  ;;  %v3112_v28 = vpop.f32.mrb[175].mxu1 }
 0x46a   :  { %14784 = vmatprep.mubr.msk.f32.mxu1 %vm16656_vm3, %v22679_v26 }
 0x46b   :  { %v19776_v31 = vsel %vm3232_vm11, %v4600_v39, %v4602_v55 }
 0x46c   :  { %v3115_v2 = vpop.f32.mrb[176].mxu1 }
 0x46d   :  { %14785 = vmatmul.mubr.msk.f32.gmra.mrb[230].mxu1 %vm3258_vm12, %v19221_v27  ;;  %v4604_v58 = vrot.slane %v3115_v2, 4  ;;  %v3117_v19 = vpop.f32.mrb[177].mxu1 }
 0x46e   :  { %14787 = vmatprep.mubr.msk.f32.mxu1 %vm16656_vm3, %v22679_v26 }
 0x46f   :  { %v19783_v48 = vsel %vm3232_vm11, %v4602_v55, %v4604_v58 }
 0x470   :  { %v3120_v61 = vpop.f32.mrb[178].mxu1 }
 0x471   :  { %14788 = vmatmul.mubr.msk.f32.gmra.mrb[232].mxu1 %vm3258_vm12, %v19238_v54  ;;  %v4606_v38 = vrot.slane %v3120_v61, 4  ;;  %v3122_v46 = vpop.f32.mrb[179].mxu1 }
 0x472   :  { %14790 = vmatprep.mubr.msk.f32.mxu1 %vm16656_vm3, %v22679_v26 }
 0x473   :  { %v19790_v39 = vsel %vm3232_vm11, %v4604_v58, %v4606_v38 }
 0x474   :  { %v3125_v27 = vpop.f32.mrb[180].mxu1 }
 0x475   :  { %14791 = vmatmul.mubr.msk.f32.gmra.mrb[234].mxu1 %vm3258_vm12, %v19255_v59  ;;  %v4608_v28 = vrot.slane %v3125_v27, 4  ;;  %v3127_v2 = vpop.f32.mrb[181].mxu1 }
 0x476   :  { %14793 = vmatprep.mubr.msk.f32.mxu1 %vm16656_vm3, %v22679_v26 }
 0x477   :  { %v19797_v55 = vsel %vm3232_vm11, %v4606_v38, %v4608_v28  ;;  %v13027_v38 = vld [vmem:[%s22579_s4 + $0x48] sm:$0x3] }
 0x478   :  { %v3130_v54 = vpop.f32.mrb[182].mxu1 }
 0x479   :  { %14794 = vmatmul.mubr.msk.f32.gmra.mrb[236].mxu1 %vm3258_vm12, %v19272_v15  ;;  %v4610_v19 = vrot.slane %v3130_v54, 4  ;;  %v3132_v61 = vpop.f32.mrb[183].mxu1  ;;  %v13026_v15 = vld [vmem:[%s22579_s4 + $0x40] sm:$0xff] }
 0x47a   :  { %14796 = vmatprep.mubr.msk.f32.mxu1 %vm16656_vm3, %v22679_v26  ;;  %v15874_v61 = vpack.c.bf16 %v13027_v38, %v13026_v15 }
 0x47b   :  { %v19804_v58 = vsel %vm3232_vm11, %v4608_v28, %v4610_v19 }
 0x47c   :  { %v3135_v59 = vpop.f32.mrb[184].mxu1 }
 0x47d   :  { %14797 = vmatmul.mubr.msk.f32.gmra.mrb[238].mxu1 %vm3258_vm12, %v19290_v30  ;;  %v4612_v46 = vrot.slane %v3135_v59, 4  ;;  %v3137_v27 = vpop.f32.mrb[185].mxu1 }
 0x47e   :  { %14799 = vmatprep.mubr.msk.f32.mxu1 %vm16656_vm3, %v22679_v26 }
 0x47f   :  { %v19817_v28 = vsel %vm3232_vm11, %v4610_v19, %v4612_v46 }
 0x480   :  { %v3140_v2 = vpop.f32.mrb[186].mxu1 }
 0x481   :  { %14800 = vmatmul.mubr.msk.f32.gmra.mrb[240].mxu1 %vm3258_vm12, %v19301_v47  ;;  %v4614_v30 = vrot.slane %v3140_v2, 4  ;;  %v3142_v54 = vpop.f32.mrb[187].mxu1 }
 0x482   :  { %14806 = vmatprep.mubr.msk.f32.mxu1 %vm16656_vm3, %v22679_v26 }
 0x483   :  { %v19824_v59 = vsel %vm3232_vm11, %v4612_v46, %v4614_v30 }
 0x484   :  { %v19826_v27 = vpop.f32.mrb[188].mxu1 }
 0x485   :  { %14807 = vmatmul.mubr.msk.f32.vlgmr.msra.gmra.mrb[216].mxu1 %vm3258_vm12, %v19319_v33  ;;  %v4616_v19 = vrot.slane %v19826_v27, 4  ;;  %v3147_v51 = vpop.f32.mrb[189].mxu1 }
 0x486   :  { %14809 = vmatprep.mubr.msk.f32.mxu1 %vm16656_vm3, %v22679_v26  ;;  %15876 = vmatpush3.bf16.msk.msra.mxu1 %vm18721_vm10, %v15874_v61 }
 0x487   :  { %15877 = vmatprep.subr.bf16.mxu1 %v22632_v34  ;;  %v19839_v47 = vsel %vm3232_vm11, %v4614_v30, %v4616_v19 }
 0x488   :  { %v19841_v46 = vpop.f32.mrb[190].mxu1 }
 0x489   :  { %14810 = vmatmul.mubr.msk.f32.gmra.mrb[218].mxu1 %vm3258_vm12, %v19329_v44  ;;  %v3152_v33 = vpop.f32.mrb[191].mxu1 }
 0x48a   :  { %14812 = vmatprep.mubr.msk.f32.mxu1 %vm16656_vm3, %v22679_v26 }
 0x48c   :  { %v19847_v51 = vpop.f32.mrb[192].mxu1 }
 0x48d   :  { %14813 = vmatmul.mubr.msk.f32.gmra.mrb[220].mxu1 %vm3258_vm12, %v19341_v16  ;;  %v3157_v15 = vpop.f32.mrb[193].mxu1 }
 0x48e   :  { %14815 = vmatprep.mubr.msk.f32.mxu1 %vm16656_vm3, %v22679_v26 }
 0x490   :  { %v19853_v38 = vpop.f32.mrb[194].mxu1 }
 0x491   :  { %14816 = vmatmul.mubr.msk.f32.gmra.mrb[222].mxu1 %vm3258_vm12, %v19353_v0  ;;  %v3162_v2 = vpop.f32.mrb[195].mxu1 }
 0x492   :  { %14818 = vmatprep.mubr.msk.f32.mxu1 %vm16656_vm3, %v22679_v26 }
 0x494   :  { %v19859_v44 = vpop.f32.mrb[196].mxu1 }
 0x495   :  { %14819 = vmatmul.mubr.msk.f32.gmra.mrb[224].mxu1 %vm3258_vm12, %v19365_v4  ;;  %v3167_v30 = vpop.f32.mrb[197].mxu1 }
 0x496   :  { %14821 = vmatprep.mubr.msk.f32.mxu1 %vm16656_vm3, %v22679_v26 }
 0x498   :  { %v19865_v16 = vpop.f32.mrb[198].mxu1 }
 0x499   :  { %14822 = vmatmul.mubr.msk.f32.gmra.mrb[226].mxu1 %vm3258_vm12, %v19377_v17  ;;  %v3172_v54 = vpop.f32.mrb[199].mxu1 }
 0x49a   :  { %14824 = vmatprep.mubr.msk.f32.mxu1 %vm16656_vm3, %v22679_v26 }
 0x49c   :  { %v19871_v0 = vpop.f32.mrb[200].mxu1 }
 0x49d   :  { %14825 = vmatmul.mubr.msk.f32.gmra.mrb[228].mxu1 %vm3258_vm12, %v19389_v21  ;;  %v3177_v61 = vpop.f32.mrb[201].mxu1 }
 0x49e   :  { %14827 = vmatprep.mubr.msk.f32.mxu1 %vm16656_vm3, %v22679_v26 }
 0x4a0   :  { %v19877_v4 = vpop.f32.mrb[202].mxu1 }
 0x4a1   :  { %14828 = vmatmul.mubr.msk.f32.gmra.mrb[230].mxu1 %vm3258_vm12, %v19399_v20  ;;  %v3182_v33 = vpop.f32.mrb[203].mxu1 }
 0x4a2   :  { %14830 = vmatprep.mubr.msk.f32.mxu1 %vm16656_vm3, %v22679_v26  ;;  %v22686_v33 = vrot.slane %v19431_v56, 4  ;;  %v22687_v56 = vld [vmem:[#allocation28_spill] sm:$0xff] }
 0x4a4   :  { %v19883_v17 = vpop.f32.mrb[204].mxu1 }
 0x4a5   :  { %14831 = vmatmul.mubr.msk.f32.gmra.mrb[232].mxu1 %vm3258_vm12, %v19409_v7  ;;  %v3187_v15 = vpop.f32.mrb[205].mxu1 }
 0x4a6   :  { %14833 = vmatprep.mubr.msk.f32.mxu1 %vm16656_vm3, %v22679_v26 }
 0x4a8   :  { %v19889_v21 = vpop.f32.mrb[206].mxu1 }
 0x4a9   :  { %14834 = vmatmul.mubr.msk.f32.gmra.mrb[234].mxu1 %vm3258_vm12, %v19419_v62  ;;  %v3192_v2 = vpop.f32.mrb[207].mxu1  ;;  %v13042_v62 = vld [vmem:[%s22579_s4 + $0x50] sm:$0xff] }
 0x4aa   :  { %14836 = vmatprep.mubr.msk.f32.mxu1 %vm16656_vm3, %v22679_v26 }
 0x4ac   :  { %v19895_v20 = vpop.f32.mrb[208].mxu1 }
 0x4ad   :  { %14837 = vmatmul.mubr.msk.f32.gmra.mrb[236].mxu1 %vm3258_vm12, %v19429_v9  ;;  %v3197_v30 = vpop.f32.mrb[209].mxu1  ;;  %v13043_v9 = vld [vmem:[%s22579_s4 + $0x58] sm:$0x3] }
 0x4ae   :  { %14839 = vmatprep.mubr.msk.f32.mxu1 %vm16656_vm3, %v22679_v26 }
 0x4b0   :  { %v19901_v7 = vpop.f32.mrb[210].mxu1 }
 0x4b1   :  { %14840 = vmatmul.mubr.msk.f32.gmra.mrb[238].mxu1 %vm3258_vm12, %v19444_v11  ;;  %v3202_v54 = vpop.f32.mrb[211].mxu1  ;;  %v15878_v11 = vpack.c.bf16 %v13043_v9, %v13042_v62  ;;  %v22690_v62 = vld [vmem:[#allocation31_spill] sm:$0xff]  ;;  %v22691_v9 = vld [vmem:[#allocation32_spill] sm:$0xff] }
 0x4b2   :  { %14842 = vmatprep.mubr.msk.f32.mxu1 %vm16656_vm3, %v22679_v26  ;;  %v22688_v54 = vld [vmem:[#allocation29_spill] sm:$0xff] }
 0x4b4   :  { %v19913_v61 = vpop.f32.mrb[212].mxu1 }
 0x4b5   :  { %14843 = vmatmul.mubr.msk.f32.gmra.mrb[240].mxu1 %vm3258_vm12, %v22686_v33  ;;  %v3207_v15 = vpop.f32.mrb[213].mxu1  ;;  %v22692_v33 = vld [vmem:[#allocation33_spill] sm:$0xff] }
 0x4b6   :  { %14849 = vmatprep.mubr.msk.f32.mxu1 %vm16656_vm3, %v22679_v26  ;;  %v22693_v15 = vld [vmem:[#allocation34_spill] sm:$0xff] }
 0x4b8   :  { %v19920_v2 = vpop.f32.mrb[214].mxu1 }
 0x4b9   :  { %14850 = vmatmul.mubr.msk.f32.vlgmr.msra.gmra.mrb[216].mxu1 %vm3258_vm12, %v19446_v42  ;;  %v3212_v30 = vpop.f32.mrb[215].mxu1  ;;  %v22689_v42 = vld [vmem:[#allocation30_spill] sm:$0xff] }
 0x4ba   :  { %14852 = vmatprep.mubr.msk.f32.mxu1 %vm16656_vm3, %v22679_v26  ;;  %15880 = vmatpush3.bf16.msk.msra.mxu1 %vm18721_vm10, %v15878_v11  ;;  %v22694_v11 = vld [vmem:[#allocation35_spill] sm:$0xff]  ;;  %v22695_v30 = vld [vmem:[#allocation36_spill] sm:$0xff] }
 0x4bb   :  { %15881 = vmatprep.subr.bf16.mxu1 %v22632_v34 }
 0x4bd   :  { %14853 = vmatmul.mubr.msk.f32.gmra.mrb[218].mxu1 %vm3258_vm12, %v22687_v56  ;;  %v13058_v56 = vld [vmem:[%s22579_s4 + $0x60] sm:$0xff] }
 0x4be   :  { %14855 = vmatprep.mubr.msk.f32.mxu1 %vm16656_vm3, %v22679_v26 }
 0x4c1   :  { %14856 = vmatmul.mubr.msk.f32.gmra.mrb[220].mxu1 %vm3258_vm12, %v22688_v54  ;;  %v22696_v54 = vld [vmem:[#allocation37_spill] sm:$0xff] }
 0x4c2   :  { %14858 = vmatprep.mubr.msk.f32.mxu1 %vm16656_vm3, %v22679_v26 }
 0x4c5   :  { %14859 = vmatmul.mubr.msk.f32.gmra.mrb[222].mxu1 %vm3258_vm12, %v22689_v42 }
 0x4c6   :  { %14861 = vmatprep.mubr.msk.f32.mxu1 %vm16656_vm3, %v22679_v26 }
 0x4c9   :  { %14862 = vmatmul.mubr.msk.f32.gmra.mrb[224].mxu1 %vm3258_vm12, %v22690_v62 }
 0x4ca   :  { %14864 = vmatprep.mubr.msk.f32.mxu1 %vm16656_vm3, %v22679_v26 }
 0x4cd   :  { %14865 = vmatmul.mubr.msk.f32.gmra.mrb[226].mxu1 %vm3258_vm12, %v22691_v9 }
 0x4ce   :  { %14867 = vmatprep.mubr.msk.f32.mxu1 %vm16656_vm3, %v22679_v26 }
 0x4d1   :  { %14868 = vmatmul.mubr.msk.f32.gmra.mrb[228].mxu1 %vm3258_vm12, %v22692_v33 }
 0x4d2   :  { %14870 = vmatprep.mubr.msk.f32.mxu1 %vm16656_vm3, %v22679_v26 }
 0x4d5   :  { %14871 = vmatmul.mubr.msk.f32.gmra.mrb[230].mxu1 %vm3258_vm12, %v22693_v15 }
 0x4d6   :  { %14873 = vmatprep.mubr.msk.f32.mxu1 %vm16656_vm3, %v22679_v26 }
 0x4d9   :  { %14874 = vmatmul.mubr.msk.f32.gmra.mrb[232].mxu1 %vm3258_vm12, %v22694_v11 }
 0x4da   :  { %14876 = vmatprep.mubr.msk.f32.mxu1 %vm16656_vm3, %v22679_v26 }
 0x4dd   :  { %14877 = vmatmul.mubr.msk.f32.gmra.mrb[234].mxu1 %vm3258_vm12, %v19530_v14  ;;  %v13059_v14 = vld [vmem:[%s22579_s4 + $0x68] sm:$0x3] }
 0x4de   :  { %14879 = vmatprep.mubr.msk.f32.mxu1 %vm16656_vm3, %v22679_v26 }
 0x4e1   :  { %14880 = vmatmul.mubr.msk.f32.gmra.mrb[236].mxu1 %vm3258_vm12, %v19534_v13  ;;  %v15882_v13 = vpack.c.bf16 %v13059_v14, %v13058_v56 }
 0x4e2   :  { %14882 = vmatprep.mubr.msk.f32.mxu1 %vm16656_vm3, %v22679_v26 }
 0x4e5   :  { %14883 = vmatmul.mubr.msk.f32.gmra.mrb[238].mxu1 %vm3258_vm12, %v22695_v30 }
 0x4e6   :  { %14885 = vmatprep.mubr.msk.f32.mxu1 %vm16656_vm3, %v22679_v26 }
 0x4e9   :  { %14886 = vmatmul.mubr.msk.f32.gmra.mrb[240].mxu1 %vm3258_vm12, %v22696_v54  ;;  %v20236_v54 = vld [vmem:[%s22580_s5] ss:$0 sm:$0xff] }
 0x4ea   :  { %14892 = vmatprep.mubr.msk.f32.mxu1 %vm16656_vm3, %v22679_v26 }
 0x4ed   :  { %14893 = vmatmul.mubr.msk.f32.vlgmr.msra.gmra.mrb[216].mxu1 %vm3258_vm12, %v19561_v8  ;;  %v22697_v8 = vld [vmem:[#allocation38_spill] sm:$0xff] }
 0x4ee   :  { %14895 = vmatprep.mubr.msk.f32.mxu1 %vm16656_vm3, %v22679_v26  ;;  %15884 = vmatpush3.bf16.msk.msra.mxu1 %vm18721_vm10, %v15882_v13 }
 0x4ef   :  { %15885 = vmatprep.subr.bf16.mxu1 %v22632_v34 }
 0x4f1   :  { %14896 = vmatmul.mubr.msk.f32.gmra.mrb[218].mxu1 %vm3258_vm12, %v19568_v43  ;;  %v22698_v43 = vld [vmem:[#allocation39_spill] sm:$0xff] }
 0x4f2   :  { %14898 = vmatprep.mubr.msk.f32.mxu1 %vm16656_vm3, %v22679_v26 }
 0x4f5   :  { %14899 = vmatmul.mubr.msk.f32.gmra.mrb[220].mxu1 %vm3258_vm12, %v19575_v18  ;;  %v22699_v18 = vld [vmem:[#allocation40_spill] sm:$0xff] }
 0x4f6   :  { %14901 = vmatprep.mubr.msk.f32.mxu1 %vm16656_vm3, %v22679_v26 }
 0x4f9   :  { %14902 = vmatmul.mubr.msk.f32.gmra.mrb[222].mxu1 %vm3258_vm12, %v19582_v53  ;;  %v13074_v53 = vld [vmem:[%s22579_s4 + $0x70] sm:$0xff] }
 0x4fa   :  { %14904 = vmatprep.mubr.msk.f32.mxu1 %vm16656_vm3, %v22679_v26 }
 0x4fd   :  { %14905 = vmatmul.mubr.msk.f32.gmra.mrb[224].mxu1 %vm3258_vm12, %v19589_v36  ;;  %v13075_v36 = vld [vmem:[%s22579_s4 + $0x78] sm:$0x3] }
 0x4fe   :  { %14907 = vmatprep.mubr.msk.f32.mxu1 %vm16656_vm3, %v22679_v26 }
 0x501   :  { %14908 = vmatmul.mubr.msk.f32.gmra.mrb[226].mxu1 %vm3258_vm12, %v19596_v6  ;;  %v22700_v6 = vrot.slane %v19643_v12, 4  ;;  %v13091_v12 = vld [vmem:[%s22579_s4 + $0x88] sm:$0x3] }
 0x502   :  { %14910 = vmatprep.mubr.msk.f32.mxu1 %vm16656_vm3, %v22679_v26 }
 0x505   :  { %14911 = vmatmul.mubr.msk.f32.gmra.mrb[228].mxu1 %vm3258_vm12, %v22697_v8 }
 0x506   :  { %14913 = vmatprep.mubr.msk.f32.mxu1 %vm16656_vm3, %v22679_v26 }
 0x509   :  { %14914 = vmatmul.mubr.msk.f32.gmra.mrb[230].mxu1 %vm3258_vm12, %v22698_v43 }
 0x50a   :  { %14916 = vmatprep.mubr.msk.f32.mxu1 %vm16656_vm3, %v22679_v26 }
 0x50d   :  { %14917 = vmatmul.mubr.msk.f32.gmra.mrb[232].mxu1 %vm3258_vm12, %v22699_v18 }
 0x50e   :  { %14919 = vmatprep.mubr.msk.f32.mxu1 %vm16656_vm3, %v22679_v26 }
 0x511   :  { %14920 = vmatmul.mubr.msk.f32.gmra.mrb[234].mxu1 %vm3258_vm12, %v19631_v35  ;;  %v15886_v35 = vpack.c.bf16 %v13075_v36, %v13074_v53 }
 0x512   :  { %14922 = vmatprep.mubr.msk.f32.mxu1 %vm16656_vm3, %v22679_v26 }
 0x515   :  { %14923 = vmatmul.mubr.msk.f32.gmra.mrb[236].mxu1 %vm3258_vm12, %v19641_v50  ;;  %v13090_v50 = vld [vmem:[%s22579_s4 + $0x80] sm:$0xff] }
 0x516   :  { %14925 = vmatprep.mubr.msk.f32.mxu1 %vm16656_vm3, %v22679_v26 }
 0x519   :  { %14926 = vmatmul.mubr.msk.f32.gmra.mrb[238].mxu1 %vm3258_vm12, %v19653_v32  ;;  %v15890_v32 = vpack.c.bf16 %v13091_v12, %v13090_v50 }
 0x51a   :  { %14928 = vmatprep.mubr.msk.f32.mxu1 %vm16656_vm3, %v22679_v26 }
 0x51d   :  { %14929 = vmatmul.mubr.msk.f32.gmra.mrb[240].mxu1 %vm3258_vm12, %v22700_v6  ;;  %v5047_v6 = vld [vmem:[%s22581_s6] sm:$0xff] }
 0x51e   :  { %14935 = vmatprep.mubr.msk.f32.mxu1 %vm16656_vm3, %v22679_v26 }
 0x521   :  { %14936 = vmatmul.mubr.msk.f32.vlgmr.msra.gmra.mrb[216].mxu1 %vm3258_vm12, %v19655_v24  ;;  %v13107_v24 = vld [vmem:[%s22581_s6 + $0x10] sm:$0xff] }
 0x522   :  { %14938 = vmatprep.mubr.msk.f32.mxu1 %vm16656_vm3, %v22679_v26  ;;  %15888 = vmatpush3.bf16.msk.msra.mxu1 %vm18721_vm10, %v15886_v35  ;;  %v5048_v35 = vld [vmem:[%s22581_s6 + $0x8] sm:$0x3] }
 0x523   :  { %15889 = vmatprep.subr.bf16.mxu1 %v22632_v34 }
 0x525   :  { %14939 = vmatmul.mubr.msk.f32.gmra.mrb[218].mxu1 %vm3258_vm12, %v19661_v49  ;;  %v13108_v49 = vld [vmem:[%s22581_s6 + $0x18] sm:$0x3] }
 0x526   :  { %14941 = vmatprep.mubr.msk.f32.mxu1 %vm16656_vm3, %v22679_v26 }
 0x529   :  { %14942 = vmatmul.mubr.msk.f32.gmra.mrb[220].mxu1 %vm3258_vm12, %v19667_v1  ;;  %v15894_v1 = vpack.c.bf16 %v13108_v49, %v13107_v24 }
 0x52a   :  { %14944 = vmatprep.mubr.msk.f32.mxu1 %vm16656_vm3, %v22679_v26 }
 0x52b   :  { %15896 = vmatpush3.bf16.msk.msra.mxu0 %vm18721_vm10, %v15894_v1 }
 0x52c   :  { %15897 = vmatprep.subr.bf16.mxu0 %v22632_v34 }
 0x52d   :  { %14945 = vmatmul.mubr.msk.f32.gmra.mrb[222].mxu1 %vm3258_vm12, %v19673_v25 }
 0x52e   :  { %14947 = vmatprep.mubr.msk.f32.mxu1 %vm16656_vm3, %v22679_v26 }
 0x531   :  { %14948 = vmatmul.mubr.msk.f32.gmra.mrb[224].mxu1 %vm3258_vm12, %v19679_v5 }
 0x532   :  { %14950 = vmatprep.mubr.msk.f32.mxu1 %vm16656_vm3, %v22679_v26 }
 0x535   :  { %14951 = vmatmul.mubr.msk.f32.gmra.mrb[226].mxu1 %vm3258_vm12, %v19685_v41 }
 0x536   :  { %14953 = vmatprep.mubr.msk.f32.mxu1 %vm16656_vm3, %v22679_v26 }
 0x539   :  { %14954 = vmatmul.mubr.msk.f32.gmra.mrb[228].mxu1 %vm3258_vm12, %v19691_v23 }
 0x53a   :  { %14956 = vmatprep.mubr.msk.f32.mxu1 %vm16656_vm3, %v22679_v26 }
 0x53d   :  { %14957 = vmatmul.mubr.msk.f32.gmra.mrb[230].mxu1 %vm3258_vm12, %v19697_v57 }
 0x53e   :  { %14959 = vmatprep.mubr.msk.f32.mxu1 %vm16656_vm3, %v22679_v26 }
 0x541   :  { %14960 = vmatmul.mubr.msk.f32.gmra.mrb[232].mxu1 %vm3258_vm12, %v19703_v52 }
 0x542   :  { %14962 = vmatprep.mubr.msk.f32.mxu1 %vm16656_vm3, %v22679_v26 }
 0x545   :  { %14963 = vmatmul.mubr.msk.f32.gmra.mrb[234].mxu1 %vm3258_vm12, %v19709_v3 }
 0x546   :  { %14965 = vmatprep.mubr.msk.f32.mxu1 %vm16656_vm3, %v22679_v26 }
 0x549   :  { %14966 = vmatmul.mubr.msk.f32.gmra.mrb[236].mxu1 %vm3258_vm12, %v19721_v37 }
 0x54a   :  { %14968 = vmatprep.mubr.msk.f32.mxu1 %vm16656_vm3, %v22679_v26 }
 0x54d   :  { %14969 = vmatmul.mubr.msk.f32.gmra.mrb[238].mxu1 %vm3258_vm12, %v19727_v10 }
 0x54e   :  { %14971 = vmatprep.mubr.msk.f32.mxu1 %vm16656_vm3, %v22679_v26 }
 0x551   :  { %14972 = vmatmul.mubr.msk.f32.gmra.mrb[240].mxu1 %vm3258_vm12, %v19736_v22 }
 0x552   :  { %14978 = vmatprep.mubr.msk.f32.mxu1 %vm16656_vm3, %v22679_v26 }
 0x555   :  { %14979 = vmatmul.mubr.msk.f32.vlgmr.msra.gmra.mrb[216].mxu1 %vm3258_vm12, %v19748_v63 }
 0x556   :  { %14981 = vmatprep.mubr.msk.f32.mxu1 %vm16656_vm3, %v22679_v26  ;;  %15892 = vmatpush3.bf16.msk.msra.mxu1 %vm18721_vm10, %v15890_v32 }
 0x557   :  { %16033 = vmatprep.subr.bf16.mxu1 %v22632_v34 }
 0x559   :  { %14982 = vmatmul.mubr.msk.f32.gmra.mrb[218].mxu1 %vm3258_vm12, %v19755_v45 }
 0x55a   :  { %14984 = vmatprep.mubr.msk.f32.mxu1 %vm16656_vm3, %v22679_v26 }
 0x55d   :  { %14985 = vmatmul.mubr.msk.f32.gmra.mrb[220].mxu1 %vm3258_vm12, %v19762_v40 }
 0x55e   :  { %14987 = vmatprep.mubr.msk.f32.mxu1 %vm16656_vm3, %v22679_v26 }
 0x561   :  { %14988 = vmatmul.mubr.msk.f32.gmra.mrb[222].mxu1 %vm3258_vm12, %v19769_v29 }
 0x562   :  { %14990 = vmatprep.mubr.msk.f32.mxu1 %vm16656_vm3, %v22679_v26 }
 0x565   :  { %14991 = vmatmul.mubr.msk.f32.gmra.mrb[224].mxu1 %vm3258_vm12, %v19776_v31 }
 0x566   :  { %14993 = vmatprep.mubr.msk.f32.mxu1 %vm16656_vm3, %v22679_v26 }
 0x569   :  { %14994 = vmatmul.mubr.msk.f32.gmra.mrb[226].mxu1 %vm3258_vm12, %v19783_v48 }
 0x56a   :  { %14996 = vmatprep.mubr.msk.f32.mxu1 %vm16656_vm3, %v22679_v26 }
 0x56d   :  { %14997 = vmatmul.mubr.msk.f32.gmra.mrb[228].mxu1 %vm3258_vm12, %v19790_v39 }
 0x56e   :  { %14999 = vmatprep.mubr.msk.f32.mxu1 %vm16656_vm3, %v22679_v26 }
 0x571   :  { %15000 = vmatmul.mubr.msk.f32.gmra.mrb[230].mxu1 %vm3258_vm12, %v19797_v55 }
 0x572   :  { %15002 = vmatprep.mubr.msk.f32.mxu1 %vm16656_vm3, %v22679_v26 }
 0x575   :  { %15003 = vmatmul.mubr.msk.f32.gmra.mrb[232].mxu1 %vm3258_vm12, %v19804_v58 }
 0x576   :  { %15005 = vmatprep.mubr.msk.f32.mxu1 %vm16656_vm3, %v22679_v26 }
 0x579   :  { %15006 = vmatmul.mubr.msk.f32.gmra.mrb[234].mxu1 %vm3258_vm12, %v19817_v28 }
 0x57a   :  { %15008 = vmatprep.mubr.msk.f32.mxu1 %vm16656_vm3, %v22679_v26 }
 0x57d   :  { %15009 = vmatmul.mubr.msk.f32.gmra.mrb[236].mxu1 %vm3258_vm12, %v19824_v59 }
 0x57e   :  { %15011 = vmatprep.mubr.msk.f32.mxu1 %vm16656_vm3, %v22679_v26 }
 0x581   :  { %15012 = vmatmul.mubr.msk.f32.gmra.mrb[238].mxu1 %vm3258_vm12, %v19839_v47 }
 0x582   :  { %15014 = vmatprep.mubr.msk.f32.mxu1 %vm16656_vm3, %v22679_v26 }
 0x585   :  { %15015 = vmatmul.mubr.msk.f32.gmra.mrb[240].mxu1 %vm3258_vm12, %v4616_v19 }
 0x586   :  { %15021 = vmatprep.mubr.msk.f32.mxu1 %vm16656_vm3, %v22679_v26 }
 0x589   :  { %15022 = vmatmul.mubr.msk.f32.vlgmr.msra.gmra.mrb[216].mxu1 %vm3258_vm12, %v19841_v46 }
 0x58a   :  { %15024 = vmatprep.mubr.msk.f32.mxu1 %vm16656_vm3, %v22679_v26 }
 0x58d   :  { %15025 = vmatmul.mubr.msk.f32.gmra.mrb[218].mxu1 %vm3258_vm12, %v19847_v51 }
 0x58e   :  { %15027 = vmatprep.mubr.msk.f32.mxu1 %vm16656_vm3, %v22679_v26 }
 0x591   :  { %15028 = vmatmul.mubr.msk.f32.gmra.mrb[220].mxu1 %vm3258_vm12, %v19853_v38 }
 0x592   :  { %15030 = vmatprep.mubr.msk.f32.mxu1 %vm16656_vm3, %v22679_v26 }
 0x595   :  { %15031 = vmatmul.mubr.msk.f32.gmra.mrb[222].mxu1 %vm3258_vm12, %v19859_v44 }
 0x596   :  { %15033 = vmatprep.mubr.msk.f32.mxu1 %vm16656_vm3, %v22679_v26 }
 0x599   :  { %15034 = vmatmul.mubr.msk.f32.gmra.mrb[224].mxu1 %vm3258_vm12, %v19865_v16 }
 0x59a   :  { %15036 = vmatprep.mubr.msk.f32.mxu1 %vm16656_vm3, %v22679_v26 }
 0x59d   :  { %15037 = vmatmul.mubr.msk.f32.gmra.mrb[226].mxu1 %vm3258_vm12, %v19871_v0 }
 0x59e   :  { %15039 = vmatprep.mubr.msk.f32.mxu1 %vm16656_vm3, %v22679_v26 }
 0x5a1   :  { %15040 = vmatmul.mubr.msk.f32.gmra.mrb[228].mxu1 %vm3258_vm12, %v19877_v4 }
 0x5a2   :  { %15042 = vmatprep.mubr.msk.f32.mxu1 %vm16656_vm3, %v22679_v26 }
 0x5a5   :  { %15043 = vmatmul.mubr.msk.f32.gmra.mrb[230].mxu1 %vm3258_vm12, %v19883_v17 }
 0x5a6   :  { %15045 = vmatprep.mubr.msk.f32.mxu1 %vm16656_vm3, %v22679_v26 }
 0x5a9   :  { %15046 = vmatmul.mubr.msk.f32.gmra.mrb[232].mxu1 %vm3258_vm12, %v19889_v21 }
 0x5aa   :  { %15048 = vmatprep.mubr.msk.f32.mxu1 %vm16656_vm3, %v22679_v26 }
 0x5ad   :  { %15049 = vmatmul.mubr.msk.f32.gmra.mrb[234].mxu1 %vm3258_vm12, %v19895_v20 }
 0x5ae   :  { %15051 = vmatprep.mubr.msk.f32.mxu1 %vm16656_vm3, %v22679_v26 }
 0x5b1   :  { %15052 = vmatmul.mubr.msk.f32.gmra.mrb[236].mxu1 %vm3258_vm12, %v19901_v7 }
 0x5b2   :  { %15054 = vmatprep.mubr.msk.f32.mxu1 %vm16656_vm3, %v22679_v26 }
 0x5b5   :  { %15055 = vmatmul.mubr.msk.f32.gmra.mrb[238].mxu1 %vm3258_vm12, %v19913_v61 }
 0x5b6   :  { %15057 = vmatprep.mubr.msk.f32.mxu1 %vm16656_vm3, %v22679_v26 }
 0x5b9   :  { %15058 = vmatmul.mubr.msk.f32.gmra.mrb[240].mxu1 %vm3258_vm12, %v19920_v2 }
 0x5ba   :  { %15250 = vmatprep.mubr.msk.f32.mxu1 %vm16656_vm3, %v22679_v26 }
 0x65c   :  { %v4901_v25 = vpop.f32.mrb[216].mxu1 }
 0x65d   :  { %v15023_v5 = vpop.f32.mrb[217].mxu1 }
 0x660   :  { %v4906_v41 = vpop.f32.mrb[218].mxu1 }
 0x661   :  { %v15026_v23 = vpop.f32.mrb[219].mxu1 }
 0x662   :  { %v13114_v23 = vld [vmem:[%s22581_s6 + $0x28] sm:$0x3] }
 0x664   :  { %v4911_v57 = vpop.f32.mrb[220].mxu1 }
 0x665   :  { %v15029_v52 = vpop.f32.mrb[221].mxu1 }
 0x668   :  { %v4916_v3 = vpop.f32.mrb[222].mxu1 }
 0x669   :  { %v15032_v37 = vpop.f32.mrb[223].mxu1  ;;  %v4982_v22 = vrot.slane %v4916_v3, 1 }
 0x66c   :  { %v4921_v10 = vpop.f32.mrb[224].mxu1 }
 0x66d   :  { %v4983_v63 = vrot.slane %v4921_v10, 1  ;;  %v15035_v45 = vpop.f32.mrb[225].mxu1  ;;  %v13117_v10 = vld [vmem:[%s22581_s6 + $0x30] sm:$0xff] }
 0x66f   :  { %v4984_v40 = vsel %vm1659_vm5, %v4982_v22, %v4983_v63  ;;  %v13118_v22 = vld [vmem:[%s22581_s6 + $0x38] sm:$0x3] }
 0x670   :  { %v4993_v29 = vmax.f32 %v4901_v25, %v4984_v40  ;;  %v4926_v31 = vpop.f32.mrb[226].mxu1  ;;  %v15898_v25 = vpack.c.bf16 %v5048_v35, %v5047_v6  ;;  %v13121_v40 = vld [vmem:[%s22581_s6 + $0x40] sm:$0xff] }
 0x671   :  { %v4985_v48 = vrot.slane %v4926_v31, 1  ;;  %v15038_v39 = vpop.f32.mrb[227].mxu1 }
 0x672   :  { %v13125_v39 = vld [vmem:[%s22581_s6 + $0x50] sm:$0xff] }
 0x673   :  { %v4986_v55 = vsel %vm1659_vm5, %v4983_v63, %v4985_v48  ;;  %v15906_v63 = vpack.c.bf16 %v13118_v22, %v13117_v10 }
 0x674   :  { %v4994_v58 = vmax.f32 %v4906_v41, %v4986_v55  ;;  %v4931_v28 = vpop.f32.mrb[228].mxu1  ;;  %v13113_v41 = vld [vmem:[%s22581_s6 + $0x20] sm:$0xff]  ;;  %v13126_v55 = vld [vmem:[%s22581_s6 + $0x58] sm:$0x3] }
 0x675   :  { %v4987_v59 = vrot.slane %v4931_v28, 1  ;;  %v15041_v27 = vpop.f32.mrb[229].mxu1  ;;  %v5000_v38 = vrot.slane %v4931_v28, 2  ;;  %v15902_v37 = vpack.c.bf16 %v13114_v23, %v13113_v41  ;;  %v13169_v41 = vld [vmem:[%s22581_s6 + $0x100] sm:$0xff]  ;;  %v13170_v23 = vld [vmem:[%s22581_s6 + $0x108] sm:$0x3] }
 0x676   :  { %v13130_v27 = vld [vmem:[%s22581_s6 + $0x68] sm:$0x3] }
 0x677   :  { %v4988_v19 = vsel %vm1659_vm5, %v4985_v48, %v4987_v59  ;;  %v4996_v47 = vmax.f32 %v4916_v3, %v4987_v59  ;;  %v13129_v59 = vld [vmem:[%s22581_s6 + $0x60] sm:$0xff] }
 0x678   :  { %v4995_v46 = vmax.f32 %v4911_v57, %v4988_v19  ;;  %v4936_v51 = vpop.f32.mrb[230].mxu1  ;;  %v15918_v19 = vpack.c.bf16 %v13130_v27, %v13129_v59  ;;  %v13186_v59 = vld [vmem:[%s22581_s6 + $0x148] sm:$0x3] }
 0x679   :  { %v5001_v44 = vrot.slane %v4936_v51, 2  ;;  %v15044_v16 = vpop.f32.mrb[231].mxu1  ;;  %v13134_v51 = vld [vmem:[%s22581_s6 + $0x78] sm:$0x3] }
 0x67a   :  { %v13137_v16 = vld [vmem:[%s22581_s6 + $0x80] sm:$0xff] }
 0x67b   :  { %v5002_v0 = vsel %vm1768_vm6, %v5000_v38, %v5001_v44 }
 0x67c   :  { %v5011_v4 = vmax.f32 %v4993_v29, %v5002_v0  ;;  %v4941_v17 = vpop.f32.mrb[232].mxu1  ;;  %v13122_v29 = vld [vmem:[%s22581_s6 + $0x48] sm:$0x3] }
 0x67d   :  { %v5003_v21 = vrot.slane %v4941_v17, 2  ;;  %v15047_v20 = vpop.f32.mrb[233].mxu1  ;;  %v15910_v31 = vpack.c.bf16 %v13122_v29, %v13121_v40  ;;  %v13138_v0 = vld [vmem:[%s22581_s6 + $0x88] sm:$0x3] }
 0x67e   :  { %v13141_v20 = vld [vmem:[%s22581_s6 + $0x90] sm:$0xff]  ;;  %v13178_v40 = vld [vmem:[%s22581_s6 + $0x128] sm:$0x3] }
 0x67f   :  { %v5004_v7 = vsel %vm1768_vm6, %v5001_v44, %v5003_v21 }
 0x680   :  { %v20228_v61 = vmax.f32 %v4994_v58, %v5004_v7  ;;  %v4946_v2 = vpop.f32.mrb[234].mxu1  ;;  %v15914_v58 = vpack.c.bf16 %v13126_v55, %v13125_v39  ;;  %v13142_v7 = vld [vmem:[%s22581_s6 + $0x98] sm:$0x3] }
 0x681   :  { %v5005_v42 = vrot.slane %v4946_v2, 2  ;;  %v15050_v62 = vpop.f32.mrb[235].mxu1  ;;  %v5018_v30 = vrot.slane %v4946_v2, 3  ;;  %v13182_v39 = vld [vmem:[%s22581_s6 + $0x138] sm:$0x3] }
 0x682   :  { %v13146_v62 = vld [vmem:[%s22581_s6 + $0xa8] sm:$0x3] }
 0x683   :  { %v5006_v9 = vsel %vm1768_vm6, %v5003_v21, %v5005_v42  ;;  %v5014_v33 = vmax.f32 %v4996_v47, %v5005_v42  ;;  %v13145_v42 = vld [vmem:[%s22581_s6 + $0xa0] sm:$0xff] }
 0x684   :  { %v20231_v15 = vmax.f32 %v4995_v46, %v5006_v9  ;;  %v4951_v11 = vpop.f32.mrb[236].mxu1  ;;  %v13133_v46 = vld [vmem:[%s22581_s6 + $0x70] sm:$0xff]  ;;  %v15934_v9 = vpack.c.bf16 %v13146_v62, %v13145_v42 }
 0x685   :  { %v5019_v56 = vrot.slane %v4951_v11, 3  ;;  %v15053_v14 = vpop.f32.mrb[237].mxu1  ;;  %v15922_v38 = vpack.c.bf16 %v13134_v51, %v13133_v46  ;;  %v13149_v11 = vld [vmem:[%s22581_s6 + $0xb0] sm:$0xff]  ;;  %v13190_v46 = vld [vmem:[%s22581_s6 + $0x158] sm:$0x3] }
 0x687   :  { %v5020_v13 = vsel %vm1877_vm8, %v5018_v30, %v5019_v56  ;;  %v13150_v30 = vld [vmem:[%s22581_s6 + $0xb8] sm:$0x3] }
 0x688   :  { %v5029_v8 = vmax.f32 %v5011_v4, %v5020_v13  ;;  %v4956_v43 = vpop.f32.mrb[238].mxu1  ;;  %v15926_v4 = vpack.c.bf16 %v13138_v0, %v13137_v16  ;;  %v13153_v13 = vld [vmem:[%s22581_s6 + $0xc0] sm:$0xff]  ;;  %v13194_v16 = vld [vmem:[%s22581_s6 + $0x168] sm:$0x3] }
 0x689   :  { %v5021_v18 = vrot.slane %v4956_v43, 3  ;;  %v15056_v53 = vpop.f32.mrb[239].mxu1 }
 0x68a   :  { %v5039_v36 = vadd.f32 %v20236_v54, %v5029_v8  ;;  %v13154_v8 = vld [vmem:[%s22581_s6 + $0xc8] sm:$0x3]  ;;  %v13157_v53 = vld [vmem:[%s22581_s6 + $0xd0] sm:$0xff] }
 0x68b   :  { %v20247_v50 = vsel %vm1877_vm8, %v5019_v56, %v5021_v18  ;;  %v15938_v56 = vpack.c.bf16 %v13150_v30, %v13149_v11  ;;  %v15942_v43 = vpack.c.bf16 %v13154_v8, %v13153_v13  ;;  %v212_v30 = vld [vmem:[%s22583_s8 + $0x10] sm:$0xff] }
 0x68c   :  { %v20249_v12 = vmax.f32 %v5039_v36, 0.0  ;;  %v5030_v32 = vmax.f32 %v20228_v61, %v20247_v50  ;;  %v4961_v24 = vpop.f32.mrb[240].mxu1  ;;  %v15930_v61 = vpack.c.bf16 %v13142_v7, %v13141_v20  ;;  %v13158_v36 = vld [vmem:[%s22581_s6 + $0xd8] sm:$0x3]  ;;  %v13161_v50 = vld [vmem:[%s22581_s6 + $0xe0] sm:$0xff] }
 0x68d   :  { %v5023_v49 = vrot.slane %v4961_v24, 3  ;;  %v15059_v1 = vpop.f32.mrb[241].mxu1  ;;  %v15946_v6 = vpack.c.bf16 %v13158_v36, %v13157_v53 }
 0x68e   :  { %v5053_v5 = vrot.slane %v20249_v12, 1  ;;  %v5207_v45 = vrot.slane %v20249_v12, 2  ;;  %v5287_v48 = vrot.slane %v20249_v12, 3  ;;  %v5367_v28 = vrot.slane %v20249_v12, 4  ;;  %v13166_v1 = vld [vmem:[%s22581_s6 + $0xf8] sm:$0x3] }
 0x68f   :  { %v20261_v57 = vsel %vm1877_vm8, %v5021_v18, %v5023_v49  ;;  %v20263_v52 = vmax.f32 %v5014_v33, %v5023_v49  ;;  %v5447_v47 = vrot.slane %v20249_v12, 5  ;;  %v5527_v44 = vrot.slane %v20249_v12, 6  ;;  %v13165_v49 = vld [vmem:[%s22581_s6 + $0xf0] sm:$0xff] }
 0x690   :  { %v5031_v3 = vmax.f32 %v20231_v15, %v20261_v57  ;;  %15065 = vmatmul.mubr.msk.f32.vlgmr.msra.gmra.mrb[92].mxu0 %vm3258_vm12, %v5053_v5  ;;  %v5040_v17 = vadd.f32 %v20236_v54, %v5030_v32  ;;  %v5607_v21 = vrot.slane %v20249_v12, 7 }
 0x691   :  { %15900 = vmatpush3.bf16.msk.msra.mxu0 %vm18721_vm10, %v15898_v25  ;;  %15071 = vmatprep.mubr.msk.f32.mxu0 %vm16656_vm3, %v22679_v26  ;;  %v15954_v25 = vpack.c.bf16 %v13166_v1, %v13165_v49  ;;  %v5042_v62 = vadd.f32 %v20236_v54, %v20263_v52  ;;  %v211_v52 = vld [vmem:[%s22583_s8 + $0x8] sm:$0xff] }
 0x692   :  { %15901 = vmatprep.subr.bf16.mxu0 %v22632_v34  ;;  %v5044_v2 = vmax.f32 %v5040_v17, 0.0  ;;  %v5041_v10 = vadd.f32 %v20236_v54, %v5031_v3  ;;  %v13177_v3 = vld [vmem:[%s22581_s6 + $0x120] sm:$0xff]  ;;  %v13197_v17 = vld [vmem:[%s22581_s6 + $0x170] sm:$0xff] }
 0x693   :  { %v15966_v29 = vpack.c.bf16 %v13178_v40, %v13177_v3  ;;  %v210_v54 = vld [vmem:[%s22583_s8] sm:$0xff] }
 0x694   :  { %15072 = vmatmul.mubr.msk.f32.vlgmr.msra.gmra.mrb[94].mxu0 %vm3258_vm12, %v20249_v12  ;;  %v5767_v33 = vrot.slane %v5044_v2, 1  ;;  %v5847_v14 = vrot.slane %v5044_v2, 2  ;;  %v5927_v18 = vrot.slane %v5044_v2, 3  ;;  %v6007_v35 = vrot.slane %v5044_v2, 4  ;;  %v13162_v12 = vld [vmem:[%s22581_s6 + $0xe8] sm:$0x3] }
 0x695   :  { %15904 = vmatpush3.bf16.msk.msra.mxu0 %vm18721_vm10, %v15902_v37  ;;  %15078 = vmatprep.mubr.msk.f32.mxu0 %vm16656_vm3, %v22679_v26  ;;  %v15950_v32 = vpack.c.bf16 %v13162_v12, %v13161_v50  ;;  %v6087_v24 = vrot.slane %v5044_v2, 5  ;;  %v6167_v5 = vrot.slane %v5044_v2, 6  ;;  %v15958_v37 = vpack.c.bf16 %v13170_v23, %v13169_v41 }
 0x696   :  { %15905 = vmatprep.subr.bf16.mxu0 %v22632_v34  ;;  %v6247_v22 = vrot.slane %v5044_v2, 7  ;;  %v5045_v57 = vmax.f32 %v5041_v10, 0.0  ;;  %v20566_v11 = vpack.c.bf16 %v211_v52, %v210_v54 }
 0x698   :  { %15079 = vmatmul.mubr.msk.f32.vlgmr.msra.gmra.mrb[96].mxu0 %vm3258_vm12, %v5207_v45  ;;  %v13174_v45 = vld [vmem:[%s22581_s6 + $0x118] sm:$0x3]  ;;  %v6807_v7 = vrot.slane %v5045_v57, 6 }
 0x699   :  { %15908 = vmatpush3.bf16.msk.msra.mxu0 %vm18721_vm10, %v15906_v63  ;;  %15085 = vmatprep.mubr.msk.f32.mxu0 %vm16656_vm3, %v22679_v26  ;;  %v13173_v63 = vld [vmem:[%s22581_s6 + $0x110] sm:$0xff] }
 0x69a   :  { %15909 = vmatprep.subr.bf16.mxu0 %v22632_v34  ;;  %v15962_v15 = vpack.c.bf16 %v13174_v45, %v13173_v63 }
 0x69c   :  { %15086 = vmatmul.mubr.msk.f32.vlgmr.msra.gmra.mrb[98].mxu0 %vm3258_vm12, %v5287_v48  ;;  %v13181_v48 = vld [vmem:[%s22581_s6 + $0x130] sm:$0xff] }
 0x69d   :  { %15912 = vmatpush3.bf16.msk.msra.mxu0 %vm18721_vm10, %v15910_v31  ;;  %15092 = vmatprep.mubr.msk.f32.mxu0 %vm16656_vm3, %v22679_v26  ;;  %v6407_v31 = vrot.slane %v5045_v57, 1  ;;  %v15970_v55 = vpack.c.bf16 %v13182_v39, %v13181_v48 }
 0x69e   :  { %15913 = vmatprep.subr.bf16.mxu0 %v22632_v34 }
 0x6a0   :  { %15093 = vmatmul.mubr.msk.f32.vlgmr.msra.gmra.mrb[100].mxu0 %vm3258_vm12, %v5367_v28  ;;  %v13185_v28 = vld [vmem:[%s22581_s6 + $0x140] sm:$0xff] }
 0x6a1   :  { %15916 = vmatpush3.bf16.msk.msra.mxu0 %vm18721_vm10, %v15914_v58  ;;  %15099 = vmatprep.mubr.msk.f32.mxu0 %vm16656_vm3, %v22679_v26  ;;  %v6487_v58 = vrot.slane %v5045_v57, 2  ;;  %v15974_v27 = vpack.c.bf16 %v13186_v59, %v13185_v28 }
 0x6a2   :  { %15917 = vmatprep.subr.bf16.mxu0 %v22632_v34 }
 0x6a4   :  { %15100 = vmatmul.mubr.msk.f32.vlgmr.msra.gmra.mrb[102].mxu0 %vm3258_vm12, %v5447_v47  ;;  %v13189_v47 = vld [vmem:[%s22581_s6 + $0x150] sm:$0xff] }
 0x6a5   :  { %15920 = vmatpush3.bf16.msk.msra.mxu0 %vm18721_vm10, %v15918_v19  ;;  %15106 = vmatprep.mubr.msk.f32.mxu0 %vm16656_vm3, %v22679_v26  ;;  %v6567_v19 = vrot.slane %v5045_v57, 3  ;;  %v15978_v51 = vpack.c.bf16 %v13190_v46, %v13189_v47 }
 0x6a6   :  { %15921 = vmatprep.subr.bf16.mxu0 %v22632_v34 }
 0x6a8   :  { %15107 = vmatmul.mubr.msk.f32.vlgmr.msra.gmra.mrb[104].mxu0 %vm3258_vm12, %v5527_v44  ;;  %v13193_v44 = vld [vmem:[%s22581_s6 + $0x160] sm:$0xff] }
 0x6a9   :  { %15924 = vmatpush3.bf16.msk.msra.mxu0 %vm18721_vm10, %v15922_v38  ;;  %15113 = vmatprep.mubr.msk.f32.mxu0 %vm16656_vm3, %v22679_v26  ;;  %v6647_v38 = vrot.slane %v5045_v57, 4  ;;  %v15982_v0 = vpack.c.bf16 %v13194_v16, %v13193_v44 }
 0x6aa   :  { %15925 = vmatprep.subr.bf16.mxu0 %v22632_v34 }
 0x6ac   :  { %15114 = vmatmul.mubr.msk.f32.vlgmr.msra.gmra.mrb[106].mxu0 %vm3258_vm12, %v5607_v21  ;;  %v13198_v21 = vld [vmem:[%s22581_s6 + $0x178] sm:$0x3] }
 0x6ad   :  { %15928 = vmatpush3.bf16.msk.msra.mxu0 %vm18721_vm10, %v15926_v4  ;;  %15120 = vmatprep.mubr.msk.f32.mxu0 %vm16656_vm3, %v22679_v26  ;;  %v6727_v4 = vrot.slane %v5045_v57, 5  ;;  %v15986_v20 = vpack.c.bf16 %v13198_v21, %v13197_v17 }
 0x6ae   :  { %15929 = vmatprep.subr.bf16.mxu0 %v22632_v34 }
 0x6b0   :  { %15121 = vmatmul.mubr.msk.f32.vlgmr.msra.gmra.mrb[108].mxu0 %vm3258_vm12, %v5044_v2  ;;  %v13202_v2 = vld [vmem:[%s22581_s6 + $0x188] sm:$0x3] }
 0x6b1   :  { %15932 = vmatpush3.bf16.msk.msra.mxu0 %vm18721_vm10, %v15930_v61  ;;  %15127 = vmatprep.mubr.msk.f32.mxu0 %vm16656_vm3, %v22679_v26  ;;  %v13201_v61 = vld [vmem:[%s22581_s6 + $0x180] sm:$0xff] }
 0x6b2   :  { %15933 = vmatprep.subr.bf16.mxu0 %v22632_v34  ;;  %v15990_v42 = vpack.c.bf16 %v13202_v2, %v13201_v61 }
 0x6b4   :  { %15128 = vmatmul.mubr.msk.f32.vlgmr.msra.gmra.mrb[110].mxu0 %vm3258_vm12, %v5767_v33  ;;  %v5046_v33 = vmax.f32 %v5042_v62, 0.0 }
 0x6b5   :  { %15936 = vmatpush3.bf16.msk.msra.mxu0 %vm18721_vm10, %v15934_v9  ;;  %15134 = vmatprep.mubr.msk.f32.mxu0 %vm16656_vm3, %v22679_v26  ;;  %v6887_v9 = vrot.slane %v5045_v57, 7 }
 0x6b6   :  { %15937 = vmatprep.subr.bf16.mxu0 %v22632_v34 }
 0x6b8   :  { %15135 = vmatmul.mubr.msk.f32.vlgmr.msra.gmra.mrb[112].mxu0 %vm3258_vm12, %v5847_v14 }
 0x6b9   :  { %15940 = vmatpush3.bf16.msk.msra.mxu0 %vm18721_vm10, %v15938_v56  ;;  %15141 = vmatprep.mubr.msk.f32.mxu0 %vm16656_vm3, %v22679_v26  ;;  %v213_v56 = vld [vmem:[%s22583_s8 + $0x18] sm:$0xff] }
 0x6ba   :  { %15941 = vmatprep.subr.bf16.mxu0 %v22632_v34  ;;  %v20576_v14 = vpack.c.bf16 %v213_v56, %v212_v30 }
 0x6bc   :  { %15142 = vmatmul.mubr.msk.f32.vlgmr.msra.gmra.mrb[114].mxu0 %vm3258_vm12, %v5927_v18 }
 0x6bd   :  { %15944 = vmatpush3.bf16.msk.msra.mxu0 %vm18721_vm10, %v15942_v43  ;;  %15148 = vmatprep.mubr.msk.f32.mxu0 %vm16656_vm3, %v22679_v26 }
 0x6be   :  { %15945 = vmatprep.subr.bf16.mxu0 %v22632_v34 }
 0x6c0   :  { %15149 = vmatmul.mubr.msk.f32.vlgmr.msra.gmra.mrb[116].mxu0 %vm3258_vm12, %v6007_v35 }
 0x6c1   :  { %15948 = vmatpush3.bf16.msk.msra.mxu0 %vm18721_vm10, %v15946_v6  ;;  %15155 = vmatprep.mubr.msk.f32.mxu0 %vm16656_vm3, %v22679_v26 }
 0x6c2   :  { %15949 = vmatprep.subr.bf16.mxu0 %v22632_v34 }
 0x6c4   :  { %15156 = vmatmul.mubr.msk.f32.vlgmr.msra.gmra.mrb[118].mxu0 %vm3258_vm12, %v6087_v24 }
 0x6c5   :  { %15952 = vmatpush3.bf16.msk.msra.mxu0 %vm18721_vm10, %v15950_v32  ;;  %15162 = vmatprep.mubr.msk.f32.mxu0 %vm16656_vm3, %v22679_v26 }
 0x6c6   :  { %15953 = vmatprep.subr.bf16.mxu0 %v22632_v34 }
 0x6c8   :  { %15163 = vmatmul.mubr.msk.f32.vlgmr.msra.gmra.mrb[120].mxu0 %vm3258_vm12, %v6167_v5 }
 0x6c9   :  { %15956 = vmatpush3.bf16.msk.msra.mxu0 %vm18721_vm10, %v15954_v25  ;;  %15169 = vmatprep.mubr.msk.f32.mxu0 %vm16656_vm3, %v22679_v26 }
 0x6ca   :  { %15957 = vmatprep.subr.bf16.mxu0 %v22632_v34 }
 0x6cc   :  { %15170 = vmatmul.mubr.msk.f32.vlgmr.msra.gmra.mrb[122].mxu0 %vm3258_vm12, %v6247_v22 }
 0x6cd   :  { %15960 = vmatpush3.bf16.msk.msra.mxu0 %vm18721_vm10, %v15958_v37  ;;  %15176 = vmatprep.mubr.msk.f32.mxu0 %vm16656_vm3, %v22679_v26 }
 0x6ce   :  { %15961 = vmatprep.subr.bf16.mxu0 %v22632_v34 }
 0x6d0   :  { %15177 = vmatmul.mubr.msk.f32.vlgmr.msra.gmra.mrb[124].mxu0 %vm3258_vm12, %v5045_v57 }
 0x6d1   :  { %15964 = vmatpush3.bf16.msk.msra.mxu0 %vm18721_vm10, %v15962_v15  ;;  %15183 = vmatprep.mubr.msk.f32.mxu0 %vm16656_vm3, %v22679_v26 }
 0x6d2   :  { %15965 = vmatprep.subr.bf16.mxu0 %v22632_v34 }
 0x6d4   :  { %15184 = vmatmul.mubr.msk.f32.vlgmr.msra.gmra.mrb[126].mxu0 %vm3258_vm12, %v6407_v31 }
 0x6d5   :  { %15968 = vmatpush3.bf16.msk.msra.mxu0 %vm18721_vm10, %v15966_v29  ;;  %15190 = vmatprep.mubr.msk.f32.mxu0 %vm16656_vm3, %v22679_v26 }
 0x6d6   :  { %15969 = vmatprep.subr.bf16.mxu0 %v22632_v34 }
 0x6d8   :  { %15191 = vmatmul.mubr.msk.f32.vlgmr.msra.gmra.mrb[128].mxu0 %vm3258_vm12, %v6487_v58 }
 0x6d9   :  { %15972 = vmatpush3.bf16.msk.msra.mxu0 %vm18721_vm10, %v15970_v55  ;;  %15197 = vmatprep.mubr.msk.f32.mxu0 %vm16656_vm3, %v22679_v26 }
 0x6da   :  { %15973 = vmatprep.subr.bf16.mxu0 %v22632_v34 }
 0x6dc   :  { %15198 = vmatmul.mubr.msk.f32.vlgmr.msra.gmra.mrb[130].mxu0 %vm3258_vm12, %v6567_v19 }
 0x6dd   :  { %15976 = vmatpush3.bf16.msk.msra.mxu0 %vm18721_vm10, %v15974_v27  ;;  %15204 = vmatprep.mubr.msk.f32.mxu0 %vm16656_vm3, %v22679_v26 }
 0x6de   :  { %15977 = vmatprep.subr.bf16.mxu0 %v22632_v34 }
 0x6e0   :  { %15205 = vmatmul.mubr.msk.f32.vlgmr.msra.gmra.mrb[132].mxu0 %vm3258_vm12, %v6647_v38 }
 0x6e1   :  { %15980 = vmatpush3.bf16.msk.msra.mxu0 %vm18721_vm10, %v15978_v51  ;;  %15211 = vmatprep.mubr.msk.f32.mxu0 %vm16656_vm3, %v22679_v26 }
 0x6e2   :  { %15981 = vmatprep.subr.bf16.mxu0 %v22632_v34 }
 0x6e4   :  { %15212 = vmatmul.mubr.msk.f32.vlgmr.msra.gmra.mrb[134].mxu0 %vm3258_vm12, %v6727_v4 }
 0x6e5   :  { %15984 = vmatpush3.bf16.msk.msra.mxu0 %vm18721_vm10, %v15982_v0  ;;  %15218 = vmatprep.mubr.msk.f32.mxu0 %vm16656_vm3, %v22679_v26 }
 0x6e6   :  { %15985 = vmatprep.subr.bf16.mxu0 %v22632_v34 }
 0x6e8   :  { %15219 = vmatmul.mubr.msk.f32.vlgmr.msra.gmra.mrb[136].mxu0 %vm3258_vm12, %v6807_v7 }
 0x6e9   :  { %15988 = vmatpush3.bf16.msk.msra.mxu0 %vm18721_vm10, %v15986_v20  ;;  %15225 = vmatprep.mubr.msk.f32.mxu0 %vm16656_vm3, %v22679_v26 }
 0x6ea   :  { %15989 = vmatprep.subr.bf16.mxu0 %v22632_v34 }
 0x6ec   :  { %15226 = vmatmul.mubr.msk.f32.vlgmr.msra.gmra.mrb[138].mxu0 %vm3258_vm12, %v6887_v9 }
 0x6ed   :  { %15992 = vmatpush3.bf16.msk.msra.mxu0 %vm18721_vm10, %v15990_v42  ;;  %15232 = vmatprep.mubr.msk.f32.mxu0 %vm16656_vm3, %v22679_v26 }
 0x6ee   :  { %15993 = vmatprep.subr.bf16.mxu0 %v22632_v34 }
 0x6f0   :  { %15233 = vmatmul.mubr.msk.f32.vlgmr.msra.gmra.mrb[140].mxu0 %vm3258_vm12, %v5046_v33 }
 0x6f1   :  { %15243 = vmatprep.mubr.msk.f32.mxu0 %vm16656_vm3, %v22679_v26  ;;  %15995 = vmatpush3.bf16.msra.mxu0 %v20566_v11 }
 0x6f2   :  { %15996 = vmatprep.subr.bf16.mxu0 %v22632_v34 }
 0x6f5   :  { %15998 = vmatpush3.bf16.msra.mxu0 %v20576_v14 }
 0x6f6   :  { %15999 = vmatprep.subr.bf16.mxu0 %v22632_v34 }
 0x763   :  { %v5125_v13 = vpop.f32.mrb[92].mxu0 }
 0x764   :  { %v15066_v8 = vpop.f32.mrb[93].mxu0 }
 0x767   :  { %v5200_v43 = vpop.f32.mrb[94].mxu0 }
 0x768   :  { %v5201_v18 = vadd.f32 %v5200_v43, %v5125_v13  ;;  %v15073_v53 = vpop.f32.mrb[95].mxu0 }
 0x76b   :  { %v5279_v36 = vpop.f32.mrb[96].mxu0 }
 0x76c   :  { %v5283_v6 = vadd.f32 %v5279_v36, %v5201_v18  ;;  %v15080_v35 = vpop.f32.mrb[97].mxu0 }
 0x76f   :  { %v5359_v50 = vpop.f32.mrb[98].mxu0 }
 0x770   :  { %v5363_v12 = vadd.f32 %v5359_v50, %v5283_v6  ;;  %v15087_v32 = vpop.f32.mrb[99].mxu0 }
 0x773   :  { %v5439_v24 = vpop.f32.mrb[100].mxu0 }
 0x774   :  { %v5443_v49 = vadd.f32 %v5439_v24, %v5363_v12  ;;  %v15094_v1 = vpop.f32.mrb[101].mxu0 }
 0x777   :  { %v5519_v25 = vpop.f32.mrb[102].mxu0 }
 0x778   :  { %v5523_v5 = vadd.f32 %v5519_v25, %v5443_v49  ;;  %v15101_v41 = vpop.f32.mrb[103].mxu0  ;;  %v209_v49 = vld [vmem:[%s22582_s7] sm:$0x1] }
 0x77b   :  { %v5599_v23 = vpop.f32.mrb[104].mxu0 }
 0x77c   :  { %v5603_v37 = vadd.f32 %v5599_v23, %v5523_v5  ;;  %v15108_v10 = vpop.f32.mrb[105].mxu0 }
 0x77d   :  { %v22701_v10 = vld [vmem:[#allocation7_spill] sm:$0xff] }
 0x77f   :  { %v5679_v22 = vpop.f32.mrb[106].mxu0 }
 0x780   :  { %v5683_v63 = vadd.f32 %v5679_v22, %v5603_v37  ;;  %v15115_v45 = vpop.f32.mrb[107].mxu0  ;;  %v7505_v37 = vld [vmem:[%s22578_s3 + $0x8] sm:$0xff] }
 0x781   :  { %v22702_v22 = vld [vmem:[#allocation6_spill] sm:$0xff]  ;;  %v22704_v45 = vld [vmem:[#allocation9_spill] sm:$0xff] }
 0x783   :  { %v5759_v15 = vpop.f32.mrb[108].mxu0 }
 0x784   :  { %v5763_v57 = vadd.f32 %v5759_v15, %v5683_v63  ;;  %v15122_v3 = vpop.f32.mrb[109].mxu0  ;;  %v22703_v63 = vpack.c.bf16 %v22701_v10, %v22702_v22  ;;  %v22705_v15 = vld [vmem:[#allocation8_spill] sm:$0xff]  ;;  %v7530_v22 = vld [vmem:[%s22578_s3 + $0xd0] sm:$0xff] }
 0x785   :  { %v22707_v3 = vld [vmem:[#allocation11_spill] sm:$0xff] }
 0x786   :  { %v7531_v10 = vld [vmem:[%s22578_s3 + $0xd8] sm:$0xff] }
 0x787   :  { %v5839_v40 = vpop.f32.mrb[110].mxu0 }
 0x788   :  { %v5843_v29 = vadd.f32 %v5839_v40, %v5763_v57  ;;  %v15129_v31 = vpop.f32.mrb[111].mxu0  ;;  %v22706_v57 = vpack.c.bf16 %v22704_v45, %v22705_v15  ;;  %v22708_v40 = vld [vmem:[#allocation10_spill] sm:$0xff]  ;;  %v7532_v45 = vld [vmem:[%s22578_s3 + $0xe0] sm:$0xff]  ;;  %v7535_v15 = vld [vmem:[%s22578_s3 + $0xf8] sm:$0xff] }
 0x789   :  { %v22710_v31 = vld [vmem:[#allocation13_spill] sm:$0xff] }
 0x78b   :  { %v5919_v48 = vpop.f32.mrb[112].mxu0 }
 0x78c   :  { %v5923_v39 = vadd.f32 %v5919_v48, %v5843_v29  ;;  %v15136_v55 = vpop.f32.mrb[113].mxu0  ;;  %v22709_v29 = vpack.c.bf16 %v22707_v3, %v22708_v40  ;;  %v22711_v48 = vld [vmem:[#allocation12_spill] sm:$0xff]  ;;  %v7537_v3 = vld [vmem:[%s22578_s3 + $0x108] sm:$0xff] }
 0x78d   :  { %v22713_v55 = vld [vmem:[#allocation15_spill] sm:$0xff]  ;;  %v7536_v40 = vld [vmem:[%s22578_s3 + $0x100] sm:$0xff] }
 0x78f   :  { %v5999_v58 = vpop.f32.mrb[114].mxu0 }
 0x790   :  { %v6003_v28 = vadd.f32 %v5999_v58, %v5923_v39  ;;  %v15143_v59 = vpop.f32.mrb[115].mxu0  ;;  %v22712_v39 = vpack.c.bf16 %v22710_v31, %v22711_v48  ;;  %v22714_v58 = vld [vmem:[#allocation14_spill] sm:$0xff] }
 0x791   :  { %v22716_v59 = vld [vmem:[#allocation17_spill] sm:$0xff]  ;;  %v7538_v31 = vld [vmem:[%s22578_s3 + $0x110] sm:$0xff] }
 0x792   :  { %v7541_v48 = vld [vmem:[%s22578_s3 + $0x128] sm:$0xff] }
 0x793   :  { %v6079_v27 = vpop.f32.mrb[116].mxu0 }
 0x794   :  { %v6083_v19 = vadd.f32 %v6079_v27, %v6003_v28  ;;  %v15150_v47 = vpop.f32.mrb[117].mxu0  ;;  %v22715_v28 = vpack.c.bf16 %v22713_v55, %v22714_v58  ;;  %v22717_v27 = vld [vmem:[#allocation16_spill] sm:$0xff]  ;;  %v7542_v58 = vld [vmem:[%s22578_s3 + $0x130] sm:$0xff] }
 0x795   :  { %v22719_v47 = vld [vmem:[#allocation19_spill] sm:$0xff] }
 0x796   :  { %v7543_v55 = vld [vmem:[%s22578_s3 + $0x138] sm:$0xff] }
 0x797   :  { %v6159_v46 = vpop.f32.mrb[118].mxu0 }
 0x798   :  { %v6163_v51 = vadd.f32 %v6159_v46, %v6083_v19  ;;  %v15157_v38 = vpop.f32.mrb[119].mxu0  ;;  %v22718_v19 = vpack.c.bf16 %v22716_v59, %v22717_v27  ;;  %v22720_v46 = vld [vmem:[#allocation18_spill] sm:$0xff]  ;;  %v7544_v59 = vld [vmem:[%s22578_s3 + $0x140] sm:$0xff]  ;;  %v7547_v27 = vld [vmem:[%s22578_s3 + $0x158] sm:$0xff] }
 0x799   :  { %v22722_v38 = vld [vmem:[#allocation21_spill] sm:$0xff] }
 0x79b   :  { %v6239_v44 = vpop.f32.mrb[120].mxu0 }
 0x79c   :  { %v6243_v16 = vadd.f32 %v6239_v44, %v6163_v51  ;;  %v15164_v0 = vpop.f32.mrb[121].mxu0  ;;  %v22721_v51 = vpack.c.bf16 %v22719_v47, %v22720_v46  ;;  %v22723_v44 = vld [vmem:[#allocation20_spill] sm:$0xff]  ;;  %v7549_v47 = vld [vmem:[%s22578_s3 + $0x168] sm:$0xff] }
 0x79d   :  { %v22725_v0 = vld [vmem:[#allocation23_spill] sm:$0xff]  ;;  %v7548_v46 = vld [vmem:[%s22578_s3 + $0x160] sm:$0xff] }
 0x79f   :  { %v6319_v4 = vpop.f32.mrb[122].mxu0 }
 0x7a0   :  { %v6323_v17 = vadd.f32 %v6319_v4, %v6243_v16  ;;  %v15171_v21 = vpop.f32.mrb[123].mxu0  ;;  %v22724_v16 = vpack.c.bf16 %v22722_v38, %v22723_v44  ;;  %v22726_v4 = vld [vmem:[#allocation22_spill] sm:$0xff] }
 0x7a1   :  { %v22728_v21 = vld [vmem:[#allocation27_spill] sm:$0xff]  ;;  %v7553_v44 = vld [vmem:[%s22578_s3 + $0x188] sm:$0xff] }
 0x7a2   :  { %v7550_v38 = vld [vmem:[%s22578_s3 + $0x170] sm:$0xff] }
 0x7a3   :  { %v6399_v20 = vpop.f32.mrb[124].mxu0 }
 0x7a4   :  { %v6403_v7 = vadd.f32 %v6399_v20, %v6323_v17  ;;  %v15178_v61 = vpop.f32.mrb[125].mxu0  ;;  %v22727_v17 = vpack.c.bf16 %v22725_v0, %v22726_v4  ;;  %v22729_v20 = vld [vmem:[#allocation24_spill] sm:$0xff]  ;;  %v7554_v4 = vld [vmem:[%s22578_s3 + $0x190] sm:$0xff] }
 0x7a5   :  { %v22731_v61 = vld [vmem:[#allocation25_spill] sm:$0xff]  ;;  %v7555_v0 = vld [vmem:[%s22578_s3 + $0x198] sm:$0xff] }
 0x7a7   :  { %v6479_v2 = vpop.f32.mrb[126].mxu0 }
 0x7a8   :  { %v6483_v42 = vadd.f32 %v6479_v2, %v6403_v7  ;;  %v15185_v62 = vpop.f32.mrb[127].mxu0  ;;  %v22730_v7 = vpack.c.bf16 %v22728_v21, %v22729_v20  ;;  %v22732_v2 = vld [vmem:[#allocation26_spill] sm:$0xff]  ;;  %v7556_v21 = vld [vmem:[%s22578_s3 + $0x1a0] sm:$0xff]  ;;  %v7559_v20 = vld [vmem:[%s22578_s3 + $0x1b8] sm:$0xff] }
 0x7a9   :  { %v7562_v62 = vld [vmem:[%s22578_s3 + $0x1d0] sm:$0xff] }
 0x7ab   :  { %v6559_v9 = vpop.f32.mrb[128].mxu0 }
 0x7ac   :  { %v6563_v33 = vadd.f32 %v6559_v9, %v6483_v42  ;;  %v15192_v54 = vpop.f32.mrb[129].mxu0  ;;  %v22733_v42 = vpack.c.bf16 %v22731_v61, %v22732_v2  ;;  %v7504_v9 = vld [vmem:[%s22578_s3] sm:$0xff]  ;;  %v7561_v61 = vld [vmem:[%s22578_s3 + $0x1c8] sm:$0xff] }
 0x7ad   :  { %v7506_v54 = vld [vmem:[%s22578_s3 + $0x10] sm:$0xff]  ;;  %v7560_v2 = vld [vmem:[%s22578_s3 + $0x1c0] sm:$0xff] }
 0x7af   :  { %v6639_v52 = vpop.f32.mrb[130].mxu0 }
 0x7b0   :  { %v6643_v30 = vadd.f32 %v6639_v52, %v6563_v33  ;;  %v15199_v56 = vpop.f32.mrb[131].mxu0  ;;  %v7507_v33 = vld [vmem:[%s22578_s3 + $0x18] sm:$0xff]  ;;  %v7509_v52 = vld [vmem:[%s22578_s3 + $0x28] sm:$0xff] }
 0x7b1   :  { %v7511_v56 = vld [vmem:[%s22578_s3 + $0x38] sm:$0xff] }
 0x7b3   :  { %v6719_v13 = vpop.f32.mrb[132].mxu0 }
 0x7b4   :  { %v6723_v8 = vadd.f32 %v6719_v13, %v6643_v30  ;;  %v15206_v43 = vpop.f32.mrb[133].mxu0  ;;  %v7508_v30 = vld [vmem:[%s22578_s3 + $0x20] sm:$0xff]  ;;  %v7510_v13 = vld [vmem:[%s22578_s3 + $0x30] sm:$0xff] }
 0x7b5   :  { %v7512_v43 = vld [vmem:[%s22578_s3 + $0x40] sm:$0xff] }
 0x7b7   :  { %v6799_v18 = vpop.f32.mrb[134].mxu0 }
 0x7b8   :  { %v6803_v53 = vadd.f32 %v6799_v18, %v6723_v8  ;;  %v15213_v36 = vpop.f32.mrb[135].mxu0  ;;  %v7513_v8 = vld [vmem:[%s22578_s3 + $0x48] sm:$0xff]  ;;  %v7515_v18 = vld [vmem:[%s22578_s3 + $0x58] sm:$0xff] }
 0x7b9   :  { %v7517_v36 = vld [vmem:[%s22578_s3 + $0x68] sm:$0xff] }
 0x7bb   :  { %v6879_v6 = vpop.f32.mrb[136].mxu0 }
 0x7bc   :  { %v6883_v35 = vadd.f32 %v6879_v6, %v6803_v53  ;;  %v15220_v50 = vpop.f32.mrb[137].mxu0  ;;  %v7514_v53 = vld [vmem:[%s22578_s3 + $0x50] sm:$0xff]  ;;  %v7516_v6 = vld [vmem:[%s22578_s3 + $0x60] sm:$0xff] }
 0x7bd   :  { %v7518_v50 = vld [vmem:[%s22578_s3 + $0x70] sm:$0xff] }
 0x7bf   :  { %v6959_v12 = vpop.f32.mrb[138].mxu0 }
 0x7c0   :  { %v6963_v32 = vadd.f32 %v6959_v12, %v6883_v35  ;;  %v15227_v24 = vpop.f32.mrb[139].mxu0  ;;  %v7519_v35 = vld [vmem:[%s22578_s3 + $0x78] sm:$0xff]  ;;  %v7521_v12 = vld [vmem:[%s22578_s3 + $0x88] sm:$0xff] }
 0x7c1   :  { %v7523_v24 = vld [vmem:[%s22578_s3 + $0x98] sm:$0xff] }
 0x7c3   :  { %v7039_v1 = vpop.f32.mrb[140].mxu0 }
 0x7c4   :  { %v7043_v25 = vadd.f32 %v7039_v1, %v6963_v32  ;;  %v15234_v5 = vpop.f32.mrb[141].mxu0  ;;  %v7520_v32 = vld [vmem:[%s22578_s3 + $0x80] sm:$0xff]  ;;  %v7525_v1 = vld [vmem:[%s22578_s3 + $0xa8] sm:$0xff] }
 0x7c5   :  { %v7527_v5 = vld [vmem:[%s22578_s3 + $0xb8] sm:$0xff] }
 0x7c6   :  { %v7044_v41 = vadd.f32 %v7043_v25, %v209_v49  ;;  %v7522_v49 = vld [vmem:[%s22578_s3 + $0x90] sm:$0xff]  ;;  %v7524_v25 = vld [vmem:[%s22578_s3 + $0xa0] sm:$0xff] }
 0x7c8   :  { %v7045_v23 = vmax.f32 %v7044_v41, 0.0  ;;  %v7526_v41 = vld [vmem:[%s22578_s3 + $0xb0] sm:$0xff] }
 0x7ca   :  { %15244 = vmatmul.mubr.msk.f32.vlgmr.msra.gmra.mrb[142].mxu0 %vm7046_vm13, %v7045_v23  ;;  %v7529_v23 = vld [vmem:[%s22578_s3 + $0xc8] sm:$0xff] }
 0x7cb   :  { %16001 = vmatpush1.bf16.msra.mxu0 %v22703_v63  ;;  %13207 = vmatprep.mubr.msk.f32.mxu0 %vm2241_vm7, %v7505_v37  ;;  %v7528_v37 = vld [vmem:[%s22578_s3 + $0xc0] sm:$0xff]  ;;  %v7533_v63 = vld [vmem:[%s22578_s3 + $0xe8] sm:$0xff] }
 0x7cc   :  { %16002 = vmatprep.subr.bf16.mxu0 %v22632_v34 }
 0x7cf   :  { %16004 = vmatpush1.bf16.msra.mxu0 %v22706_v57  ;;  %v7534_v57 = vld [vmem:[%s22578_s3 + $0xf0] sm:$0xff] }
 0x7d0   :  { %16005 = vmatprep.subr.bf16.mxu0 %v22632_v34 }
 0x7d3   :  { %16007 = vmatpush1.bf16.msra.mxu0 %v22709_v29  ;;  %v7539_v29 = vld [vmem:[%s22578_s3 + $0x118] sm:$0xff] }
 0x7d4   :  { %16008 = vmatprep.subr.bf16.mxu0 %v22632_v34 }
 0x7d7   :  { %16010 = vmatpush1.bf16.msra.mxu0 %v22712_v39  ;;  %v7540_v39 = vld [vmem:[%s22578_s3 + $0x120] sm:$0xff] }
 0x7d8   :  { %16011 = vmatprep.subr.bf16.mxu0 %v22632_v34 }
 0x7db   :  { %16013 = vmatpush1.bf16.msra.mxu0 %v22715_v28  ;;  %v7545_v28 = vld [vmem:[%s22578_s3 + $0x148] sm:$0xff] }
 0x7dc   :  { %16014 = vmatprep.subr.bf16.mxu0 %v22632_v34 }
 0x7df   :  { %16016 = vmatpush1.bf16.msra.mxu0 %v22718_v19  ;;  %v7546_v19 = vld [vmem:[%s22578_s3 + $0x150] sm:$0xff] }
 0x7e0   :  { %16017 = vmatprep.subr.bf16.mxu0 %v22632_v34 }
 0x7e3   :  { %16019 = vmatpush1.bf16.msra.mxu0 %v22721_v51  ;;  %v7551_v51 = vld [vmem:[%s22578_s3 + $0x178] sm:$0xff] }
 0x7e4   :  { %16020 = vmatprep.subr.bf16.mxu0 %v22632_v34 }
 0x7e7   :  { %16022 = vmatpush1.bf16.msra.mxu0 %v22724_v16  ;;  %v7552_v16 = vld [vmem:[%s22578_s3 + $0x180] sm:$0xff] }
 0x7e8   :  { %16023 = vmatprep.subr.bf16.mxu0 %v22632_v34 }
 0x7eb   :  { %16025 = vmatpush1.bf16.msra.mxu0 %v22727_v17  ;;  %v7557_v17 = vld [vmem:[%s22578_s3 + $0x1a8] sm:$0xff] }
 0x7ec   :  { %16026 = vmatprep.subr.bf16.mxu0 %v22632_v34 }
 0x7ef   :  { %16028 = vmatpush1.bf16.msra.mxu0 %v22730_v7  ;;  %v7558_v7 = vld [vmem:[%s22578_s3 + $0x1b0] sm:$0xff] }
 0x7f0   :  { %16029 = vmatprep.subr.bf16.mxu0 %v22632_v34 }
 0x7f3   :  { %16032 = vmatpush1.bf16.msk.msra.mxu0 %vm16722_vm2, %v22733_v42  ;;  %v7563_v42 = vld [vmem:[%s22578_s3 + $0x1d8] sm:$0xff] }
 0x7f4   :  { %16069 = vmatprep.subr.bf16.mxu0 %v22632_v34 }
 0x7f6   :  { %8222 = vmatmul.mubr.f32.vlgmr.msra.gmra.mrb[144].mxu0 %v7504_v9  ;;  %v7565_v9 = vld [vmem:[%s22578_s3 + $0x1e8] sm:$0xff] }
 0x7f7   :  { %13208 = vmatprep.mubr.msk.f32.mxu0 %vm2241_vm7, %v7507_v33  ;;  %v7564_v33 = vld [vmem:[%s22578_s3 + $0x1e0] sm:$0xff] }
 0x7fa   :  { %8227 = vmatmul.mubr.f32.gmra.mrb[146].mxu0 %v7506_v54  ;;  %v7567_v54 = vld [vmem:[%s22578_s3 + $0x1f8] sm:$0xff] }
 0x7fb   :  { %13209 = vmatprep.mubr.msk.f32.mxu0 %vm2241_vm7, %v7509_v52  ;;  %v7566_v52 = vld [vmem:[%s22578_s3 + $0x1f0] sm:$0xff] }
 0x7fe   :  { %8232 = vmatmul.mubr.f32.gmra.mrb[148].mxu0 %v7508_v30  ;;  %v7569_v30 = vld [vmem:[%s22578_s3 + $0x208] sm:$0xff] }
 0x7ff   :  { %13210 = vmatprep.mubr.msk.f32.mxu0 %vm2241_vm7, %v7511_v56  ;;  %v7568_v56 = vld [vmem:[%s22578_s3 + $0x200] sm:$0xff] }
 0x802   :  { %8237 = vmatmul.mubr.f32.gmra.mrb[150].mxu0 %v7510_v13  ;;  %v7571_v13 = vld [vmem:[%s22578_s3 + $0x218] sm:$0xff] }
 0x803   :  { %13211 = vmatprep.mubr.msk.f32.mxu0 %vm2241_vm7, %v7513_v8  ;;  %v7570_v8 = vld [vmem:[%s22578_s3 + $0x210] sm:$0xff] }
 0x806   :  { %8242 = vmatmul.mubr.f32.gmra.mrb[152].mxu0 %v7512_v43  ;;  %v7573_v43 = vld [vmem:[%s22578_s3 + $0x228] sm:$0xff] }
 0x807   :  { %13212 = vmatprep.mubr.msk.f32.mxu0 %vm2241_vm7, %v7515_v18  ;;  %v7572_v18 = vld [vmem:[%s22578_s3 + $0x220] sm:$0xff] }
 0x80a   :  { %8247 = vmatmul.mubr.f32.gmra.mrb[154].mxu0 %v7514_v53  ;;  %v7575_v53 = vld [vmem:[%s22578_s3 + $0x238] sm:$0xff] }
 0x80b   :  { %13213 = vmatprep.mubr.msk.f32.mxu0 %vm2241_vm7, %v7517_v36  ;;  %v13320_v36 = vld [vmem:[%s22579_s4 + $0x10] sm:$0xff] }
 0x80e   :  { %8252 = vmatmul.mubr.f32.gmra.mrb[156].mxu0 %v7516_v6  ;;  %v13321_v6 = vld [vmem:[%s22579_s4 + $0x18] sm:$0x3] }
 0x80f   :  { %13214 = vmatprep.mubr.msk.f32.mxu0 %vm2241_vm7, %v7519_v35  ;;  %v16034_v35 = vpack.c.bf16 %v13321_v6, %v13320_v36  ;;  %v7618_v6 = vld [vmem:[%s22578_s3 + $0x390] sm:$0xff] }
 0x811   :  { %16036 = vmatpush3.bf16.msk.msra.mxu1 %vm18721_vm10, %v16034_v35  ;;  %v7621_v35 = vld [vmem:[%s22578_s3 + $0x3a8] sm:$0xff] }
 0x812   :  { %8257 = vmatmul.mubr.f32.gmra.mrb[158].mxu0 %v7518_v50  ;;  %v7574_v50 = vld [vmem:[%s22578_s3 + $0x230] sm:$0xff]  ;;  %16037 = vmatprep.subr.bf16.mxu1 %v22632_v34 }
 0x813   :  { %13215 = vmatprep.mubr.msk.f32.mxu0 %vm2241_vm7, %v7521_v12  ;;  %v7577_v12 = vld [vmem:[%s22578_s3 + $0x248] sm:$0xff] }
 0x816   :  { %8262 = vmatmul.mubr.f32.gmra.mrb[160].mxu0 %v7520_v32  ;;  %v7576_v32 = vld [vmem:[%s22578_s3 + $0x240] sm:$0xff] }
 0x817   :  { %13216 = vmatprep.mubr.msk.f32.mxu0 %vm2241_vm7, %v7523_v24  ;;  %v7579_v24 = vld [vmem:[%s22578_s3 + $0x258] sm:$0xff] }
 0x81a   :  { %8267 = vmatmul.mubr.f32.gmra.mrb[162].mxu0 %v7522_v49  ;;  %v7578_v49 = vld [vmem:[%s22578_s3 + $0x250] sm:$0xff] }
 0x81b   :  { %13217 = vmatprep.mubr.msk.f32.mxu0 %vm2241_vm7, %v7525_v1  ;;  %v7581_v1 = vld [vmem:[%s22578_s3 + $0x268] sm:$0xff] }
 0x81e   :  { %8272 = vmatmul.mubr.f32.gmra.mrb[164].mxu0 %v7524_v25  ;;  %v7580_v25 = vld [vmem:[%s22578_s3 + $0x260] sm:$0xff] }
 0x81f   :  { %13218 = vmatprep.mubr.msk.f32.mxu0 %vm2241_vm7, %v7527_v5  ;;  %v7583_v5 = vld [vmem:[%s22578_s3 + $0x278] sm:$0xff] }
 0x822   :  { %8277 = vmatmul.mubr.f32.gmra.mrb[166].mxu0 %v7526_v41  ;;  %v7582_v41 = vld [vmem:[%s22578_s3 + $0x270] sm:$0xff] }
 0x823   :  { %13219 = vmatprep.mubr.msk.f32.mxu0 %vm2241_vm7, %v7529_v23  ;;  %v7585_v23 = vld [vmem:[%s22578_s3 + $0x288] sm:$0xff] }
 0x826   :  { %8282 = vmatmul.mubr.f32.gmra.mrb[168].mxu0 %v7528_v37  ;;  %v7584_v37 = vld [vmem:[%s22578_s3 + $0x280] sm:$0xff] }
 0x827   :  { %13220 = vmatprep.mubr.msk.f32.mxu0 %vm2241_vm7, %v7531_v10  ;;  %v7587_v10 = vld [vmem:[%s22578_s3 + $0x298] sm:$0xff] }
 0x82a   :  { %8287 = vmatmul.mubr.f32.gmra.mrb[170].mxu0 %v7530_v22  ;;  %v7586_v22 = vld [vmem:[%s22578_s3 + $0x290] sm:$0xff] }
 0x82b   :  { %13221 = vmatprep.mubr.msk.f32.mxu0 %vm2241_vm7, %v7533_v63  ;;  %v7589_v63 = vld [vmem:[%s22578_s3 + $0x2a8] sm:$0xff] }
 0x82e   :  { %8292 = vmatmul.mubr.f32.gmra.mrb[172].mxu0 %v7532_v45  ;;  %v214_v45 = vld [vmem:[%s22584_s9] sm:$0x1] }
 0x82f   :  { %13222 = vmatprep.mubr.msk.f32.mxu0 %vm2241_vm7, %v7535_v15  ;;  %v7588_v15 = vld [vmem:[%s22578_s3 + $0x2a0] sm:$0xff] }
 0x832   :  { %8297 = vmatmul.mubr.f32.gmra.mrb[174].mxu0 %v7534_v57  ;;  %v7591_v57 = vld [vmem:[%s22578_s3 + $0x2b8] sm:$0xff] }
 0x833   :  { %13223 = vmatprep.mubr.msk.f32.mxu0 %vm2241_vm7, %v7537_v3 }
 0x836   :  { %8302 = vmatmul.mubr.f32.gmra.mrb[176].mxu0 %v7536_v40 }
 0x837   :  { %13224 = vmatprep.mubr.msk.f32.mxu0 %vm2241_vm7, %v7539_v29 }
 0x83a   :  { %8307 = vmatmul.mubr.f32.gmra.mrb[178].mxu0 %v7538_v31  ;;  %v7590_v31 = vld [vmem:[%s22578_s3 + $0x2b0] sm:$0xff] }
 0x83b   :  { %13225 = vmatprep.mubr.msk.f32.mxu0 %vm2241_vm7, %v7541_v48 }
 0x83e   :  { %8312 = vmatmul.mubr.f32.gmra.mrb[180].mxu0 %v7540_v39  ;;  %v7593_v39 = vld [vmem:[%s22578_s3 + $0x2c8] sm:$0xff] }
 0x83f   :  { %13226 = vmatprep.mubr.msk.f32.mxu0 %vm2241_vm7, %v7543_v55  ;;  %v7592_v55 = vld [vmem:[%s22578_s3 + $0x2c0] sm:$0xff] }
 0x842   :  { %8317 = vmatmul.mubr.f32.gmra.mrb[182].mxu0 %v7542_v58  ;;  %v7595_v58 = vld [vmem:[%s22578_s3 + $0x2d8] sm:$0xff] }
 0x843   :  { %13227 = vmatprep.mubr.msk.f32.mxu0 %vm2241_vm7, %v7545_v28  ;;  %v7594_v28 = vld [vmem:[%s22578_s3 + $0x2d0] sm:$0xff] }
 0x846   :  { %8322 = vmatmul.mubr.f32.gmra.mrb[184].mxu0 %v7544_v59  ;;  %v7597_v59 = vld [vmem:[%s22578_s3 + $0x2e8] sm:$0xff] }
 0x847   :  { %13228 = vmatprep.mubr.msk.f32.mxu0 %vm2241_vm7, %v7547_v27  ;;  %v7596_v27 = vld [vmem:[%s22578_s3 + $0x2e0] sm:$0xff] }
 0x84a   :  { %8327 = vmatmul.mubr.f32.gmra.mrb[186].mxu0 %v7546_v19  ;;  %v7599_v19 = vld [vmem:[%s22578_s3 + $0x2f8] sm:$0xff] }
 0x84b   :  { %13229 = vmatprep.mubr.msk.f32.mxu0 %vm2241_vm7, %v7549_v47  ;;  %v7598_v47 = vld [vmem:[%s22578_s3 + $0x2f0] sm:$0xff] }
 0x84e   :  { %8332 = vmatmul.mubr.f32.gmra.mrb[188].mxu0 %v7548_v46  ;;  %v7601_v46 = vld [vmem:[%s22578_s3 + $0x308] sm:$0xff] }
 0x84f   :  { %13230 = vmatprep.mubr.msk.f32.mxu0 %vm2241_vm7, %v7551_v51  ;;  %v7600_v51 = vld [vmem:[%s22578_s3 + $0x300] sm:$0xff] }
 0x852   :  { %8337 = vmatmul.mubr.f32.gmra.mrb[190].mxu0 %v7550_v38  ;;  %v7603_v38 = vld [vmem:[%s22578_s3 + $0x318] sm:$0xff] }
 0x853   :  { %13231 = vmatprep.mubr.msk.f32.mxu0 %vm2241_vm7, %v7553_v44  ;;  %v7602_v44 = vld [vmem:[%s22578_s3 + $0x310] sm:$0xff] }
 0x856   :  { %8342 = vmatmul.mubr.f32.gmra.mrb[192].mxu0 %v7552_v16  ;;  %v7605_v16 = vld [vmem:[%s22578_s3 + $0x328] sm:$0xff] }
 0x857   :  { %13232 = vmatprep.mubr.msk.f32.mxu0 %vm2241_vm7, %v7555_v0  ;;  %v7604_v0 = vld [vmem:[%s22578_s3 + $0x320] sm:$0xff] }
 0x85a   :  { %8347 = vmatmul.mubr.f32.gmra.mrb[194].mxu0 %v7554_v4  ;;  %v7607_v4 = vld [vmem:[%s22578_s3 + $0x338] sm:$0xff] }
 0x85b   :  { %13233 = vmatprep.mubr.msk.f32.mxu0 %vm2241_vm7, %v7557_v17  ;;  %v7606_v17 = vld [vmem:[%s22578_s3 + $0x330] sm:$0xff] }
 0x85e   :  { %8352 = vmatmul.mubr.f32.gmra.mrb[196].mxu0 %v7556_v21  ;;  %v7609_v21 = vld [vmem:[%s22578_s3 + $0x348] sm:$0xff] }
 0x85f   :  { %13234 = vmatprep.mubr.msk.f32.mxu0 %vm2241_vm7, %v7559_v20  ;;  %v7608_v20 = vld [vmem:[%s22578_s3 + $0x340] sm:$0xff] }
 0x862   :  { %8357 = vmatmul.mubr.f32.gmra.mrb[198].mxu0 %v7558_v7  ;;  %v7611_v7 = vld [vmem:[%s22578_s3 + $0x358] sm:$0xff] }
 0x863   :  { %13235 = vmatprep.mubr.msk.f32.mxu0 %vm2241_vm7, %v7561_v61  ;;  %v7610_v61 = vld [vmem:[%s22578_s3 + $0x350] sm:$0xff] }
 0x866   :  { %8362 = vmatmul.mubr.f32.gmra.mrb[200].mxu0 %v7560_v2  ;;  %v7613_v2 = vld [vmem:[%s22578_s3 + $0x368] sm:$0xff] }
 0x867   :  { %13236 = vmatprep.mubr.msk.f32.mxu0 %vm2241_vm7, %v7563_v42 }
 0x86a   :  { %8367 = vmatmul.mubr.f32.gmra.mrb[202].mxu0 %v7562_v62 }
 0x86b   :  { %13237 = vmatprep.mubr.msk.f32.mxu0 %vm2241_vm7, %v7565_v9  ;;  %v7612_v9 = vld [vmem:[%s22578_s3 + $0x360] sm:$0xff] }
 0x86e   :  { %8372 = vmatmul.mubr.f32.gmra.mrb[204].mxu0 %v7564_v33  ;;  %v7615_v33 = vld [vmem:[%s22578_s3 + $0x378] sm:$0xff] }
 0x86f   :  { %13238 = vmatprep.mubr.msk.f32.mxu0 %vm2241_vm7, %v7567_v54 }
 0x872   :  { %8377 = vmatmul.mubr.f32.gmra.mrb[206].mxu0 %v7566_v52 }
 0x873   :  { %13239 = vmatprep.mubr.msk.f32.mxu0 %vm2241_vm7, %v7569_v30  ;;  %v7614_v30 = vld [vmem:[%s22578_s3 + $0x370] sm:$0xff] }
 0x876   :  { %8382 = vmatmul.mubr.f32.gmra.mrb[208].mxu0 %v7568_v56  ;;  %v7617_v56 = vld [vmem:[%s22578_s3 + $0x388] sm:$0xff] }
 0x877   :  { %13240 = vmatprep.mubr.msk.f32.mxu0 %vm2241_vm7, %v7571_v13 }
 0x87a   :  { %8387 = vmatmul.mubr.f32.gmra.mrb[210].mxu0 %v7570_v8 }
 0x87b   :  { %13241 = vmatprep.mubr.msk.f32.mxu0 %vm2241_vm7, %v7573_v43  ;;  %v7616_v43 = vld [vmem:[%s22578_s3 + $0x380] sm:$0xff] }
 0x87e   :  { %8392 = vmatmul.mubr.f32.gmra.mrb[212].mxu0 %v7572_v18  ;;  %v7619_v18 = vld [vmem:[%s22578_s3 + $0x398] sm:$0xff] }
 0x87f   :  { %13242 = vmatprep.mubr.msk.f32.mxu0 %vm2241_vm7, %v7575_v53 }
 0x882   :  { %8397 = vmatmul.mubr.f32.gmra.mrb[214].mxu0 %v7574_v50 }
 0x883   :  { %13243 = vmatprep.mubr.msk.f32.mxu0 %vm2241_vm7, %v7577_v12 }
 0x886   :  { %8402 = vmatmul.mubr.f32.gmra.mrb[216].mxu0 %v7576_v32  ;;  %v7620_v32 = vld [vmem:[%s22578_s3 + $0x3a0] sm:$0xff] }
 0x887   :  { %13244 = vmatprep.mubr.msk.f32.mxu0 %vm2241_vm7, %v7579_v24  ;;  %v7623_v24 = vld [vmem:[%s22578_s3 + $0x3b8] sm:$0xff] }
 0x88a   :  { %8407 = vmatmul.mubr.f32.gmra.mrb[218].mxu0 %v7578_v49 }
 0x88b   :  { %13245 = vmatprep.mubr.msk.f32.mxu0 %vm2241_vm7, %v7581_v1 }
 0x88e   :  { %8412 = vmatmul.mubr.f32.gmra.mrb[220].mxu0 %v7580_v25  ;;  %v7622_v25 = vld [vmem:[%s22578_s3 + $0x3b0] sm:$0xff] }
 0x88f   :  { %13246 = vmatprep.mubr.msk.f32.mxu0 %vm2241_vm7, %v7583_v5  ;;  %v7625_v5 = vld [vmem:[%s22578_s3 + $0x3c8] sm:$0xff] }
 0x892   :  { %8417 = vmatmul.mubr.f32.gmra.mrb[222].mxu0 %v7582_v41 }
 0x893   :  { %13247 = vmatprep.mubr.msk.f32.mxu0 %vm2241_vm7, %v7585_v23 }
 0x896   :  { %8422 = vmatmul.mubr.f32.gmra.mrb[224].mxu0 %v7584_v37  ;;  %v7624_v37 = vld [vmem:[%s22578_s3 + $0x3c0] sm:$0xff] }
 0x897   :  { %13248 = vmatprep.mubr.msk.f32.mxu0 %vm2241_vm7, %v7587_v10  ;;  %v7627_v10 = vld [vmem:[%s22578_s3 + $0x3d8] sm:$0xff] }
 0x89a   :  { %8427 = vmatmul.mubr.f32.gmra.mrb[226].mxu0 %v7586_v22 }
 0x89b   :  { %13249 = vmatprep.mubr.msk.f32.mxu0 %vm2241_vm7, %v7589_v63 }
 0x89d   :  { %v7116_v3 = vpop.f32.mrb[142].mxu0 }
 0x89e   :  { %v20946_v40 = vadd.f32 %v7116_v3, %v214_v45  ;;  %v15245_v29 = vpop.f32.mrb[143].mxu0  ;;  %8432 = vmatmul.mubr.f32.gmra.mrb[228].mxu0 %v7588_v15  ;;  %v7626_v45 = vld [vmem:[%s22578_s3 + $0x3d0] sm:$0xff]  ;;  %v7629_v15 = vld [vmem:[%s22578_s3 + $0x3e8] sm:$0xff] }
 0x89f   :  { %13250 = vmatprep.mubr.msk.f32.mxu0 %vm2241_vm7, %v7591_v57  ;;  %v7628_v29 = vld [vmem:[%s22578_s3 + $0x3e0] sm:$0xff] }
 0x8a0   :  { %v7121_v48 = vsel %vm7120_vm14, %v20946_v40, -inf }
 0x8a1   :  { %7122 = vmax.xlane.f32.xlu0 %v7121_v48 }
 0x8a2   :  { %8437 = vmatmul.mubr.f32.gmra.mrb[230].mxu0 %v7590_v31  ;;  %v7631_v31 = vld [vmem:[%s22578_s3 + $0x3f8] sm:$0xff] }
 0x8a3   :  { %13251 = vmatprep.mubr.msk.f32.mxu0 %vm2241_vm7, %v7593_v39 }
 0x8a6   :  { %8442 = vmatmul.mubr.f32.gmra.mrb[232].mxu0 %v7592_v55  ;;  %v7630_v55 = vld [vmem:[%s22578_s3 + $0x3f0] sm:$0xff] }
 0x8a7   :  { %13252 = vmatprep.mubr.msk.f32.mxu0 %vm2241_vm7, %v7595_v58  ;;  %v7633_v58 = vld [vmem:[%s22578_s3 + $0x408] sm:$0xff] }
 0x8aa   :  { %8447 = vmatmul.mubr.f32.gmra.mrb[234].mxu0 %v7594_v28 }
 0x8ab   :  { %13253 = vmatprep.mubr.msk.f32.mxu0 %vm2241_vm7, %v7597_v59 }
 0x8ae   :  { %8452 = vmatmul.mubr.f32.gmra.mrb[236].mxu0 %v7596_v27  ;;  %v7632_v27 = vld [vmem:[%s22578_s3 + $0x400] sm:$0xff] }
 0x8af   :  { %13254 = vmatprep.mubr.msk.f32.mxu0 %vm2241_vm7, %v7599_v19  ;;  %v7635_v19 = vld [vmem:[%s22578_s3 + $0x418] sm:$0xff] }
 0x8b2   :  { %8457 = vmatmul.mubr.f32.gmra.mrb[238].mxu0 %v7598_v47 }
 0x8b3   :  { %13255 = vmatprep.mubr.msk.f32.mxu0 %vm2241_vm7, %v7601_v46 }
 0x8b6   :  { %8462 = vmatmul.mubr.f32.gmra.mrb[240].mxu0 %v7600_v51  ;;  %v7634_v51 = vld [vmem:[%s22578_s3 + $0x410] sm:$0xff] }
 0x8b7   :  { %13256 = vmatprep.mubr.msk.f32.mxu0 %vm2241_vm7, %v7603_v38  ;;  %v7637_v38 = vld [vmem:[%s22578_s3 + $0x428] sm:$0xff] }
 0x8ba   :  { %8467 = vmatmul.mubr.f32.gmra.mrb[242].mxu0 %v7602_v44 }
 0x8bb   :  { %13257 = vmatprep.mubr.msk.f32.mxu0 %vm2241_vm7, %v7605_v16 }
 0x8be   :  { %8472 = vmatmul.mubr.f32.gmra.mrb[244].mxu0 %v7604_v0  ;;  %v8787_v0 = vld [vmem:[%s22579_s4] sm:$0xff] }
 0x8bf   :  { %13258 = vmatprep.mubr.msk.f32.mxu0 %vm2241_vm7, %v7607_v4  ;;  %v8788_v4 = vld [vmem:[%s22579_s4 + $0x8] sm:$0x3] }
 0x8c2   :  { %8477 = vmatmul.mubr.f32.gmra.mrb[246].mxu0 %v7606_v17  ;;  %v7636_v17 = vld [vmem:[%s22578_s3 + $0x420] sm:$0xff] }
 0x8c3   :  { %13259 = vmatprep.mubr.msk.f32.mxu0 %vm2241_vm7, %v7609_v21  ;;  %v7639_v21 = vld [vmem:[%s22578_s3 + $0x438] sm:$0xff] }
 0x8c6   :  { %8482 = vmatmul.mubr.f32.gmra.mrb[248].mxu0 %v7608_v20 }
 0x8c7   :  { %13260 = vmatprep.mubr.msk.f32.mxu0 %vm2241_vm7, %v7611_v7 }
 0x8c9   :  { %v21027_v42 = vpop.f32.mrb[144].mxu0 }
 0x8ca   :  { %v8225_v62 = vpop.f32.mrb[145].mxu0  ;;  %8487 = vmatmul.mubr.f32.gmra.mrb[250].mxu0 %v7610_v61 }
 0x8cb   :  { %13261 = vmatprep.mubr.msk.f32.mxu0 %vm2241_vm7, %v7613_v2  ;;  %v16038_v62 = vpack.c.bf16 %v8788_v4, %v8787_v0  ;;  %v7650_v4 = vld [vmem:[%s22578_s3 + $0x490] sm:$0xff] }
 0x8cd   :  { %v21036_v54 = vpop.f32.mrb[146].mxu0 }
 0x8ce   :  { %v8230_v52 = vpop.f32.mrb[147].mxu0  ;;  %8492 = vmatmul.mubr.f32.gmra.mrb[252].mxu0 %v7612_v9 }
 0x8cf   :  { %13262 = vmatprep.mubr.msk.f32.mxu0 %vm2241_vm7, %v7615_v33  ;;  %v7638_v33 = vld [vmem:[%s22578_s3 + $0x430] sm:$0xff] }
 0x8d1   :  { %v21045_v13 = vpop.f32.mrb[148].mxu0 }
 0x8d2   :  { %v8235_v8 = vpop.f32.mrb[149].mxu0  ;;  %8497 = vmatmul.mubr.f32.gmra.mrb[254].mxu0 %v7614_v30  ;;  %v7641_v30 = vld [vmem:[%s22578_s3 + $0x448] sm:$0xff] }
 0x8d3   :  { %13263 = vmatprep.mubr.msk.f32.mxu0 %vm2241_vm7, %v7617_v56 }
 0x8d5   :  { %v21054_v53 = vpop.f32.mrb[150].mxu0 }
 0x8d6   :  { %v8240_v36 = vpop.f32.mrb[151].mxu0  ;;  %8502 = vmatmul.mubr.f32.gmra.mrb[0].mxu0 %v7616_v43 }
 0x8d7   :  { %13264 = vmatprep.mubr.msk.f32.mxu0 %vm2241_vm7, %v7619_v18  ;;  %v7640_v18 = vld [vmem:[%s22578_s3 + $0x440] sm:$0xff] }
 0x8d9   :  { %v21063_v50 = vpop.f32.mrb[152].mxu0 }
 0x8da   :  { %v8245_v12 = vpop.f32.mrb[153].mxu0  ;;  %8507 = vmatmul.mubr.f32.gmra.mrb[2].mxu0 %v7618_v6  ;;  %v7643_v6 = vld [vmem:[%s22578_s3 + $0x458] sm:$0xff] }
 0x8db   :  { %13265 = vmatprep.mubr.msk.f32.mxu0 %vm2241_vm7, %v7621_v35 }
 0x8dd   :  { %v21072_v49 = vpop.f32.mrb[154].mxu0 }
 0x8de   :  { %v8250_v1 = vpop.f32.mrb[155].mxu0  ;;  %8512 = vmatmul.mubr.f32.gmra.mrb[4].mxu0 %v7620_v32 }
 0x8df   :  { %13266 = vmatprep.mubr.msk.f32.mxu0 %vm2241_vm7, %v7623_v24  ;;  %v7642_v24 = vld [vmem:[%s22578_s3 + $0x450] sm:$0xff] }
 0x8e1   :  { %v21081_v41 = vpop.f32.mrb[156].mxu0 }
 0x8e2   :  { %v8255_v23 = vpop.f32.mrb[157].mxu0  ;;  %8517 = vmatmul.mubr.f32.gmra.mrb[6].mxu0 %v7622_v25  ;;  %v7645_v25 = vld [vmem:[%s22578_s3 + $0x468] sm:$0xff] }
 0x8e3   :  { %13267 = vmatprep.mubr.msk.f32.mxu0 %vm2241_vm7, %v7625_v5 }
 0x8e5   :  { %v21090_v22 = vpop.f32.mrb[158].mxu0 }
 0x8e6   :  { %v8260_v63 = vpop.f32.mrb[159].mxu0  ;;  %8522 = vmatmul.mubr.f32.gmra.mrb[8].mxu0 %v7624_v37 }
 0x8e7   :  { %13268 = vmatprep.mubr.msk.f32.mxu0 %vm2241_vm7, %v7627_v10  ;;  %v7644_v10 = vld [vmem:[%s22578_s3 + $0x460] sm:$0xff] }
 0x8e9   :  { %v21099_v57 = vpop.f32.mrb[160].mxu0 }
 0x8ea   :  { %v8265_v3 = vpop.f32.mrb[161].mxu0  ;;  %8527 = vmatmul.mubr.f32.gmra.mrb[10].mxu0 %v7626_v45  ;;  %v7647_v45 = vld [vmem:[%s22578_s3 + $0x478] sm:$0xff] }
 0x8eb   :  { %13269 = vmatprep.mubr.msk.f32.mxu0 %vm2241_vm7, %v7629_v15 }
 0x8ed   :  { %v21108_v48 = vpop.f32.mrb[162].mxu0 }
 0x8ee   :  { %v8270_v39 = vpop.f32.mrb[163].mxu0  ;;  %8532 = vmatmul.mubr.f32.gmra.mrb[12].mxu0 %v7628_v29 }
 0x8ef   :  { %13270 = vmatprep.mubr.msk.f32.mxu0 %vm2241_vm7, %v7631_v31  ;;  %v7646_v31 = vld [vmem:[%s22578_s3 + $0x470] sm:$0xff] }
 0x8f1   :  { %v21117_v28 = vpop.f32.mrb[164].mxu0 }
 0x8f2   :  { %v8275_v59 = vpop.f32.mrb[165].mxu0  ;;  %8537 = vmatmul.mubr.f32.gmra.mrb[14].mxu0 %v7630_v55  ;;  %v7649_v55 = vld [vmem:[%s22578_s3 + $0x488] sm:$0xff] }
 0x8f3   :  { %13271 = vmatprep.mubr.msk.f32.mxu0 %vm2241_vm7, %v7633_v58 }
 0x8f5   :  { %v21126_v47 = vpop.f32.mrb[166].mxu0 }
 0x8f6   :  { %v8280_v46 = vpop.f32.mrb[167].mxu0  ;;  %8542 = vmatmul.mubr.f32.gmra.mrb[16].mxu0 %v7632_v27 }
 0x8f7   :  { %13272 = vmatprep.mubr.msk.f32.mxu0 %vm2241_vm7, %v7635_v19  ;;  %v7648_v19 = vld [vmem:[%s22578_s3 + $0x480] sm:$0xff] }
 0x8f9   :  { %v21135_v44 = vpop.f32.mrb[168].mxu0 }
 0x8fa   :  { %v8285_v16 = vpop.f32.mrb[169].mxu0  ;;  %8547 = vmatmul.mubr.f32.gmra.mrb[18].mxu0 %v7634_v51  ;;  %v8804_v7 = vrot.slane %v21135_v44, 4  ;;  %v7651_v51 = vld [vmem:[%s22578_s3 + $0x498] sm:$0xff] }
 0x8fb   :  { %13273 = vmatprep.mubr.msk.f32.mxu0 %vm2241_vm7, %v7637_v38 }
 0x8fd   :  { %v8288_v20 = vpop.f32.mrb[170].mxu0 }
 0x8fe   :  { %v8805_v61 = vrot.slane %v8288_v20, 4  ;;  %v8290_v2 = vpop.f32.mrb[171].mxu0  ;;  %8552 = vmatmul.mubr.f32.gmra.mrb[20].mxu0 %v7636_v17 }
 0x8ff   :  { %13274 = vmatprep.mubr.msk.f32.mxu0 %vm2241_vm7, %v7639_v21  ;;  %v7653_v21 = vld [vmem:[%s22578_s3 + $0x4a8] sm:$0xff]  ;;  %v7652_v2 = vld [vmem:[%s22578_s3 + $0x4a0] sm:$0xff] }
 0x900   :  { %v8806_v9 = vsel %vm3232_vm11, %v8804_v7, %v8805_v61 }
 0x901   :  { %v8293_v52 = vpop.f32.mrb[172].mxu0  ;;  %15251 = vmatmul.mubr.msk.f32.vlgmr.msra.gmra.mrb[242].mxu1 %vm3258_vm12, %v8806_v9  ;;  %v7655_v9 = vld [vmem:[%s22578_s3 + $0x4b8] sm:$0xff] }
 0x902   :  { %v8807_v56 = vrot.slane %v8293_v52, 4  ;;  %v8295_v8 = vpop.f32.mrb[173].mxu0  ;;  %15253 = vmatprep.mubr.msk.f32.mxu1 %vm16656_vm3, %v22679_v26  ;;  %16040 = vmatpush3.bf16.msk.msra.mxu1 %vm18721_vm10, %v16038_v62 }
 0x903   :  { %8557 = vmatmul.mubr.f32.gmra.mrb[22].mxu0 %v7638_v33  ;;  %16041 = vmatprep.subr.bf16.mxu1 %v22632_v34 }
 0x904   :  { %v8808_v43 = vsel %vm3232_vm11, %v8805_v61, %v8807_v56  ;;  %13275 = vmatprep.mubr.msk.f32.mxu0 %vm2241_vm7, %v7641_v30 }
 0x905   :  { %v8298_v36 = vpop.f32.mrb[174].mxu0  ;;  %15254 = vmatmul.mubr.msk.f32.gmra.mrb[244].mxu1 %vm3258_vm12, %v8808_v43  ;;  %v7657_v43 = vld [vmem:[%s22578_s3 + $0x4c8] sm:$0xff] }
 0x906   :  { %v8809_v35 = vrot.slane %v8298_v36, 4  ;;  %v8300_v12 = vpop.f32.mrb[175].mxu0  ;;  %15256 = vmatprep.mubr.msk.f32.mxu1 %vm16656_vm3, %v22679_v26 }
 0x907   :  { %8562 = vmatmul.mubr.f32.gmra.mrb[24].mxu0 %v7640_v18 }
 0x908   :  { %v8810_v32 = vsel %vm3232_vm11, %v8807_v56, %v8809_v35  ;;  %13276 = vmatprep.mubr.msk.f32.mxu0 %vm2241_vm7, %v7643_v6  ;;  %v7654_v56 = vld [vmem:[%s22578_s3 + $0x4b0] sm:$0xff] }
 0x909   :  { %v8303_v1 = vpop.f32.mrb[176].mxu0  ;;  %15257 = vmatmul.mubr.msk.f32.gmra.mrb[246].mxu1 %vm3258_vm12, %v8810_v32  ;;  %v7659_v32 = vld [vmem:[%s22578_s3 + $0x4d8] sm:$0xff] }
 0x90a   :  { %v8811_v5 = vrot.slane %v8303_v1, 4  ;;  %v8305_v23 = vpop.f32.mrb[177].mxu0  ;;  %15259 = vmatprep.mubr.msk.f32.mxu1 %vm16656_vm3, %v22679_v26 }
 0x90b   :  { %8567 = vmatmul.mubr.f32.gmra.mrb[26].mxu0 %v7642_v24 }
 0x90c   :  { %v8812_v37 = vsel %vm3232_vm11, %v8809_v35, %v8811_v5  ;;  %13277 = vmatprep.mubr.msk.f32.mxu0 %vm2241_vm7, %v7645_v25  ;;  %v7656_v35 = vld [vmem:[%s22578_s3 + $0x4c0] sm:$0xff] }
 0x90d   :  { %v8308_v63 = vpop.f32.mrb[178].mxu0  ;;  %15260 = vmatmul.mubr.msk.f32.gmra.mrb[248].mxu1 %vm3258_vm12, %v8812_v37  ;;  %v7661_v37 = vld [vmem:[%s22578_s3 + $0x4e8] sm:$0xff] }
 0x90e   :  { %v8813_v15 = vrot.slane %v8308_v63, 4  ;;  %v8310_v3 = vpop.f32.mrb[179].mxu0  ;;  %15262 = vmatprep.mubr.msk.f32.mxu1 %vm16656_vm3, %v22679_v26 }
 0x90f   :  { %8572 = vmatmul.mubr.f32.gmra.mrb[28].mxu0 %v7644_v10 }
 0x910   :  { %v8814_v29 = vsel %vm3232_vm11, %v8811_v5, %v8813_v15  ;;  %13278 = vmatprep.mubr.msk.f32.mxu0 %vm2241_vm7, %v7647_v45  ;;  %v7658_v5 = vld [vmem:[%s22578_s3 + $0x4d0] sm:$0xff] }
 0x911   :  { %v8313_v39 = vpop.f32.mrb[180].mxu0  ;;  %15263 = vmatmul.mubr.msk.f32.gmra.mrb[250].mxu1 %vm3258_vm12, %v8814_v29  ;;  %v7663_v29 = vld [vmem:[%s22578_s3 + $0x4f8] sm:$0xff] }
 0x912   :  { %v8815_v58 = vrot.slane %v8313_v39, 4  ;;  %v8315_v59 = vpop.f32.mrb[181].mxu0  ;;  %15265 = vmatprep.mubr.msk.f32.mxu1 %vm16656_vm3, %v22679_v26 }
 0x913   :  { %8577 = vmatmul.mubr.f32.gmra.mrb[30].mxu0 %v7646_v31  ;;  %v13351_v59 = vld [vmem:[%s22579_s4 + $0x28] sm:$0x3] }
 0x914   :  { %v8816_v27 = vsel %vm3232_vm11, %v8813_v15, %v8815_v58  ;;  %13279 = vmatprep.mubr.msk.f32.mxu0 %vm2241_vm7, %v7649_v55  ;;  %v7660_v15 = vld [vmem:[%s22578_s3 + $0x4e0] sm:$0xff] }
 0x915   :  { %v8318_v46 = vpop.f32.mrb[182].mxu0  ;;  %15266 = vmatmul.mubr.msk.f32.gmra.mrb[252].mxu1 %vm3258_vm12, %v8816_v27  ;;  %v7662_v27 = vld [vmem:[%s22578_s3 + $0x4f0] sm:$0xff] }
 0x916   :  { %v8817_v38 = vrot.slane %v8318_v46, 4  ;;  %v8320_v16 = vpop.f32.mrb[183].mxu0  ;;  %15268 = vmatprep.mubr.msk.f32.mxu1 %vm16656_vm3, %v22679_v26 }
 0x917   :  { %8582 = vmatmul.mubr.f32.gmra.mrb[32].mxu0 %v7648_v19 }
 0x918   :  { %v8818_v0 = vsel %vm3232_vm11, %v8815_v58, %v8817_v38  ;;  %13280 = vmatprep.mubr.msk.f32.mxu0 %vm2241_vm7, %v7651_v51  ;;  %v13350_v58 = vld [vmem:[%s22579_s4 + $0x20] sm:$0xff]  ;;  %v7665_v51 = vld [vmem:[%s22578_s3 + $0x508] sm:$0xff] }
 0x919   :  { %v8323_v17 = vpop.f32.mrb[184].mxu0  ;;  %15269 = vmatmul.mubr.msk.f32.gmra.mrb[254].mxu1 %vm3258_vm12, %v8818_v0  ;;  %v7664_v0 = vld [vmem:[%s22578_s3 + $0x500] sm:$0xff] }
 0x91a   :  { %v8819_v20 = vrot.slane %v8323_v17, 4  ;;  %v8325_v7 = vpop.f32.mrb[185].mxu0  ;;  %15271 = vmatprep.mubr.msk.f32.mxu1 %vm16656_vm3, %v22679_v26  ;;  %v7667_v17 = vld [vmem:[%s22578_s3 + $0x518] sm:$0xff] }
 0x91b   :  { %8587 = vmatmul.mubr.f32.gmra.mrb[34].mxu0 %v7650_v4  ;;  %v7669_v7 = vld [vmem:[%s22578_s3 + $0x528] sm:$0xff] }
 0x91c   :  { %v8820_v61 = vsel %vm3232_vm11, %v8817_v38, %v8819_v20  ;;  %13281 = vmatprep.mubr.msk.f32.mxu0 %vm2241_vm7, %v7653_v21  ;;  %v16042_v38 = vpack.c.bf16 %v13351_v59, %v13350_v58 }
 0x91d   :  { %v8328_v62 = vpop.f32.mrb[186].mxu0  ;;  %15272 = vmatmul.mubr.msk.f32.gmra.mrb[0].mxu1 %vm3258_vm12, %v8820_v61 }
 0x91e   :  { %v8821_v33 = vrot.slane %v8328_v62, 4  ;;  %v8330_v52 = vpop.f32.mrb[187].mxu0  ;;  %15274 = vmatprep.mubr.msk.f32.mxu1 %vm16656_vm3, %v22679_v26 }
 0x91f   :  { %8592 = vmatmul.mubr.f32.gmra.mrb[36].mxu0 %v7652_v2  ;;  %v7668_v2 = vld [vmem:[%s22578_s3 + $0x520] sm:$0xff] }
 0x920   :  { %v8822_v30 = vsel %vm3232_vm11, %v8819_v20, %v8821_v33  ;;  %13282 = vmatprep.mubr.msk.f32.mxu0 %vm2241_vm7, %v7655_v9  ;;  %v7671_v9 = vld [vmem:[%s22578_s3 + $0x538] sm:$0xff] }
 0x921   :  { %v8333_v8 = vpop.f32.mrb[188].mxu0  ;;  %15275 = vmatmul.mubr.msk.f32.gmra.mrb[2].mxu1 %vm3258_vm12, %v8822_v30 }
 0x922   :  { %v8823_v18 = vrot.slane %v8333_v8, 4  ;;  %v8335_v36 = vpop.f32.mrb[189].mxu0  ;;  %15277 = vmatprep.mubr.msk.f32.mxu1 %vm16656_vm3, %v22679_v26 }
 0x923   :  { %8597 = vmatmul.mubr.f32.gmra.mrb[38].mxu0 %v7654_v56  ;;  %v7673_v56 = vld [vmem:[%s22578_s3 + $0x548] sm:$0xff] }
 0x924   :  { %v8824_v6 = vsel %vm3232_vm11, %v8821_v33, %v8823_v18  ;;  %13283 = vmatprep.mubr.msk.f32.mxu0 %vm2241_vm7, %v7657_v43  ;;  %v7672_v43 = vld [vmem:[%s22578_s3 + $0x540] sm:$0xff] }
 0x925   :  { %v8338_v12 = vpop.f32.mrb[190].mxu0  ;;  %15278 = vmatmul.mubr.msk.f32.gmra.mrb[4].mxu1 %vm3258_vm12, %v8824_v6  ;;  %v7674_v6 = vld [vmem:[%s22578_s3 + $0x550] sm:$0xff] }
 0x926   :  { %v8825_v24 = vrot.slane %v8338_v12, 4  ;;  %v8340_v1 = vpop.f32.mrb[191].mxu0  ;;  %15280 = vmatprep.mubr.msk.f32.mxu1 %vm16656_vm3, %v22679_v26 }
 0x927   :  { %8602 = vmatmul.mubr.f32.gmra.mrb[40].mxu0 %v7656_v35  ;;  %v7677_v35 = vld [vmem:[%s22578_s3 + $0x568] sm:$0xff] }
 0x928   :  { %v8826_v25 = vsel %vm3232_vm11, %v8823_v18, %v8825_v24  ;;  %13284 = vmatprep.mubr.msk.f32.mxu0 %vm2241_vm7, %v7659_v32  ;;  %v7675_v18 = vld [vmem:[%s22578_s3 + $0x558] sm:$0xff]  ;;  %v7676_v32 = vld [vmem:[%s22578_s3 + $0x560] sm:$0xff] }
 0x929   :  { %v8343_v23 = vpop.f32.mrb[192].mxu0  ;;  %15281 = vmatmul.mubr.msk.f32.gmra.mrb[6].mxu1 %vm3258_vm12, %v8826_v25  ;;  %v7678_v25 = vld [vmem:[%s22578_s3 + $0x570] sm:$0xff] }
 0x92a   :  { %v8827_v10 = vrot.slane %v8343_v23, 4  ;;  %15283 = vmatprep.mubr.msk.f32.mxu1 %vm16656_vm3, %v22679_v26  ;;  %v8345_v63 = vpop.f32.mrb[193].mxu0 }
 0x92b   :  { %8607 = vmatmul.mubr.f32.gmra.mrb[42].mxu0 %v7658_v5  ;;  %v7681_v5 = vld [vmem:[%s22578_s3 + $0x588] sm:$0xff] }
 0x92c   :  { %v8828_v45 = vsel %vm3232_vm11, %v8825_v24, %v8827_v10  ;;  %13285 = vmatprep.mubr.msk.f32.mxu0 %vm2241_vm7, %v7661_v37  ;;  %v7679_v24 = vld [vmem:[%s22578_s3 + $0x578] sm:$0xff]  ;;  %v7680_v37 = vld [vmem:[%s22578_s3 + $0x580] sm:$0xff] }
 0x92d   :  { %15284 = vmatmul.mubr.msk.f32.gmra.mrb[8].mxu1 %vm3258_vm12, %v8828_v45  ;;  %v21281_v3 = vpop.f32.mrb[194].mxu0  ;;  %v7682_v45 = vld [vmem:[%s22578_s3 + $0x590] sm:$0xff] }
 0x92e   :  { %v21286_v31 = vpop.xlane.xlu0 %7122  ;;  %15286 = vmatprep.mubr.msk.f32.mxu1 %vm16656_vm3, %v22679_v26  ;;  %v8350_v39 = vpop.f32.mrb[195].mxu0 }
 0x92f   :  { %v7124_v55 = vsub.f32 %v20946_v40, %v21286_v31  ;;  %8612 = vmatmul.mubr.f32.gmra.mrb[44].mxu0 %v7660_v15  ;;  %v7685_v15 = vld [vmem:[%s22578_s3 + $0x5a8] sm:$0xff]  ;;  %v7684_v39 = vld [vmem:[%s22578_s3 + $0x5a0] sm:$0xff] }
 0x930   :  { %13286 = vmatprep.mubr.msk.f32.mxu0 %vm2241_vm7, %v7663_v29 }
 0x931   :  { %v7125_v19 = vmul.f32 1.442695, %v7124_v55  ;;  %15287 = vmatmul.mubr.msk.f32.gmra.mrb[10].mxu1 %vm3258_vm12, %v8827_v10  ;;  %v21303_v46 = vpop.f32.mrb[196].mxu0  ;;  %v7683_v10 = vld [vmem:[%s22578_s3 + $0x598] sm:$0xff] }
 0x932   :  { %15293 = vmatprep.mubr.msk.f32.mxu1 %vm16656_vm3, %v22679_v26  ;;  %v8355_v16 = vpop.f32.mrb[197].mxu0  ;;  %v7687_v55 = vld [vmem:[%s22578_s3 + $0x5b8] sm:$0xff] }
 0x933   :  { %16618 = vpow2.f32 %v7125_v19  ;;  %8617 = vmatmul.mubr.f32.gmra.mrb[46].mxu0 %v7662_v27  ;;  %v7686_v27 = vld [vmem:[%s22578_s3 + $0x5b0] sm:$0xff]  ;;  %v7689_v19 = vld [vmem:[%s22578_s3 + $0x5c8] sm:$0xff] }
 0x934   :  { %13287 = vmatprep.mubr.msk.f32.mxu0 %vm2241_vm7, %v7665_v51  ;;  %v13366_v16 = vld [vmem:[%s22579_s4 + $0x30] sm:$0xff] }
 0x935   :  { %15294 = vmatmul.mubr.msk.f32.vlgmr.msra.gmra.mrb[242].mxu1 %vm3258_vm12, %v21027_v42  ;;  %v21316_v4 = vpop.f32.mrb[198].mxu0  ;;  %v7666_v42 = vld [vmem:[%s22578_s3 + $0x510] sm:$0xff] }
 0x936   :  { %15296 = vmatprep.mubr.msk.f32.mxu1 %vm16656_vm3, %v22679_v26  ;;  %16044 = vmatpush3.bf16.msk.msra.mxu1 %vm18721_vm10, %v16042_v38  ;;  %v8360_v21 = vpop.f32.mrb[199].mxu0 }
 0x937   :  { %8622 = vmatmul.mubr.f32.gmra.mrb[48].mxu0 %v7664_v0  ;;  %16045 = vmatprep.subr.bf16.mxu1 %v22632_v34  ;;  %v13367_v0 = vld [vmem:[%s22579_s4 + $0x38] sm:$0x3] }
 0x938   :  { %13288 = vmatprep.mubr.msk.f32.mxu0 %vm2241_vm7, %v7667_v17  ;;  %v7688_v17 = vld [vmem:[%s22578_s3 + $0x5c0] sm:$0xff] }
 0x939   :  { %15297 = vmatmul.mubr.msk.f32.gmra.mrb[244].mxu1 %vm3258_vm12, %v21036_v54  ;;  %v21332_v20 = vpop.f32.mrb[200].mxu0 }
 0x93a   :  { %15299 = vmatprep.mubr.msk.f32.mxu1 %vm16656_vm3, %v22679_v26  ;;  %v8365_v61 = vpop.f32.mrb[201].mxu0 }
 0x93b   :  { %8627 = vmatmul.mubr.f32.gmra.mrb[50].mxu0 %v7666_v42  ;;  %v7691_v42 = vld [vmem:[%s22578_s3 + $0x5d8] sm:$0xff] }
 0x93c   :  { %13289 = vmatprep.mubr.msk.f32.mxu0 %vm2241_vm7, %v7669_v7  ;;  %v16046_v7 = vpack.c.bf16 %v13367_v0, %v13366_v16 }
 0x93d   :  { %v16619_v62 = vpop.eup %16618  ;;  %15300 = vmatmul.mubr.msk.f32.gmra.mrb[246].mxu1 %vm3258_vm12, %v21045_v13  ;;  %v21345_v54 = vpop.f32.mrb[202].mxu0  ;;  %v7670_v13 = vld [vmem:[%s22578_s3 + $0x530] sm:$0xff] }
 0x93e   :  { %v7127_v33 = vsel %vm7120_vm14, %v16619_v62, 0.0  ;;  %15302 = vmatprep.mubr.msk.f32.mxu1 %vm16656_vm3, %v22679_v26  ;;  %v8370_v52 = vpop.f32.mrb[203].mxu0 }
 0x93f   :  { %7128 = vadd.xlane.f32.xlu1 %v7127_v33  ;;  %8632 = vmatmul.mubr.f32.gmra.mrb[52].mxu0 %v7668_v2  ;;  %v7693_v33 = vld [vmem:[%s22578_s3 + $0x5e8] sm:$0xff] }
 0x940   :  { %13290 = vmatprep.mubr.msk.f32.mxu0 %vm2241_vm7, %v7671_v9 }
 0x941   :  { %15303 = vmatmul.mubr.msk.f32.gmra.mrb[248].mxu1 %vm3258_vm12, %v21054_v53  ;;  %v21359_v30 = vpop.f32.mrb[204].mxu0 }
 0x942   :  { %15305 = vmatprep.mubr.msk.f32.mxu1 %vm16656_vm3, %v22679_v26  ;;  %v8375_v8 = vpop.f32.mrb[205].mxu0 }
 0x943   :  { %8637 = vmatmul.mubr.f32.gmra.mrb[54].mxu0 %v7670_v13 }
 0x944   :  { %13291 = vmatprep.mubr.msk.f32.mxu0 %vm2241_vm7, %v7673_v56 }
 0x945   :  { %15306 = vmatmul.mubr.msk.f32.gmra.mrb[250].mxu1 %vm3258_vm12, %v21063_v50  ;;  %v21372_v53 = vpop.f32.mrb[206].mxu0 }
 0x946   :  { %15308 = vmatprep.mubr.msk.f32.mxu1 %vm16656_vm3, %v22679_v26  ;;  %v8380_v36 = vpop.f32.mrb[207].mxu0 }
 0x947   :  { %8642 = vmatmul.mubr.f32.gmra.mrb[56].mxu0 %v7672_v43  ;;  %v7695_v43 = vld [vmem:[%s22578_s3 + $0x5f8] sm:$0xff] }
 0x948   :  { %13292 = vmatprep.mubr.msk.f32.mxu0 %vm2241_vm7, %v7675_v18 }
 0x949   :  { %15309 = vmatmul.mubr.msk.f32.gmra.mrb[252].mxu1 %vm3258_vm12, %v21072_v49  ;;  %v21385_v50 = vpop.f32.mrb[208].mxu0 }
 0x94a   :  { %15311 = vmatprep.mubr.msk.f32.mxu1 %vm16656_vm3, %v22679_v26  ;;  %v8385_v12 = vpop.f32.mrb[209].mxu0 }
 0x94b   :  { %8647 = vmatmul.mubr.f32.gmra.mrb[58].mxu0 %v7674_v6  ;;  %v7697_v12 = vld [vmem:[%s22578_s3 + $0x608] sm:$0xff] }
 0x94c   :  { %13293 = vmatprep.mubr.msk.f32.mxu0 %vm2241_vm7, %v7677_v35 }
 0x94d   :  { %15312 = vmatmul.mubr.msk.f32.gmra.mrb[254].mxu1 %vm3258_vm12, %v21081_v41  ;;  %v21398_v49 = vpop.f32.mrb[210].mxu0 }
 0x94e   :  { %15314 = vmatprep.mubr.msk.f32.mxu1 %vm16656_vm3, %v22679_v26  ;;  %v8390_v1 = vpop.f32.mrb[211].mxu0 }
 0x94f   :  { %8652 = vmatmul.mubr.f32.gmra.mrb[60].mxu0 %v7676_v32 }
 0x950   :  { %13294 = vmatprep.mubr.msk.f32.mxu0 %vm2241_vm7, %v7679_v24 }
 0x951   :  { %15315 = vmatmul.mubr.msk.f32.gmra.mrb[0].mxu1 %vm3258_vm12, %v21090_v22  ;;  %v21411_v41 = vpop.f32.mrb[212].mxu0 }
 0x952   :  { %15317 = vmatprep.mubr.msk.f32.mxu1 %vm16656_vm3, %v22679_v26  ;;  %v8395_v23 = vpop.f32.mrb[213].mxu0 }
 0x953   :  { %8657 = vmatmul.mubr.f32.gmra.mrb[62].mxu0 %v7678_v25 }
 0x954   :  { %13295 = vmatprep.mubr.msk.f32.mxu0 %vm2241_vm7, %v7681_v5  ;;  %v7699_v5 = vld [vmem:[%s22578_s3 + $0x618] sm:$0xff] }
 0x955   :  { %15318 = vmatmul.mubr.msk.f32.gmra.mrb[2].mxu1 %vm3258_vm12, %v21099_v57  ;;  %v21424_v22 = vpop.f32.mrb[214].mxu0 }
 0x956   :  { %15320 = vmatprep.mubr.msk.f32.mxu1 %vm16656_vm3, %v22679_v26  ;;  %v8400_v63 = vpop.f32.mrb[215].mxu0 }
 0x957   :  { %8662 = vmatmul.mubr.f32.gmra.mrb[64].mxu0 %v7680_v37 }
 0x958   :  { %13296 = vmatprep.mubr.msk.f32.mxu0 %vm2241_vm7, %v7683_v10 }
 0x959   :  { %15321 = vmatmul.mubr.msk.f32.gmra.mrb[4].mxu1 %vm3258_vm12, %v21108_v48  ;;  %v21437_v57 = vpop.f32.mrb[216].mxu0 }
 0x95a   :  { %15323 = vmatprep.mubr.msk.f32.mxu1 %vm16656_vm3, %v22679_v26  ;;  %v8405_v29 = vpop.f32.mrb[217].mxu0 }
 0x95b   :  { %8667 = vmatmul.mubr.f32.gmra.mrb[66].mxu0 %v7682_v45  ;;  %v7701_v45 = vld [vmem:[%s22578_s3 + $0x628] sm:$0xff] }
 0x95c   :  { %13297 = vmatprep.mubr.msk.f32.mxu0 %vm2241_vm7, %v7685_v15 }
 0x95d   :  { %15324 = vmatmul.mubr.msk.f32.gmra.mrb[6].mxu1 %vm3258_vm12, %v21117_v28  ;;  %v21450_v48 = vpop.f32.mrb[218].mxu0 }
 0x95e   :  { %15326 = vmatprep.mubr.msk.f32.mxu1 %vm16656_vm3, %v22679_v26  ;;  %v8410_v58 = vpop.f32.mrb[219].mxu0  ;;  %v9360_v59 = vrot.slane %v21450_v48, 4 }
 0x95f   :  { %8672 = vmatmul.mubr.f32.gmra.mrb[68].mxu0 %v7684_v39  ;;  %v7703_v58 = vld [vmem:[%s22578_s3 + $0x638] sm:$0xff] }
 0x960   :  { %13298 = vmatprep.mubr.msk.f32.mxu0 %vm2241_vm7, %v7687_v55 }
 0x961   :  { %15327 = vmatmul.mubr.msk.f32.gmra.mrb[8].mxu1 %vm3258_vm12, %v21126_v47  ;;  %v8413_v28 = vpop.f32.mrb[220].mxu0 }
 0x962   :  { %15329 = vmatprep.mubr.msk.f32.mxu1 %vm16656_vm3, %v22679_v26  ;;  %v9361_v51 = vrot.slane %v8413_v28, 4  ;;  %v8415_v38 = vpop.f32.mrb[221].mxu0 }
 0x963   :  { %8677 = vmatmul.mubr.f32.gmra.mrb[70].mxu0 %v7686_v27 }
 0x964   :  { %v21476_v47 = vsel %vm3232_vm11, %v9360_v59, %v9361_v51  ;;  %13299 = vmatprep.mubr.msk.f32.mxu0 %vm2241_vm7, %v7689_v19 }
 0x965   :  { %15330 = vmatmul.mubr.msk.f32.gmra.mrb[10].mxu1 %vm3258_vm12, %v21135_v44  ;;  %v8418_v21 = vpop.f32.mrb[222].mxu0  ;;  %v7690_v44 = vld [vmem:[%s22578_s3 + $0x5d0] sm:$0xff] }
 0x966   :  { %15336 = vmatprep.mubr.msk.f32.mxu1 %vm16656_vm3, %v22679_v26  ;;  %v9363_v61 = vrot.slane %v8418_v21, 4  ;;  %v8420_v2 = vpop.f32.mrb[223].mxu0  ;;  %v7707_v21 = vld [vmem:[%s22578_s3 + $0x658] sm:$0xff] }
 0x967   :  { %8682 = vmatmul.mubr.f32.gmra.mrb[72].mxu0 %v7688_v17 }
 0x968   :  { %v21490_v62 = vsel %vm3232_vm11, %v9361_v51, %v9363_v61  ;;  %13300 = vmatprep.mubr.msk.f32.mxu0 %vm2241_vm7, %v7691_v42  ;;  %v7705_v51 = vld [vmem:[%s22578_s3 + $0x648] sm:$0xff] }
 0x969   :  { %15337 = vmatmul.mubr.msk.f32.vlgmr.msra.gmra.mrb[242].mxu1 %vm3258_vm12, %v21281_v3  ;;  %v8423_v9 = vpop.f32.mrb[224].mxu0  ;;  %v7692_v3 = vld [vmem:[%s22578_s3 + $0x5e0] sm:$0xff] }
 0x96a   :  { %15339 = vmatprep.mubr.msk.f32.mxu1 %vm16656_vm3, %v22679_v26  ;;  %16048 = vmatpush3.bf16.msk.msra.mxu1 %vm18721_vm10, %v16046_v7  ;;  %v9365_v52 = vrot.slane %v8423_v9, 4  ;;  %v8425_v13 = vpop.f32.mrb[225].mxu0 }
 0x96b   :  { %8687 = vmatmul.mubr.f32.gmra.mrb[74].mxu0 %v7690_v44  ;;  %16049 = vmatprep.subr.bf16.mxu1 %v22632_v34  ;;  %v7709_v44 = vld [vmem:[%s22578_s3 + $0x668] sm:$0xff] }
 0x96c   :  { %v21507_v56 = vsel %vm3232_vm11, %v9363_v61, %v9365_v52  ;;  %13301 = vmatprep.mubr.msk.f32.mxu0 %vm2241_vm7, %v7693_v33 }
 0x96d   :  { %15340 = vmatmul.mubr.msk.f32.gmra.mrb[244].mxu1 %vm3258_vm12, %v21303_v46  ;;  %v8428_v8 = vpop.f32.mrb[226].mxu0  ;;  %v7694_v46 = vld [vmem:[%s22578_s3 + $0x5f0] sm:$0xff] }
 0x96e   :  { %15342 = vmatprep.mubr.msk.f32.mxu1 %vm16656_vm3, %v22679_v26  ;;  %v9367_v18 = vrot.slane %v8428_v8, 4  ;;  %v8430_v36 = vpop.f32.mrb[227].mxu0 }
 0x96f   :  { %8692 = vmatmul.mubr.f32.gmra.mrb[76].mxu0 %v7692_v3  ;;  %v7711_v3 = vld [vmem:[%s22578_s3 + $0x678] sm:$0xff] }
 0x970   :  { %v21521_v6 = vsel %vm3232_vm11, %v9365_v52, %v9367_v18  ;;  %13302 = vmatprep.mubr.msk.f32.mxu0 %vm2241_vm7, %v7695_v43 }
 0x971   :  { %15343 = vmatmul.mubr.msk.f32.gmra.mrb[246].mxu1 %vm3258_vm12, %v21316_v4  ;;  %v8433_v35 = vpop.f32.mrb[228].mxu0  ;;  %v7696_v4 = vld [vmem:[%s22578_s3 + $0x600] sm:$0xff] }
 0x972   :  { %15345 = vmatprep.mubr.msk.f32.mxu1 %vm16656_vm3, %v22679_v26  ;;  %v9369_v32 = vrot.slane %v8433_v35, 4  ;;  %v8435_v24 = vpop.f32.mrb[229].mxu0 }
 0x973   :  { %8697 = vmatmul.mubr.f32.gmra.mrb[78].mxu0 %v7694_v46  ;;  %v7713_v46 = vld [vmem:[%s22578_s3 + $0x688] sm:$0xff] }
 0x974   :  { %v21535_v1 = vsel %vm3232_vm11, %v9367_v18, %v9369_v32  ;;  %13303 = vmatprep.mubr.msk.f32.mxu0 %vm2241_vm7, %v7697_v12  ;;  %v7712_v12 = vld [vmem:[%s22578_s3 + $0x680] sm:$0xff] }
 0x975   :  { %15346 = vmatmul.mubr.msk.f32.gmra.mrb[248].mxu1 %vm3258_vm12, %v21332_v20  ;;  %v8438_v25 = vpop.f32.mrb[230].mxu0  ;;  %v7698_v20 = vld [vmem:[%s22578_s3 + $0x610] sm:$0xff] }
 0x976   :  { %15348 = vmatprep.mubr.msk.f32.mxu1 %vm16656_vm3, %v22679_v26  ;;  %v9371_v23 = vrot.slane %v8438_v25, 4  ;;  %v8440_v37 = vpop.f32.mrb[231].mxu0  ;;  %v13383_v25 = vld [vmem:[%s22579_s4 + $0x48] sm:$0x3] }
 0x977   :  { %8702 = vmatmul.mubr.f32.gmra.mrb[80].mxu0 %v7696_v4  ;;  %v13382_v4 = vld [vmem:[%s22579_s4 + $0x40] sm:$0xff] }
 0x978   :  { %v21549_v10 = vsel %vm3232_vm11, %v9369_v32, %v9371_v23  ;;  %13304 = vmatprep.mubr.msk.f32.mxu0 %vm2241_vm7, %v7699_v5  ;;  %v7715_v32 = vld [vmem:[%s22578_s3 + $0x698] sm:$0xff]  ;;  %v16050_v37 = vpack.c.bf16 %v13383_v25, %v13382_v4 }
 0x979   :  { %15349 = vmatmul.mubr.msk.f32.gmra.mrb[250].mxu1 %vm3258_vm12, %v21345_v54  ;;  %v8443_v63 = vpop.f32.mrb[232].mxu0  ;;  %v7700_v54 = vld [vmem:[%s22578_s3 + $0x620] sm:$0xff] }
 0x97a   :  { %15351 = vmatprep.mubr.msk.f32.mxu1 %vm16656_vm3, %v22679_v26  ;;  %v9373_v15 = vrot.slane %v8443_v63, 4  ;;  %v8445_v29 = vpop.f32.mrb[233].mxu0  ;;  %v7716_v63 = vld [vmem:[%s22578_s3 + $0x6a0] sm:$0xff] }
 0x97b   :  { %8707 = vmatmul.mubr.f32.gmra.mrb[82].mxu0 %v7698_v20 }
 0x97c   :  { %v21563_v39 = vsel %vm3232_vm11, %v9371_v23, %v9373_v15  ;;  %13305 = vmatprep.mubr.msk.f32.mxu0 %vm2241_vm7, %v7701_v45  ;;  %v7717_v23 = vld [vmem:[%s22578_s3 + $0x6a8] sm:$0xff]  ;;  %v7719_v45 = vld [vmem:[%s22578_s3 + $0x6b8] sm:$0xff] }
 0x97d   :  { %15352 = vmatmul.mubr.msk.f32.gmra.mrb[252].mxu1 %vm3258_vm12, %v21359_v30  ;;  %v8448_v55 = vpop.f32.mrb[234].mxu0  ;;  %v7702_v30 = vld [vmem:[%s22578_s3 + $0x630] sm:$0xff] }
 0x97e   :  { %15354 = vmatprep.mubr.msk.f32.mxu1 %vm16656_vm3, %v22679_v26  ;;  %v9375_v59 = vrot.slane %v8448_v55, 4  ;;  %v8450_v27 = vpop.f32.mrb[235].mxu0 }
 0x97f   :  { %8712 = vmatmul.mubr.f32.gmra.mrb[84].mxu0 %v7700_v54  ;;  %v7721_v54 = vld [vmem:[%s22578_s3 + $0x6c8] sm:$0xff] }
 0x980   :  { %v21577_v28 = vsel %vm3232_vm11, %v9373_v15, %v9375_v59  ;;  %13306 = vmatprep.mubr.msk.f32.mxu0 %vm2241_vm7, %v7703_v58  ;;  %v7720_v58 = vld [vmem:[%s22578_s3 + $0x6c0] sm:$0xff] }
 0x981   :  { %15355 = vmatmul.mubr.msk.f32.gmra.mrb[254].mxu1 %vm3258_vm12, %v21372_v53  ;;  %v8453_v19 = vpop.f32.mrb[236].mxu0  ;;  %v7704_v53 = vld [vmem:[%s22578_s3 + $0x640] sm:$0xff] }
 0x982   :  { %15357 = vmatprep.mubr.msk.f32.mxu1 %vm16656_vm3, %v22679_v26  ;;  %v9377_v38 = vrot.slane %v8453_v19, 4  ;;  %v8455_v16 = vpop.f32.mrb[237].mxu0  ;;  %v7725_v19 = vld [vmem:[%s22578_s3 + $0x6e8] sm:$0xff] }
 0x983   :  { %8717 = vmatmul.mubr.f32.gmra.mrb[86].mxu0 %v7702_v30  ;;  %v7722_v30 = vld [vmem:[%s22578_s3 + $0x6d0] sm:$0xff]  ;;  %v7727_v16 = vld [vmem:[%s22578_s3 + $0x6f8] sm:$0xff] }
 0x984   :  { %v21591_v0 = vsel %vm3232_vm11, %v9375_v59, %v9377_v38  ;;  %13307 = vmatprep.mubr.msk.f32.mxu0 %vm2241_vm7, %v7705_v51  ;;  %v7723_v59 = vld [vmem:[%s22578_s3 + $0x6d8] sm:$0xff] }
 0x985   :  { %15358 = vmatmul.mubr.msk.f32.gmra.mrb[0].mxu1 %vm3258_vm12, %v21385_v50  ;;  %v8458_v17 = vpop.f32.mrb[238].mxu0  ;;  %v7706_v50 = vld [vmem:[%s22578_s3 + $0x650] sm:$0xff] }
 0x986   :  { %15360 = vmatprep.mubr.msk.f32.mxu1 %vm16656_vm3, %v22679_v26  ;;  %v9379_v42 = vrot.slane %v8458_v17, 4  ;;  %v8460_v7 = vpop.f32.mrb[239].mxu0  ;;  %v7726_v17 = vld [vmem:[%s22578_s3 + $0x6f0] sm:$0xff] }
 0x987   :  { %8722 = vmatmul.mubr.f32.gmra.mrb[88].mxu0 %v7704_v53  ;;  %v7728_v7 = vld [vmem:[%s22578_s3 + $0x700] sm:$0xf] }
 0x988   :  { %v21605_v61 = vsel %vm3232_vm11, %v9377_v38, %v9379_v42  ;;  %13308 = vmatprep.mubr.msk.f32.mxu0 %vm2241_vm7, %v7707_v21  ;;  %v7724_v38 = vld [vmem:[%s22578_s3 + $0x6e0] sm:$0xff]  ;;  %v7729_v21 = vld [vmem:[%s22578_s3 + $0x708] sm:$0xf] }
 0x989   :  { %15361 = vmatmul.mubr.msk.f32.gmra.mrb[2].mxu1 %vm3258_vm12, %v21398_v49  ;;  %v8463_v2 = vpop.f32.mrb[240].mxu0  ;;  %v7708_v49 = vld [vmem:[%s22578_s3 + $0x660] sm:$0xff] }
 0x98a   :  { %15363 = vmatprep.mubr.msk.f32.mxu1 %vm16656_vm3, %v22679_v26  ;;  %v9381_v9 = vrot.slane %v8463_v2, 4  ;;  %v8465_v33 = vpop.f32.mrb[241].mxu0 }
 0x98b   :  { %8727 = vmatmul.mubr.f32.gmra.mrb[90].mxu0 %v7706_v50 }
 0x98c   :  { %v21619_v52 = vsel %vm3232_vm11, %v9379_v42, %v9381_v9  ;;  %13309 = vmatprep.mubr.msk.f32.mxu0 %vm2241_vm7, %v7709_v44 }
 0x98d   :  { %15364 = vmatmul.mubr.msk.f32.gmra.mrb[4].mxu1 %vm3258_vm12, %v21411_v41  ;;  %v21627_v13 = vpop.f32.mrb[242].mxu0  ;;  %v7710_v41 = vld [vmem:[%s22578_s3 + $0x670] sm:$0xff] }
 0x98e   :  { %15366 = vmatprep.mubr.msk.f32.mxu1 %vm16656_vm3, %v22679_v26  ;;  %v9383_v8 = vrot.slane %v21627_v13, 4  ;;  %v8470_v43 = vpop.f32.mrb[243].mxu0 }
 0x98f   :  { %8732 = vmatmul.mubr.f32.gmra.mrb[92].mxu0 %v7708_v49 }
 0x990   :  { %v21638_v18 = vsel %vm3232_vm11, %v9381_v9, %v9383_v8  ;;  %13310 = vmatprep.mubr.msk.f32.mxu0 %vm2241_vm7, %v7711_v3 }
 0x991   :  { %15367 = vmatmul.mubr.msk.f32.gmra.mrb[6].mxu1 %vm3258_vm12, %v21424_v22  ;;  %v21646_v36 = vpop.f32.mrb[244].mxu0 }
 0x992   :  { %15369 = vmatprep.mubr.msk.f32.mxu1 %vm16656_vm3, %v22679_v26  ;;  %v8475_v35 = vpop.f32.mrb[245].mxu0 }
 0x993   :  { %8737 = vmatmul.mubr.f32.gmra.mrb[94].mxu0 %v7710_v41 }
 0x994   :  { %13311 = vmatprep.mubr.msk.f32.mxu0 %vm2241_vm7, %v7713_v46 }
 0x995   :  { %15370 = vmatmul.mubr.msk.f32.gmra.mrb[8].mxu1 %vm3258_vm12, %v21437_v57  ;;  %v21659_v22 = vpop.f32.mrb[246].mxu0  ;;  %v7714_v57 = vld [vmem:[%s22578_s3 + $0x690] sm:$0xff] }
 0x996   :  { %15372 = vmatprep.mubr.msk.f32.mxu1 %vm16656_vm3, %v22679_v26  ;;  %v8480_v24 = vpop.f32.mrb[247].mxu0 }
 0x997   :  { %8742 = vmatmul.mubr.f32.gmra.mrb[96].mxu0 %v7712_v12  ;;  %v13399_v12 = vld [vmem:[%s22579_s4 + $0x58] sm:$0x3] }
 0x998   :  { %13312 = vmatprep.mubr.msk.f32.mxu0 %vm2241_vm7, %v7715_v32 }
 0x999   :  { %15373 = vmatmul.mubr.msk.f32.gmra.mrb[10].mxu1 %vm3258_vm12, %v21450_v48  ;;  %v21678_v5 = vpop.f32.mrb[248].mxu0 }
 0x99a   :  { %15379 = vmatprep.mubr.msk.f32.mxu1 %vm16656_vm3, %v22679_v26  ;;  %v8485_v20 = vpop.f32.mrb[249].mxu0 }
 0x99b   :  { %8747 = vmatmul.mubr.f32.gmra.mrb[98].mxu0 %v7714_v57 }
 0x99c   :  { %13313 = vmatprep.mubr.msk.f32.mxu0 %vm2241_vm7, %v7717_v23 }
 0x99d   :  { %15380 = vmatmul.mubr.msk.f32.vlgmr.msra.gmra.mrb[242].mxu1 %vm3258_vm12, %v21476_v47  ;;  %v21691_v48 = vpop.f32.mrb[250].mxu0  ;;  %v7718_v47 = vld [vmem:[%s22578_s3 + $0x6b0] sm:$0xff] }
 0x99e   :  { %15382 = vmatprep.mubr.msk.f32.mxu1 %vm16656_vm3, %v22679_v26  ;;  %16052 = vmatpush3.bf16.msk.msra.mxu1 %vm18721_vm10, %v16050_v37  ;;  %v8490_v15 = vpop.f32.mrb[251].mxu0 }
 0x99f   :  { %8752 = vmatmul.mubr.f32.gmra.mrb[100].mxu0 %v7716_v63  ;;  %16053 = vmatprep.subr.bf16.mxu1 %v22632_v34 }
 0x9a0   :  { %13314 = vmatprep.mubr.msk.f32.mxu0 %vm2241_vm7, %v7719_v45 }
 0x9a1   :  { %15383 = vmatmul.mubr.msk.f32.gmra.mrb[244].mxu1 %vm3258_vm12, %v21490_v62  ;;  %v21707_v29 = vpop.f32.mrb[252].mxu0 }
 0x9a2   :  { %15385 = vmatprep.mubr.msk.f32.mxu1 %vm16656_vm3, %v22679_v26  ;;  %v8495_v55 = vpop.f32.mrb[253].mxu0 }
 0x9a3   :  { %8757 = vmatmul.mubr.f32.gmra.mrb[102].mxu0 %v7718_v47 }
 0x9a4   :  { %13315 = vmatprep.mubr.msk.f32.mxu0 %vm2241_vm7, %v7721_v54 }
 0x9a5   :  { %15386 = vmatmul.mubr.msk.f32.gmra.mrb[246].mxu1 %vm3258_vm12, %v21507_v56  ;;  %v21720_v62 = vpop.f32.mrb[254].mxu0 }
 0x9a6   :  { %15388 = vmatprep.mubr.msk.f32.mxu1 %vm16656_vm3, %v22679_v26  ;;  %v8500_v27 = vpop.f32.mrb[255].mxu0 }
 0x9a7   :  { %8762 = vmatmul.mubr.f32.gmra.mrb[104].mxu0 %v7720_v58 }
 0x9a8   :  { %13316 = vmatprep.mubr.msk.f32.mxu0 %vm2241_vm7, %v7723_v59 }
 0x9a9   :  { %15389 = vmatmul.mubr.msk.f32.gmra.mrb[248].mxu1 %vm3258_vm12, %v21521_v6  ;;  %v21733_v56 = vpop.f32.mrb[0].mxu0 }
 0x9aa   :  { %15391 = vmatprep.mubr.msk.f32.mxu1 %vm16656_vm3, %v22679_v26  ;;  %v8505_v51 = vpop.f32.mrb[1].mxu0 }
 0x9ab   :  { %8767 = vmatmul.mubr.f32.gmra.mrb[106].mxu0 %v7722_v30 }
 0x9ac   :  { %13317 = vmatprep.mubr.msk.f32.mxu0 %vm2241_vm7, %v7725_v19 }
 0x9ad   :  { %15392 = vmatmul.mubr.msk.f32.gmra.mrb[250].mxu1 %vm3258_vm12, %v21535_v1  ;;  %v21746_v6 = vpop.f32.mrb[2].mxu0 }
 0x9ae   :  { %15394 = vmatprep.mubr.msk.f32.mxu1 %vm16656_vm3, %v22679_v26  ;;  %v8510_v53 = vpop.f32.mrb[3].mxu0 }
 0x9af   :  { %8772 = vmatmul.mubr.f32.gmra.mrb[108].mxu0 %v7724_v38 }
 0x9b0   :  { %13318 = vmatprep.mubr.msk.f32.mxu0 %vm2241_vm7, %v7727_v16 }
 0x9b1   :  { %15395 = vmatmul.mubr.msk.f32.gmra.mrb[252].mxu1 %vm3258_vm12, %v21549_v10  ;;  %v21759_v1 = vpop.f32.mrb[4].mxu0 }
 0x9b2   :  { %15397 = vmatprep.mubr.msk.f32.mxu1 %vm16656_vm3, %v22679_v26  ;;  %v8515_v42 = vpop.f32.mrb[5].mxu0 }
 0x9b3   :  { %8777 = vmatmul.mubr.f32.gmra.mrb[110].mxu0 %v7726_v17 }
 0x9b4   :  { %13319 = vmatprep.mubr.msk.f32.mxu0 %vm2241_vm7, %v7729_v21 }
 0x9b5   :  { %15398 = vmatmul.mubr.msk.f32.gmra.mrb[254].mxu1 %vm3258_vm12, %v21563_v39  ;;  %v21772_v10 = vpop.f32.mrb[6].mxu0 }
 0x9b6   :  { %15400 = vmatprep.mubr.msk.f32.mxu1 %vm16656_vm3, %v22679_v26  ;;  %v8520_v50 = vpop.f32.mrb[7].mxu0 }
 0x9b7   :  { %8782 = vmatmul.mubr.f32.gmra.mrb[112].mxu0 %v7728_v7 }
 0x9b8   :  { %15637 = vmatprep.mubr.msk.f32.mxu0 %vm16656_vm3, %v22679_v26 }
 0x9b9   :  { %15401 = vmatmul.mubr.msk.f32.gmra.mrb[0].mxu1 %vm3258_vm12, %v21577_v28  ;;  %v21780_v2 = vpop.f32.mrb[8].mxu0 }
 0x9ba   :  { %15403 = vmatprep.mubr.msk.f32.mxu1 %vm16656_vm3, %v22679_v26  ;;  %v8525_v44 = vpop.f32.mrb[9].mxu0 }
 0x9bd   :  { %15404 = vmatmul.mubr.msk.f32.gmra.mrb[2].mxu1 %vm3258_vm12, %v21591_v0  ;;  %v21786_v39 = vpop.f32.mrb[10].mxu0 }
 0x9be   :  { %15406 = vmatprep.mubr.msk.f32.mxu1 %vm16656_vm3, %v22679_v26  ;;  %v8530_v9 = vpop.f32.mrb[11].mxu0 }
 0x9c1   :  { %15407 = vmatmul.mubr.msk.f32.gmra.mrb[4].mxu1 %vm3258_vm12, %v21605_v61  ;;  %v21792_v33 = vpop.f32.mrb[12].mxu0 }
 0x9c2   :  { %15409 = vmatprep.mubr.msk.f32.mxu1 %vm16656_vm3, %v22679_v26  ;;  %v8535_v28 = vpop.f32.mrb[13].mxu0  ;;  %v9758_v49 = vrot.slane %v21792_v33, 4 }
 0x9c5   :  { %15410 = vmatmul.mubr.msk.f32.gmra.mrb[6].mxu1 %vm3258_vm12, %v21619_v52  ;;  %v8538_v0 = vpop.f32.mrb[14].mxu0  ;;  %v13398_v52 = vld [vmem:[%s22579_s4 + $0x50] sm:$0xff] }
 0x9c6   :  { %15412 = vmatprep.mubr.msk.f32.mxu1 %vm16656_vm3, %v22679_v26  ;;  %v9759_v3 = vrot.slane %v8538_v0, 4  ;;  %v8540_v43 = vpop.f32.mrb[15].mxu0  ;;  %v16054_v4 = vpack.c.bf16 %v13399_v12, %v13398_v52 }
 0x9c8   :  { %v21802_v41 = vsel %vm3232_vm11, %v9758_v49, %v9759_v3 }
 0x9c9   :  { %15413 = vmatmul.mubr.msk.f32.gmra.mrb[8].mxu1 %vm3258_vm12, %v21638_v18  ;;  %v8543_v61 = vpop.f32.mrb[16].mxu0 }
 0x9ca   :  { %15415 = vmatprep.mubr.msk.f32.mxu1 %vm16656_vm3, %v22679_v26  ;;  %v9761_v46 = vrot.slane %v8543_v61, 4  ;;  %v8545_v35 = vpop.f32.mrb[17].mxu0 }
 0x9cb   :  { %v13414_v35 = vld [vmem:[%s22579_s4 + $0x60] sm:$0xff] }
 0x9cc   :  { %v7129_v32 = vpop.xlane.xlu1 %7128  ;;  %v21815_v24 = vsel %vm3232_vm11, %v9759_v3, %v9761_v46 }
 0x9cd   :  { %16620 = vlog2.f32 %v7129_v32  ;;  %15416 = vmatmul.mubr.msk.f32.gmra.mrb[10].mxu1 %vm3258_vm12, %v9383_v8  ;;  %v8548_v18 = vpop.f32.mrb[18].mxu0 }
 0x9ce   :  { %15422 = vmatprep.mubr.msk.f32.mxu1 %vm16656_vm3, %v22679_v26  ;;  %v9763_v25 = vrot.slane %v8548_v18, 4  ;;  %v8550_v57 = vpop.f32.mrb[19].mxu0 }
 0x9d0   :  { %v21823_v23 = vsel %vm3232_vm11, %v9761_v46, %v9763_v25 }
 0x9d1   :  { %15423 = vmatmul.mubr.msk.f32.vlgmr.msra.gmra.mrb[242].mxu1 %vm3258_vm12, %v21646_v36  ;;  %v8553_v37 = vpop.f32.mrb[20].mxu0 }
 0x9d2   :  { %15425 = vmatprep.mubr.msk.f32.mxu1 %vm16656_vm3, %v22679_v26  ;;  %16056 = vmatpush3.bf16.msk.msra.mxu1 %vm18721_vm10, %v16054_v4  ;;  %v9765_v13 = vrot.slane %v8553_v37, 4  ;;  %v8555_v8 = vpop.f32.mrb[21].mxu0 }
 0x9d3   :  { %16057 = vmatprep.subr.bf16.mxu1 %v22632_v34 }
 0x9d4   :  { %v21833_v20 = vsel %vm3232_vm11, %v9763_v25, %v9765_v13 }
 0x9d5   :  { %15426 = vmatmul.mubr.msk.f32.gmra.mrb[244].mxu1 %vm3258_vm12, %v21659_v22 }
 0x9d6   :  { %15428 = vmatprep.mubr.msk.f32.mxu1 %vm16656_vm3, %v22679_v26  ;;  %v8558_v36 = vpop.f32.mrb[22].mxu0 }
 0x9d7   :  { %v16621_v63 = vpop.eup %16620  ;;  %v9767_v45 = vrot.slane %v8558_v36, 4  ;;  %v8560_v15 = vpop.f32.mrb[23].mxu0 }
 0x9d8   :  { %v7131_v47 = vmul.f32 0.6931472, %v16621_v63 }
 0x9d9   :  { %15429 = vmatmul.mubr.msk.f32.gmra.mrb[246].mxu1 %vm3258_vm12, %v21678_v5  ;;  %v21842_v54 = vsel %vm3232_vm11, %v9765_v13, %v9767_v45 }
 0x9da   :  { %v7132_v55 = vadd.f32 %v7131_v47, %v21286_v31  ;;  %15431 = vmatprep.mubr.msk.f32.mxu1 %vm16656_vm3, %v22679_v26  ;;  %v8563_v22 = vpop.f32.mrb[24].mxu0 }
 0x9db   :  { %v9769_v58 = vrot.slane %v8563_v22, 4  ;;  %v8565_v59 = vpop.f32.mrb[25].mxu0 }
 0x9dc   :  { %v7133_v27 = vsub.f32 %v20946_v40, %v7132_v55 }
 0x9dd   :  { %15432 = vmatmul.mubr.msk.f32.gmra.mrb[248].mxu1 %vm3258_vm12, %v21691_v48  ;;  %v21851_v30 = vsel %vm3232_vm11, %v9767_v45, %v9769_v58 }
 0x9de   :  { %15434 = vmatprep.mubr.msk.f32.mxu1 %vm16656_vm3, %v22679_v26  ;;  %v8568_v5 = vpop.f32.mrb[26].mxu0  ;;  %7134 = vst.msk [vmem:[#allocation2] sm:$0x1] %vm7120_vm14, %v7133_v27 }
 0x9df   :  { %v9771_v31 = vrot.slane %v8568_v5, 4  ;;  %v8570_v19 = vpop.f32.mrb[27].mxu0 }
 0x9e1   :  { %15435 = vmatmul.mubr.msk.f32.gmra.mrb[250].mxu1 %vm3258_vm12, %v21707_v29  ;;  %v21859_v51 = vsel %vm3232_vm11, %v9769_v58, %v9771_v31 }
 0x9e2   :  { %15437 = vmatprep.mubr.msk.f32.mxu1 %vm16656_vm3, %v22679_v26  ;;  %v8573_v40 = vpop.f32.mrb[28].mxu0 }
 0x9e3   :  { %v9773_v48 = vrot.slane %v8573_v40, 4  ;;  %v8575_v38 = vpop.f32.mrb[29].mxu0  ;;  %v13430_v40 = vld [vmem:[%s22579_s4 + $0x70] sm:$0xff] }
 0x9e5   :  { %15438 = vmatmul.mubr.msk.f32.gmra.mrb[252].mxu1 %vm3258_vm12, %v21720_v62  ;;  %v21866_v16 = vsel %vm3232_vm11, %v9771_v31, %v9773_v48 }
 0x9e6   :  { %15440 = vmatprep.mubr.msk.f32.mxu1 %vm16656_vm3, %v22679_v26  ;;  %v8578_v53 = vpop.f32.mrb[30].mxu0 }
 0x9e7   :  { %v9775_v29 = vrot.slane %v8578_v53, 4  ;;  %v8580_v17 = vpop.f32.mrb[31].mxu0 }
 0x9e9   :  { %15441 = vmatmul.mubr.msk.f32.gmra.mrb[254].mxu1 %vm3258_vm12, %v21733_v56  ;;  %v21873_v21 = vsel %vm3232_vm11, %v9773_v48, %v9775_v29  ;;  %v13431_v48 = vld [vmem:[%s22579_s4 + $0x78] sm:$0x3] }
 0x9ea   :  { %15443 = vmatprep.mubr.msk.f32.mxu1 %vm16656_vm3, %v22679_v26  ;;  %v8583_v42 = vpop.f32.mrb[32].mxu0 }
 0x9eb   :  { %v9777_v62 = vrot.slane %v8583_v42, 4  ;;  %v8585_v7 = vpop.f32.mrb[33].mxu0 }
 0x9ed   :  { %15444 = vmatmul.mubr.msk.f32.gmra.mrb[0].mxu1 %vm3258_vm12, %v21746_v6  ;;  %v21880_v50 = vsel %vm3232_vm11, %v9775_v29, %v9777_v62  ;;  %v16062_v29 = vpack.c.bf16 %v13431_v48, %v13430_v40 }
 0x9ee   :  { %15446 = vmatprep.mubr.msk.f32.mxu1 %vm16656_vm3, %v22679_v26  ;;  %v8588_v44 = vpop.f32.mrb[34].mxu0 }
 0x9ef   :  { %v9779_v56 = vrot.slane %v8588_v44, 4  ;;  %v8590_v9 = vpop.f32.mrb[35].mxu0 }
 0x9f1   :  { %15447 = vmatmul.mubr.msk.f32.gmra.mrb[2].mxu1 %vm3258_vm12, %v21759_v1  ;;  %v21887_v28 = vsel %vm3232_vm11, %v9777_v62, %v9779_v56 }
 0x9f2   :  { %15449 = vmatprep.mubr.msk.f32.mxu1 %vm16656_vm3, %v22679_v26  ;;  %v21891_v49 = vpop.f32.mrb[36].mxu0 }
 0x9f3   :  { %v9781_v6 = vrot.slane %v21891_v49, 4  ;;  %v8595_v0 = vpop.f32.mrb[37].mxu0 }
 0x9f5   :  { %15450 = vmatmul.mubr.msk.f32.gmra.mrb[4].mxu1 %vm3258_vm12, %v21772_v10  ;;  %v21899_v3 = vsel %vm3232_vm11, %v9779_v56, %v9781_v6 }
 0x9f6   :  { %15452 = vmatprep.mubr.msk.f32.mxu1 %vm16656_vm3, %v22679_v26  ;;  %v21903_v1 = vpop.f32.mrb[38].mxu0 }
 0x9f7   :  { %v8600_v43 = vpop.f32.mrb[39].mxu0 }
 0x9f9   :  { %15453 = vmatmul.mubr.msk.f32.gmra.mrb[6].mxu1 %vm3258_vm12, %v21780_v2  ;;  %v13415_v2 = vld [vmem:[%s22579_s4 + $0x68] sm:$0x3] }
 0x9fa   :  { %15455 = vmatprep.mubr.msk.f32.mxu1 %vm16656_vm3, %v22679_v26  ;;  %v21909_v61 = vpop.f32.mrb[40].mxu0 }
 0x9fb   :  { %v8605_v10 = vpop.f32.mrb[41].mxu0 }
 0x9fd   :  { %15456 = vmatmul.mubr.msk.f32.gmra.mrb[8].mxu1 %vm3258_vm12, %v21786_v39  ;;  %v16058_v39 = vpack.c.bf16 %v13415_v2, %v13414_v35 }
 0x9fe   :  { %15458 = vmatprep.mubr.msk.f32.mxu1 %vm16656_vm3, %v22679_v26  ;;  %v21915_v46 = vpop.f32.mrb[42].mxu0 }
 0x9ff   :  { %v8610_v52 = vpop.f32.mrb[43].mxu0 }
 0xa01   :  { %15459 = vmatmul.mubr.msk.f32.gmra.mrb[10].mxu1 %vm3258_vm12, %v21792_v33 }
 0xa02   :  { %15465 = vmatprep.mubr.msk.f32.mxu1 %vm16656_vm3, %v22679_v26  ;;  %v21927_v12 = vpop.f32.mrb[44].mxu0 }
 0xa03   :  { %v8615_v32 = vpop.f32.mrb[45].mxu0 }
 0xa05   :  { %15466 = vmatmul.mubr.msk.f32.vlgmr.msra.gmra.mrb[242].mxu1 %vm3258_vm12, %v21802_v41 }
 0xa06   :  { %15468 = vmatprep.mubr.msk.f32.mxu1 %vm16656_vm3, %v22679_v26  ;;  %16060 = vmatpush3.bf16.msk.msra.mxu1 %vm18721_vm10, %v16058_v39  ;;  %v21935_v18 = vpop.f32.mrb[46].mxu0 }
 0xa07   :  { %v8620_v4 = vpop.f32.mrb[47].mxu0  ;;  %16061 = vmatprep.subr.bf16.mxu1 %v22632_v34 }
 0xa09   :  { %15469 = vmatmul.mubr.msk.f32.gmra.mrb[244].mxu1 %vm3258_vm12, %v21815_v24 }
 0xa0a   :  { %15471 = vmatprep.mubr.msk.f32.mxu1 %vm16656_vm3, %v22679_v26  ;;  %v21942_v33 = vpop.f32.mrb[48].mxu0 }
 0xa0b   :  { %v8625_v41 = vpop.f32.mrb[49].mxu0 }
 0xa0d   :  { %15472 = vmatmul.mubr.msk.f32.gmra.mrb[246].mxu1 %vm3258_vm12, %v21823_v23 }
 0xa0e   :  { %15474 = vmatprep.mubr.msk.f32.mxu1 %vm16656_vm3, %v22679_v26  ;;  %v21948_v25 = vpop.f32.mrb[50].mxu0 }
 0xa0f   :  { %v8630_v57 = vpop.f32.mrb[51].mxu0 }
 0xa10   :  { %v13462_v57 = vld [vmem:[%s22581_s6 + $0x10] sm:$0xff] }
 0xa11   :  { %15475 = vmatmul.mubr.msk.f32.gmra.mrb[248].mxu1 %vm3258_vm12, %v21833_v20 }
 0xa12   :  { %15477 = vmatprep.mubr.msk.f32.mxu1 %vm16656_vm3, %v22679_v26  ;;  %v21954_v24 = vpop.f32.mrb[52].mxu0 }
 0xa13   :  { %v8635_v37 = vpop.f32.mrb[53].mxu0 }
 0xa15   :  { %15478 = vmatmul.mubr.msk.f32.gmra.mrb[250].mxu1 %vm3258_vm12, %v21842_v54 }
 0xa16   :  { %15480 = vmatprep.mubr.msk.f32.mxu1 %vm16656_vm3, %v22679_v26  ;;  %v21960_v23 = vpop.f32.mrb[54].mxu0 }
 0xa17   :  { %v8640_v13 = vpop.f32.mrb[55].mxu0 }
 0xa19   :  { %15481 = vmatmul.mubr.msk.f32.gmra.mrb[252].mxu1 %vm3258_vm12, %v21851_v30 }
 0xa1a   :  { %15483 = vmatprep.mubr.msk.f32.mxu1 %vm16656_vm3, %v22679_v26  ;;  %v21966_v8 = vpop.f32.mrb[56].mxu0 }
 0xa1b   :  { %v8645_v20 = vpop.f32.mrb[57].mxu0 }
 0xa1d   :  { %15484 = vmatmul.mubr.msk.f32.gmra.mrb[254].mxu1 %vm3258_vm12, %v21859_v51 }
 0xa1e   :  { %15486 = vmatprep.mubr.msk.f32.mxu1 %vm16656_vm3, %v22679_v26  ;;  %v21972_v36 = vpop.f32.mrb[58].mxu0 }
 0xa1f   :  { %v8650_v63 = vpop.f32.mrb[59].mxu0 }
 0xa21   :  { %15487 = vmatmul.mubr.msk.f32.gmra.mrb[0].mxu1 %vm3258_vm12, %v21866_v16 }
 0xa22   :  { %15489 = vmatprep.mubr.msk.f32.mxu1 %vm16656_vm3, %v22679_v26  ;;  %v21978_v45 = vpop.f32.mrb[60].mxu0 }
 0xa23   :  { %v8655_v15 = vpop.f32.mrb[61].mxu0 }
 0xa25   :  { %15490 = vmatmul.mubr.msk.f32.gmra.mrb[2].mxu1 %vm3258_vm12, %v21873_v21 }
 0xa26   :  { %15492 = vmatprep.mubr.msk.f32.mxu1 %vm16656_vm3, %v22679_v26  ;;  %v21984_v47 = vpop.f32.mrb[62].mxu0 }
 0xa27   :  { %v8660_v54 = vpop.f32.mrb[63].mxu0  ;;  %v10156_v55 = vrot.slane %v21984_v47, 4 }
 0xa29   :  { %15493 = vmatmul.mubr.msk.f32.gmra.mrb[4].mxu1 %vm3258_vm12, %v21880_v50 }
 0xa2a   :  { %15495 = vmatprep.mubr.msk.f32.mxu1 %vm16656_vm3, %v22679_v26  ;;  %v8663_v22 = vpop.f32.mrb[64].mxu0 }
 0xa2b   :  { %v10157_v58 = vrot.slane %v8663_v22, 4  ;;  %v8665_v59 = vpop.f32.mrb[65].mxu0 }
 0xa2d   :  { %15496 = vmatmul.mubr.msk.f32.gmra.mrb[6].mxu1 %vm3258_vm12, %v21887_v28  ;;  %v21994_v27 = vsel %vm3232_vm11, %v10156_v55, %v10157_v58 }
 0xa2e   :  { %15498 = vmatprep.mubr.msk.f32.mxu1 %vm16656_vm3, %v22679_v26  ;;  %v8668_v30 = vpop.f32.mrb[66].mxu0 }
 0xa2f   :  { %v10159_v5 = vrot.slane %v8668_v30, 4  ;;  %v8670_v31 = vpop.f32.mrb[67].mxu0 }
 0xa30   :  { %v13446_v31 = vld [vmem:[%s22579_s4 + $0x80] sm:$0xff] }
 0xa31   :  { %15499 = vmatmul.mubr.msk.f32.gmra.mrb[8].mxu1 %vm3258_vm12, %v21899_v3  ;;  %v22001_v19 = vsel %vm3232_vm11, %v10157_v58, %v10159_v5 }
 0xa32   :  { %15501 = vmatprep.mubr.msk.f32.mxu1 %vm16656_vm3, %v22679_v26  ;;  %v8673_v51 = vpop.f32.mrb[68].mxu0 }
 0xa33   :  { %v10161_v38 = vrot.slane %v8673_v51, 4  ;;  %v8675_v16 = vpop.f32.mrb[69].mxu0 }
 0xa35   :  { %15502 = vmatmul.mubr.msk.f32.gmra.mrb[10].mxu1 %vm3258_vm12, %v9781_v6  ;;  %v22015_v53 = vsel %vm3232_vm11, %v10159_v5, %v10161_v38 }
 0xa36   :  { %15508 = vmatprep.mubr.msk.f32.mxu1 %vm16656_vm3, %v22679_v26  ;;  %v8678_v17 = vpop.f32.mrb[70].mxu0 }
 0xa37   :  { %v10163_v21 = vrot.slane %v8678_v17, 4  ;;  %v8680_v42 = vpop.f32.mrb[71].mxu0 }
 0xa39   :  { %15509 = vmatmul.mubr.msk.f32.vlgmr.msra.gmra.mrb[242].mxu1 %vm3258_vm12, %v21903_v1  ;;  %v22022_v62 = vsel %vm3232_vm11, %v10161_v38, %v10163_v21 }
 0xa3a   :  { %15511 = vmatprep.mubr.msk.f32.mxu1 %vm16656_vm3, %v22679_v26  ;;  %16064 = vmatpush3.bf16.msk.msra.mxu1 %vm18721_vm10, %v16062_v29  ;;  %v8683_v7 = vpop.f32.mrb[72].mxu0 }
 0xa3b   :  { %v10165_v50 = vrot.slane %v8683_v7, 4  ;;  %v8685_v44 = vpop.f32.mrb[73].mxu0  ;;  %16065 = vmatprep.subr.bf16.mxu1 %v22632_v34 }
 0xa3d   :  { %15512 = vmatmul.mubr.msk.f32.gmra.mrb[244].mxu1 %vm3258_vm12, %v21909_v61  ;;  %v22032_v56 = vsel %vm3232_vm11, %v10163_v21, %v10165_v50 }
 0xa3e   :  { %15514 = vmatprep.mubr.msk.f32.mxu1 %vm16656_vm3, %v22679_v26  ;;  %v8688_v9 = vpop.f32.mrb[74].mxu0 }
 0xa3f   :  { %v10167_v28 = vrot.slane %v8688_v9, 4  ;;  %v8690_v49 = vpop.f32.mrb[75].mxu0 }
 0xa41   :  { %15515 = vmatmul.mubr.msk.f32.gmra.mrb[246].mxu1 %vm3258_vm12, %v21915_v46  ;;  %v22039_v6 = vsel %vm3232_vm11, %v10165_v50, %v10167_v28 }
 0xa42   :  { %15517 = vmatprep.mubr.msk.f32.mxu1 %vm16656_vm3, %v22679_v26  ;;  %v8693_v0 = vpop.f32.mrb[76].mxu0 }
 0xa43   :  { %v10169_v3 = vrot.slane %v8693_v0, 4  ;;  %v8695_v1 = vpop.f32.mrb[77].mxu0 }
 0xa45   :  { %15518 = vmatmul.mubr.msk.f32.gmra.mrb[248].mxu1 %vm3258_vm12, %v21927_v12  ;;  %v22046_v43 = vsel %vm3232_vm11, %v10167_v28, %v10169_v3 }
 0xa46   :  { %15520 = vmatprep.mubr.msk.f32.mxu1 %vm16656_vm3, %v22679_v26  ;;  %v8698_v61 = vpop.f32.mrb[78].mxu0 }
 0xa47   :  { %v10171_v10 = vrot.slane %v8698_v61, 4  ;;  %v8700_v46 = vpop.f32.mrb[79].mxu0 }
 0xa49   :  { %15521 = vmatmul.mubr.msk.f32.gmra.mrb[250].mxu1 %vm3258_vm12, %v21935_v18  ;;  %v22053_v35 = vsel %vm3232_vm11, %v10169_v3, %v10171_v10 }
 0xa4a   :  { %15523 = vmatprep.mubr.msk.f32.mxu1 %vm16656_vm3, %v22679_v26  ;;  %v8703_v2 = vpop.f32.mrb[80].mxu0 }
 0xa4b   :  { %v10173_v52 = vrot.slane %v8703_v2, 4  ;;  %v8705_v39 = vpop.f32.mrb[81].mxu0 }
 0xa4d   :  { %15524 = vmatmul.mubr.msk.f32.gmra.mrb[252].mxu1 %vm3258_vm12, %v21942_v33  ;;  %v22060_v12 = vsel %vm3232_vm11, %v10171_v10, %v10173_v52  ;;  %v13463_v33 = vld [vmem:[%s22581_s6 + $0x18] sm:$0x3] }
 0xa4e   :  { %15526 = vmatprep.mubr.msk.f32.mxu1 %vm16656_vm3, %v22679_v26  ;;  %v8708_v32 = vpop.f32.mrb[82].mxu0  ;;  %v16070_v13 = vpack.c.bf16 %v13463_v33, %v13462_v57 }
 0xa4f   :  { %v10175_v18 = vrot.slane %v8708_v32, 4  ;;  %v8710_v4 = vpop.f32.mrb[83].mxu0 }
 0xa50   :  { %16072 = vmatpush3.bf16.msk.msra.mxu0 %vm18721_vm10, %v16070_v13 }
 0xa51   :  { %15527 = vmatmul.mubr.msk.f32.gmra.mrb[254].mxu1 %vm3258_vm12, %v21948_v25  ;;  %v22067_v41 = vsel %vm3232_vm11, %v10173_v52, %v10175_v18  ;;  %16073 = vmatprep.subr.bf16.mxu0 %v22632_v34 }
 0xa52   :  { %15529 = vmatprep.mubr.msk.f32.mxu1 %vm16656_vm3, %v22679_v26  ;;  %v8713_v37 = vpop.f32.mrb[84].mxu0 }
 0xa53   :  { %v10177_v20 = vrot.slane %v8713_v37, 4  ;;  %v8715_v63 = vpop.f32.mrb[85].mxu0 }
 0xa55   :  { %15530 = vmatmul.mubr.msk.f32.gmra.mrb[0].mxu1 %vm3258_vm12, %v21954_v24  ;;  %v22082_v25 = vsel %vm3232_vm11, %v10175_v18, %v10177_v20 }
 0xa56   :  { %15532 = vmatprep.mubr.msk.f32.mxu1 %vm16656_vm3, %v22679_v26  ;;  %v22087_v15 = vpop.f32.mrb[86].mxu0 }
 0xa57   :  { %v10179_v54 = vrot.slane %v22087_v15, 4  ;;  %v8720_v55 = vpop.f32.mrb[87].mxu0 }
 0xa59   :  { %15533 = vmatmul.mubr.msk.f32.gmra.mrb[2].mxu1 %vm3258_vm12, %v21960_v23  ;;  %v10180_v24 = vsel %vm3232_vm11, %v10177_v20, %v10179_v54 }
 0xa5a   :  { %15535 = vmatprep.mubr.msk.f32.mxu1 %vm16656_vm3, %v22679_v26  ;;  %v22097_v22 = vpop.f32.mrb[88].mxu0 }
 0xa5b   :  { %v8725_v58 = vpop.f32.mrb[89].mxu0 }
 0xa5d   :  { %15536 = vmatmul.mubr.msk.f32.gmra.mrb[4].mxu1 %vm3258_vm12, %v21966_v8 }
 0xa5e   :  { %15538 = vmatprep.mubr.msk.f32.mxu1 %vm16656_vm3, %v22679_v26  ;;  %v8728_v59 = vpop.f32.mrb[90].mxu0 }
 0xa5f   :  { %v8730_v30 = vpop.f32.mrb[91].mxu0 }
 0xa61   :  { %15539 = vmatmul.mubr.msk.f32.gmra.mrb[6].mxu1 %vm3258_vm12, %v21972_v36  ;;  %v13447_v36 = vld [vmem:[%s22579_s4 + $0x88] sm:$0x3] }
 0xa62   :  { %15541 = vmatprep.mubr.msk.f32.mxu1 %vm16656_vm3, %v22679_v26  ;;  %v8733_v23 = vpop.f32.mrb[92].mxu0 }
 0xa63   :  { %v8735_v5 = vpop.f32.mrb[93].mxu0 }
 0xa65   :  { %15542 = vmatmul.mubr.msk.f32.gmra.mrb[8].mxu1 %vm3258_vm12, %v21978_v45  ;;  %v16066_v45 = vpack.c.bf16 %v13447_v36, %v13446_v31 }
 0xa66   :  { %15544 = vmatprep.mubr.msk.f32.mxu1 %vm16656_vm3, %v22679_v26  ;;  %v8738_v8 = vpop.f32.mrb[94].mxu0 }
 0xa67   :  { %v8740_v51 = vpop.f32.mrb[95].mxu0 }
 0xa69   :  { %15545 = vmatmul.mubr.msk.f32.gmra.mrb[10].mxu1 %vm3258_vm12, %v21984_v47 }
 0xa6a   :  { %15551 = vmatprep.mubr.msk.f32.mxu1 %vm16656_vm3, %v22679_v26  ;;  %v8743_v40 = vpop.f32.mrb[96].mxu0 }
 0xa6b   :  { %v8745_v48 = vpop.f32.mrb[97].mxu0 }
 0xa6d   :  { %15552 = vmatmul.mubr.msk.f32.vlgmr.msra.gmra.mrb[242].mxu1 %vm3258_vm12, %v21994_v27 }
 0xa6e   :  { %15554 = vmatprep.mubr.msk.f32.mxu1 %vm16656_vm3, %v22679_v26  ;;  %16068 = vmatpush3.bf16.msk.msra.mxu1 %vm18721_vm10, %v16066_v45  ;;  %v8748_v38 = vpop.f32.mrb[98].mxu0 }
 0xa6f   :  { %v8750_v16 = vpop.f32.mrb[99].mxu0 }
 0xa71   :  { %15555 = vmatmul.mubr.msk.f32.gmra.mrb[244].mxu1 %vm3258_vm12, %v22001_v19 }
 0xa72   :  { %15557 = vmatprep.mubr.msk.f32.mxu1 %vm16656_vm3, %v22679_v26  ;;  %v8753_v47 = vpop.f32.mrb[100].mxu0 }
 0xa73   :  { %v8755_v29 = vpop.f32.mrb[101].mxu0 }
 0xa75   :  { %15558 = vmatmul.mubr.msk.f32.gmra.mrb[246].mxu1 %vm3258_vm12, %v22015_v53 }
 0xa76   :  { %15560 = vmatprep.mubr.msk.f32.mxu1 %vm16656_vm3, %v22679_v26  ;;  %v8758_v27 = vpop.f32.mrb[102].mxu0 }
 0xa77   :  { %v8760_v17 = vpop.f32.mrb[103].mxu0 }
 0xa79   :  { %15561 = vmatmul.mubr.msk.f32.gmra.mrb[248].mxu1 %vm3258_vm12, %v22022_v62 }
 0xa7a   :  { %15563 = vmatprep.mubr.msk.f32.mxu1 %vm16656_vm3, %v22679_v26  ;;  %v8763_v19 = vpop.f32.mrb[104].mxu0 }
 0xa7b   :  { %v8765_v21 = vpop.f32.mrb[105].mxu0 }
 0xa7d   :  { %15564 = vmatmul.mubr.msk.f32.gmra.mrb[250].mxu1 %vm3258_vm12, %v22032_v56 }
 0xa7e   :  { %15566 = vmatprep.mubr.msk.f32.mxu1 %vm16656_vm3, %v22679_v26  ;;  %v8768_v53 = vpop.f32.mrb[106].mxu0 }
 0xa7f   :  { %v8770_v42 = vpop.f32.mrb[107].mxu0 }
 0xa81   :  { %15567 = vmatmul.mubr.msk.f32.gmra.mrb[252].mxu1 %vm3258_vm12, %v22039_v6 }
 0xa82   :  { %15569 = vmatprep.mubr.msk.f32.mxu1 %vm16656_vm3, %v22679_v26  ;;  %v8773_v62 = vpop.f32.mrb[108].mxu0 }
 0xa83   :  { %v8775_v7 = vpop.f32.mrb[109].mxu0 }
 0xa84   :  { %v10604_v7 = vld [vmem:[%s22581_s6 + $0x8] sm:$0x3] }
 0xa85   :  { %15570 = vmatmul.mubr.msk.f32.gmra.mrb[254].mxu1 %vm3258_vm12, %v22046_v43 }
 0xa86   :  { %15572 = vmatprep.mubr.msk.f32.mxu1 %vm16656_vm3, %v22679_v26  ;;  %v8778_v50 = vpop.f32.mrb[110].mxu0 }
 0xa87   :  { %v8780_v44 = vpop.f32.mrb[111].mxu0 }
 0xa89   :  { %15573 = vmatmul.mubr.msk.f32.gmra.mrb[0].mxu1 %vm3258_vm12, %v22053_v35 }
 0xa8a   :  { %15575 = vmatprep.mubr.msk.f32.mxu1 %vm16656_vm3, %v22679_v26  ;;  %v8783_v56 = vpop.f32.mrb[112].mxu0 }
 0xa8b   :  { %v8785_v9 = vpop.f32.mrb[113].mxu0 }
 0xa8d   :  { %15576 = vmatmul.mubr.msk.f32.gmra.mrb[2].mxu1 %vm3258_vm12, %v22060_v12 }
 0xa8e   :  { %15578 = vmatprep.mubr.msk.f32.mxu1 %vm16656_vm3, %v22679_v26 }
 0xa91   :  { %15579 = vmatmul.mubr.msk.f32.gmra.mrb[4].mxu1 %vm3258_vm12, %v22067_v41 }
 0xa92   :  { %15581 = vmatprep.mubr.msk.f32.mxu1 %vm16656_vm3, %v22679_v26 }
 0xa95   :  { %15582 = vmatmul.mubr.msk.f32.gmra.mrb[6].mxu1 %vm3258_vm12, %v22082_v25 }
 0xa96   :  { %15584 = vmatprep.mubr.msk.f32.mxu1 %vm16656_vm3, %v22679_v26 }
 0xa99   :  { %15585 = vmatmul.mubr.msk.f32.gmra.mrb[8].mxu1 %vm3258_vm12, %v10180_v24 }
 0xa9a   :  { %15587 = vmatprep.mubr.msk.f32.mxu1 %vm16656_vm3, %v22679_v26 }
 0xa9d   :  { %15588 = vmatmul.mubr.msk.f32.gmra.mrb[10].mxu1 %vm3258_vm12, %v10179_v54 }
 0xa9e   :  { %15594 = vmatprep.mubr.msk.f32.mxu1 %vm16656_vm3, %v22679_v26 }
 0xaa1   :  { %15595 = vmatmul.mubr.msk.f32.vlgmr.msra.gmra.mrb[242].mxu1 %vm3258_vm12, %v22097_v22 }
 0xaa2   :  { %15597 = vmatprep.mubr.msk.f32.mxu1 %vm16656_vm3, %v22679_v26 }
 0xaa5   :  { %15598 = vmatmul.mubr.msk.f32.gmra.mrb[244].mxu1 %vm3258_vm12, %v8728_v59 }
 0xaa6   :  { %15600 = vmatprep.mubr.msk.f32.mxu1 %vm16656_vm3, %v22679_v26 }
 0xaa9   :  { %15601 = vmatmul.mubr.msk.f32.gmra.mrb[246].mxu1 %vm3258_vm12, %v8733_v23 }
 0xaaa   :  { %15603 = vmatprep.mubr.msk.f32.mxu1 %vm16656_vm3, %v22679_v26 }
 0xaad   :  { %15604 = vmatmul.mubr.msk.f32.gmra.mrb[248].mxu1 %vm3258_vm12, %v8738_v8 }
 0xaae   :  { %15606 = vmatprep.mubr.msk.f32.mxu1 %vm16656_vm3, %v22679_v26 }
 0xab1   :  { %15607 = vmatmul.mubr.msk.f32.gmra.mrb[250].mxu1 %vm3258_vm12, %v8743_v40 }
 0xab2   :  { %15609 = vmatprep.mubr.msk.f32.mxu1 %vm16656_vm3, %v22679_v26 }
 0xab5   :  { %15610 = vmatmul.mubr.msk.f32.gmra.mrb[252].mxu1 %vm3258_vm12, %v8748_v38 }
 0xab6   :  { %15612 = vmatprep.mubr.msk.f32.mxu1 %vm16656_vm3, %v22679_v26 }
 0xab9   :  { %15613 = vmatmul.mubr.msk.f32.gmra.mrb[254].mxu1 %vm3258_vm12, %v8753_v47 }
 0xaba   :  { %15615 = vmatprep.mubr.msk.f32.mxu1 %vm16656_vm3, %v22679_v26 }
 0xabd   :  { %15616 = vmatmul.mubr.msk.f32.gmra.mrb[0].mxu1 %vm3258_vm12, %v8758_v27 }
 0xabe   :  { %15618 = vmatprep.mubr.msk.f32.mxu1 %vm16656_vm3, %v22679_v26 }
 0xac1   :  { %15619 = vmatmul.mubr.msk.f32.gmra.mrb[2].mxu1 %vm3258_vm12, %v8763_v19 }
 0xac2   :  { %15621 = vmatprep.mubr.msk.f32.mxu1 %vm16656_vm3, %v22679_v26 }
 0xac5   :  { %15622 = vmatmul.mubr.msk.f32.gmra.mrb[4].mxu1 %vm3258_vm12, %v8768_v53  ;;  %v22227_v53 = vld [vmem:[%s22580_s5] ss:$0 sm:$0xff] }
 0xac6   :  { %15624 = vmatprep.mubr.msk.f32.mxu1 %vm16656_vm3, %v22679_v26 }
 0xac9   :  { %15625 = vmatmul.mubr.msk.f32.gmra.mrb[6].mxu1 %vm3258_vm12, %v8773_v62  ;;  %v10603_v62 = vld [vmem:[%s22581_s6] sm:$0xff] }
 0xaca   :  { %15627 = vmatprep.mubr.msk.f32.mxu1 %vm16656_vm3, %v22679_v26 }
 0xacd   :  { %15628 = vmatmul.mubr.msk.f32.gmra.mrb[8].mxu1 %vm3258_vm12, %v8778_v50 }
 0xace   :  { %15630 = vmatprep.mubr.msk.f32.mxu1 %vm16656_vm3, %v22679_v26 }
 0xad1   :  { %15631 = vmatmul.mubr.msk.f32.gmra.mrb[10].mxu1 %vm3258_vm12, %v8783_v56 }
 0xb74   :  { %v10463_v28 = vpop.f32.mrb[242].mxu1 }
 0xb75   :  { %v15596_v49 = vpop.f32.mrb[243].mxu1 }
 0xb78   :  { %v10468_v6 = vpop.f32.mrb[244].mxu1 }
 0xb79   :  { %v15599_v0 = vpop.f32.mrb[245].mxu1 }
 0xb7c   :  { %v10473_v3 = vpop.f32.mrb[246].mxu1 }
 0xb7d   :  { %v15602_v1 = vpop.f32.mrb[247].mxu1 }
 0xb7e   :  { %v13469_v1 = vld [vmem:[%s22581_s6 + $0x28] sm:$0x3] }
 0xb80   :  { %v10478_v43 = vpop.f32.mrb[248].mxu1 }
 0xb81   :  { %v15605_v61 = vpop.f32.mrb[249].mxu1  ;;  %v10544_v46 = vrot.slane %v10478_v43, 1 }
 0xb84   :  { %v10483_v10 = vpop.f32.mrb[250].mxu1 }
 0xb85   :  { %v10545_v35 = vrot.slane %v10483_v10, 1  ;;  %v15608_v2 = vpop.f32.mrb[251].mxu1 }
 0xb86   :  { %v13473_v2 = vld [vmem:[%s22581_s6 + $0x38] sm:$0x3] }
 0xb87   :  { %v10546_v52 = vsel %vm1659_vm5, %v10544_v46, %v10545_v35 }
 0xb88   :  { %v10555_v39 = vmax.f32 %v10463_v28, %v10546_v52  ;;  %v10488_v12 = vpop.f32.mrb[252].mxu1 }
 0xb89   :  { %v10547_v32 = vrot.slane %v10488_v12, 1  ;;  %v15611_v18 = vpop.f32.mrb[253].mxu1  ;;  %v13476_v12 = vld [vmem:[%s22581_s6 + $0x40] sm:$0xff] }
 0xb8b   :  { %v10548_v4 = vsel %vm1659_vm5, %v10545_v35, %v10547_v32  ;;  %v13472_v35 = vld [vmem:[%s22581_s6 + $0x30] sm:$0xff] }
 0xb8c   :  { %v10556_v41 = vmax.f32 %v10468_v6, %v10548_v4  ;;  %v10493_v57 = vpop.f32.mrb[254].mxu1  ;;  %v16074_v6 = vpack.c.bf16 %v10604_v7, %v10603_v62  ;;  %v16082_v52 = vpack.c.bf16 %v13473_v2, %v13472_v35  ;;  %v13512_v62 = vld [vmem:[%s22581_s6 + $0xd0] sm:$0xff]  ;;  %v13513_v7 = vld [vmem:[%s22581_s6 + $0xd8] sm:$0x3]  ;;  %v13525_v35 = vld [vmem:[%s22581_s6 + $0x108] sm:$0x3] }
 0xb8d   :  { %v10549_v33 = vrot.slane %v10493_v57, 1  ;;  %v15614_v37 = vpop.f32.mrb[255].mxu1  ;;  %v10562_v15 = vrot.slane %v10493_v57, 2  ;;  %v13481_v57 = vld [vmem:[%s22581_s6 + $0x58] sm:$0x3] }
 0xb8f   :  { %v10550_v13 = vsel %vm1659_vm5, %v10547_v32, %v10549_v33  ;;  %v10558_v20 = vmax.f32 %v10478_v43, %v10549_v33  ;;  %v13477_v32 = vld [vmem:[%s22581_s6 + $0x48] sm:$0x3] }
 0xb90   :  { %v10557_v63 = vmax.f32 %v10473_v3, %v10550_v13  ;;  %v10498_v25 = vpop.f32.mrb[0].mxu1  ;;  %v13468_v3 = vld [vmem:[%s22581_s6 + $0x20] sm:$0xff]  ;;  %v16086_v18 = vpack.c.bf16 %v13477_v32, %v13476_v12  ;;  %v13528_v12 = vld [vmem:[%s22581_s6 + $0x110] sm:$0xff]  ;;  %v13529_v32 = vld [vmem:[%s22581_s6 + $0x118] sm:$0x3] }
 0xb91   :  { %v10563_v54 = vrot.slane %v10498_v25, 2  ;;  %v15617_v55 = vpop.f32.mrb[1].mxu1  ;;  %v16078_v46 = vpack.c.bf16 %v13469_v1, %v13468_v3  ;;  %v13484_v13 = vld [vmem:[%s22581_s6 + $0x60] sm:$0xff] }
 0xb93   :  { %v10564_v24 = vsel %vm1768_vm6, %v10562_v15, %v10563_v54  ;;  %v13488_v15 = vld [vmem:[%s22581_s6 + $0x70] sm:$0xff] }
 0xb94   :  { %v10573_v22 = vmax.f32 %v10555_v39, %v10564_v24  ;;  %v10503_v58 = vpop.f32.mrb[2].mxu1 }
 0xb95   :  { %v10565_v59 = vrot.slane %v10503_v58, 2  ;;  %v15620_v30 = vpop.f32.mrb[3].mxu1  ;;  %v13493_v58 = vld [vmem:[%s22581_s6 + $0x88] sm:$0x3] }
 0xb97   :  { %v10566_v23 = vsel %vm1768_vm6, %v10563_v54, %v10565_v59  ;;  %v13489_v54 = vld [vmem:[%s22581_s6 + $0x78] sm:$0x3] }
 0xb98   :  { %v22218_v5 = vmax.f32 %v10556_v41, %v10566_v23  ;;  %v10508_v8 = vpop.f32.mrb[4].mxu1  ;;  %v13480_v41 = vld [vmem:[%s22581_s6 + $0x50] sm:$0xff]  ;;  %v16098_v55 = vpack.c.bf16 %v13489_v54, %v13488_v15 }
 0xb99   :  { %v10567_v31 = vrot.slane %v10508_v8, 2  ;;  %v15623_v36 = vpop.f32.mrb[5].mxu1  ;;  %v10580_v38 = vrot.slane %v10508_v8, 3  ;;  %v16090_v33 = vpack.c.bf16 %v13481_v57, %v13480_v41  ;;  %v13497_v8 = vld [vmem:[%s22581_s6 + $0x98] sm:$0x3]  ;;  %v13536_v57 = vld [vmem:[%s22581_s6 + $0x130] sm:$0xff] }
 0xb9a   :  { %v13544_v54 = vld [vmem:[%s22581_s6 + $0x150] sm:$0xff] }
 0xb9b   :  { %v10568_v51 = vsel %vm1768_vm6, %v10565_v59, %v10567_v31  ;;  %v10576_v45 = vmax.f32 %v10558_v20, %v10567_v31  ;;  %v13485_v20 = vld [vmem:[%s22581_s6 + $0x68] sm:$0x3] }
 0xb9c   :  { %v22221_v40 = vmax.f32 %v10557_v63, %v10568_v51  ;;  %v10513_v48 = vpop.f32.mrb[6].mxu1  ;;  %v16094_v63 = vpack.c.bf16 %v13485_v20, %v13484_v13  ;;  %v13500_v51 = vld [vmem:[%s22581_s6 + $0xa0] sm:$0xff] }
 0xb9d   :  { %v10581_v16 = vrot.slane %v10513_v48, 3  ;;  %v15626_v47 = vpop.f32.mrb[7].mxu1  ;;  %v13540_v20 = vld [vmem:[%s22581_s6 + $0x140] sm:$0xff] }
 0xb9e   :  { %v13505_v47 = vld [vmem:[%s22581_s6 + $0xb8] sm:$0x3] }
 0xb9f   :  { %v10582_v29 = vsel %vm1877_vm8, %v10580_v38, %v10581_v16 }
 0xba0   :  { %v10591_v27 = vmax.f32 %v10573_v22, %v10582_v29  ;;  %v10518_v17 = vpop.f32.mrb[8].mxu1  ;;  %v13492_v22 = vld [vmem:[%s22581_s6 + $0x80] sm:$0xff] }
 0xba1   :  { %v10583_v19 = vrot.slane %v10518_v17, 3  ;;  %v15629_v21 = vpop.f32.mrb[9].mxu1  ;;  %v16102_v59 = vpack.c.bf16 %v13493_v58, %v13492_v22  ;;  %v13508_v17 = vld [vmem:[%s22581_s6 + $0xc0] sm:$0xff] }
 0xba2   :  { %v10595_v42 = vadd.f32 %v22227_v53, %v10591_v27  ;;  %v13548_v58 = vld [vmem:[%s22581_s6 + $0x160] sm:$0xff] }
 0xba3   :  { %v22237_v50 = vsel %vm1877_vm8, %v10581_v16, %v10583_v19  ;;  %v13504_v16 = vld [vmem:[%s22581_s6 + $0xb0] sm:$0xff] }
 0xba4   :  { %v22239_v44 = vmax.f32 %v10595_v42, 0.0  ;;  %v10592_v56 = vmax.f32 %v22218_v5, %v22237_v50  ;;  %v10523_v9 = vpop.f32.mrb[10].mxu1  ;;  %v13496_v5 = vld [vmem:[%s22581_s6 + $0x90] sm:$0xff]  ;;  %v16114_v29 = vpack.c.bf16 %v13505_v47, %v13504_v16  ;;  %v16122_v50 = vpack.c.bf16 %v13513_v7, %v13512_v62 }
 0xba5   :  { %v10585_v28 = vrot.slane %v10523_v9, 3  ;;  %v15632_v49 = vpop.f32.mrb[11].mxu1  ;;  %v16106_v31 = vpack.c.bf16 %v13497_v8, %v13496_v5  ;;  %v13517_v9 = vld [vmem:[%s22581_s6 + $0xe8] sm:$0x3]  ;;  %v13552_v5 = vld [vmem:[%s22581_s6 + $0x170] sm:$0xff] }
 0xba6   :  { %v10608_v0 = vrot.slane %v22239_v44, 1  ;;  %v10761_v39 = vrot.slane %v22239_v44, 2  ;;  %v10840_v4 = vrot.slane %v22239_v44, 3  ;;  %v10919_v37 = vrot.slane %v22239_v44, 4  ;;  %v13553_v8 = vld [vmem:[%s22581_s6 + $0x178] sm:$0x3] }
 0xba7   :  { %v22251_v43 = vsel %vm1877_vm8, %v10583_v19, %v10585_v28  ;;  %v22253_v61 = vmax.f32 %v10576_v45, %v10585_v28  ;;  %v10998_v25 = vrot.slane %v22239_v44, 5  ;;  %v11077_v24 = vrot.slane %v22239_v44, 6  ;;  %v13501_v45 = vld [vmem:[%s22581_s6 + $0xa8] sm:$0x3] }
 0xba8   :  { %v10593_v10 = vmax.f32 %v22221_v40, %v22251_v43  ;;  %15638 = vmatmul.mubr.msk.f32.vlgmr.msra.gmra.mrb[114].mxu0 %vm3258_vm12, %v10608_v0  ;;  %v10596_v30 = vadd.f32 %v22227_v53, %v10592_v56  ;;  %v11156_v23 = vrot.slane %v22239_v44, 7  ;;  %v16110_v48 = vpack.c.bf16 %v13501_v45, %v13500_v51  ;;  %v13509_v19 = vld [vmem:[%s22581_s6 + $0xc8] sm:$0x3]  ;;  %v13516_v56 = vld [vmem:[%s22581_s6 + $0xe0] sm:$0xff]  ;;  %v13521_v0 = vld [vmem:[%s22581_s6 + $0xf8] sm:$0x3] }
 0xba9   :  { %16076 = vmatpush3.bf16.msk.msra.mxu0 %vm18721_vm10, %v16074_v6  ;;  %15644 = vmatprep.mubr.msk.f32.mxu0 %vm16656_vm3, %v22679_v26  ;;  %v16118_v21 = vpack.c.bf16 %v13509_v19, %v13508_v17  ;;  %v16126_v28 = vpack.c.bf16 %v13517_v9, %v13516_v56  ;;  %v13520_v6 = vld [vmem:[%s22581_s6 + $0xf0] sm:$0xff]  ;;  %v16138_v40 = vpack.c.bf16 %v13529_v32, %v13528_v12  ;;  %v13556_v51 = vld [vmem:[%s22581_s6 + $0x180] sm:$0xff]  ;;  %v13557_v45 = vld [vmem:[%s22581_s6 + $0x188] sm:$0x3] }
 0xbaa   :  { %16077 = vmatprep.subr.bf16.mxu0 %v22632_v34  ;;  %v10600_v36 = vmax.f32 %v10596_v30, 0.0  ;;  %v16130_v3 = vpack.c.bf16 %v13521_v0, %v13520_v6 }
 0xbac   :  { %15645 = vmatmul.mubr.msk.f32.vlgmr.msra.gmra.mrb[116].mxu0 %vm3258_vm12, %v22239_v44  ;;  %v11314_v38 = vrot.slane %v10600_v36, 1  ;;  %v11393_v27 = vrot.slane %v10600_v36, 2  ;;  %v11472_v42 = vrot.slane %v10600_v36, 3  ;;  %v11551_v44 = vrot.slane %v10600_v36, 4 }
 0xbad   :  { %16080 = vmatpush3.bf16.msk.msra.mxu0 %vm18721_vm10, %v16078_v46  ;;  %15651 = vmatprep.mubr.msk.f32.mxu0 %vm16656_vm3, %v22679_v26  ;;  %v11630_v49 = vrot.slane %v10600_v36, 5  ;;  %v11709_v1 = vrot.slane %v10600_v36, 6  ;;  %v13524_v46 = vld [vmem:[%s22581_s6 + $0x100] sm:$0xff] }
 0xbae   :  { %16081 = vmatprep.subr.bf16.mxu0 %v22632_v34  ;;  %v16134_v2 = vpack.c.bf16 %v13525_v35, %v13524_v46 }
 0xbb0   :  { %15652 = vmatmul.mubr.msk.f32.vlgmr.msra.gmra.mrb[118].mxu0 %vm3258_vm12, %v10761_v39  ;;  %v11788_v39 = vrot.slane %v10600_v36, 7 }
 0xbb1   :  { %16084 = vmatpush3.bf16.msk.msra.mxu0 %vm18721_vm10, %v16082_v52  ;;  %15658 = vmatprep.mubr.msk.f32.mxu0 %vm16656_vm3, %v22679_v26  ;;  %v10597_v52 = vadd.f32 %v22227_v53, %v10593_v10  ;;  %v13532_v10 = vld [vmem:[%s22581_s6 + $0x120] sm:$0xff] }
 0xbb2   :  { %16085 = vmatprep.subr.bf16.mxu0 %v22632_v34 }
 0xbb3   :  { %v10601_v43 = vmax.f32 %v10597_v52, 0.0 }
 0xbb4   :  { %15659 = vmatmul.mubr.msk.f32.vlgmr.msra.gmra.mrb[120].mxu0 %vm3258_vm12, %v10840_v4 }
 0xbb5   :  { %16088 = vmatpush3.bf16.msk.msra.mxu0 %vm18721_vm10, %v16086_v18  ;;  %15665 = vmatprep.mubr.msk.f32.mxu0 %vm16656_vm3, %v22679_v26  ;;  %v13533_v18 = vld [vmem:[%s22581_s6 + $0x128] sm:$0x3]  ;;  %v11946_v41 = vrot.slane %v10601_v43, 1  ;;  %v12025_v13 = vrot.slane %v10601_v43, 2  ;;  %v12104_v15 = vrot.slane %v10601_v43, 3  ;;  %v12183_v22 = vrot.slane %v10601_v43, 4 }
 0xbb6   :  { %16089 = vmatprep.subr.bf16.mxu0 %v22632_v34  ;;  %v16142_v4 = vpack.c.bf16 %v13533_v18, %v13532_v10  ;;  %v12420_v16 = vrot.slane %v10601_v43, 7 }
 0xbb8   :  { %15666 = vmatmul.mubr.msk.f32.vlgmr.msra.gmra.mrb[122].mxu0 %vm3258_vm12, %v10919_v37 }
 0xbb9   :  { %16092 = vmatpush3.bf16.msk.msra.mxu0 %vm18721_vm10, %v16090_v33  ;;  %15672 = vmatprep.mubr.msk.f32.mxu0 %vm16656_vm3, %v22679_v26  ;;  %v13537_v33 = vld [vmem:[%s22581_s6 + $0x138] sm:$0x3] }
 0xbba   :  { %16093 = vmatprep.subr.bf16.mxu0 %v22632_v34  ;;  %v16146_v37 = vpack.c.bf16 %v13537_v33, %v13536_v57 }
 0xbbc   :  { %15673 = vmatmul.mubr.msk.f32.vlgmr.msra.gmra.mrb[124].mxu0 %vm3258_vm12, %v10998_v25 }
 0xbbd   :  { %16096 = vmatpush3.bf16.msk.msra.mxu0 %vm18721_vm10, %v16094_v63  ;;  %15679 = vmatprep.mubr.msk.f32.mxu0 %vm16656_vm3, %v22679_v26  ;;  %v13541_v63 = vld [vmem:[%s22581_s6 + $0x148] sm:$0x3] }
 0xbbe   :  { %16097 = vmatprep.subr.bf16.mxu0 %v22632_v34  ;;  %v16150_v25 = vpack.c.bf16 %v13541_v63, %v13540_v20 }
 0xbc0   :  { %15680 = vmatmul.mubr.msk.f32.vlgmr.msra.gmra.mrb[126].mxu0 %vm3258_vm12, %v11077_v24 }
 0xbc1   :  { %16100 = vmatpush3.bf16.msk.msra.mxu0 %vm18721_vm10, %v16098_v55  ;;  %15686 = vmatprep.mubr.msk.f32.mxu0 %vm16656_vm3, %v22679_v26  ;;  %v13545_v55 = vld [vmem:[%s22581_s6 + $0x158] sm:$0x3] }
 0xbc2   :  { %16101 = vmatprep.subr.bf16.mxu0 %v22632_v34  ;;  %v16154_v24 = vpack.c.bf16 %v13545_v55, %v13544_v54 }
 0xbc4   :  { %15687 = vmatmul.mubr.msk.f32.vlgmr.msra.gmra.mrb[128].mxu0 %vm3258_vm12, %v11156_v23  ;;  %v12262_v23 = vrot.slane %v10601_v43, 5 }
 0xbc5   :  { %16104 = vmatpush3.bf16.msk.msra.mxu0 %vm18721_vm10, %v16102_v59  ;;  %15693 = vmatprep.mubr.msk.f32.mxu0 %vm16656_vm3, %v22679_v26  ;;  %v13549_v59 = vld [vmem:[%s22581_s6 + $0x168] sm:$0x3] }
 0xbc6   :  { %16105 = vmatprep.subr.bf16.mxu0 %v22632_v34  ;;  %v16158_v30 = vpack.c.bf16 %v13549_v59, %v13548_v58 }
 0xbc8   :  { %15694 = vmatmul.mubr.msk.f32.vlgmr.msra.gmra.mrb[130].mxu0 %vm3258_vm12, %v10600_v36  ;;  %v12341_v36 = vrot.slane %v10601_v43, 6 }
 0xbc9   :  { %16108 = vmatpush3.bf16.msk.msra.mxu0 %vm18721_vm10, %v16106_v31  ;;  %15700 = vmatprep.mubr.msk.f32.mxu0 %vm16656_vm3, %v22679_v26  ;;  %v16162_v31 = vpack.c.bf16 %v13553_v8, %v13552_v5 }
 0xbca   :  { %16109 = vmatprep.subr.bf16.mxu0 %v22632_v34 }
 0xbcc   :  { %15701 = vmatmul.mubr.msk.f32.vlgmr.msra.gmra.mrb[132].mxu0 %vm3258_vm12, %v11314_v38  ;;  %v10598_v38 = vadd.f32 %v22227_v53, %v22253_v61 }
 0xbcd   :  { %16112 = vmatpush3.bf16.msk.msra.mxu0 %vm18721_vm10, %v16110_v48  ;;  %15707 = vmatprep.mubr.msk.f32.mxu0 %vm16656_vm3, %v22679_v26  ;;  %v16166_v48 = vpack.c.bf16 %v13557_v45, %v13556_v51 }
 0xbce   :  { %16113 = vmatprep.subr.bf16.mxu0 %v22632_v34  ;;  %v10602_v47 = vmax.f32 %v10598_v38, 0.0 }
 0xbd0   :  { %15708 = vmatmul.mubr.msk.f32.vlgmr.msra.gmra.mrb[134].mxu0 %vm3258_vm12, %v11393_v27 }
 0xbd1   :  { %16116 = vmatpush3.bf16.msk.msra.mxu0 %vm18721_vm10, %v16114_v29  ;;  %15714 = vmatprep.mubr.msk.f32.mxu0 %vm16656_vm3, %v22679_v26 }
 0xbd2   :  { %16117 = vmatprep.subr.bf16.mxu0 %v22632_v34 }
 0xbd4   :  { %15715 = vmatmul.mubr.msk.f32.vlgmr.msra.gmra.mrb[136].mxu0 %vm3258_vm12, %v11472_v42 }
 0xbd5   :  { %16120 = vmatpush3.bf16.msk.msra.mxu0 %vm18721_vm10, %v16118_v21  ;;  %15721 = vmatprep.mubr.msk.f32.mxu0 %vm16656_vm3, %v22679_v26 }
 0xbd6   :  { %16121 = vmatprep.subr.bf16.mxu0 %v22632_v34 }
 0xbd8   :  { %15722 = vmatmul.mubr.msk.f32.vlgmr.msra.gmra.mrb[138].mxu0 %vm3258_vm12, %v11551_v44 }
 0xbd9   :  { %16124 = vmatpush3.bf16.msk.msra.mxu0 %vm18721_vm10, %v16122_v50  ;;  %15728 = vmatprep.mubr.msk.f32.mxu0 %vm16656_vm3, %v22679_v26 }
 0xbda   :  { %16125 = vmatprep.subr.bf16.mxu0 %v22632_v34 }
 0xbdc   :  { %15729 = vmatmul.mubr.msk.f32.vlgmr.msra.gmra.mrb[140].mxu0 %vm3258_vm12, %v11630_v49 }
 0xbdd   :  { %16128 = vmatpush3.bf16.msk.msra.mxu0 %vm18721_vm10, %v16126_v28  ;;  %15735 = vmatprep.mubr.msk.f32.mxu0 %vm16656_vm3, %v22679_v26 }
 0xbde   :  { %16129 = vmatprep.subr.bf16.mxu0 %v22632_v34 }
 0xbe0   :  { %15736 = vmatmul.mubr.msk.f32.vlgmr.msra.gmra.mrb[142].mxu0 %vm3258_vm12, %v11709_v1 }
 0xbe1   :  { %16132 = vmatpush3.bf16.msk.msra.mxu0 %vm18721_vm10, %v16130_v3  ;;  %15742 = vmatprep.mubr.msk.f32.mxu0 %vm16656_vm3, %v22679_v26 }
 0xbe2   :  { %16133 = vmatprep.subr.bf16.mxu0 %v22632_v34 }
 0xbe4   :  { %15743 = vmatmul.mubr.msk.f32.vlgmr.msra.gmra.mrb[144].mxu0 %vm3258_vm12, %v11788_v39 }
 0xbe5   :  { %16136 = vmatpush3.bf16.msk.msra.mxu0 %vm18721_vm10, %v16134_v2  ;;  %15749 = vmatprep.mubr.msk.f32.mxu0 %vm16656_vm3, %v22679_v26 }
 0xbe6   :  { %16137 = vmatprep.subr.bf16.mxu0 %v22632_v34 }
 0xbe8   :  { %15750 = vmatmul.mubr.msk.f32.vlgmr.msra.gmra.mrb[146].mxu0 %vm3258_vm12, %v10601_v43 }
 0xbe9   :  { %16140 = vmatpush3.bf16.msk.msra.mxu0 %vm18721_vm10, %v16138_v40  ;;  %15756 = vmatprep.mubr.msk.f32.mxu0 %vm16656_vm3, %v22679_v26 }
 0xbea   :  { %16141 = vmatprep.subr.bf16.mxu0 %v22632_v34 }
 0xbec   :  { %15757 = vmatmul.mubr.msk.f32.vlgmr.msra.gmra.mrb[148].mxu0 %vm3258_vm12, %v11946_v41 }
 0xbed   :  { %16144 = vmatpush3.bf16.msk.msra.mxu0 %vm18721_vm10, %v16142_v4  ;;  %15763 = vmatprep.mubr.msk.f32.mxu0 %vm16656_vm3, %v22679_v26 }
 0xbee   :  { %16145 = vmatprep.subr.bf16.mxu0 %v22632_v34 }
 0xbf0   :  { %15764 = vmatmul.mubr.msk.f32.vlgmr.msra.gmra.mrb[150].mxu0 %vm3258_vm12, %v12025_v13 }
 0xbf1   :  { %16148 = vmatpush3.bf16.msk.msra.mxu0 %vm18721_vm10, %v16146_v37  ;;  %15770 = vmatprep.mubr.msk.f32.mxu0 %vm16656_vm3, %v22679_v26 }
 0xbf2   :  { %16149 = vmatprep.subr.bf16.mxu0 %v22632_v34 }
 0xbf4   :  { %15771 = vmatmul.mubr.msk.f32.vlgmr.msra.gmra.mrb[152].mxu0 %vm3258_vm12, %v12104_v15 }
 0xbf5   :  { %16152 = vmatpush3.bf16.msk.msra.mxu0 %vm18721_vm10, %v16150_v25  ;;  %15777 = vmatprep.mubr.msk.f32.mxu0 %vm16656_vm3, %v22679_v26 }
 0xbf6   :  { %16153 = vmatprep.subr.bf16.mxu0 %v22632_v34 }
 0xbf8   :  { %15778 = vmatmul.mubr.msk.f32.vlgmr.msra.gmra.mrb[154].mxu0 %vm3258_vm12, %v12183_v22 }
 0xbf9   :  { %16156 = vmatpush3.bf16.msk.msra.mxu0 %vm18721_vm10, %v16154_v24  ;;  %15784 = vmatprep.mubr.msk.f32.mxu0 %vm16656_vm3, %v22679_v26 }
 0xbfa   :  { %16157 = vmatprep.subr.bf16.mxu0 %v22632_v34 }
 0xbfc   :  { %15785 = vmatmul.mubr.msk.f32.vlgmr.msra.gmra.mrb[156].mxu0 %vm3258_vm12, %v12262_v23 }
 0xbfd   :  { %16160 = vmatpush3.bf16.msk.msra.mxu0 %vm18721_vm10, %v16158_v30  ;;  %15791 = vmatprep.mubr.msk.f32.mxu0 %vm16656_vm3, %v22679_v26 }
 0xbfe   :  { %16161 = vmatprep.subr.bf16.mxu0 %v22632_v34 }
 0xc00   :  { %15792 = vmatmul.mubr.msk.f32.vlgmr.msra.gmra.mrb[158].mxu0 %vm3258_vm12, %v12341_v36 }
 0xc01   :  { %16164 = vmatpush3.bf16.msk.msra.mxu0 %vm18721_vm10, %v16162_v31  ;;  %15798 = vmatprep.mubr.msk.f32.mxu0 %vm16656_vm3, %v22679_v26 }
 0xc02   :  { %16165 = vmatprep.subr.bf16.mxu0 %v22632_v34 }
 0xc04   :  { %15799 = vmatmul.mubr.msk.f32.vlgmr.msra.gmra.mrb[160].mxu0 %vm3258_vm12, %v12420_v16 }
 0xc05   :  { %16168 = vmatpush3.bf16.msk.msra.mxu0 %vm18721_vm10, %v16166_v48  ;;  %15805 = vmatprep.mubr.msk.f32.mxu0 %vm16656_vm3, %v22679_v26 }
 0xc06   :  { %16169 = vmatprep.subr.bf16.mxu0 %v22632_v34 }
 0xc08   :  { %15806 = vmatmul.mubr.msk.f32.vlgmr.msra.gmra.mrb[162].mxu0 %vm3258_vm12, %v10602_v47 }
 0xc09   :  { %16171 = vmatpush3.bf16.msra.mxu0 %v20566_v11  ;;  %15816 = vmatprep.mubr.msk.f32.mxu0 %vm16656_vm3, %v22679_v26 }
 0xc0a   :  { %16172 = vmatprep.subr.bf16.mxu0 %v22632_v34 }
 0xc0d   :  { %16174 = vmatpush3.bf16.msra.mxu0 %v20576_v14 }
 0xc7b   :  { %v10680_v53 = vpop.f32.mrb[114].mxu0 }
 0xc7c   :  { %v15639_v60 = vpop.f32.mrb[115].mxu0 }
 0xc7f   :  { %v10755_v61 = vpop.f32.mrb[116].mxu0 }
 0xc80   :  { %v10756_v29 = vadd.f32 %v10755_v61, %v10680_v53  ;;  %v15646_v27 = vpop.f32.mrb[117].mxu0 }
 0xc83   :  { %v10833_v17 = vpop.f32.mrb[118].mxu0 }
 0xc84   :  { %v10837_v19 = vadd.f32 %v10833_v17, %v10756_v29  ;;  %v15653_v21 = vpop.f32.mrb[119].mxu0 }
 0xc87   :  { %v10912_v42 = vpop.f32.mrb[120].mxu0 }
 0xc88   :  { %v10916_v62 = vadd.f32 %v10912_v42, %v10837_v19  ;;  %v15660_v7 = vpop.f32.mrb[121].mxu0 }
 0xc89   :  { %v16628_v7 = vld [vmem:[%s22582_s7] sm:$0x1]  ;;  %s16658_s7 = smov [#allocation2]  }
 0xc8a   :  { %s12671_s23 = sshll.u32 %s16658_s7, 4  ;;  %s12672_s23 = int_to_ptr.vmem [resolvable:$true] %s12671_s23 }
 0xc8b   :  { %v10991_v50 = vpop.f32.mrb[122].mxu0  ;;  %p16635_p1 = scmp.lt.s32.totalorder %s12672_s23, %s12672_s23 }
 0xc8c   :  { %v10995_v11 = vadd.f32 %v10991_v50, %v10916_v62  ;;  %v15667_v44 = vpop.f32.mrb[123].mxu0 }
 0xc8f   :  { %v11070_v56 = vpop.f32.mrb[124].mxu0 }
 0xc90   :  { %v11074_v26 = vadd.f32 %v11070_v56, %v10995_v11  ;;  %v15674_v9 = vpop.f32.mrb[125].mxu0  ;;  %v16629_v56 = vld [vmem:[%s22584_s9] sm:$0x1]  ;;  %s16630_s9 = scalar_lea.vmem %s12672_s23, 32 }
 0xc91   :  { %p16631_p0 = scmp.ne.s32.totalorder %s12672_s23, %s16630_s9  ;;  %p16636_p2 = scmp.lt.s32.totalorder %s16630_s9, %s16630_s9 }
 0xc93   :  { %v11149_v34 = vpop.f32.mrb[126].mxu0  ;;  %p16637_p3 = por %p16636_p2, %p16635_p1 }
 0xc94   :  { %v11153_v28 = vadd.f32 %v11149_v34, %v11074_v26  ;;  %v15681_v14 = vpop.f32.mrb[127].mxu0 }
 0xc95   :  { %p16638_p4 = pnand %p16637_p3, %p16631_p0 }
 0xc97   :  { %v11228_v49 = vpop.f32.mrb[128].mxu0 }
 0xc98   :  { %v11232_v6 = vadd.f32 %v11228_v49, %v11153_v28  ;;  %v15688_v0 = vpop.f32.mrb[129].mxu0 }
 0xc9b   :  { %v11307_v3 = vpop.f32.mrb[130].mxu0 }
 0xc9c   :  { %v11311_v1 = vadd.f32 %v11307_v3, %v11232_v6  ;;  %v15695_v46 = vpop.f32.mrb[131].mxu0 }
 0xc9f   :  { %v11386_v35 = vpop.f32.mrb[132].mxu0 }
 0xca0   :  { %v11390_v2 = vadd.f32 %v11386_v35, %v11311_v1  ;;  %v15702_v52 = vpop.f32.mrb[133].mxu0 }
 0xca3   :  { %v11465_v39 = vpop.f32.mrb[134].mxu0 }
 0xca4   :  { %v11469_v12 = vadd.f32 %v11465_v39, %v11390_v2  ;;  %v15709_v32 = vpop.f32.mrb[135].mxu0 }
 0xca7   :  { %v11544_v40 = vpop.f32.mrb[136].mxu0 }
 0xca8   :  { %v11548_v43 = vadd.f32 %v11544_v40, %v11469_v12  ;;  %v15716_v10 = vpop.f32.mrb[137].mxu0 }
 0xcab   :  { %v11623_v18 = vpop.f32.mrb[138].mxu0 }
 0xcac   :  { %v11627_v4 = vadd.f32 %v11623_v18, %v11548_v43  ;;  %v15723_v41 = vpop.f32.mrb[139].mxu0 }
 0xcaf   :  { %v11702_v57 = vpop.f32.mrb[140].mxu0 }
 0xcb0   :  { %v11706_v33 = vadd.f32 %v11702_v57, %v11627_v4  ;;  %v15730_v37 = vpop.f32.mrb[141].mxu0 }
 0xcb3   :  { %v11781_v13 = vpop.f32.mrb[142].mxu0 }
 0xcb4   :  { %v11785_v20 = vadd.f32 %v11781_v13, %v11706_v33  ;;  %v15737_v63 = vpop.f32.mrb[143].mxu0 }
 0xcb7   :  { %v11860_v25 = vpop.f32.mrb[144].mxu0 }
 0xcb8   :  { %v11864_v15 = vadd.f32 %v11860_v25, %v11785_v20  ;;  %v15744_v54 = vpop.f32.mrb[145].mxu0 }
 0xcbb   :  { %v11939_v55 = vpop.f32.mrb[146].mxu0 }
 0xcbc   :  { %v11943_v24 = vadd.f32 %v11939_v55, %v11864_v15  ;;  %v15751_v22 = vpop.f32.mrb[147].mxu0 }
 0xcbf   :  { %v12018_v58 = vpop.f32.mrb[148].mxu0 }
 0xcc0   :  { %v12022_v59 = vadd.f32 %v12018_v58, %v11943_v24  ;;  %v15758_v30 = vpop.f32.mrb[149].mxu0 }
 0xcc3   :  { %v12097_v23 = vpop.f32.mrb[150].mxu0 }
 0xcc4   :  { %v12101_v5 = vadd.f32 %v12097_v23, %v12022_v59  ;;  %v15765_v8 = vpop.f32.mrb[151].mxu0 }
 0xcc7   :  { %v12176_v31 = vpop.f32.mrb[152].mxu0 }
 0xcc8   :  { %v12180_v36 = vadd.f32 %v12176_v31, %v12101_v5  ;;  %v15772_v51 = vpop.f32.mrb[153].mxu0 }
 0xccb   :  { %v12255_v45 = vpop.f32.mrb[154].mxu0 }
 0xccc   :  { %v12259_v48 = vadd.f32 %v12255_v45, %v12180_v36  ;;  %v15779_v38 = vpop.f32.mrb[155].mxu0 }
 0xccf   :  { %v12334_v16 = vpop.f32.mrb[156].mxu0 }
 0xcd0   :  { %v12338_v47 = vadd.f32 %v12334_v16, %v12259_v48  ;;  %v15786_v53 = vpop.f32.mrb[157].mxu0 }
 0xcd3   :  { %v12413_v60 = vpop.f32.mrb[158].mxu0 }
 0xcd4   :  { %v12417_v61 = vadd.f32 %v12413_v60, %v12338_v47  ;;  %v15793_v29 = vpop.f32.mrb[159].mxu0 }
 0xcd7   :  { %v12492_v27 = vpop.f32.mrb[160].mxu0 }
 0xcd8   :  { %v12496_v17 = vadd.f32 %v12492_v27, %v12417_v61  ;;  %v15800_v19 = vpop.f32.mrb[161].mxu0 }
 0xcdb   :  { %v12571_v21 = vpop.f32.mrb[162].mxu0 }
 0xcdc   :  { %v12575_v42 = vadd.f32 %v12571_v21, %v12496_v17  ;;  %v15807_v62 = vpop.f32.mrb[163].mxu0 }
 0xcde   :  { %v12576_v50 = vadd.f32 %v16628_v7, %v12575_v42 }
 0xce0   :  { %v12577_v11 = vmax.f32 %v12576_v50, 0.0 }
 0xce2   :  { %15817 = vmatmul.mubr.msk.f32.vlgmr.msra.gmra.mrb[164].mxu0 %vm7046_vm13, %v12577_v11 }
 0xdb5   :  { %v12647_v44 = vpop.f32.mrb[164].mxu0 }
 0xdb6   :  { %v12648_v26 = vadd.f32 %v16629_v56, %v12647_v44  ;;  %v15818_v9 = vpop.f32.mrb[165].mxu0 }
 0xdb8   :  { %v12651_v34 = vsel %vm7120_vm14, %v12648_v26, -inf }
 0xdb9   :  { %12652 = vmax.xlane.f32.xlu0 %v12651_v34 }
 0xe46   :  { %v12653_v28 = vpop.xlane.xlu0 %12652 }
 0xe47   :  { %v12654_v14 = vsub.f32 %v12648_v26, %v12653_v28 }
 0xe49   :  { %v12655_v49 = vmul.f32 1.442695, %v12654_v14 }
 0xe4b   :  { %16622 = vpow2.f32 %v12655_v49 }
 0xe55   :  { %v16623_v6 = vpop.eup %16622 }
 0xe56   :  { %v12657_v0 = vsel %vm7120_vm14, %v16623_v6, 0.0 }
 0xe57   :  { %12658 = vadd.xlane.f32.xlu1 %v12657_v0 }
 0xee4   :  { %v12659_v3 = vpop.xlane.xlu1 %12658 }
 0xee5   :  { %16624 = vlog2.f32 %v12659_v3 }
 0xeef   :  { %v16625_v1 = vpop.eup %16624 }
 0xef0   :  { %v12661_v46 = vmul.f32 0.6931472, %v16625_v1 }
 0xef2   :  { %v12662_v35 = vadd.f32 %v12661_v46, %v12653_v28 }
 0xef4   :  { %v12663_v2 = vsub.f32 %v12648_v26, %v12662_v35 }
 0xef6   :  { %12664 = vst.msk [vmem:[#allocation2 + $0x1] sm:$0x1] %vm7120_vm14, %v12663_v2 }
 0xef7   :  { %16641 = shalt.err (!%p16638_p4)
}
 0xef8   :  { %s16642_s26 = scalar_lea.hbm %s22585_s10, 32 }
 0xef9   :  { %p16643_p5 = scmp.ne.s32.totalorder %s22585_s10, %s16642_s26  ;;  %p16646_p6 = scmp.lt.u32.totalorder %s16642_s26, %s22585_s10 }
 0xefb   :  { %p16648_p7 = pnand %p16646_p6, %p16643_p5 }
 0xefd   :  { %16651 = shalt.err (!%p16648_p7)
}
 0xefe   :  { %12674 = dma.vmem_to_hbm [thread:$0]  %s12672_s23, 32, %s22585_s10, [#allocation3]  }
 0xeff   :  { %16652 = dma.done.wait [#allocation3], 32  }
 0xf00   :  { %16653 = vsyncadd [#allocation3], 4294967264 }
 0xf01   :  { %12678 = vsyncpa [#allocation3], 1 }

</bundles_post_ra>
